<compile_context>
chip_gen: v6e
topology: v6e:2x2x1
jax: 0.10.0
libtpu: 0.0.40
codegen_flags: <defaults>
</compile_context>

<pallas_src>
import jax
import jax.numpy as jnp
from jax.experimental import pallas as pl
from jax.experimental.pallas import tpu as pltpu

HIDDEN = 768
EPS = 1e-12  # matches the module: LayerNorm((768,), eps=1e-12)

# Conservative scoped-VMEM budget used for tile sizing (v5e default is 16 MiB;
# v6e/v7x have >= 32 MiB, so this is safe everywhere).
_VMEM_BUDGET_BYTES = 16 * 1024 * 1024


def add_layernorm_kernel(a_ref, b_ref, gamma_ref, beta_ref, o_ref):
    # a_ref, b_ref, o_ref: (ROW_TILE, HIDDEN); gamma_ref, beta_ref: (1, HIDDEN)
    a = a_ref[...]
    b = b_ref[...]
    if a.dtype != jnp.float32:
        a = a.astype(jnp.float32)
    if b.dtype != jnp.float32:
        b = b.astype(jnp.float32)
    x = a + b

    # LayerNorm over the hidden axis, f32 accumulation (biased variance, like
    # torch).  Two-pass form kept for numerical robustness (see header note).
    mean = jnp.mean(x, axis=-1, keepdims=True)
    centered = x - mean
    var = jnp.mean(centered * centered, axis=-1, keepdims=True)
    inv = jax.lax.rsqrt(var + EPS)
    normed = centered * inv

    # Load affine params once; implicit single row-broadcast in the final ops.
    gamma = gamma_ref[...]
    beta = beta_ref[...]
    if gamma.dtype != jnp.float32:
        gamma = gamma.astype(jnp.float32)
    if beta.dtype != jnp.float32:
        beta = beta.astype(jnp.float32)

    o_ref[...] = (normed * gamma + beta).astype(o_ref.dtype)


def _num_tensorcores_per_chip() -> int:
    """Best-effort detection: v7x has 2 TensorCores/chip, v5e/v6e have 1."""
    try:
        kind = jax.devices()[0].device_kind.lower()
        if "v7" in kind:
            return 2
    except Exception:
        pass
    return 1


def _pick_row_tile(rows: int, num_cores: int) -> int:
    """Largest VMEM-fitting row tile; prefer step counts divisible by num_cores.

    Constraints: row_tile must be a multiple of 8 (sublane tiling) or equal to
    `rows` (full-extent block), and must evenly divide `rows`.
    """
    # Per grid step, BlockSpec double-buffers each of the 3 row-tiled operands
    # (a, b, out); gamma/beta tiles are negligible (1 x HIDDEN each).
    bytes_per_row = 3 * 2 * HIDDEN * 4
    max_tile = max(8, (_VMEM_BUDGET_BYTES // bytes_per_row) // 8 * 8)

    candidates = []
    if rows <= max_tile:
        candidates.append(rows)  # single full-extent block (always layout-legal)
    t = 8
    while t <= min(rows, max_tile):
        if rows % t == 0:
            candidates.append(t)
        t += 8
    if not candidates:
        return rows  # last resort: whole thing as one block

    best_key = None
    best_tile = rows
    for t in candidates:
        n = rows // t
        fits_cores = (n % num_cores == 0)
        # Maximize: (splits evenly across cores, fewest grid steps, biggest tile)
        key = (fits_cores, -n, t)
        if best_key is None or key > best_key:
            best_key = key
            best_tile = t
    return best_tile


def add_layernorm(x214, x244, gamma, beta):
    assert x214.shape == x244.shape
    orig_shape = x214.shape
    hidden = orig_shape[-1]
    assert hidden == HIDDEN

    a2 = x214.reshape(-1, hidden)
    b2 = x244.reshape(-1, hidden)
    rows = a2.shape[0]

    num_cores = _num_tensorcores_per_chip()
    row_tile = _pick_row_tile(rows, num_cores)
    assert rows % row_tile == 0
    grid = (rows // row_tile,)

    gamma2 = gamma.reshape(1, hidden)
    beta2 = beta.reshape(1, hidden)

    itemsize = jnp.dtype(x214.dtype).itemsize
    param_bytes = 2 * hidden * jnp.dtype(gamma.dtype).itemsize
    cost = pl.CostEstimate(
        flops=8 * rows * hidden,            # add, sub, mul, fma-ish per element
        transcendentals=rows,               # one rsqrt per row
        bytes_accessed=3 * rows * hidden * itemsize + param_bytes,
    )

    out = pl.pallas_call(
        add_layernorm_kernel,
        out_shape=jax.ShapeDtypeStruct((rows, hidden), x214.dtype),
        grid_spec=pltpu.PrefetchScalarGridSpec(
            num_scalar_prefetch=0,
            grid=grid,
            in_specs=[
                pl.BlockSpec((row_tile, hidden), lambda i: (i, 0)),
                pl.BlockSpec((row_tile, hidden), lambda i: (i, 0)),
                pl.BlockSpec((1, hidden), lambda i: (0, 0)),
                pl.BlockSpec((1, hidden), lambda i: (0, 0)),
            ],
            out_specs=pl.BlockSpec((row_tile, hidden), lambda i: (i, 0)),
        ),
        compiler_params=pltpu.CompilerParams(
            dimension_semantics=("parallel",),
        ),
        cost_estimate=cost,
    )(a2, b2, gamma2, beta2)
    return out.reshape(orig_shape)


if __name__ == "__main__":
    key = jax.random.PRNGKey(0)
    k1, k2 = jax.random.split(key)
    # Shapes implied by the module's forward: [1, 384, 768]
    x214 = jax.random.normal(k1, (1, 384, HIDDEN), dtype=jnp.float32)
    x244 = jax.random.normal(k2, (1, 384, HIDDEN), dtype=jnp.float32)

    # Deterministic LayerNorm parameters (PyTorch default init: weight=1, bias=0)
    gamma = jnp.ones((HIDDEN,), dtype=jnp.float32)
    beta = jnp.zeros((HIDDEN,), dtype=jnp.float32)

    out = jax.block_until_ready(add_layernorm(x214, x244, gamma, beta))

    # Sanity check against pure-JAX reference (f32).
    x = x214 + x244
    mean = jnp.mean(x, axis=-1, keepdims=True)
    var = jnp.mean((x - mean) ** 2, axis=-1, keepdims=True)
    ref = (x - mean) / jnp.sqrt(var + EPS) * gamma + beta
    assert jnp.allclose(out, ref, atol=1e-4, rtol=1e-4), "f32 mismatch vs reference"

    # bf16 I/O path: halves HBM traffic for this memory-bound kernel; compute
    # is still promoted to f32 inside the kernel.
    x214_bf = x214.astype(jnp.bfloat16)
    x244_bf = x244.astype(jnp.bfloat16)
    out_bf = jax.block_until_ready(add_layernorm(x214_bf, x244_bf, gamma, beta))
    assert out_bf.dtype == jnp.bfloat16
    assert jnp.allclose(out_bf.astype(jnp.float32), ref, atol=5e-2, rtol=5e-2), (
        "bf16 mismatch vs reference"
    )

    print("KERNEL_OK")
</pallas_src>

<mosaic_0001>
module attributes {stable_mosaic.version = 11 : i64} {
  func.func @add_layernorm_kernel(%arg0: i32, %arg1: memref<384x768xf32, #tpu.memory_space<vmem>>, %arg2: memref<384x768xf32, #tpu.memory_space<vmem>>, %arg3: memref<1x768xf32, #tpu.memory_space<vmem>>, %arg4: memref<1x768xf32, #tpu.memory_space<vmem>>, %arg5: memref<384x768xf32, #tpu.memory_space<vmem>>) attributes {dimension_semantics = [#tpu.dimension_semantics<parallel>], iteration_bounds = array<i64: 1>, scalar_prefetch = 0 : i64, scratch_operands = 0 : i64, tpu.core_type = #tpu.core_type<tc>, window_params = [{transform_indices = @transform_0, window_bounds = array<i64: 384, 768>}, {transform_indices = @transform_1, window_bounds = array<i64: 384, 768>}, {pipeline_mode = #tpu.pipeline_mode<synchronous>, transform_indices = @transform_2, window_bounds = array<i64: 1, 768>}, {pipeline_mode = #tpu.pipeline_mode<synchronous>, transform_indices = @transform_3, window_bounds = array<i64: 1, 768>}, {transform_indices = @transform_4, window_bounds = array<i64: 384, 768>}]} {
    %c0 = arith.constant 0 : index
    %c0_0 = arith.constant 0 : index
    %0 = vector.load %arg1[%c0, %c0_0] : memref<384x768xf32, #tpu.memory_space<vmem>>, vector<384x768xf32>
    %c0_1 = arith.constant 0 : index
    %c0_2 = arith.constant 0 : index
    %1 = vector.load %arg2[%c0_1, %c0_2] : memref<384x768xf32, #tpu.memory_space<vmem>>, vector<384x768xf32>
    %2 = arith.addf %0, %1 : vector<384x768xf32>
    %cst = arith.constant dense<0.000000e+00> : vector<384xf32>
    %3 = vector.multi_reduction <add>, %2, %cst [1] : vector<384x768xf32> to vector<384xf32>
    %4 = vector.shape_cast %3 : vector<384xf32> to vector<384x1xf32>
    %cst_3 = arith.constant 7.680000e+02 : f32
    %5 = vector.broadcast %cst_3 : f32 to vector<384x1xf32>
    %6 = arith.divf %4, %5 : vector<384x1xf32>
    %7 = vector.broadcast %6 : vector<384x1xf32> to vector<384x768xf32>
    %8 = arith.subf %2, %7 : vector<384x768xf32>
    %9 = arith.mulf %8, %8 : vector<384x768xf32>
    %cst_4 = arith.constant dense<0.000000e+00> : vector<384xf32>
    %10 = vector.multi_reduction <add>, %9, %cst_4 [1] : vector<384x768xf32> to vector<384xf32>
    %11 = vector.shape_cast %10 : vector<384xf32> to vector<384x1xf32>
    %cst_5 = arith.constant 7.680000e+02 : f32
    %12 = vector.broadcast %cst_5 : f32 to vector<384x1xf32>
    %13 = arith.divf %11, %12 : vector<384x1xf32>
    %cst_6 = arith.constant 9.99999996E-13 : f32
    %14 = vector.broadcast %cst_6 : f32 to vector<384x1xf32>
    %15 = arith.addf %13, %14 : vector<384x1xf32>
    %16 = math.rsqrt %15 : vector<384x1xf32>
    %17 = vector.broadcast %16 : vector<384x1xf32> to vector<384x768xf32>
    %18 = arith.mulf %8, %17 : vector<384x768xf32>
    %c0_7 = arith.constant 0 : index
    %c0_8 = arith.constant 0 : index
    %19 = vector.load %arg3[%c0_7, %c0_8] : memref<1x768xf32, #tpu.memory_space<vmem>>, vector<1x768xf32>
    %c0_9 = arith.constant 0 : index
    %c0_10 = arith.constant 0 : index
    %20 = vector.load %arg4[%c0_9, %c0_10] : memref<1x768xf32, #tpu.memory_space<vmem>>, vector<1x768xf32>
    %21 = vector.broadcast %19 : vector<1x768xf32> to vector<384x768xf32>
    %22 = arith.mulf %18, %21 : vector<384x768xf32>
    %23 = vector.broadcast %20 : vector<1x768xf32> to vector<384x768xf32>
    %24 = arith.addf %22, %23 : vector<384x768xf32>
    %c0_11 = arith.constant 0 : index
    %c0_12 = arith.constant 0 : index
    %25 = vector.load %arg5[%c0_11, %c0_12] : memref<384x768xf32, #tpu.memory_space<vmem>>, vector<384x768xf32>
    tpu.vector_store %arg5[%c0_11, %c0_12], %24 {strides = array<i32>} : memref<384x768xf32, #tpu.memory_space<vmem>>, vector<384x768xf32>,
    return
  }
  func.func @transform_0(%arg0: i32) -> (i32, i32) {
    %c0_i32 = arith.constant 0 : i32
    %c0_i32_0 = arith.constant 0 : i32
    return %arg0, %c0_i32 : i32, i32
  }
  func.func @transform_1(%arg0: i32) -> (i32, i32) {
    %c0_i32 = arith.constant 0 : i32
    %c0_i32_0 = arith.constant 0 : i32
    return %arg0, %c0_i32 : i32, i32
  }
  func.func @transform_2(%arg0: i32) -> (i32, i32) {
    %c0_i32 = arith.constant 0 : i32
    %c0_i32_0 = arith.constant 0 : i32
    %c0_i32_1 = arith.constant 0 : i32
    return %c0_i32, %c0_i32_0 : i32, i32
  }
  func.func @transform_3(%arg0: i32) -> (i32, i32) {
    %c0_i32 = arith.constant 0 : i32
    %c0_i32_0 = arith.constant 0 : i32
    %c0_i32_1 = arith.constant 0 : i32
    return %c0_i32, %c0_i32_0 : i32, i32
  }
  func.func @transform_4(%arg0: i32) -> (i32, i32) {
    %c0_i32 = arith.constant 0 : i32
    %c0_i32_0 = arith.constant 0 : i32
    return %arg0, %c0_i32 : i32, i32
  }
}

</mosaic_0001>

<bundles_post_ra>
// kernel: tpu_custom_call.1
= control target key start
LH: loop header
LB: loop body
LE: loop exit
PB: predicated region body
PF: predicated region fallthrough
CT: control target
= control target key end

     0   :  { %9 = vsyncpa [#allocation3], 0  ;;  %s7855_s0 = inlined_call_operand.hbm [shape: f32[384,768], index: 0, kind: input, shape index: {}]   ;;  %s7856_s1 = inlined_call_operand.hbm [shape: f32[384,768], index: 1, kind: input, shape index: {}]   ;;  %s7857_s2 = inlined_call_operand.hbm [shape: f32[1,768], index: 2, kind: input, shape index: {}]   ;;  %s7858_s3 = inlined_call_operand.hbm [shape: f32[1,768], index: 3, kind: input, shape index: {}]   ;;  %s7859_s4 = inlined_call_operand.hbm [shape: f32[384,768], index: 4, kind: output, shape index: {}]  }
   0x1   :  { %10 = vsyncpa [#allocation6], 0 }
   0x2   :  { %11 = vsyncpa [#allocation9], 0 }
   0x3   :  { %12 = vsyncpa [#allocation4], 0  ;;  %s3820_s15 = smov [#allocation5]   ;;  %s3821_s17 = smov [#allocation2]  }
   0x4   :  { %s30_s16 = sshll.u32 %s3820_s15, 4  ;;  %s18_s18 = sshll.u32 %s3821_s17, 4  ;;  %s31_s16 = int_to_ptr.vmem [resolvable:$true] %s30_s16  ;;  %s19_s18 = int_to_ptr.vmem [resolvable:$true] %s18_s18 }
   0x5   :  { %s3720_s19 = scalar_lea.vmem %s31_s16, 36864  ;;  %p3725_p1 = scmp.lt.s32.totalorder %s31_s16, %s31_s16 }
   0x6   :  { %p3721_p0 = scmp.ne.s32.totalorder %s31_s16, %s3720_s19  ;;  %p3726_p2 = scmp.lt.s32.totalorder %s3720_s19, %s3720_s19 }
   0x8   :  { %p3727_p3 = por %p3726_p2, %p3725_p1 }
   0xa   :  { %p3728_p4 = pnand %p3727_p3, %p3721_p0 }
   0xc   :  { %3731 = shalt.err (!%p3728_p4)
}
   0xd   :  { %s3822_s20 = smov 768   ;;  %s3823_s21 = smov 48  }
   0xe   :  { %36 = dma.hbm_to_vmem [thread:$0]  %s7856_s1, 36864, %s31_s16, [#allocation6], %s3822_s20, %s3822_s20, %s3823_s21  }
   0xf   :  { %s3740_s24 = scalar_lea.vmem %s19_s18, 36864  ;;  %p3745_p6 = scmp.lt.s32.totalorder %s19_s18, %s19_s18 }
  0x10   :  { %p3741_p5 = scmp.ne.s32.totalorder %s19_s18, %s3740_s24  ;;  %p3746_p7 = scmp.lt.s32.totalorder %s3740_s24, %s3740_s24 }
  0x12   :  { %p3747_p8 = por %p3746_p7, %p3745_p6 }
  0x14   :  { %p3748_p9 = pnand %p3747_p8, %p3741_p5 }
  0x16   :  { %3751 = shalt.err (!%p3748_p9)
}
  0x17   :  { %24 = dma.hbm_to_vmem [thread:$0]  %s7855_s0, 36864, %s19_s18, [#allocation3], %s3822_s20, %s3822_s20, %s3823_s21  }
  0x18   :  { %s3824_s27 = smov [#allocation7]   ;;  %s3825_s29 = smov [#allocation8]  }
  0x19   :  { %s43_s28 = sshll.u32 %s3824_s27, 4  ;;  %s53_s30 = sshll.u32 %s3825_s29, 4  ;;  %s44_s28 = int_to_ptr.vmem [resolvable:$true] %s43_s28  ;;  %s54_s30 = int_to_ptr.vmem [resolvable:$true] %s53_s30 }
  0x1a   :  { %s3760_s1 = scalar_lea.vmem %s44_s28, 96  ;;  %p3765_p11 = scmp.lt.s32.totalorder %s44_s28, %s44_s28 }
  0x1b   :  { %p3761_p10 = scmp.ne.s32.totalorder %s44_s28, %s3760_s1  ;;  %p3766_p12 = scmp.lt.s32.totalorder %s3760_s1, %s3760_s1 }
  0x1d   :  { %p3767_p13 = por %p3766_p12, %p3765_p11 }
  0x1f   :  { %p3768_p0 = pnand %p3767_p13, %p3761_p10 }
  0x21   :  { %3771 = shalt.err (!%p3768_p0)
}
  0x22   :  { %46 = dma.hbm_to_vmem [thread:$0]  %s7857_s2, 96, %s44_s28, [#allocation6]  }
  0x23   :  { %s3780_s7 = scalar_lea.vmem %s54_s30, 96  ;;  %p3785_p2 = scmp.lt.s32.totalorder %s54_s30, %s54_s30 }
  0x24   :  { %p3781_p1 = scmp.ne.s32.totalorder %s54_s30, %s3780_s7  ;;  %p3786_p3 = scmp.lt.s32.totalorder %s3780_s7, %s3780_s7 }
  0x26   :  { %p3787_p4 = por %p3786_p3, %p3785_p2 }
  0x28   :  { %p3788_p5 = pnand %p3787_p4, %p3781_p1 }
  0x2a   :  { %3791 = shalt.err (!%p3788_p5)
}
  0x2b   :  { %56 = dma.hbm_to_vmem [thread:$0]  %s7858_s3, 96, %s54_s30, [#allocation9]  }
  0x2c   :  { %3812 = dma.done.wait [#allocation3], 36864  }
  0x2d   :  { %3813 = vsyncadd [#allocation3], 4294930432 }
  0x2e   :  { %3814 = dma.done.wait [#allocation6], 36960  }
  0x2f   :  { %3815 = vsyncadd [#allocation6], 4294930336 }
  0x30   :  { %3816 = dma.done.wait [#allocation9], 96  }
  0x31   :  { %3817 = vsyncadd [#allocation9], 4294967200  ;;  %v81_v0 = vld [vmem:[#allocation2 + $0x60] sm:$0xff]  ;;  %v82_v1 = vld [vmem:[#allocation2 + $0x68] sm:$0xff]  ;;  %s3826_s2 = smov [#allocation10]  }
  0x32   :  { %v83_v2 = vld [vmem:[#allocation2 + $0x70] sm:$0xff]  ;;  %v84_v3 = vld [vmem:[#allocation2 + $0x78] sm:$0xff]  ;;  %v369_v4 = vld [vmem:[#allocation5 + $0x60] sm:$0xff]  ;;  %s3595_s3 = sshll.u32 %s3826_s2, 4  ;;  %s3596_s3 = int_to_ptr.vmem [resolvable:$true] %s3595_s3 }
  0x33   :  { %v370_v5 = vld [vmem:[#allocation5 + $0x68] sm:$0xff]  ;;  %v371_v6 = vld [vmem:[#allocation5 + $0x70] sm:$0xff]  ;;  %v85_v7 = vld [vmem:[#allocation2 + $0x80] sm:$0xff]  ;;  %v3870_v10 = vadd.f32 %v369_v4, %v81_v0  ;;  %s3792_s9 = scalar_lea.vmem %s3596_s3, 36864  ;;  %p3797_p7 = scmp.lt.s32.totalorder %s3596_s3, %s3596_s3 }
  0x34   :  { %v372_v8 = vld [vmem:[#allocation5 + $0x78] sm:$0xff]  ;;  %v373_v9 = vld [vmem:[#allocation5 + $0x80] sm:$0xff]  ;;  %v3872_v11 = vadd.f32 %v370_v5, %v82_v1  ;;  %v3874_v12 = vadd.f32 %v371_v6, %v83_v2  ;;  %v86_v13 = vld [vmem:[#allocation2 + $0x88] sm:$0xff]  ;;  %p3793_p6 = scmp.ne.s32.totalorder %s3596_s3, %s3792_s9  ;;  %p3798_p8 = scmp.lt.s32.totalorder %s3792_s9, %s3792_s9 }
  0x35   :  { %v69_v14 = vld [vmem:[#allocation2] sm:$0xff]  ;;  %v70_v15 = vld [vmem:[#allocation2 + $0x8] sm:$0xff]  ;;  %v71_v16 = vld [vmem:[#allocation2 + $0x10] sm:$0xff]  ;;  %v3876_v18 = vadd.f32 %v372_v8, %v84_v3  ;;  %v3880_v22 = vadd.f32 %v373_v9, %v85_v7 }
  0x36   :  { %v374_v17 = vld [vmem:[#allocation5 + $0x88] sm:$0xff]  ;;  %v947_v19 = vadd.f32 %v3872_v11, %v3870_v10  ;;  %v72_v20 = vld [vmem:[#allocation2 + $0x18] sm:$0xff]  ;;  %v73_v21 = vld [vmem:[#allocation2 + $0x20] sm:$0xff]  ;;  %p3799_p9 = por %p3798_p8, %p3797_p7 }
  0x37   :  { %v357_v23 = vld [vmem:[#allocation5] sm:$0xff]  ;;  %v358_v24 = vld [vmem:[#allocation5 + $0x8] sm:$0xff]  ;;  %v359_v25 = vld [vmem:[#allocation5 + $0x10] sm:$0xff]  ;;  %v3889_v36 = vadd.f32 %v374_v17, %v86_v13 }
  0x38   :  { %v948_v26 = vadd.f32 %v947_v19, %v3874_v12  ;;  %v74_v27 = vld [vmem:[#allocation2 + $0x28] sm:$0xff]  ;;  %v360_v28 = vld [vmem:[#allocation5 + $0x18] sm:$0xff]  ;;  %v361_v29 = vld [vmem:[#allocation5 + $0x20] sm:$0xff]  ;;  %v3883_v30 = vadd.f32 %v357_v23, %v69_v14  ;;  %v3885_v31 = vadd.f32 %v358_v24, %v70_v15  ;;  %v3887_v32 = vadd.f32 %v359_v25, %v71_v16  ;;  %p3800_p10 = pnand %p3799_p9, %p3793_p6 }
  0x39   :  { %v362_v33 = vld [vmem:[#allocation5 + $0x28] sm:$0xff]  ;;  %v87_v34 = vld [vmem:[#allocation2 + $0x90] sm:$0xff]  ;;  %v88_v35 = vld [vmem:[#allocation2 + $0x98] sm:$0xff]  ;;  %v3892_v38 = vadd.f32 %v360_v28, %v72_v20  ;;  %v3896_v43 = vadd.f32 %v361_v29, %v73_v21 }
  0x3a   :  { %v949_v37 = vadd.f32 %v948_v26, %v3876_v18  ;;  %v933_v39 = vadd.f32 %v3885_v31, %v3883_v30  ;;  %v89_v40 = vld [vmem:[#allocation2 + $0xa0] sm:$0xff]  ;;  %v90_v41 = vld [vmem:[#allocation2 + $0xa8] sm:$0xff]  ;;  %v91_v42 = vld [vmem:[#allocation2 + $0xb0] sm:$0xff]  ;;  %v3904_v54 = vadd.f32 %v362_v33, %v74_v27 }
  0x3b   :  { %v375_v44 = vld [vmem:[#allocation5 + $0x90] sm:$0xff]  ;;  %v376_v45 = vld [vmem:[#allocation5 + $0x98] sm:$0xff]  ;;  %v377_v46 = vld [vmem:[#allocation5 + $0xa0] sm:$0xff] }
  0x3c   :  { %v950_v47 = vadd.f32 %v949_v37, %v3880_v22  ;;  %v934_v48 = vadd.f32 %v933_v39, %v3887_v32  ;;  %v92_v49 = vld [vmem:[#allocation2 + $0xb8] sm:$0xff]  ;;  %v378_v50 = vld [vmem:[#allocation5 + $0xa8] sm:$0xff]  ;;  %v379_v51 = vld [vmem:[#allocation5 + $0xb0] sm:$0xff]  ;;  %v3900_v52 = vadd.f32 %v375_v44, %v87_v34  ;;  %v3902_v53 = vadd.f32 %v376_v45, %v88_v35 }
  0x3d   :  { %v380_v55 = vld [vmem:[#allocation5 + $0xb8] sm:$0xff]  ;;  %v3906_v56 = vadd.f32 %v377_v46, %v89_v40  ;;  %v75_v57 = vld [vmem:[#allocation2 + $0x30] sm:$0xff]  ;;  %v3910_v61 = vadd.f32 %v378_v50, %v90_v41  ;;  %v77_v63 = vld [vmem:[#allocation2 + $0x40] sm:$0xff]  ;;  %v3914_v2 = vadd.f32 %v379_v51, %v91_v42 }
  0x3e   :  { %v76_v58 = vld [vmem:[#allocation2 + $0x38] sm:$0xff]  ;;  %v951_v59 = vadd.f32 %v950_v47, %v3889_v36  ;;  %v935_v60 = vadd.f32 %v934_v48, %v3892_v38  ;;  %v954_v62 = vadd.f32 %v3902_v53, %v3900_v52  ;;  %v78_v0 = vld [vmem:[#allocation2 + $0x48] sm:$0xff]  ;;  %v79_v1 = vld [vmem:[#allocation2 + $0x50] sm:$0xff]  ;;  %v3922_v16 = vadd.f32 %v380_v55, %v92_v49 }
  0x3f   :  { %v363_v3 = vld [vmem:[#allocation5 + $0x30] sm:$0xff]  ;;  %v364_v4 = vld [vmem:[#allocation5 + $0x38] sm:$0xff]  ;;  %v365_v5 = vld [vmem:[#allocation5 + $0x40] sm:$0xff] }
  0x40   :  { %952 = vadd.xlane.f32.xlu1 %v951_v59  ;;  %v936_v6 = vadd.f32 %v935_v60, %v3896_v43  ;;  %v955_v7 = vadd.f32 %v954_v62, %v3906_v56  ;;  %v80_v8 = vld [vmem:[#allocation2 + $0x58] sm:$0xff]  ;;  %v366_v9 = vld [vmem:[#allocation5 + $0x48] sm:$0xff]  ;;  %v367_v13 = vld [vmem:[#allocation5 + $0x50] sm:$0xff]  ;;  %v3918_v14 = vadd.f32 %v363_v3, %v75_v57  ;;  %v3920_v15 = vadd.f32 %v364_v4, %v76_v58 }
  0x41   :  { %v368_v17 = vld [vmem:[#allocation5 + $0x58] sm:$0xff]  ;;  %v3924_v19 = vadd.f32 %v365_v5, %v77_v63  ;;  %v99_v20 = vld [vmem:[#allocation2 + $0xf0] sm:$0xff]  ;;  %v3928_v25 = vadd.f32 %v366_v9, %v78_v0  ;;  %v101_v27 = vld [vmem:[#allocation2 + $0x100] sm:$0xff]  ;;  %v3932_v33 = vadd.f32 %v367_v13, %v79_v1 }
  0x42   :  { %v100_v21 = vld [vmem:[#allocation2 + $0xf8] sm:$0xff]  ;;  %v937_v23 = vadd.f32 %v936_v6, %v3904_v54  ;;  %v956_v24 = vadd.f32 %v955_v7, %v3910_v61  ;;  %v940_v26 = vadd.f32 %v3920_v15, %v3918_v14  ;;  %v102_v28 = vld [vmem:[#allocation2 + $0x108] sm:$0xff]  ;;  %v103_v29 = vld [vmem:[#allocation2 + $0x110] sm:$0xff]  ;;  %v3940_v47 = vadd.f32 %v368_v17, %v80_v8 }
  0x43   :  { %v387_v34 = vld [vmem:[#allocation5 + $0xf0] sm:$0xff]  ;;  %v388_v35 = vld [vmem:[#allocation5 + $0xf8] sm:$0xff]  ;;  %v389_v37 = vld [vmem:[#allocation5 + $0x100] sm:$0xff] }
  0x44   :  { %938 = vadd.xlane.f32.xlu0 %v937_v23  ;;  %v957_v39 = vadd.f32 %v956_v24, %v3914_v2  ;;  %v941_v40 = vadd.f32 %v940_v26, %v3924_v19  ;;  %v104_v41 = vld [vmem:[#allocation2 + $0x118] sm:$0xff]  ;;  %v390_v42 = vld [vmem:[#allocation5 + $0x108] sm:$0xff]  ;;  %v391_v44 = vld [vmem:[#allocation5 + $0x110] sm:$0xff]  ;;  %v3936_v45 = vadd.f32 %v387_v34, %v99_v20  ;;  %v3938_v46 = vadd.f32 %v388_v35, %v100_v21 }
  0x45   :  { %v392_v48 = vld [vmem:[#allocation5 + $0x118] sm:$0xff]  ;;  %v3942_v49 = vadd.f32 %v389_v37, %v101_v27  ;;  %v93_v50 = vld [vmem:[#allocation2 + $0xc0] sm:$0xff]  ;;  %v94_v51 = vld [vmem:[#allocation2 + $0xc8] sm:$0xff]  ;;  %v3946_v58 = vadd.f32 %v390_v42, %v102_v28  ;;  %v3950_v0 = vadd.f32 %v391_v44, %v103_v29 }
  0x46   :  { %8367 = vst [vmem:[#allocation15_spill] sm:$0xff] %v3936_v45  ;;  %8368 = vst [vmem:[#allocation16_spill] sm:$0xff] %v3938_v46  ;;  %v958_v55 = vadd.f32 %v957_v39, %v3922_v16  ;;  %v942_v57 = vadd.f32 %v941_v40, %v3928_v25  ;;  %v968_v59 = vadd.f32 %v3938_v46, %v3936_v45  ;;  %v95_v60 = vld [vmem:[#allocation2 + $0xd0] sm:$0xff]  ;;  %v96_v62 = vld [vmem:[#allocation2 + $0xd8] sm:$0xff] }
  0x47   :  { %8369 = vst [vmem:[#allocation17_spill] sm:$0xff] %v3942_v49  ;;  %8370 = vst [vmem:[#allocation18_spill] sm:$0xff] %v3946_v58  ;;  %v97_v63 = vld [vmem:[#allocation2 + $0xe0] sm:$0xff]  ;;  %v382_v3 = vld [vmem:[#allocation5 + $0xc8] sm:$0xff]  ;;  %v3958_v20 = vadd.f32 %v392_v48, %v104_v41 }
  0x48   :  { %8371 = vst [vmem:[#allocation19_spill] sm:$0xff] %v3950_v0  ;;  %v381_v1 = vld [vmem:[#allocation5 + $0xc0] sm:$0xff]  ;;  %v383_v4 = vld [vmem:[#allocation5 + $0xd0] sm:$0xff]  ;;  %959 = vadd.xlane.f32.xlu1 %v958_v55  ;;  %v943_v5 = vadd.f32 %v942_v57, %v3932_v33  ;;  %v969_v6 = vadd.f32 %v968_v59, %v3942_v49  ;;  %v98_v7 = vld [vmem:[#allocation2 + $0xe8] sm:$0xff]  ;;  %v3956_v17 = vadd.f32 %v382_v3, %v94_v51 }
  0x49   :  { %v384_v8 = vld [vmem:[#allocation5 + $0xd8] sm:$0xff]  ;;  %v385_v9 = vld [vmem:[#allocation5 + $0xe0] sm:$0xff]  ;;  %v3954_v13 = vadd.f32 %v381_v1, %v93_v50  ;;  %8372 = vst [vmem:[#allocation20_spill] sm:$0xff] %v3958_v20  ;;  %v386_v21 = vld [vmem:[#allocation5 + $0xe8] sm:$0xff]  ;;  %v3960_v23 = vadd.f32 %v383_v4, %v95_v60 }
  0x4a   :  { %v111_v24 = vld [vmem:[#allocation2 + $0x150] sm:$0xff]  ;;  %v112_v26 = vld [vmem:[#allocation2 + $0x158] sm:$0xff]  ;;  %v944_v27 = vadd.f32 %v943_v5, %v3940_v47  ;;  %v970_v28 = vadd.f32 %v969_v6, %v3946_v58  ;;  %v3964_v29 = vadd.f32 %v384_v8, %v96_v62  ;;  %v113_v35 = vld [vmem:[#allocation2 + $0x160] sm:$0xff]  ;;  %v3968_v40 = vadd.f32 %v385_v9, %v97_v63 }
  0x4b   :  { %v961_v34 = vadd.f32 %v3956_v17, %v3954_v13  ;;  %v114_v37 = vld [vmem:[#allocation2 + $0x168] sm:$0xff]  ;;  %v115_v39 = vld [vmem:[#allocation2 + $0x170] sm:$0xff]  ;;  %v400_v42 = vld [vmem:[#allocation5 + $0x158] sm:$0xff]  ;;  %v3976_v62 = vadd.f32 %v386_v21, %v98_v7 }
  0x4c   :  { %v399_v41 = vld [vmem:[#allocation5 + $0x150] sm:$0xff]  ;;  %v401_v44 = vld [vmem:[#allocation5 + $0x160] sm:$0xff]  ;;  %945 = vadd.xlane.f32.xlu0 %v944_v27  ;;  %v971_v48 = vadd.f32 %v970_v28, %v3950_v0  ;;  %v116_v51 = vld [vmem:[#allocation2 + $0x178] sm:$0xff]  ;;  %v3974_v60 = vadd.f32 %v400_v42, %v112_v26 }
  0x4d   :  { %v962_v50 = vadd.f32 %v961_v34, %v3960_v23  ;;  %v402_v55 = vld [vmem:[#allocation5 + $0x168] sm:$0xff]  ;;  %v403_v57 = vld [vmem:[#allocation5 + $0x170] sm:$0xff]  ;;  %v3972_v59 = vadd.f32 %v399_v41, %v111_v24  ;;  %8375 = vst [vmem:[#allocation23_spill] sm:$0xff] %v3976_v62  ;;  %v404_v1 = vld [vmem:[#allocation5 + $0x178] sm:$0xff]  ;;  %v3978_v63 = vadd.f32 %v401_v44, %v113_v35 }
  0x4e   :  { %8374 = vst [vmem:[#allocation22_spill] sm:$0xff] %v3974_v60  ;;  %v105_v3 = vld [vmem:[#allocation2 + $0x120] sm:$0xff]  ;;  %v106_v4 = vld [vmem:[#allocation2 + $0x128] sm:$0xff]  ;;  %v972_v5 = vadd.f32 %v971_v48, %v3958_v20  ;;  %v3982_v8 = vadd.f32 %v402_v55, %v114_v37  ;;  %v107_v24 = vld [vmem:[#allocation2 + $0x130] sm:$0xff]  ;;  %v3986_v28 = vadd.f32 %v403_v57, %v115_v39  ;;  %v3994_v55 = vadd.f32 %v404_v1, %v116_v51 }
  0x4f   :  { %8373 = vst [vmem:[#allocation21_spill] sm:$0xff] %v3972_v59  ;;  %8376 = vst [vmem:[#allocation24_spill] sm:$0xff] %v3978_v63  ;;  %v963_v6 = vadd.f32 %v962_v50, %v3964_v29  ;;  %v982_v9 = vadd.f32 %v3974_v60, %v3972_v59  ;;  %v108_v27 = vld [vmem:[#allocation2 + $0x138] sm:$0xff]  ;;  %v109_v26 = vld [vmem:[#allocation2 + $0x140] sm:$0xff] }
  0x50   :  { %8377 = vst [vmem:[#allocation25_spill] sm:$0xff] %v3982_v8  ;;  %8378 = vst [vmem:[#allocation26_spill] sm:$0xff] %v3986_v28  ;;  %v393_v7 = vld [vmem:[#allocation5 + $0x120] sm:$0xff]  ;;  %v394_v21 = vld [vmem:[#allocation5 + $0x128] sm:$0xff]  ;;  %973 = vadd.xlane.f32.xlu1 %v972_v5 }
  0x51   :  { %v395_v34 = vld [vmem:[#allocation5 + $0x130] sm:$0xff]  ;;  %v964_v35 = vadd.f32 %v963_v6, %v3968_v40  ;;  %v983_v41 = vadd.f32 %v982_v9, %v3978_v63  ;;  %v110_v42 = vld [vmem:[#allocation2 + $0x148] sm:$0xff]  ;;  %v396_v44 = vld [vmem:[#allocation5 + $0x138] sm:$0xff]  ;;  %v3990_v48 = vadd.f32 %v393_v7, %v105_v3  ;;  %v3992_v50 = vadd.f32 %v394_v21, %v106_v4  ;;  %8381 = vst [vmem:[#allocation29_spill] sm:$0xff] %v3994_v55 }
  0x52   :  { %v397_v37 = vld [vmem:[#allocation5 + $0x140] sm:$0xff]  ;;  %v398_v60 = vld [vmem:[#allocation5 + $0x148] sm:$0xff]  ;;  %v3996_v39 = vadd.f32 %v395_v34, %v107_v24  ;;  %v123_v57 = vld [vmem:[#allocation2 + $0x1b0] sm:$0xff]  ;;  %v4000_v20 = vadd.f32 %v396_v44, %v108_v27 }
  0x53   :  { %8379 = vst [vmem:[#allocation27_spill] sm:$0xff] %v3990_v48  ;;  %8380 = vst [vmem:[#allocation28_spill] sm:$0xff] %v3992_v50  ;;  %v124_v59 = vld [vmem:[#allocation2 + $0x1b8] sm:$0xff]  ;;  %v965_v5 = vadd.f32 %v964_v35, %v3976_v62  ;;  %v984_v6 = vadd.f32 %v983_v41, %v3982_v8  ;;  %v975_v9 = vadd.f32 %v3992_v50, %v3990_v48  ;;  %v125_v3 = vld [vmem:[#allocation2 + $0x1c0] sm:$0xff] }
  0x54   :  { %8382 = vst [vmem:[#allocation30_spill] sm:$0xff] %v3996_v39  ;;  %8383 = vst [vmem:[#allocation31_spill] sm:$0xff] %v4000_v20  ;;  %v126_v7 = vld [vmem:[#allocation2 + $0x1c8] sm:$0xff]  ;;  %v127_v4 = vld [vmem:[#allocation2 + $0x1d0] sm:$0xff]  ;;  %v4004_v21 = vadd.f32 %v397_v37, %v109_v26  ;;  %v4012_v50 = vadd.f32 %v398_v60, %v110_v42 }
  0x55   :  { %v411_v51 = vld [vmem:[#allocation5 + $0x1b0] sm:$0xff]  ;;  %v412_v1 = vld [vmem:[#allocation5 + $0x1b8] sm:$0xff]  ;;  %v413_v24 = vld [vmem:[#allocation5 + $0x1c0] sm:$0xff]  ;;  %966 = vadd.xlane.f32.xlu0 %v965_v5  ;;  %v985_v34 = vadd.f32 %v984_v6, %v3986_v28  ;;  %v976_v35 = vadd.f32 %v975_v9, %v3996_v39 }
  0x56   :  { %8384 = vst [vmem:[#allocation32_spill] sm:$0xff] %v4004_v21  ;;  %v128_v63 = vld [vmem:[#allocation2 + $0x1d8] sm:$0xff]  ;;  %v414_v41 = vld [vmem:[#allocation5 + $0x1c8] sm:$0xff]  ;;  %v415_v27 = vld [vmem:[#allocation5 + $0x1d0] sm:$0xff]  ;;  %v4008_v44 = vadd.f32 %v411_v51, %v123_v57  ;;  %v4010_v8 = vadd.f32 %v412_v1, %v124_v59  ;;  %v4014_v26 = vadd.f32 %v413_v24, %v125_v3 }
  0x57   :  { %8387 = vst [vmem:[#allocation35_spill] sm:$0xff] %v4012_v50  ;;  %v416_v48 = vld [vmem:[#allocation5 + $0x1d8] sm:$0xff]  ;;  %v117_v37 = vld [vmem:[#allocation2 + $0x180] sm:$0xff]  ;;  %v118_v0 = vld [vmem:[#allocation2 + $0x188] sm:$0xff]  ;;  %v986_v5 = vadd.f32 %v985_v34, %v3994_v55  ;;  %v977_v6 = vadd.f32 %v976_v35, %v4000_v20  ;;  %v4018_v28 = vadd.f32 %v414_v41, %v126_v7  ;;  %v4022_v1 = vadd.f32 %v415_v27, %v127_v4 }
  0x58   :  { %8385 = vst [vmem:[#allocation33_spill] sm:$0xff] %v4008_v44  ;;  %8386 = vst [vmem:[#allocation34_spill] sm:$0xff] %v4010_v8  ;;  %v996_v9 = vadd.f32 %v4010_v8, %v4008_v44  ;;  %v119_v57 = vld [vmem:[#allocation2 + $0x190] sm:$0xff]  ;;  %v120_v51 = vld [vmem:[#allocation2 + $0x198] sm:$0xff]  ;;  %v4030_v8 = vadd.f32 %v416_v48, %v128_v63 }
  0x59   :  { %8388 = vst [vmem:[#allocation36_spill] sm:$0xff] %v4014_v26  ;;  %8389 = vst [vmem:[#allocation37_spill] sm:$0xff] %v4018_v28  ;;  %v121_v59 = vld [vmem:[#allocation2 + $0x1a0] sm:$0xff]  ;;  %v406_v42 = vld [vmem:[#allocation5 + $0x188] sm:$0xff]  ;;  %987 = vadd.xlane.f32.xlu1 %v986_v5  ;;  %v978_v24 = vadd.f32 %v977_v6, %v4004_v21 }
  0x5a   :  { %8390 = vst [vmem:[#allocation38_spill] sm:$0xff] %v4022_v1  ;;  %v405_v60 = vld [vmem:[#allocation5 + $0x180] sm:$0xff]  ;;  %v407_v3 = vld [vmem:[#allocation5 + $0x190] sm:$0xff]  ;;  %v997_v34 = vadd.f32 %v996_v9, %v4014_v26  ;;  %v122_v55 = vld [vmem:[#allocation2 + $0x1a8] sm:$0xff]  ;;  %v4028_v20 = vadd.f32 %v406_v42, %v118_v0 }
  0x5b   :  { %v408_v35 = vld [vmem:[#allocation5 + $0x198] sm:$0xff]  ;;  %v409_v7 = vld [vmem:[#allocation5 + $0x1a0] sm:$0xff]  ;;  %v4026_v41 = vadd.f32 %v405_v60, %v117_v37  ;;  %8393 = vst [vmem:[#allocation41_spill] sm:$0xff] %v4030_v8  ;;  %v410_v44 = vld [vmem:[#allocation5 + $0x1a8] sm:$0xff]  ;;  %v4032_v4 = vadd.f32 %v407_v3, %v119_v57  ;;  %v979_v5 = vadd.f32 %v978_v24, %v4012_v50 }
  0x5c   :  { %8392 = vst [vmem:[#allocation40_spill] sm:$0xff] %v4028_v20  ;;  %v135_v27 = vld [vmem:[#allocation2 + $0x210] sm:$0xff]  ;;  %v136_v39 = vld [vmem:[#allocation2 + $0x218] sm:$0xff]  ;;  %v998_v6 = vadd.f32 %v997_v34, %v4018_v28  ;;  %v4036_v21 = vadd.f32 %v408_v35, %v120_v51  ;;  %v137_v37 = vld [vmem:[#allocation2 + $0x220] sm:$0xff]  ;;  %v4040_v42 = vadd.f32 %v409_v7, %v121_v59 }
  0x5d   :  { %8391 = vst [vmem:[#allocation39_spill] sm:$0xff] %v4026_v41  ;;  %8394 = vst [vmem:[#allocation42_spill] sm:$0xff] %v4032_v4  ;;  %v989_v9 = vadd.f32 %v4028_v20, %v4026_v41  ;;  %v138_v60 = vld [vmem:[#allocation2 + $0x228] sm:$0xff]  ;;  %v139_v0 = vld [vmem:[#allocation2 + $0x230] sm:$0xff]  ;;  %980 = vadd.xlane.f32.xlu0 %v979_v5  ;;  %v4048_v20 = vadd.f32 %v410_v44, %v122_v55 }
  0x5e   :  { %8395 = vst [vmem:[#allocation43_spill] sm:$0xff] %v4036_v21  ;;  %8396 = vst [vmem:[#allocation44_spill] sm:$0xff] %v4040_v42  ;;  %v423_v63 = vld [vmem:[#allocation5 + $0x210] sm:$0xff]  ;;  %v424_v48 = vld [vmem:[#allocation5 + $0x218] sm:$0xff]  ;;  %v999_v3 = vadd.f32 %v998_v6, %v4022_v1 }
  0x5f   :  { %v425_v57 = vld [vmem:[#allocation5 + $0x220] sm:$0xff]  ;;  %v990_v24 = vadd.f32 %v989_v9, %v4032_v4  ;;  %v140_v26 = vld [vmem:[#allocation2 + $0x238] sm:$0xff]  ;;  %v426_v34 = vld [vmem:[#allocation5 + $0x228] sm:$0xff]  ;;  %v4044_v35 = vadd.f32 %v423_v63, %v135_v27  ;;  %v4046_v28 = vadd.f32 %v424_v48, %v136_v39  ;;  %8399 = vst [vmem:[#allocation47_spill] sm:$0xff] %v4048_v20 }
  0x60   :  { %v427_v51 = vld [vmem:[#allocation5 + $0x230] sm:$0xff]  ;;  %v428_v41 = vld [vmem:[#allocation5 + $0x238] sm:$0xff]  ;;  %v4050_v59 = vadd.f32 %v425_v57, %v137_v37  ;;  %v129_v7 = vld [vmem:[#allocation2 + $0x1e0] sm:$0xff]  ;;  %v1000_v5 = vadd.f32 %v999_v3, %v4030_v8  ;;  %v4054_v1 = vadd.f32 %v426_v34, %v138_v60 }
  0x61   :  { %8397 = vst [vmem:[#allocation45_spill] sm:$0xff] %v4044_v35  ;;  %8398 = vst [vmem:[#allocation46_spill] sm:$0xff] %v4046_v28  ;;  %v130_v50 = vld [vmem:[#allocation2 + $0x1e8] sm:$0xff]  ;;  %v991_v6 = vadd.f32 %v990_v24, %v4036_v21  ;;  %v1010_v9 = vadd.f32 %v4046_v28, %v4044_v35  ;;  %v131_v27 = vld [vmem:[#allocation2 + $0x1f0] sm:$0xff]  ;;  %v4058_v48 = vadd.f32 %v427_v51, %v139_v0 }
  0x62   :  { %8400 = vst [vmem:[#allocation48_spill] sm:$0xff] %v4050_v59  ;;  %8401 = vst [vmem:[#allocation49_spill] sm:$0xff] %v4054_v1  ;;  %v132_v63 = vld [vmem:[#allocation2 + $0x1f8] sm:$0xff]  ;;  %v133_v39 = vld [vmem:[#allocation2 + $0x200] sm:$0xff]  ;;  %1001 = vadd.xlane.f32.xlu1 %v1000_v5  ;;  %v4066_v28 = vadd.f32 %v428_v41, %v140_v26 }
  0x63   :  { %8402 = vst [vmem:[#allocation50_spill] sm:$0xff] %v4058_v48  ;;  %v417_v55 = vld [vmem:[#allocation5 + $0x1e0] sm:$0xff]  ;;  %v418_v44 = vld [vmem:[#allocation5 + $0x1e8] sm:$0xff]  ;;  %v419_v37 = vld [vmem:[#allocation5 + $0x1f0] sm:$0xff]  ;;  %v992_v57 = vadd.f32 %v991_v6, %v4040_v42  ;;  %v1011_v3 = vadd.f32 %v1010_v9, %v4050_v59 }
  0x64   :  { %v134_v8 = vld [vmem:[#allocation2 + $0x208] sm:$0xff]  ;;  %v420_v24 = vld [vmem:[#allocation5 + $0x1f8] sm:$0xff]  ;;  %v421_v60 = vld [vmem:[#allocation5 + $0x200] sm:$0xff]  ;;  %v4062_v34 = vadd.f32 %v417_v55, %v129_v7  ;;  %v4064_v21 = vadd.f32 %v418_v44, %v130_v50  ;;  %8405 = vst [vmem:[#allocation53_spill] sm:$0xff] %v4066_v28  ;;  %v4068_v0 = vadd.f32 %v419_v37, %v131_v27 }
  0x65   :  { %v422_v35 = vld [vmem:[#allocation5 + $0x208] sm:$0xff]  ;;  %v147_v51 = vld [vmem:[#allocation2 + $0x270] sm:$0xff]  ;;  %v148_v4 = vld [vmem:[#allocation2 + $0x278] sm:$0xff]  ;;  %v993_v5 = vadd.f32 %v992_v57, %v4048_v20  ;;  %v1012_v6 = vadd.f32 %v1011_v3, %v4054_v1  ;;  %v4072_v42 = vadd.f32 %v420_v24, %v132_v63  ;;  %v4076_v44 = vadd.f32 %v421_v60, %v133_v39 }
  0x66   :  { %8403 = vst [vmem:[#allocation51_spill] sm:$0xff] %v4062_v34  ;;  %8404 = vst [vmem:[#allocation52_spill] sm:$0xff] %v4064_v21  ;;  %v1003_v9 = vadd.f32 %v4064_v21, %v4062_v34  ;;  %v149_v7 = vld [vmem:[#allocation2 + $0x280] sm:$0xff]  ;;  %v150_v55 = vld [vmem:[#allocation2 + $0x288] sm:$0xff]  ;;  %v4084_v21 = vadd.f32 %v422_v35, %v134_v8 }
  0x67   :  { %8406 = vst [vmem:[#allocation54_spill] sm:$0xff] %v4068_v0  ;;  %8407 = vst [vmem:[#allocation55_spill] sm:$0xff] %v4072_v42  ;;  %v151_v50 = vld [vmem:[#allocation2 + $0x290] sm:$0xff]  ;;  %v436_v41 = vld [vmem:[#allocation5 + $0x278] sm:$0xff]  ;;  %994 = vadd.xlane.f32.xlu0 %v993_v5  ;;  %v1013_v37 = vadd.f32 %v1012_v6, %v4058_v48 }
  0x68   :  { %8408 = vst [vmem:[#allocation56_spill] sm:$0xff] %v4076_v44  ;;  %v435_v26 = vld [vmem:[#allocation5 + $0x270] sm:$0xff]  ;;  %v437_v27 = vld [vmem:[#allocation5 + $0x280] sm:$0xff]  ;;  %v1004_v57 = vadd.f32 %v1003_v9, %v4068_v0  ;;  %v152_v59 = vld [vmem:[#allocation2 + $0x298] sm:$0xff]  ;;  %v4082_v1 = vadd.f32 %v436_v41, %v148_v4 }
  0x69   :  { %v438_v3 = vld [vmem:[#allocation5 + $0x288] sm:$0xff]  ;;  %v439_v63 = vld [vmem:[#allocation5 + $0x290] sm:$0xff]  ;;  %v4080_v24 = vadd.f32 %v435_v26, %v147_v51  ;;  %8411 = vst [vmem:[#allocation59_spill] sm:$0xff] %v4084_v21  ;;  %v440_v34 = vld [vmem:[#allocation5 + $0x298] sm:$0xff]  ;;  %v4086_v39 = vadd.f32 %v437_v27, %v149_v7  ;;  %v1014_v5 = vadd.f32 %v1013_v37, %v4066_v28 }
  0x6a   :  { %8410 = vst [vmem:[#allocation58_spill] sm:$0xff] %v4082_v1  ;;  %v141_v60 = vld [vmem:[#allocation2 + $0x240] sm:$0xff]  ;;  %v142_v20 = vld [vmem:[#allocation2 + $0x248] sm:$0xff]  ;;  %v1005_v6 = vadd.f32 %v1004_v57, %v4072_v42  ;;  %v4090_v48 = vadd.f32 %v438_v3, %v150_v55  ;;  %v143_v51 = vld [vmem:[#allocation2 + $0x250] sm:$0xff]  ;;  %v4094_v41 = vadd.f32 %v439_v63, %v151_v50 }
  0x6b   :  { %8409 = vst [vmem:[#allocation57_spill] sm:$0xff] %v4080_v24  ;;  %8412 = vst [vmem:[#allocation60_spill] sm:$0xff] %v4086_v39  ;;  %v1024_v9 = vadd.f32 %v4082_v1, %v4080_v24  ;;  %v144_v26 = vld [vmem:[#allocation2 + $0x258] sm:$0xff]  ;;  %v145_v4 = vld [vmem:[#allocation2 + $0x260] sm:$0xff]  ;;  %1015 = vadd.xlane.f32.xlu1 %v1014_v5  ;;  %v4102_v1 = vadd.f32 %v440_v34, %v152_v59 }
  0x6c   :  { %8413 = vst [vmem:[#allocation61_spill] sm:$0xff] %v4090_v48  ;;  %8414 = vst [vmem:[#allocation62_spill] sm:$0xff] %v4094_v41  ;;  %v429_v8 = vld [vmem:[#allocation5 + $0x240] sm:$0xff]  ;;  %v430_v35 = vld [vmem:[#allocation5 + $0x248] sm:$0xff]  ;;  %v1006_v27 = vadd.f32 %v1005_v6, %v4076_v44 }
  0x6d   :  { %v431_v7 = vld [vmem:[#allocation5 + $0x250] sm:$0xff]  ;;  %v1025_v37 = vadd.f32 %v1024_v9, %v4086_v39  ;;  %v146_v28 = vld [vmem:[#allocation2 + $0x268] sm:$0xff]  ;;  %v432_v57 = vld [vmem:[#allocation5 + $0x258] sm:$0xff]  ;;  %v4098_v3 = vadd.f32 %v429_v8, %v141_v60  ;;  %v4100_v42 = vadd.f32 %v430_v35, %v142_v20  ;;  %8417 = vst [vmem:[#allocation65_spill] sm:$0xff] %v4102_v1 }
  0x6e   :  { %v433_v55 = vld [vmem:[#allocation5 + $0x260] sm:$0xff]  ;;  %v434_v24 = vld [vmem:[#allocation5 + $0x268] sm:$0xff]  ;;  %v4104_v50 = vadd.f32 %v431_v7, %v143_v51  ;;  %v159_v63 = vld [vmem:[#allocation2 + $0x2d0] sm:$0xff]  ;;  %v1007_v5 = vadd.f32 %v1006_v27, %v4084_v21  ;;  %v4108_v44 = vadd.f32 %v432_v57, %v144_v26 }
  0x6f   :  { %8415 = vst [vmem:[#allocation63_spill] sm:$0xff] %v4098_v3  ;;  %8416 = vst [vmem:[#allocation64_spill] sm:$0xff] %v4100_v42  ;;  %v160_v0 = vld [vmem:[#allocation2 + $0x2d8] sm:$0xff]  ;;  %v1026_v6 = vadd.f32 %v1025_v37, %v4090_v48  ;;  %v1017_v9 = vadd.f32 %v4100_v42, %v4098_v3  ;;  %v161_v60 = vld [vmem:[#allocation2 + $0x2e0] sm:$0xff]  ;;  %v4112_v35 = vadd.f32 %v433_v55, %v145_v4 }
  0x70   :  { %8418 = vst [vmem:[#allocation66_spill] sm:$0xff] %v4104_v50  ;;  %8419 = vst [vmem:[#allocation67_spill] sm:$0xff] %v4108_v44  ;;  %v162_v8 = vld [vmem:[#allocation2 + $0x2e8] sm:$0xff]  ;;  %v163_v20 = vld [vmem:[#allocation2 + $0x2f0] sm:$0xff]  ;;  %1008 = vadd.xlane.f32.xlu0 %v1007_v5  ;;  %v4120_v42 = vadd.f32 %v434_v24, %v146_v28 }
  0x71   :  { %8420 = vst [vmem:[#allocation68_spill] sm:$0xff] %v4112_v35  ;;  %v447_v59 = vld [vmem:[#allocation5 + $0x2d0] sm:$0xff]  ;;  %v448_v34 = vld [vmem:[#allocation5 + $0x2d8] sm:$0xff]  ;;  %v449_v51 = vld [vmem:[#allocation5 + $0x2e0] sm:$0xff]  ;;  %v1027_v7 = vadd.f32 %v1026_v6, %v4094_v41  ;;  %v1018_v27 = vadd.f32 %v1017_v9, %v4104_v50 }
  0x72   :  { %v164_v39 = vld [vmem:[#allocation2 + $0x2f8] sm:$0xff]  ;;  %v450_v37 = vld [vmem:[#allocation5 + $0x2e8] sm:$0xff]  ;;  %v451_v26 = vld [vmem:[#allocation5 + $0x2f0] sm:$0xff]  ;;  %v4116_v57 = vadd.f32 %v447_v59, %v159_v63  ;;  %v4118_v48 = vadd.f32 %v448_v34, %v160_v0  ;;  %8423 = vst [vmem:[#allocation71_spill] sm:$0xff] %v4120_v42  ;;  %v4122_v4 = vadd.f32 %v449_v51, %v161_v60 }
  0x73   :  { %v452_v3 = vld [vmem:[#allocation5 + $0x2f8] sm:$0xff]  ;;  %v153_v55 = vld [vmem:[#allocation2 + $0x2a0] sm:$0xff]  ;;  %v154_v21 = vld [vmem:[#allocation2 + $0x2a8] sm:$0xff]  ;;  %v1028_v5 = vadd.f32 %v1027_v7, %v4102_v1  ;;  %v1019_v6 = vadd.f32 %v1018_v27, %v4108_v44  ;;  %v4126_v41 = vadd.f32 %v450_v37, %v162_v8  ;;  %v4130_v34 = vadd.f32 %v451_v26, %v163_v20 }
  0x74   :  { %8421 = vst [vmem:[#allocation69_spill] sm:$0xff] %v4116_v57  ;;  %8422 = vst [vmem:[#allocation70_spill] sm:$0xff] %v4118_v48  ;;  %v1038_v9 = vadd.f32 %v4118_v48, %v4116_v57  ;;  %v155_v63 = vld [vmem:[#allocation2 + $0x2b0] sm:$0xff]  ;;  %v156_v59 = vld [vmem:[#allocation2 + $0x2b8] sm:$0xff]  ;;  %v4138_v48 = vadd.f32 %v452_v3, %v164_v39 }
  0x75   :  { %8424 = vst [vmem:[#allocation72_spill] sm:$0xff] %v4122_v4  ;;  %8425 = vst [vmem:[#allocation73_spill] sm:$0xff] %v4126_v41  ;;  %v157_v0 = vld [vmem:[#allocation2 + $0x2c0] sm:$0xff]  ;;  %v442_v24 = vld [vmem:[#allocation5 + $0x2a8] sm:$0xff]  ;;  %1029 = vadd.xlane.f32.xlu1 %v1028_v5  ;;  %v1020_v51 = vadd.f32 %v1019_v6, %v4112_v35 }
  0x76   :  { %8426 = vst [vmem:[#allocation74_spill] sm:$0xff] %v4130_v34  ;;  %v441_v28 = vld [vmem:[#allocation5 + $0x2a0] sm:$0xff]  ;;  %v443_v60 = vld [vmem:[#allocation5 + $0x2b0] sm:$0xff]  ;;  %v1039_v7 = vadd.f32 %v1038_v9, %v4122_v4  ;;  %v158_v1 = vld [vmem:[#allocation2 + $0x2c8] sm:$0xff]  ;;  %v4136_v44 = vadd.f32 %v442_v24, %v154_v21 }
  0x77   :  { %v444_v27 = vld [vmem:[#allocation5 + $0x2b8] sm:$0xff]  ;;  %v445_v8 = vld [vmem:[#allocation5 + $0x2c0] sm:$0xff]  ;;  %v4134_v37 = vadd.f32 %v441_v28, %v153_v55  ;;  %8429 = vst [vmem:[#allocation77_spill] sm:$0xff] %v4138_v48  ;;  %v446_v57 = vld [vmem:[#allocation5 + $0x2c8] sm:$0xff]  ;;  %v4140_v20 = vadd.f32 %v443_v60, %v155_v63  ;;  %v1021_v5 = vadd.f32 %v1020_v51, %v4120_v42 }
  0x78   :  { %8428 = vst [vmem:[#allocation76_spill] sm:$0xff] %v4136_v44  ;;  %v171_v26 = vld [vmem:[#allocation2 + $0x330] sm:$0xff]  ;;  %v172_v50 = vld [vmem:[#allocation2 + $0x338] sm:$0xff]  ;;  %v1040_v6 = vadd.f32 %v1039_v7, %v4126_v41  ;;  %v4144_v35 = vadd.f32 %v444_v27, %v156_v59  ;;  %v173_v55 = vld [vmem:[#allocation2 + $0x340] sm:$0xff]  ;;  %v4148_v24 = vadd.f32 %v445_v8, %v157_v0 }
  0x79   :  { %8427 = vst [vmem:[#allocation75_spill] sm:$0xff] %v4134_v37  ;;  %8430 = vst [vmem:[#allocation78_spill] sm:$0xff] %v4140_v20  ;;  %v1031_v9 = vadd.f32 %v4136_v44, %v4134_v37  ;;  %v174_v28 = vld [vmem:[#allocation2 + $0x348] sm:$0xff]  ;;  %v175_v21 = vld [vmem:[#allocation2 + $0x350] sm:$0xff]  ;;  %1022 = vadd.xlane.f32.xlu0 %v1021_v5  ;;  %v4156_v44 = vadd.f32 %v446_v57, %v158_v1 }
  0x7a   :  { %8431 = vst [vmem:[#allocation79_spill] sm:$0xff] %v4144_v35  ;;  %8432 = vst [vmem:[#allocation80_spill] sm:$0xff] %v4148_v24  ;;  %v459_v39 = vld [vmem:[#allocation5 + $0x330] sm:$0xff]  ;;  %v460_v3 = vld [vmem:[#allocation5 + $0x338] sm:$0xff]  ;;  %v1041_v60 = vadd.f32 %v1040_v6, %v4130_v34 }
  0x7b   :  { %v461_v63 = vld [vmem:[#allocation5 + $0x340] sm:$0xff]  ;;  %v1032_v51 = vadd.f32 %v1031_v9, %v4140_v20  ;;  %v176_v4 = vld [vmem:[#allocation2 + $0x358] sm:$0xff]  ;;  %v462_v7 = vld [vmem:[#allocation5 + $0x348] sm:$0xff]  ;;  %v4152_v27 = vadd.f32 %v459_v39, %v171_v26  ;;  %v4154_v41 = vadd.f32 %v460_v3, %v172_v50  ;;  %8435 = vst [vmem:[#allocation83_spill] sm:$0xff] %v4156_v44 }
  0x7c   :  { %v463_v59 = vld [vmem:[#allocation5 + $0x350] sm:$0xff]  ;;  %v464_v37 = vld [vmem:[#allocation5 + $0x358] sm:$0xff]  ;;  %v4158_v0 = vadd.f32 %v461_v63, %v173_v55  ;;  %v165_v8 = vld [vmem:[#allocation2 + $0x300] sm:$0xff]  ;;  %v1042_v5 = vadd.f32 %v1041_v60, %v4138_v48  ;;  %v4162_v34 = vadd.f32 %v462_v7, %v174_v28 }
  0x7d   :  { %8433 = vst [vmem:[#allocation81_spill] sm:$0xff] %v4152_v27  ;;  %8434 = vst [vmem:[#allocation82_spill] sm:$0xff] %v4154_v41  ;;  %v166_v42 = vld [vmem:[#allocation2 + $0x308] sm:$0xff]  ;;  %v1033_v6 = vadd.f32 %v1032_v51, %v4144_v35  ;;  %v1052_v9 = vadd.f32 %v4154_v41, %v4152_v27  ;;  %v167_v26 = vld [vmem:[#allocation2 + $0x310] sm:$0xff]  ;;  %v4166_v3 = vadd.f32 %v463_v59, %v175_v21 }
  0x7e   :  { %8436 = vst [vmem:[#allocation84_spill] sm:$0xff] %v4158_v0  ;;  %8437 = vst [vmem:[#allocation85_spill] sm:$0xff] %v4162_v34  ;;  %v168_v39 = vld [vmem:[#allocation2 + $0x318] sm:$0xff]  ;;  %v169_v50 = vld [vmem:[#allocation2 + $0x320] sm:$0xff]  ;;  %1043 = vadd.xlane.f32.xlu1 %v1042_v5  ;;  %v4174_v41 = vadd.f32 %v464_v37, %v176_v4 }
  0x7f   :  { %8438 = vst [vmem:[#allocation86_spill] sm:$0xff] %v4166_v3  ;;  %v453_v1 = vld [vmem:[#allocation5 + $0x300] sm:$0xff]  ;;  %v454_v57 = vld [vmem:[#allocation5 + $0x308] sm:$0xff]  ;;  %v455_v55 = vld [vmem:[#allocation5 + $0x310] sm:$0xff]  ;;  %v1034_v63 = vadd.f32 %v1033_v6, %v4148_v24  ;;  %v1053_v60 = vadd.f32 %v1052_v9, %v4158_v0 }
  0x80   :  { %v170_v48 = vld [vmem:[#allocation2 + $0x328] sm:$0xff]  ;;  %v456_v51 = vld [vmem:[#allocation5 + $0x318] sm:$0xff]  ;;  %v457_v28 = vld [vmem:[#allocation5 + $0x320] sm:$0xff]  ;;  %v4170_v7 = vadd.f32 %v453_v1, %v165_v8  ;;  %v4172_v35 = vadd.f32 %v454_v57, %v166_v42  ;;  %8441 = vst [vmem:[#allocation89_spill] sm:$0xff] %v4174_v41  ;;  %v4176_v21 = vadd.f32 %v455_v55, %v167_v26 }
  0x81   :  { %v458_v27 = vld [vmem:[#allocation5 + $0x328] sm:$0xff]  ;;  %v183_v59 = vld [vmem:[#allocation2 + $0x390] sm:$0xff]  ;;  %v184_v20 = vld [vmem:[#allocation2 + $0x398] sm:$0xff]  ;;  %v1035_v5 = vadd.f32 %v1034_v63, %v4156_v44  ;;  %v1054_v6 = vadd.f32 %v1053_v60, %v4162_v34  ;;  %v4180_v24 = vadd.f32 %v456_v51, %v168_v39  ;;  %v4184_v57 = vadd.f32 %v457_v28, %v169_v50 }
  0x82   :  { %8439 = vst [vmem:[#allocation87_spill] sm:$0xff] %v4170_v7  ;;  %8440 = vst [vmem:[#allocation88_spill] sm:$0xff] %v4172_v35  ;;  %v1045_v9 = vadd.f32 %v4172_v35, %v4170_v7  ;;  %v185_v8 = vld [vmem:[#allocation2 + $0x3a0] sm:$0xff]  ;;  %v186_v1 = vld [vmem:[#allocation2 + $0x3a8] sm:$0xff]  ;;  %v4192_v35 = vadd.f32 %v458_v27, %v170_v48 }
  0x83   :  { %8442 = vst [vmem:[#allocation90_spill] sm:$0xff] %v4176_v21  ;;  %8443 = vst [vmem:[#allocation91_spill] sm:$0xff] %v4180_v24  ;;  %v187_v42 = vld [vmem:[#allocation2 + $0x3b0] sm:$0xff]  ;;  %v472_v37 = vld [vmem:[#allocation5 + $0x398] sm:$0xff]  ;;  %1036 = vadd.xlane.f32.xlu0 %v1035_v5  ;;  %v1055_v55 = vadd.f32 %v1054_v6, %v4166_v3 }
  0x84   :  { %8444 = vst [vmem:[#allocation92_spill] sm:$0xff] %v4184_v57  ;;  %v471_v4 = vld [vmem:[#allocation5 + $0x390] sm:$0xff]  ;;  %v473_v26 = vld [vmem:[#allocation5 + $0x3a0] sm:$0xff]  ;;  %v1046_v63 = vadd.f32 %v1045_v9, %v4176_v21  ;;  %v188_v0 = vld [vmem:[#allocation2 + $0x3b8] sm:$0xff]  ;;  %v4190_v34 = vadd.f32 %v472_v37, %v184_v20 }
  0x85   :  { %v474_v60 = vld [vmem:[#allocation5 + $0x3a8] sm:$0xff]  ;;  %v475_v39 = vld [vmem:[#allocation5 + $0x3b0] sm:$0xff]  ;;  %v4188_v51 = vadd.f32 %v471_v4, %v183_v59  ;;  %8447 = vst [vmem:[#allocation95_spill] sm:$0xff] %v4192_v35  ;;  %v476_v7 = vld [vmem:[#allocation5 + $0x3b8] sm:$0xff]  ;;  %v4194_v50 = vadd.f32 %v473_v26, %v185_v8  ;;  %v1056_v5 = vadd.f32 %v1055_v55, %v4174_v41 }
  0x86   :  { %8446 = vst [vmem:[#allocation94_spill] sm:$0xff] %v4190_v34  ;;  %v177_v28 = vld [vmem:[#allocation2 + $0x360] sm:$0xff]  ;;  %v178_v44 = vld [vmem:[#allocation2 + $0x368] sm:$0xff]  ;;  %v1047_v6 = vadd.f32 %v1046_v63, %v4180_v24  ;;  %v4198_v3 = vadd.f32 %v474_v60, %v186_v1  ;;  %v179_v59 = vld [vmem:[#allocation2 + $0x370] sm:$0xff]  ;;  %v4202_v37 = vadd.f32 %v475_v39, %v187_v42 }
  0x87   :  { %8445 = vst [vmem:[#allocation93_spill] sm:$0xff] %v4188_v51  ;;  %8448 = vst [vmem:[#allocation96_spill] sm:$0xff] %v4194_v50  ;;  %v1066_v9 = vadd.f32 %v4190_v34, %v4188_v51  ;;  %v180_v4 = vld [vmem:[#allocation2 + $0x378] sm:$0xff]  ;;  %v181_v20 = vld [vmem:[#allocation2 + $0x380] sm:$0xff]  ;;  %1057 = vadd.xlane.f32.xlu1 %v1056_v5  ;;  %v4210_v34 = vadd.f32 %v476_v7, %v188_v0 }
  0x88   :  { %8449 = vst [vmem:[#allocation97_spill] sm:$0xff] %v4198_v3  ;;  %8450 = vst [vmem:[#allocation98_spill] sm:$0xff] %v4202_v37  ;;  %v465_v48 = vld [vmem:[#allocation5 + $0x360] sm:$0xff]  ;;  %v466_v27 = vld [vmem:[#allocation5 + $0x368] sm:$0xff]  ;;  %v1048_v26 = vadd.f32 %v1047_v6, %v4184_v57 }
  0x89   :  { %v467_v8 = vld [vmem:[#allocation5 + $0x370] sm:$0xff]  ;;  %v1067_v55 = vadd.f32 %v1066_v9, %v4194_v50  ;;  %v182_v41 = vld [vmem:[#allocation2 + $0x388] sm:$0xff]  ;;  %v468_v63 = vld [vmem:[#allocation5 + $0x378] sm:$0xff]  ;;  %v4206_v60 = vadd.f32 %v465_v48, %v177_v28  ;;  %v4208_v24 = vadd.f32 %v466_v27, %v178_v44  ;;  %8453 = vst [vmem:[#allocation101_spill] sm:$0xff] %v4210_v34 }
  0x8a   :  { %v469_v1 = vld [vmem:[#allocation5 + $0x380] sm:$0xff]  ;;  %v470_v51 = vld [vmem:[#allocation5 + $0x388] sm:$0xff]  ;;  %v4212_v42 = vadd.f32 %v467_v8, %v179_v59  ;;  %v195_v39 = vld [vmem:[#allocation2 + $0x3f0] sm:$0xff]  ;;  %v1049_v5 = vadd.f32 %v1048_v26, %v4192_v35  ;;  %v4216_v57 = vadd.f32 %v468_v63, %v180_v4 }
  0x8b   :  { %8451 = vst [vmem:[#allocation99_spill] sm:$0xff] %v4206_v60  ;;  %8452 = vst [vmem:[#allocation100_spill] sm:$0xff] %v4208_v24  ;;  %v196_v21 = vld [vmem:[#allocation2 + $0x3f8] sm:$0xff]  ;;  %v1068_v6 = vadd.f32 %v1067_v55, %v4198_v3  ;;  %v1059_v9 = vadd.f32 %v4208_v24, %v4206_v60  ;;  %v197_v28 = vld [vmem:[#allocation2 + $0x400] sm:$0xff]  ;;  %v4220_v27 = vadd.f32 %v469_v1, %v181_v20 }
  0x8c   :  { %8454 = vst [vmem:[#allocation102_spill] sm:$0xff] %v4212_v42  ;;  %8455 = vst [vmem:[#allocation103_spill] sm:$0xff] %v4216_v57  ;;  %v198_v48 = vld [vmem:[#allocation2 + $0x408] sm:$0xff]  ;;  %v199_v44 = vld [vmem:[#allocation2 + $0x410] sm:$0xff]  ;;  %1050 = vadd.xlane.f32.xlu0 %v1049_v5  ;;  %v4228_v24 = vadd.f32 %v470_v51, %v182_v41 }
  0x8d   :  { %8456 = vst [vmem:[#allocation104_spill] sm:$0xff] %v4220_v27  ;;  %v483_v0 = vld [vmem:[#allocation5 + $0x3f0] sm:$0xff]  ;;  %v484_v7 = vld [vmem:[#allocation5 + $0x3f8] sm:$0xff]  ;;  %v485_v59 = vld [vmem:[#allocation5 + $0x400] sm:$0xff]  ;;  %v1069_v8 = vadd.f32 %v1068_v6, %v4202_v37  ;;  %v1060_v26 = vadd.f32 %v1059_v9, %v4212_v42 }
  0x8e   :  { %v200_v50 = vld [vmem:[#allocation2 + $0x418] sm:$0xff]  ;;  %v486_v55 = vld [vmem:[#allocation5 + $0x408] sm:$0xff]  ;;  %v487_v4 = vld [vmem:[#allocation5 + $0x410] sm:$0xff]  ;;  %v4224_v63 = vadd.f32 %v483_v0, %v195_v39  ;;  %v4226_v3 = vadd.f32 %v484_v7, %v196_v21  ;;  %8459 = vst [vmem:[#allocation107_spill] sm:$0xff] %v4228_v24  ;;  %v4230_v20 = vadd.f32 %v485_v59, %v197_v28 }
  0x8f   :  { %v488_v60 = vld [vmem:[#allocation5 + $0x418] sm:$0xff]  ;;  %v189_v1 = vld [vmem:[#allocation2 + $0x3c0] sm:$0xff]  ;;  %v190_v35 = vld [vmem:[#allocation2 + $0x3c8] sm:$0xff]  ;;  %v1070_v5 = vadd.f32 %v1069_v8, %v4210_v34  ;;  %v1061_v6 = vadd.f32 %v1060_v26, %v4216_v57  ;;  %v4234_v37 = vadd.f32 %v486_v55, %v198_v48  ;;  %v4238_v7 = vadd.f32 %v487_v4, %v199_v44 }
  0x90   :  { %8457 = vst [vmem:[#allocation105_spill] sm:$0xff] %v4224_v63  ;;  %8458 = vst [vmem:[#allocation106_spill] sm:$0xff] %v4226_v3  ;;  %v1080_v9 = vadd.f32 %v4226_v3, %v4224_v63  ;;  %v191_v39 = vld [vmem:[#allocation2 + $0x3d0] sm:$0xff]  ;;  %v192_v0 = vld [vmem:[#allocation2 + $0x3d8] sm:$0xff]  ;;  %v4246_v3 = vadd.f32 %v488_v60, %v200_v50 }
  0x91   :  { %8460 = vst [vmem:[#allocation108_spill] sm:$0xff] %v4230_v20  ;;  %8461 = vst [vmem:[#allocation109_spill] sm:$0xff] %v4234_v37  ;;  %v193_v21 = vld [vmem:[#allocation2 + $0x3e0] sm:$0xff]  ;;  %v478_v51 = vld [vmem:[#allocation5 + $0x3c8] sm:$0xff]  ;;  %1071 = vadd.xlane.f32.xlu1 %v1070_v5  ;;  %v1062_v59 = vadd.f32 %v1061_v6, %v4220_v27 }
  0x92   :  { %8462 = vst [vmem:[#allocation110_spill] sm:$0xff] %v4238_v7  ;;  %v477_v41 = vld [vmem:[#allocation5 + $0x3c0] sm:$0xff]  ;;  %v479_v28 = vld [vmem:[#allocation5 + $0x3d0] sm:$0xff]  ;;  %v1081_v8 = vadd.f32 %v1080_v9, %v4230_v20  ;;  %v194_v34 = vld [vmem:[#allocation2 + $0x3e8] sm:$0xff]  ;;  %v4244_v57 = vadd.f32 %v478_v51, %v190_v35 }
  0x93   :  { %v480_v26 = vld [vmem:[#allocation5 + $0x3d8] sm:$0xff]  ;;  %v481_v48 = vld [vmem:[#allocation5 + $0x3e0] sm:$0xff]  ;;  %v4242_v55 = vadd.f32 %v477_v41, %v189_v1  ;;  %8465 = vst [vmem:[#allocation113_spill] sm:$0xff] %v4246_v3  ;;  %v482_v63 = vld [vmem:[#allocation5 + $0x3e8] sm:$0xff]  ;;  %v4248_v44 = vadd.f32 %v479_v28, %v191_v39  ;;  %v1063_v5 = vadd.f32 %v1062_v59, %v4228_v24 }
  0x94   :  { %8464 = vst [vmem:[#allocation112_spill] sm:$0xff] %v4244_v57  ;;  %v207_v4 = vld [vmem:[#allocation2 + $0x450] sm:$0xff]  ;;  %v208_v42 = vld [vmem:[#allocation2 + $0x458] sm:$0xff]  ;;  %v1082_v6 = vadd.f32 %v1081_v8, %v4234_v37  ;;  %v4252_v27 = vadd.f32 %v480_v26, %v192_v0  ;;  %v209_v1 = vld [vmem:[#allocation2 + $0x460] sm:$0xff]  ;;  %v4256_v51 = vadd.f32 %v481_v48, %v193_v21 }
  0x95   :  { %8463 = vst [vmem:[#allocation111_spill] sm:$0xff] %v4242_v55  ;;  %8466 = vst [vmem:[#allocation114_spill] sm:$0xff] %v4248_v44  ;;  %v1073_v9 = vadd.f32 %v4244_v57, %v4242_v55  ;;  %v210_v41 = vld [vmem:[#allocation2 + $0x468] sm:$0xff]  ;;  %v211_v35 = vld [vmem:[#allocation2 + $0x470] sm:$0xff]  ;;  %1064 = vadd.xlane.f32.xlu0 %v1063_v5  ;;  %v4264_v57 = vadd.f32 %v482_v63, %v194_v34 }
  0x96   :  { %8467 = vst [vmem:[#allocation115_spill] sm:$0xff] %v4252_v27  ;;  %8468 = vst [vmem:[#allocation116_spill] sm:$0xff] %v4256_v51  ;;  %v495_v50 = vld [vmem:[#allocation5 + $0x450] sm:$0xff]  ;;  %v496_v60 = vld [vmem:[#allocation5 + $0x458] sm:$0xff]  ;;  %v1083_v28 = vadd.f32 %v1082_v6, %v4238_v7 }
  0x97   :  { %v497_v39 = vld [vmem:[#allocation5 + $0x460] sm:$0xff]  ;;  %v1074_v59 = vadd.f32 %v1073_v9, %v4248_v44  ;;  %v212_v20 = vld [vmem:[#allocation2 + $0x478] sm:$0xff]  ;;  %v498_v8 = vld [vmem:[#allocation5 + $0x468] sm:$0xff]  ;;  %v4260_v26 = vadd.f32 %v495_v50, %v207_v4  ;;  %v4262_v37 = vadd.f32 %v496_v60, %v208_v42  ;;  %8471 = vst [vmem:[#allocation119_spill] sm:$0xff] %v4264_v57 }
  0x98   :  { %v499_v0 = vld [vmem:[#allocation5 + $0x470] sm:$0xff]  ;;  %v500_v55 = vld [vmem:[#allocation5 + $0x478] sm:$0xff]  ;;  %v4266_v21 = vadd.f32 %v497_v39, %v209_v1  ;;  %v201_v48 = vld [vmem:[#allocation2 + $0x420] sm:$0xff]  ;;  %v1084_v5 = vadd.f32 %v1083_v28, %v4246_v3  ;;  %v4270_v7 = vadd.f32 %v498_v8, %v210_v41 }
  0x99   :  { %8469 = vst [vmem:[#allocation117_spill] sm:$0xff] %v4260_v26  ;;  %8470 = vst [vmem:[#allocation118_spill] sm:$0xff] %v4262_v37  ;;  %v202_v24 = vld [vmem:[#allocation2 + $0x428] sm:$0xff]  ;;  %v1075_v6 = vadd.f32 %v1074_v59, %v4252_v27  ;;  %v1094_v9 = vadd.f32 %v4262_v37, %v4260_v26  ;;  %v203_v4 = vld [vmem:[#allocation2 + $0x430] sm:$0xff]  ;;  %v4274_v60 = vadd.f32 %v499_v0, %v211_v35 }
  0x9a   :  { %8472 = vst [vmem:[#allocation120_spill] sm:$0xff] %v4266_v21  ;;  %8473 = vst [vmem:[#allocation121_spill] sm:$0xff] %v4270_v7  ;;  %v204_v50 = vld [vmem:[#allocation2 + $0x438] sm:$0xff]  ;;  %v205_v42 = vld [vmem:[#allocation2 + $0x440] sm:$0xff]  ;;  %1085 = vadd.xlane.f32.xlu1 %v1084_v5  ;;  %v4282_v37 = vadd.f32 %v500_v55, %v212_v20 }
  0x9b   :  { %8474 = vst [vmem:[#allocation122_spill] sm:$0xff] %v4274_v60  ;;  %v489_v34 = vld [vmem:[#allocation5 + $0x420] sm:$0xff]  ;;  %v490_v63 = vld [vmem:[#allocation5 + $0x428] sm:$0xff]  ;;  %v491_v1 = vld [vmem:[#allocation5 + $0x430] sm:$0xff]  ;;  %v1076_v39 = vadd.f32 %v1075_v6, %v4256_v51  ;;  %v1095_v28 = vadd.f32 %v1094_v9, %v4266_v21 }
  0x9c   :  { %v206_v3 = vld [vmem:[#allocation2 + $0x448] sm:$0xff]  ;;  %v492_v59 = vld [vmem:[#allocation5 + $0x438] sm:$0xff]  ;;  %v493_v41 = vld [vmem:[#allocation5 + $0x440] sm:$0xff]  ;;  %v4278_v8 = vadd.f32 %v489_v34, %v201_v48  ;;  %v4280_v27 = vadd.f32 %v490_v63, %v202_v24  ;;  %8477 = vst [vmem:[#allocation125_spill] sm:$0xff] %v4282_v37  ;;  %v4284_v35 = vadd.f32 %v491_v1, %v203_v4 }
  0x9d   :  { %v494_v26 = vld [vmem:[#allocation5 + $0x448] sm:$0xff]  ;;  %v219_v0 = vld [vmem:[#allocation2 + $0x4b0] sm:$0xff]  ;;  %v220_v44 = vld [vmem:[#allocation2 + $0x4b8] sm:$0xff]  ;;  %v1077_v5 = vadd.f32 %v1076_v39, %v4264_v57  ;;  %v1096_v6 = vadd.f32 %v1095_v28, %v4270_v7  ;;  %v4288_v51 = vadd.f32 %v492_v59, %v204_v50  ;;  %v4292_v63 = vadd.f32 %v493_v41, %v205_v42 }
  0x9e   :  { %8475 = vst [vmem:[#allocation123_spill] sm:$0xff] %v4278_v8  ;;  %8476 = vst [vmem:[#allocation124_spill] sm:$0xff] %v4280_v27  ;;  %v1087_v9 = vadd.f32 %v4280_v27, %v4278_v8  ;;  %v221_v48 = vld [vmem:[#allocation2 + $0x4c0] sm:$0xff]  ;;  %v222_v34 = vld [vmem:[#allocation2 + $0x4c8] sm:$0xff]  ;;  %v4300_v27 = vadd.f32 %v494_v26, %v206_v3 }
  0x9f   :  { %8478 = vst [vmem:[#allocation126_spill] sm:$0xff] %v4284_v35  ;;  %8479 = vst [vmem:[#allocation127_spill] sm:$0xff] %v4288_v51  ;;  %v223_v24 = vld [vmem:[#allocation2 + $0x4d0] sm:$0xff]  ;;  %v508_v55 = vld [vmem:[#allocation5 + $0x4b8] sm:$0xff]  ;;  %1078 = vadd.xlane.f32.xlu0 %v1077_v5  ;;  %v1097_v1 = vadd.f32 %v1096_v6, %v4274_v60 }
  0xa0   :  { %8480 = vst [vmem:[#allocation128_spill] sm:$0xff] %v4292_v63  ;;  %v507_v20 = vld [vmem:[#allocation5 + $0x4b0] sm:$0xff]  ;;  %v509_v4 = vld [vmem:[#allocation5 + $0x4c0] sm:$0xff]  ;;  %v1088_v39 = vadd.f32 %v1087_v9, %v4284_v35  ;;  %v224_v21 = vld [vmem:[#allocation2 + $0x4d8] sm:$0xff]  ;;  %v4298_v7 = vadd.f32 %v508_v55, %v220_v44 }
  0xa1   :  { %v510_v28 = vld [vmem:[#allocation5 + $0x4c8] sm:$0xff]  ;;  %v511_v50 = vld [vmem:[#allocation5 + $0x4d0] sm:$0xff]  ;;  %v4296_v59 = vadd.f32 %v507_v20, %v219_v0  ;;  %8483 = vst [vmem:[#allocation131_spill] sm:$0xff] %v4300_v27  ;;  %v512_v8 = vld [vmem:[#allocation5 + $0x4d8] sm:$0xff]  ;;  %v4302_v42 = vadd.f32 %v509_v4, %v221_v48  ;;  %v1098_v5 = vadd.f32 %v1097_v1, %v4282_v37 }
  0xa2   :  { %8482 = vst [vmem:[#allocation130_spill] sm:$0xff] %v4298_v7  ;;  %v213_v41 = vld [vmem:[#allocation2 + $0x480] sm:$0xff]  ;;  %v214_v57 = vld [vmem:[#allocation2 + $0x488] sm:$0xff]  ;;  %v1089_v6 = vadd.f32 %v1088_v39, %v4288_v51  ;;  %v4306_v60 = vadd.f32 %v510_v28, %v222_v34  ;;  %v215_v0 = vld [vmem:[#allocation2 + $0x490] sm:$0xff]  ;;  %v4310_v55 = vadd.f32 %v511_v50, %v223_v24 }
  0xa3   :  { %8481 = vst [vmem:[#allocation129_spill] sm:$0xff] %v4296_v59  ;;  %8484 = vst [vmem:[#allocation132_spill] sm:$0xff] %v4302_v42  ;;  %v1108_v9 = vadd.f32 %v4298_v7, %v4296_v59  ;;  %v216_v20 = vld [vmem:[#allocation2 + $0x498] sm:$0xff]  ;;  %v217_v44 = vld [vmem:[#allocation2 + $0x4a0] sm:$0xff]  ;;  %1099 = vadd.xlane.f32.xlu1 %v1098_v5  ;;  %v4318_v7 = vadd.f32 %v512_v8, %v224_v21 }
  0xa4   :  { %8485 = vst [vmem:[#allocation133_spill] sm:$0xff] %v4306_v60  ;;  %8486 = vst [vmem:[#allocation134_spill] sm:$0xff] %v4310_v55  ;;  %v501_v3 = vld [vmem:[#allocation5 + $0x480] sm:$0xff]  ;;  %v502_v26 = vld [vmem:[#allocation5 + $0x488] sm:$0xff]  ;;  %v1090_v4 = vadd.f32 %v1089_v6, %v4292_v63 }
  0xa5   :  { %v503_v48 = vld [vmem:[#allocation5 + $0x490] sm:$0xff]  ;;  %v1109_v1 = vadd.f32 %v1108_v9, %v4302_v42  ;;  %v218_v37 = vld [vmem:[#allocation2 + $0x4a8] sm:$0xff]  ;;  %v504_v39 = vld [vmem:[#allocation5 + $0x498] sm:$0xff]  ;;  %v4314_v28 = vadd.f32 %v501_v3, %v213_v41  ;;  %v4316_v51 = vadd.f32 %v502_v26, %v214_v57  ;;  %8489 = vst [vmem:[#allocation137_spill] sm:$0xff] %v4318_v7 }
  0xa6   :  { %v505_v34 = vld [vmem:[#allocation5 + $0x4a0] sm:$0xff]  ;;  %v506_v59 = vld [vmem:[#allocation5 + $0x4a8] sm:$0xff]  ;;  %v4320_v24 = vadd.f32 %v503_v48, %v215_v0  ;;  %v231_v50 = vld [vmem:[#allocation2 + $0x510] sm:$0xff]  ;;  %v1091_v5 = vadd.f32 %v1090_v4, %v4300_v27  ;;  %v4324_v63 = vadd.f32 %v504_v39, %v216_v20 }
  0xa7   :  { %8487 = vst [vmem:[#allocation135_spill] sm:$0xff] %v4314_v28  ;;  %8488 = vst [vmem:[#allocation136_spill] sm:$0xff] %v4316_v51  ;;  %v232_v35 = vld [vmem:[#allocation2 + $0x518] sm:$0xff]  ;;  %v1110_v6 = vadd.f32 %v1109_v1, %v4306_v60  ;;  %v1101_v9 = vadd.f32 %v4316_v51, %v4314_v28  ;;  %v233_v41 = vld [vmem:[#allocation2 + $0x520] sm:$0xff]  ;;  %v4328_v26 = vadd.f32 %v505_v34, %v217_v44 }
  0xa8   :  { %8490 = vst [vmem:[#allocation138_spill] sm:$0xff] %v4320_v24  ;;  %8491 = vst [vmem:[#allocation139_spill] sm:$0xff] %v4324_v63  ;;  %v234_v3 = vld [vmem:[#allocation2 + $0x528] sm:$0xff]  ;;  %v235_v57 = vld [vmem:[#allocation2 + $0x530] sm:$0xff]  ;;  %1092 = vadd.xlane.f32.xlu0 %v1091_v5  ;;  %v4336_v51 = vadd.f32 %v506_v59, %v218_v37 }
  0xa9   :  { %8492 = vst [vmem:[#allocation140_spill] sm:$0xff] %v4328_v26  ;;  %v519_v21 = vld [vmem:[#allocation5 + $0x510] sm:$0xff]  ;;  %v520_v8 = vld [vmem:[#allocation5 + $0x518] sm:$0xff]  ;;  %v521_v0 = vld [vmem:[#allocation5 + $0x520] sm:$0xff]  ;;  %v1111_v48 = vadd.f32 %v1110_v6, %v4310_v55  ;;  %v1102_v4 = vadd.f32 %v1101_v9, %v4320_v24 }
  0xaa   :  { %v236_v42 = vld [vmem:[#allocation2 + $0x538] sm:$0xff]  ;;  %v522_v1 = vld [vmem:[#allocation5 + $0x528] sm:$0xff]  ;;  %v523_v20 = vld [vmem:[#allocation5 + $0x530] sm:$0xff]  ;;  %v4332_v39 = vadd.f32 %v519_v21, %v231_v50  ;;  %v4334_v60 = vadd.f32 %v520_v8, %v232_v35  ;;  %8495 = vst [vmem:[#allocation143_spill] sm:$0xff] %v4336_v51  ;;  %v4338_v44 = vadd.f32 %v521_v0, %v233_v41 }
  0xab   :  { %v524_v28 = vld [vmem:[#allocation5 + $0x538] sm:$0xff]  ;;  %v225_v34 = vld [vmem:[#allocation2 + $0x4e0] sm:$0xff]  ;;  %v226_v27 = vld [vmem:[#allocation2 + $0x4e8] sm:$0xff]  ;;  %v1112_v5 = vadd.f32 %v1111_v48, %v4318_v7  ;;  %v1103_v6 = vadd.f32 %v1102_v4, %v4324_v63  ;;  %v4342_v55 = vadd.f32 %v522_v1, %v234_v3  ;;  %v4346_v8 = vadd.f32 %v523_v20, %v235_v57 }
  0xac   :  { %8493 = vst [vmem:[#allocation141_spill] sm:$0xff] %v4332_v39  ;;  %8494 = vst [vmem:[#allocation142_spill] sm:$0xff] %v4334_v60  ;;  %v1122_v9 = vadd.f32 %v4334_v60, %v4332_v39  ;;  %v227_v50 = vld [vmem:[#allocation2 + $0x4f0] sm:$0xff]  ;;  %v228_v21 = vld [vmem:[#allocation2 + $0x4f8] sm:$0xff]  ;;  %v4354_v60 = vadd.f32 %v524_v28, %v236_v42 }
  0xad   :  { %8496 = vst [vmem:[#allocation144_spill] sm:$0xff] %v4338_v44  ;;  %8497 = vst [vmem:[#allocation145_spill] sm:$0xff] %v4342_v55  ;;  %v229_v35 = vld [vmem:[#allocation2 + $0x500] sm:$0xff]  ;;  %v514_v59 = vld [vmem:[#allocation5 + $0x4e8] sm:$0xff]  ;;  %1113 = vadd.xlane.f32.xlu1 %v1112_v5  ;;  %v1104_v0 = vadd.f32 %v1103_v6, %v4328_v26 }
  0xae   :  { %8498 = vst [vmem:[#allocation146_spill] sm:$0xff] %v4346_v8  ;;  %v513_v37 = vld [vmem:[#allocation5 + $0x4e0] sm:$0xff]  ;;  %v515_v41 = vld [vmem:[#allocation5 + $0x4f0] sm:$0xff]  ;;  %v1123_v48 = vadd.f32 %v1122_v9, %v4338_v44  ;;  %v230_v7 = vld [vmem:[#allocation2 + $0x508] sm:$0xff]  ;;  %v4352_v63 = vadd.f32 %v514_v59, %v226_v27 }
  0xaf   :  { %v516_v4 = vld [vmem:[#allocation5 + $0x4f8] sm:$0xff]  ;;  %v517_v3 = vld [vmem:[#allocation5 + $0x500] sm:$0xff]  ;;  %v4350_v1 = vadd.f32 %v513_v37, %v225_v34  ;;  %8501 = vst [vmem:[#allocation149_spill] sm:$0xff] %v4354_v60  ;;  %v518_v39 = vld [vmem:[#allocation5 + $0x508] sm:$0xff]  ;;  %v4356_v57 = vadd.f32 %v515_v41, %v227_v50  ;;  %v1105_v5 = vadd.f32 %v1104_v0, %v4336_v51 }
  0xb0   :  { %8500 = vst [vmem:[#allocation148_spill] sm:$0xff] %v4352_v63  ;;  %v243_v20 = vld [vmem:[#allocation2 + $0x570] sm:$0xff]  ;;  %v244_v24 = vld [vmem:[#allocation2 + $0x578] sm:$0xff]  ;;  %v1124_v6 = vadd.f32 %v1123_v48, %v4342_v55  ;;  %v4360_v26 = vadd.f32 %v516_v4, %v228_v21  ;;  %v245_v34 = vld [vmem:[#allocation2 + $0x580] sm:$0xff]  ;;  %v4364_v59 = vadd.f32 %v517_v3, %v229_v35 }
  0xb1   :  { %8499 = vst [vmem:[#allocation147_spill] sm:$0xff] %v4350_v1  ;;  %8502 = vst [vmem:[#allocation150_spill] sm:$0xff] %v4356_v57  ;;  %v1115_v9 = vadd.f32 %v4352_v63, %v4350_v1  ;;  %v246_v37 = vld [vmem:[#allocation2 + $0x588] sm:$0xff]  ;;  %v247_v27 = vld [vmem:[#allocation2 + $0x590] sm:$0xff]  ;;  %1106 = vadd.xlane.f32.xlu0 %v1105_v5  ;;  %v4372_v63 = vadd.f32 %v518_v39, %v230_v7 }
  0xb2   :  { %8503 = vst [vmem:[#allocation151_spill] sm:$0xff] %v4360_v26  ;;  %8504 = vst [vmem:[#allocation152_spill] sm:$0xff] %v4364_v59  ;;  %v531_v42 = vld [vmem:[#allocation5 + $0x570] sm:$0xff]  ;;  %v532_v28 = vld [vmem:[#allocation5 + $0x578] sm:$0xff]  ;;  %v1125_v41 = vadd.f32 %v1124_v6, %v4346_v8 }
  0xb3   :  { %v533_v50 = vld [vmem:[#allocation5 + $0x580] sm:$0xff]  ;;  %v1116_v0 = vadd.f32 %v1115_v9, %v4356_v57  ;;  %v248_v44 = vld [vmem:[#allocation2 + $0x598] sm:$0xff]  ;;  %v534_v48 = vld [vmem:[#allocation5 + $0x588] sm:$0xff]  ;;  %v4368_v4 = vadd.f32 %v531_v42, %v243_v20  ;;  %v4370_v55 = vadd.f32 %v532_v28, %v244_v24  ;;  %8507 = vst [vmem:[#allocation155_spill] sm:$0xff] %v4372_v63 }
  0xb4   :  { %v535_v21 = vld [vmem:[#allocation5 + $0x590] sm:$0xff]  ;;  %v536_v1 = vld [vmem:[#allocation5 + $0x598] sm:$0xff]  ;;  %v4374_v35 = vadd.f32 %v533_v50, %v245_v34  ;;  %v237_v3 = vld [vmem:[#allocation2 + $0x540] sm:$0xff]  ;;  %v1126_v5 = vadd.f32 %v1125_v41, %v4354_v60  ;;  %v4378_v8 = vadd.f32 %v534_v48, %v246_v37 }
  0xb5   :  { %8505 = vst [vmem:[#allocation153_spill] sm:$0xff] %v4368_v4  ;;  %8506 = vst [vmem:[#allocation154_spill] sm:$0xff] %v4370_v55  ;;  %v238_v51 = vld [vmem:[#allocation2 + $0x548] sm:$0xff]  ;;  %v1117_v6 = vadd.f32 %v1116_v0, %v4360_v26  ;;  %v1136_v9 = vadd.f32 %v4370_v55, %v4368_v4  ;;  %v239_v20 = vld [vmem:[#allocation2 + $0x550] sm:$0xff]  ;;  %v4382_v28 = vadd.f32 %v535_v21, %v247_v27 }
  0xb6   :  { %8508 = vst [vmem:[#allocation156_spill] sm:$0xff] %v4374_v35  ;;  %8509 = vst [vmem:[#allocation157_spill] sm:$0xff] %v4378_v8  ;;  %v240_v42 = vld [vmem:[#allocation2 + $0x558] sm:$0xff]  ;;  %v241_v24 = vld [vmem:[#allocation2 + $0x560] sm:$0xff]  ;;  %1127 = vadd.xlane.f32.xlu1 %v1126_v5  ;;  %v4390_v55 = vadd.f32 %v536_v1, %v248_v44 }
  0xb7   :  { %8510 = vst [vmem:[#allocation158_spill] sm:$0xff] %v4382_v28  ;;  %v525_v7 = vld [vmem:[#allocation5 + $0x540] sm:$0xff]  ;;  %v526_v39 = vld [vmem:[#allocation5 + $0x548] sm:$0xff]  ;;  %v527_v34 = vld [vmem:[#allocation5 + $0x550] sm:$0xff]  ;;  %v1118_v50 = vadd.f32 %v1117_v6, %v4364_v59  ;;  %v1137_v41 = vadd.f32 %v1136_v9, %v4374_v35 }
  0xb8   :  { %v242_v60 = vld [vmem:[#allocation2 + $0x568] sm:$0xff]  ;;  %v528_v0 = vld [vmem:[#allocation5 + $0x558] sm:$0xff]  ;;  %v529_v37 = vld [vmem:[#allocation5 + $0x560] sm:$0xff]  ;;  %v4386_v48 = vadd.f32 %v525_v7, %v237_v3  ;;  %v4388_v26 = vadd.f32 %v526_v39, %v238_v51  ;;  %8513 = vst [vmem:[#allocation161_spill] sm:$0xff] %v4390_v55  ;;  %v4392_v27 = vadd.f32 %v527_v34, %v239_v20 }
  0xb9   :  { %v530_v4 = vld [vmem:[#allocation5 + $0x568] sm:$0xff]  ;;  %v255_v21 = vld [vmem:[#allocation2 + $0x5d0] sm:$0xff]  ;;  %v256_v57 = vld [vmem:[#allocation2 + $0x5d8] sm:$0xff]  ;;  %v1119_v5 = vadd.f32 %v1118_v50, %v4372_v63  ;;  %v1138_v6 = vadd.f32 %v1137_v41, %v4378_v8  ;;  %v4396_v59 = vadd.f32 %v528_v0, %v240_v42  ;;  %v4400_v39 = vadd.f32 %v529_v37, %v241_v24 }
  0xba   :  { %8511 = vst [vmem:[#allocation159_spill] sm:$0xff] %v4386_v48  ;;  %8512 = vst [vmem:[#allocation160_spill] sm:$0xff] %v4388_v26  ;;  %v1129_v9 = vadd.f32 %v4388_v26, %v4386_v48  ;;  %v257_v3 = vld [vmem:[#allocation2 + $0x5e0] sm:$0xff]  ;;  %v258_v7 = vld [vmem:[#allocation2 + $0x5e8] sm:$0xff]  ;;  %v4408_v26 = vadd.f32 %v530_v4, %v242_v60 }
  0xbb   :  { %8514 = vst [vmem:[#allocation162_spill] sm:$0xff] %v4392_v27  ;;  %8515 = vst [vmem:[#allocation163_spill] sm:$0xff] %v4396_v59  ;;  %v259_v51 = vld [vmem:[#allocation2 + $0x5f0] sm:$0xff]  ;;  %v544_v1 = vld [vmem:[#allocation5 + $0x5d8] sm:$0xff]  ;;  %1120 = vadd.xlane.f32.xlu0 %v1119_v5  ;;  %v1139_v34 = vadd.f32 %v1138_v6, %v4382_v28 }
  0xbc   :  { %8516 = vst [vmem:[#allocation164_spill] sm:$0xff] %v4400_v39  ;;  %v543_v44 = vld [vmem:[#allocation5 + $0x5d0] sm:$0xff]  ;;  %v545_v20 = vld [vmem:[#allocation5 + $0x5e0] sm:$0xff]  ;;  %v1130_v50 = vadd.f32 %v1129_v9, %v4392_v27  ;;  %v260_v35 = vld [vmem:[#allocation2 + $0x5f8] sm:$0xff]  ;;  %v4406_v8 = vadd.f32 %v544_v1, %v256_v57 }
  0xbd   :  { %v546_v41 = vld [vmem:[#allocation5 + $0x5e8] sm:$0xff]  ;;  %v547_v42 = vld [vmem:[#allocation5 + $0x5f0] sm:$0xff]  ;;  %v4404_v0 = vadd.f32 %v543_v44, %v255_v21  ;;  %8519 = vst [vmem:[#allocation167_spill] sm:$0xff] %v4408_v26  ;;  %v548_v48 = vld [vmem:[#allocation5 + $0x5f8] sm:$0xff]  ;;  %v4410_v24 = vadd.f32 %v545_v20, %v257_v3  ;;  %v1140_v5 = vadd.f32 %v1139_v34, %v4390_v55 }
  0xbe   :  { %8518 = vst [vmem:[#allocation166_spill] sm:$0xff] %v4406_v8  ;;  %v249_v37 = vld [vmem:[#allocation2 + $0x5a0] sm:$0xff]  ;;  %v250_v63 = vld [vmem:[#allocation2 + $0x5a8] sm:$0xff]  ;;  %v1131_v6 = vadd.f32 %v1130_v50, %v4396_v59  ;;  %v4414_v28 = vadd.f32 %v546_v41, %v258_v7  ;;  %v251_v21 = vld [vmem:[#allocation2 + $0x5b0] sm:$0xff]  ;;  %v4418_v1 = vadd.f32 %v547_v42, %v259_v51 }
  0xbf   :  { %8517 = vst [vmem:[#allocation165_spill] sm:$0xff] %v4404_v0  ;;  %8520 = vst [vmem:[#allocation168_spill] sm:$0xff] %v4410_v24  ;;  %v1150_v9 = vadd.f32 %v4406_v8, %v4404_v0  ;;  %v252_v44 = vld [vmem:[#allocation2 + $0x5b8] sm:$0xff]  ;;  %v253_v57 = vld [vmem:[#allocation2 + $0x5c0] sm:$0xff]  ;;  %1141 = vadd.xlane.f32.xlu1 %v1140_v5  ;;  %v4426_v8 = vadd.f32 %v548_v48, %v260_v35 }
  0xc0   :  { %8521 = vst [vmem:[#allocation169_spill] sm:$0xff] %v4414_v28  ;;  %8522 = vst [vmem:[#allocation170_spill] sm:$0xff] %v4418_v1  ;;  %v537_v60 = vld [vmem:[#allocation5 + $0x5a0] sm:$0xff]  ;;  %v538_v4 = vld [vmem:[#allocation5 + $0x5a8] sm:$0xff]  ;;  %v1132_v20 = vadd.f32 %v1131_v6, %v4400_v39 }
  0xc1   :  { %v539_v3 = vld [vmem:[#allocation5 + $0x5b0] sm:$0xff]  ;;  %v1151_v34 = vadd.f32 %v1150_v9, %v4410_v24  ;;  %v254_v55 = vld [vmem:[#allocation2 + $0x5c8] sm:$0xff]  ;;  %v540_v50 = vld [vmem:[#allocation5 + $0x5b8] sm:$0xff]  ;;  %v4422_v41 = vadd.f32 %v537_v60, %v249_v37  ;;  %v4424_v59 = vadd.f32 %v538_v4, %v250_v63  ;;  %8525 = vst [vmem:[#allocation173_spill] sm:$0xff] %v4426_v8 }
  0xc2   :  { %v541_v7 = vld [vmem:[#allocation5 + $0x5c0] sm:$0xff]  ;;  %v542_v0 = vld [vmem:[#allocation5 + $0x5c8] sm:$0xff]  ;;  %v4428_v51 = vadd.f32 %v539_v3, %v251_v21  ;;  %v267_v42 = vld [vmem:[#allocation2 + $0x630] sm:$0xff]  ;;  %v1133_v5 = vadd.f32 %v1132_v20, %v4408_v26  ;;  %v4432_v39 = vadd.f32 %v540_v50, %v252_v44 }
  0xc3   :  { %8523 = vst [vmem:[#allocation171_spill] sm:$0xff] %v4422_v41  ;;  %8524 = vst [vmem:[#allocation172_spill] sm:$0xff] %v4424_v59  ;;  %v268_v27 = vld [vmem:[#allocation2 + $0x638] sm:$0xff]  ;;  %v1152_v6 = vadd.f32 %v1151_v34, %v4414_v28  ;;  %v1143_v9 = vadd.f32 %v4424_v59, %v4422_v41  ;;  %v269_v37 = vld [vmem:[#allocation2 + $0x640] sm:$0xff]  ;;  %v4436_v4 = vadd.f32 %v541_v7, %v253_v57 }
  0xc4   :  { %8526 = vst [vmem:[#allocation174_spill] sm:$0xff] %v4428_v51  ;;  %8527 = vst [vmem:[#allocation175_spill] sm:$0xff] %v4432_v39  ;;  %v270_v60 = vld [vmem:[#allocation2 + $0x648] sm:$0xff]  ;;  %v271_v63 = vld [vmem:[#allocation2 + $0x650] sm:$0xff]  ;;  %1134 = vadd.xlane.f32.xlu0 %v1133_v5  ;;  %v4444_v59 = vadd.f32 %v542_v0, %v254_v55 }
  0xc5   :  { %8528 = vst [vmem:[#allocation176_spill] sm:$0xff] %v4436_v4  ;;  %v555_v35 = vld [vmem:[#allocation5 + $0x630] sm:$0xff]  ;;  %v556_v48 = vld [vmem:[#allocation5 + $0x638] sm:$0xff]  ;;  %v557_v21 = vld [vmem:[#allocation5 + $0x640] sm:$0xff]  ;;  %v1153_v3 = vadd.f32 %v1152_v6, %v4418_v1  ;;  %v1144_v20 = vadd.f32 %v1143_v9, %v4428_v51 }
  0xc6   :  { %v272_v24 = vld [vmem:[#allocation2 + $0x658] sm:$0xff]  ;;  %v558_v34 = vld [vmem:[#allocation5 + $0x648] sm:$0xff]  ;;  %v559_v44 = vld [vmem:[#allocation5 + $0x650] sm:$0xff]  ;;  %v4440_v50 = vadd.f32 %v555_v35, %v267_v42  ;;  %v4442_v28 = vadd.f32 %v556_v48, %v268_v27  ;;  %8531 = vst [vmem:[#allocation179_spill] sm:$0xff] %v4444_v59  ;;  %v4446_v57 = vadd.f32 %v557_v21, %v269_v37 }
  0xc7   :  { %v560_v41 = vld [vmem:[#allocation5 + $0x658] sm:$0xff]  ;;  %v261_v7 = vld [vmem:[#allocation2 + $0x600] sm:$0xff]  ;;  %v262_v26 = vld [vmem:[#allocation2 + $0x608] sm:$0xff]  ;;  %v1154_v5 = vadd.f32 %v1153_v3, %v4426_v8  ;;  %v1145_v6 = vadd.f32 %v1144_v20, %v4432_v39  ;;  %v4450_v1 = vadd.f32 %v558_v34, %v270_v60  ;;  %v4454_v48 = vadd.f32 %v559_v44, %v271_v63 }
  0xc8   :  { %8529 = vst [vmem:[#allocation177_spill] sm:$0xff] %v4440_v50  ;;  %8530 = vst [vmem:[#allocation178_spill] sm:$0xff] %v4442_v28  ;;  %v1164_v9 = vadd.f32 %v4442_v28, %v4440_v50  ;;  %v263_v42 = vld [vmem:[#allocation2 + $0x610] sm:$0xff]  ;;  %v264_v35 = vld [vmem:[#allocation2 + $0x618] sm:$0xff]  ;;  %v4462_v28 = vadd.f32 %v560_v41, %v272_v24 }
  0xc9   :  { %8532 = vst [vmem:[#allocation180_spill] sm:$0xff] %v4446_v57  ;;  %8533 = vst [vmem:[#allocation181_spill] sm:$0xff] %v4450_v1  ;;  %v265_v27 = vld [vmem:[#allocation2 + $0x620] sm:$0xff]  ;;  %v550_v0 = vld [vmem:[#allocation5 + $0x608] sm:$0xff]  ;;  %1155 = vadd.xlane.f32.xlu1 %v1154_v5  ;;  %v1146_v21 = vadd.f32 %v1145_v6, %v4436_v4 }
  0xca   :  { %8534 = vst [vmem:[#allocation182_spill] sm:$0xff] %v4454_v48  ;;  %v549_v55 = vld [vmem:[#allocation5 + $0x600] sm:$0xff]  ;;  %v551_v37 = vld [vmem:[#allocation5 + $0x610] sm:$0xff]  ;;  %v1165_v3 = vadd.f32 %v1164_v9, %v4446_v57  ;;  %v266_v8 = vld [vmem:[#allocation2 + $0x628] sm:$0xff]  ;;  %v4460_v39 = vadd.f32 %v550_v0, %v262_v26 }
  0xcb   :  { %v552_v20 = vld [vmem:[#allocation5 + $0x618] sm:$0xff]  ;;  %v553_v60 = vld [vmem:[#allocation5 + $0x620] sm:$0xff]  ;;  %v4458_v34 = vadd.f32 %v549_v55, %v261_v7  ;;  %8537 = vst [vmem:[#allocation185_spill] sm:$0xff] %v4462_v28  ;;  %v554_v50 = vld [vmem:[#allocation5 + $0x628] sm:$0xff]  ;;  %v4464_v63 = vadd.f32 %v551_v37, %v263_v42  ;;  %v1147_v5 = vadd.f32 %v1146_v21, %v4444_v59 }
  0xcc   :  { %8536 = vst [vmem:[#allocation184_spill] sm:$0xff] %v4460_v39  ;;  %v279_v44 = vld [vmem:[#allocation2 + $0x690] sm:$0xff]  ;;  %v280_v51 = vld [vmem:[#allocation2 + $0x698] sm:$0xff]  ;;  %v1166_v6 = vadd.f32 %v1165_v3, %v4450_v1  ;;  %v4468_v4 = vadd.f32 %v552_v20, %v264_v35  ;;  %v281_v7 = vld [vmem:[#allocation2 + $0x6a0] sm:$0xff]  ;;  %v4472_v0 = vadd.f32 %v553_v60, %v265_v27 }
  0xcd   :  { %8535 = vst [vmem:[#allocation183_spill] sm:$0xff] %v4458_v34  ;;  %8538 = vst [vmem:[#allocation186_spill] sm:$0xff] %v4464_v63  ;;  %v1157_v9 = vadd.f32 %v4460_v39, %v4458_v34  ;;  %v282_v55 = vld [vmem:[#allocation2 + $0x6a8] sm:$0xff]  ;;  %v283_v26 = vld [vmem:[#allocation2 + $0x6b0] sm:$0xff]  ;;  %1148 = vadd.xlane.f32.xlu0 %v1147_v5  ;;  %v4480_v39 = vadd.f32 %v554_v50, %v266_v8 }
  0xce   :  { %8539 = vst [vmem:[#allocation187_spill] sm:$0xff] %v4468_v4  ;;  %8540 = vst [vmem:[#allocation188_spill] sm:$0xff] %v4472_v0  ;;  %v567_v24 = vld [vmem:[#allocation5 + $0x690] sm:$0xff]  ;;  %v568_v41 = vld [vmem:[#allocation5 + $0x698] sm:$0xff]  ;;  %v1167_v37 = vadd.f32 %v1166_v6, %v4454_v48 }
  0xcf   :  { %v569_v42 = vld [vmem:[#allocation5 + $0x6a0] sm:$0xff]  ;;  %v1158_v21 = vadd.f32 %v1157_v9, %v4464_v63  ;;  %v284_v57 = vld [vmem:[#allocation2 + $0x6b8] sm:$0xff]  ;;  %v570_v3 = vld [vmem:[#allocation5 + $0x6a8] sm:$0xff]  ;;  %v4476_v20 = vadd.f32 %v567_v24, %v279_v44  ;;  %v4478_v1 = vadd.f32 %v568_v41, %v280_v51  ;;  %8543 = vst [vmem:[#allocation191_spill] sm:$0xff] %v4480_v39 }
  0xd0   :  { %v571_v35 = vld [vmem:[#allocation5 + $0x6b0] sm:$0xff]  ;;  %v572_v34 = vld [vmem:[#allocation5 + $0x6b8] sm:$0xff]  ;;  %v4482_v27 = vadd.f32 %v569_v42, %v281_v7  ;;  %v273_v60 = vld [vmem:[#allocation2 + $0x660] sm:$0xff]  ;;  %v1168_v5 = vadd.f32 %v1167_v37, %v4462_v28  ;;  %v4486_v48 = vadd.f32 %v570_v3, %v282_v55 }
  0xd1   :  { %8541 = vst [vmem:[#allocation189_spill] sm:$0xff] %v4476_v20  ;;  %8542 = vst [vmem:[#allocation190_spill] sm:$0xff] %v4478_v1  ;;  %v274_v59 = vld [vmem:[#allocation2 + $0x668] sm:$0xff]  ;;  %v1159_v6 = vadd.f32 %v1158_v21, %v4468_v4  ;;  %v1178_v9 = vadd.f32 %v4478_v1, %v4476_v20  ;;  %v275_v44 = vld [vmem:[#allocation2 + $0x670] sm:$0xff]  ;;  %v4490_v41 = vadd.f32 %v571_v35, %v283_v26 }
  0xd2   :  { %8544 = vst [vmem:[#allocation192_spill] sm:$0xff] %v4482_v27  ;;  %8545 = vst [vmem:[#allocation193_spill] sm:$0xff] %v4486_v48  ;;  %v276_v24 = vld [vmem:[#allocation2 + $0x678] sm:$0xff]  ;;  %v277_v51 = vld [vmem:[#allocation2 + $0x680] sm:$0xff]  ;;  %1169 = vadd.xlane.f32.xlu1 %v1168_v5  ;;  %v4498_v1 = vadd.f32 %v572_v34, %v284_v57 }
  0xd3   :  { %8546 = vst [vmem:[#allocation194_spill] sm:$0xff] %v4490_v41  ;;  %v561_v8 = vld [vmem:[#allocation5 + $0x660] sm:$0xff]  ;;  %v562_v50 = vld [vmem:[#allocation5 + $0x668] sm:$0xff]  ;;  %v563_v7 = vld [vmem:[#allocation5 + $0x670] sm:$0xff]  ;;  %v1160_v42 = vadd.f32 %v1159_v6, %v4472_v0  ;;  %v1179_v37 = vadd.f32 %v1178_v9, %v4482_v27 }
  0xd4   :  { %v278_v28 = vld [vmem:[#allocation2 + $0x688] sm:$0xff]  ;;  %v564_v21 = vld [vmem:[#allocation5 + $0x678] sm:$0xff]  ;;  %v565_v55 = vld [vmem:[#allocation5 + $0x680] sm:$0xff]  ;;  %v4494_v3 = vadd.f32 %v561_v8, %v273_v60  ;;  %v4496_v4 = vadd.f32 %v562_v50, %v274_v59  ;;  %8549 = vst [vmem:[#allocation197_spill] sm:$0xff] %v4498_v1  ;;  %v4500_v26 = vadd.f32 %v563_v7, %v275_v44 }
  0xd5   :  { %v566_v20 = vld [vmem:[#allocation5 + $0x688] sm:$0xff]  ;;  %v291_v35 = vld [vmem:[#allocation2 + $0x6f0] sm:$0xff]  ;;  %v292_v63 = vld [vmem:[#allocation2 + $0x6f8] sm:$0xff]  ;;  %v1161_v5 = vadd.f32 %v1160_v42, %v4480_v39  ;;  %v1180_v6 = vadd.f32 %v1179_v37, %v4486_v48  ;;  %v4504_v0 = vadd.f32 %v564_v21, %v276_v24  ;;  %v4508_v50 = vadd.f32 %v565_v55, %v277_v51 }
  0xd6   :  { %8547 = vst [vmem:[#allocation195_spill] sm:$0xff] %v4494_v3  ;;  %8548 = vst [vmem:[#allocation196_spill] sm:$0xff] %v4496_v4  ;;  %v1171_v9 = vadd.f32 %v4496_v4, %v4494_v3  ;;  %v293_v60 = vld [vmem:[#allocation2 + $0x700] sm:$0xff]  ;;  %v294_v8 = vld [vmem:[#allocation2 + $0x708] sm:$0xff]  ;;  %v4516_v4 = vadd.f32 %v566_v20, %v278_v28 }
  0xd7   :  { %8550 = vst [vmem:[#allocation198_spill] sm:$0xff] %v4500_v26  ;;  %8551 = vst [vmem:[#allocation199_spill] sm:$0xff] %v4504_v0  ;;  %v295_v59 = vld [vmem:[#allocation2 + $0x710] sm:$0xff]  ;;  %v580_v34 = vld [vmem:[#allocation5 + $0x6f8] sm:$0xff]  ;;  %1162 = vadd.xlane.f32.xlu0 %v1161_v5  ;;  %v1181_v7 = vadd.f32 %v1180_v6, %v4490_v41 }
  0xd8   :  { %8552 = vst [vmem:[#allocation200_spill] sm:$0xff] %v4508_v50  ;;  %v579_v57 = vld [vmem:[#allocation5 + $0x6f0] sm:$0xff]  ;;  %v581_v44 = vld [vmem:[#allocation5 + $0x700] sm:$0xff]  ;;  %v1172_v42 = vadd.f32 %v1171_v9, %v4500_v26  ;;  %v296_v27 = vld [vmem:[#allocation2 + $0x718] sm:$0xff]  ;;  %v4514_v48 = vadd.f32 %v580_v34, %v292_v63 }
  0xd9   :  { %v582_v37 = vld [vmem:[#allocation5 + $0x708] sm:$0xff]  ;;  %v583_v24 = vld [vmem:[#allocation5 + $0x710] sm:$0xff]  ;;  %v4512_v21 = vadd.f32 %v579_v57, %v291_v35  ;;  %8555 = vst [vmem:[#allocation203_spill] sm:$0xff] %v4516_v4  ;;  %v584_v3 = vld [vmem:[#allocation5 + $0x718] sm:$0xff]  ;;  %v4518_v51 = vadd.f32 %v581_v44, %v293_v60  ;;  %v1182_v5 = vadd.f32 %v1181_v7, %v4498_v1 }
  0xda   :  { %8554 = vst [vmem:[#allocation202_spill] sm:$0xff] %v4514_v48  ;;  %v285_v55 = vld [vmem:[#allocation2 + $0x6c0] sm:$0xff]  ;;  %v286_v39 = vld [vmem:[#allocation2 + $0x6c8] sm:$0xff]  ;;  %v1173_v6 = vadd.f32 %v1172_v42, %v4504_v0  ;;  %v4522_v41 = vadd.f32 %v582_v37, %v294_v8  ;;  %v287_v35 = vld [vmem:[#allocation2 + $0x6d0] sm:$0xff]  ;;  %v4526_v34 = vadd.f32 %v583_v24, %v295_v59 }
  0xdb   :  { %8553 = vst [vmem:[#allocation201_spill] sm:$0xff] %v4512_v21  ;;  %8556 = vst [vmem:[#allocation204_spill] sm:$0xff] %v4518_v51  ;;  %v1192_v9 = vadd.f32 %v4514_v48, %v4512_v21  ;;  %v288_v57 = vld [vmem:[#allocation2 + $0x6d8] sm:$0xff]  ;;  %v289_v63 = vld [vmem:[#allocation2 + $0x6e0] sm:$0xff]  ;;  %1183 = vadd.xlane.f32.xlu1 %v1182_v5  ;;  %v4534_v21 = vadd.f32 %v584_v3, %v296_v27 }
  0xdc   :  { %8557 = vst [vmem:[#allocation205_spill] sm:$0xff] %v4522_v41  ;;  %8558 = vst [vmem:[#allocation206_spill] sm:$0xff] %v4526_v34  ;;  %v573_v28 = vld [vmem:[#allocation5 + $0x6c0] sm:$0xff]  ;;  %v574_v20 = vld [vmem:[#allocation5 + $0x6c8] sm:$0xff]  ;;  %v1174_v44 = vadd.f32 %v1173_v6, %v4508_v50 }
  0xdd   :  { %v575_v60 = vld [vmem:[#allocation5 + $0x6d0] sm:$0xff]  ;;  %v1193_v7 = vadd.f32 %v1192_v9, %v4518_v51  ;;  %v290_v1 = vld [vmem:[#allocation2 + $0x6e8] sm:$0xff]  ;;  %v576_v42 = vld [vmem:[#allocation5 + $0x6d8] sm:$0xff]  ;;  %v4530_v0 = vadd.f32 %v573_v28, %v285_v55  ;;  %v4532_v48 = vadd.f32 %v574_v20, %v286_v39  ;;  %8561 = vst [vmem:[#allocation209_spill] sm:$0xff] %v4534_v21  ;;  %v953_v20 = vpop.xlane.xlu1 %952 }
  0xde   :  { %v577_v8 = vld [vmem:[#allocation5 + $0x6e0] sm:$0xff]  ;;  %v578_v37 = vld [vmem:[#allocation5 + $0x6e8] sm:$0xff]  ;;  %v4536_v59 = vadd.f32 %v575_v60, %v287_v35  ;;  %v303_v24 = vld [vmem:[#allocation2 + $0x750] sm:$0xff]  ;;  %v1175_v5 = vadd.f32 %v1174_v44, %v4516_v4  ;;  %v4540_v9 = vadd.f32 %v576_v42, %v288_v57  ;;  %v4556_v46 = vmul.f32 0.0013020834, %v953_v20 }
  0xdf   :  { %8559 = vst [vmem:[#allocation207_spill] sm:$0xff] %v4530_v0  ;;  %8560 = vst [vmem:[#allocation208_spill] sm:$0xff] %v4532_v48  ;;  %v304_v26 = vld [vmem:[#allocation2 + $0x758] sm:$0xff]  ;;  %v305_v58 = vld [vmem:[#allocation2 + $0x760] sm:$0xff]  ;;  %v1194_v6 = vadd.f32 %v1193_v7, %v4522_v41  ;;  %v1185_v51 = vadd.f32 %v4532_v48, %v4530_v0  ;;  %v4544_v27 = vadd.f32 %v577_v8, %v289_v63 }
  0xe0   :  { %8562 = vst [vmem:[#allocation210_spill] sm:$0xff] %v4536_v59  ;;  %8563 = vst [vmem:[#allocation211_spill] sm:$0xff] %v4540_v9  ;;  %v306_v55 = vld [vmem:[#allocation2 + $0x768] sm:$0xff]  ;;  %v307_v28 = vld [vmem:[#allocation2 + $0x770] sm:$0xff]  ;;  %1176 = vadd.xlane.f32.xlu0 %v1175_v5  ;;  %v4552_v0 = vadd.f32 %v578_v37, %v290_v1  ;;  %v939_v37 = vpop.xlane.xlu0 %938 }
  0xe1   :  { %v308_v39 = vld [vmem:[#allocation2 + $0x778] sm:$0xff]  ;;  %8564 = vst [vmem:[#allocation212_spill] sm:$0xff] %v4544_v27  ;;  %v591_v3 = vld [vmem:[#allocation5 + $0x750] sm:$0xff]  ;;  %v593_v60 = vld [vmem:[#allocation5 + $0x760] sm:$0xff]  ;;  %v1195_v50 = vadd.f32 %v1194_v6, %v4526_v34  ;;  %v1186_v44 = vadd.f32 %v1185_v51, %v4536_v59 }
  0xe2   :  { %v592_v35 = vld [vmem:[#allocation5 + $0x758] sm:$0xff]  ;;  %v594_v7 = vld [vmem:[#allocation5 + $0x768] sm:$0xff]  ;;  %v595_v57 = vld [vmem:[#allocation5 + $0x770] sm:$0xff]  ;;  %v4548_v41 = vadd.f32 %v591_v3, %v303_v24  ;;  %8567 = vst [vmem:[#allocation215_spill] sm:$0xff] %v4552_v0  ;;  %v4554_v4 = vadd.f32 %v593_v60, %v305_v58 }
  0xe3   :  { %v596_v42 = vld [vmem:[#allocation5 + $0x778] sm:$0xff]  ;;  %v4550_v48 = vadd.f32 %v592_v35, %v304_v26  ;;  %v297_v63 = vld [vmem:[#allocation2 + $0x720] sm:$0xff]  ;;  %v298_v8 = vld [vmem:[#allocation2 + $0x728] sm:$0xff]  ;;  %v1196_v5 = vadd.f32 %v1195_v50, %v4534_v21  ;;  %v1187_v51 = vadd.f32 %v1186_v44, %v4540_v9  ;;  %v4560_v6 = vadd.f32 %v594_v7, %v306_v55 }
  0xe4   :  { %8565 = vst [vmem:[#allocation213_spill] sm:$0xff] %v4548_v41  ;;  %8568 = vst [vmem:[#allocation216_spill] sm:$0xff] %v4554_v4  ;;  %v299_v49 = vld [vmem:[#allocation2 + $0x730] sm:$0xff]  ;;  %v300_v26 = vld [vmem:[#allocation2 + $0x738] sm:$0xff]  ;;  %v4564_v58 = vadd.f32 %v595_v57, %v307_v28  ;;  %v4566_v35 = vadd.f32 %v596_v42, %v308_v39  ;;  %v1270_v42 = vmul.f32 0.0013020834, %v939_v37 }
  0xe5   :  { %8566 = vst [vmem:[#allocation214_spill] sm:$0xff] %v4550_v48  ;;  %8569 = vst [vmem:[#allocation217_spill] sm:$0xff] %v4560_v6  ;;  %v1206_v24 = vadd.f32 %v4550_v48, %v4548_v41  ;;  %v301_v3 = vld [vmem:[#allocation2 + $0x740] sm:$0xff]  ;;  %v302_v1 = vld [vmem:[#allocation2 + $0x748] sm:$0xff]  ;;  %1197 = vadd.xlane.f32.xlu1 %v1196_v5  ;;  %v1188_v50 = vadd.f32 %v1187_v51, %v4544_v27  ;;  %v4578_v5 = vsub.f32 %v3870_v10, %v4556_v46 }
  0xe6   :  { %8570 = vst [vmem:[#allocation218_spill] sm:$0xff] %v4564_v58  ;;  %8571 = vst [vmem:[#allocation219_spill] sm:$0xff] %v4566_v35  ;;  %v585_v60 = vld [vmem:[#allocation5 + $0x720] sm:$0xff]  ;;  %v586_v20 = vld [vmem:[#allocation5 + $0x728] sm:$0xff]  ;;  %v4582_v51 = vsub.f32 %v3872_v11, %v4556_v46 }
  0xe7   :  { %v587_v34 = vld [vmem:[#allocation5 + $0x730] sm:$0xff]  ;;  %v1207_v55 = vadd.f32 %v1206_v24, %v4554_v4  ;;  %v588_v44 = vld [vmem:[#allocation5 + $0x738] sm:$0xff]  ;;  %v589_v7 = vld [vmem:[#allocation5 + $0x740] sm:$0xff]  ;;  %v4570_v48 = vadd.f32 %v585_v60, %v297_v63  ;;  %v4572_v41 = vadd.f32 %v586_v20, %v298_v8  ;;  %8575 = vst [vmem:[#allocation223_spill] sm:$0xff] %v4578_v5  ;;  %v1189_v24 = vadd.f32 %v1188_v50, %v4552_v0  ;;  %v960_v20 = vpop.xlane.xlu1 %959 }
  0xe8   :  { %v590_v21 = vld [vmem:[#allocation5 + $0x748] sm:$0xff]  ;;  %v4574_v9 = vadd.f32 %v587_v34, %v299_v49  ;;  %v315_v28 = vld [vmem:[#allocation2 + $0x7b0] sm:$0xff]  ;;  %v316_v39 = vld [vmem:[#allocation2 + $0x7b8] sm:$0xff]  ;;  %8576 = vst [vmem:[#allocation224_spill] sm:$0xff] %v4582_v51  ;;  %v4586_v8 = vadd.f32 %v588_v44, %v300_v26  ;;  %v4590_v4 = vadd.f32 %v589_v7, %v301_v3  ;;  %v4596_v50 = vsub.f32 %v3874_v12, %v4556_v46 }
  0xe9   :  { %8572 = vst [vmem:[#allocation220_spill] sm:$0xff] %v4570_v48  ;;  %8573 = vst [vmem:[#allocation221_spill] sm:$0xff] %v4572_v41  ;;  %v317_v57 = vld [vmem:[#allocation2 + $0x7c0] sm:$0xff]  ;;  %v1208_v63 = vadd.f32 %v1207_v55, %v4560_v6  ;;  %v1199_v49 = vadd.f32 %v4572_v41, %v4570_v48  ;;  %v318_v34 = vld [vmem:[#allocation2 + $0x7c8] sm:$0xff]  ;;  %v4592_v10 = vadd.f32 %v590_v21, %v302_v1  ;;  %1190 = vadd.xlane.f32.xlu0 %v1189_v24 }
  0xea   :  { %8574 = vst [vmem:[#allocation222_spill] sm:$0xff] %v4574_v9  ;;  %8577 = vst [vmem:[#allocation225_spill] sm:$0xff] %v4586_v8  ;;  %v319_v60 = vld [vmem:[#allocation2 + $0x7d0] sm:$0xff]  ;;  %v320_v37 = vld [vmem:[#allocation2 + $0x7d8] sm:$0xff]  ;;  %v4600_v26 = vsub.f32 %v3876_v18, %v4556_v46  ;;  %v4610_v45 = vmul.f32 0.0013020834, %v960_v20  ;;  %v4613_v18 = vsub.f32 %v3883_v30, %v1270_v42  ;;  %v4616_v24 = vsub.f32 %v3885_v31, %v1270_v42  ;;  %v946_v20 = vpop.xlane.xlu0 %945 }
  0xeb   :  { %8578 = vst [vmem:[#allocation226_spill] sm:$0xff] %v4592_v10  ;;  %v603_v27 = vld [vmem:[#allocation5 + $0x7b0] sm:$0xff]  ;;  %v604_v11 = vld [vmem:[#allocation5 + $0x7b8] sm:$0xff]  ;;  %v605_v59 = vld [vmem:[#allocation5 + $0x7c0] sm:$0xff]  ;;  %v1209_v55 = vadd.f32 %v1208_v63, %v4564_v58  ;;  %v1200_v44 = vadd.f32 %v1199_v49, %v4574_v9  ;;  %v4642_v62 = vmul.f32 0.0013020834, %v946_v20  ;;  %v974_v20 = vpop.xlane.xlu1 %973 }
  0xec   :  { %8579 = vst [vmem:[#allocation227_spill] sm:$0xff] %v4596_v50  ;;  %8580 = vst [vmem:[#allocation228_spill] sm:$0xff] %v4600_v26  ;;  %v606_v3 = vld [vmem:[#allocation5 + $0x7c8] sm:$0xff]  ;;  %v607_v7 = vld [vmem:[#allocation5 + $0x7d0] sm:$0xff]  ;;  %v4604_v1 = vadd.f32 %v603_v27, %v315_v28  ;;  %v4606_v6 = vadd.f32 %v604_v11, %v316_v39  ;;  %v4608_v41 = vadd.f32 %v605_v59, %v317_v57 }
  0xed   :  { %v608_v21 = vld [vmem:[#allocation5 + $0x7d8] sm:$0xff]  ;;  %v309_v12 = vld [vmem:[#allocation2 + $0x780] sm:$0xff]  ;;  %v310_v48 = vld [vmem:[#allocation2 + $0x788] sm:$0xff]  ;;  %8584 = vst [vmem:[#allocation232_spill] sm:$0xff] %v4613_v18  ;;  %v1210_v63 = vadd.f32 %v1209_v55, %v4566_v35  ;;  %v1201_v27 = vadd.f32 %v1200_v44, %v4586_v8  ;;  %v4620_v28 = vadd.f32 %v606_v3, %v318_v34  ;;  %v4624_v11 = vadd.f32 %v607_v7, %v319_v60 }
  0xee   :  { %8581 = vst [vmem:[#allocation229_spill] sm:$0xff] %v4604_v1  ;;  %8582 = vst [vmem:[#allocation230_spill] sm:$0xff] %v4606_v6  ;;  %v311_v0 = vld [vmem:[#allocation2 + $0x790] sm:$0xff]  ;;  %v1220_v59 = vadd.f32 %v4606_v6, %v4604_v1  ;;  %v312_v39 = vld [vmem:[#allocation2 + $0x798] sm:$0xff]  ;;  %v4626_v30 = vadd.f32 %v608_v21, %v320_v37  ;;  %v4629_v55 = vsub.f32 %v3887_v32, %v1270_v42 }
  0xef   :  { %8583 = vst [vmem:[#allocation231_spill] sm:$0xff] %v4608_v41  ;;  %8585 = vst [vmem:[#allocation233_spill] sm:$0xff] %v4616_v24  ;;  %v313_v57 = vld [vmem:[#allocation2 + $0x7a0] sm:$0xff]  ;;  %v314_v49 = vld [vmem:[#allocation2 + $0x7a8] sm:$0xff]  ;;  %v4632_v34 = vsub.f32 %v3892_v38, %v1270_v42  ;;  %1211 = vadd.xlane.f32.xlu1 %v1210_v63  ;;  %v1202_v44 = vadd.f32 %v1201_v27, %v4590_v4  ;;  %v4645_v38 = vsub.f32 %v3896_v43, %v1270_v42 }
  0xf0   :  { %8586 = vst [vmem:[#allocation234_spill] sm:$0xff] %v4620_v28  ;;  %8587 = vst [vmem:[#allocation235_spill] sm:$0xff] %v4624_v11  ;;  %v597_v58 = vld [vmem:[#allocation5 + $0x780] sm:$0xff]  ;;  %v598_v31 = vld [vmem:[#allocation5 + $0x788] sm:$0xff]  ;;  %v1221_v3 = vadd.f32 %v1220_v59, %v4608_v41  ;;  %v4648_v63 = vsub.f32 %v3904_v54, %v1270_v42 }
  0xf1   :  { %8588 = vst [vmem:[#allocation236_spill] sm:$0xff] %v4626_v30  ;;  %v599_v9 = vld [vmem:[#allocation5 + $0x790] sm:$0xff]  ;;  %8589 = vst [vmem:[#allocation237_spill] sm:$0xff] %v4629_v55  ;;  %v600_v6 = vld [vmem:[#allocation5 + $0x798] sm:$0xff]  ;;  %v4636_v7 = vadd.f32 %v597_v58, %v309_v12  ;;  %v4638_v37 = vadd.f32 %v598_v31, %v310_v48  ;;  %v1203_v27 = vadd.f32 %v1202_v44, %v4592_v10 }
  0xf2   :  { %8590 = vst [vmem:[#allocation238_spill] sm:$0xff] %v4632_v34  ;;  %v601_v1 = vld [vmem:[#allocation5 + $0x7a0] sm:$0xff]  ;;  %v602_v60 = vld [vmem:[#allocation5 + $0x7a8] sm:$0xff]  ;;  %v4640_v21 = vadd.f32 %v599_v9, %v311_v0  ;;  %v327_v35 = vld [vmem:[#allocation2 + $0x810] sm:$0xff]  ;;  %v1222_v58 = vadd.f32 %v1221_v3, %v4620_v28  ;;  %v4652_v12 = vadd.f32 %v600_v6, %v312_v39  ;;  %v1606_v44 = vmul.f32 %v4613_v18, %v4613_v18 }
  0xf3   :  { %8591 = vst [vmem:[#allocation239_spill] sm:$0xff] %v4636_v7  ;;  %8592 = vst [vmem:[#allocation240_spill] sm:$0xff] %v4638_v37  ;;  %v328_v32 = vld [vmem:[#allocation2 + $0x818] sm:$0xff]  ;;  %v329_v8 = vld [vmem:[#allocation2 + $0x820] sm:$0xff]  ;;  %v1213_v48 = vadd.f32 %v4638_v37, %v4636_v7  ;;  %v4656_v31 = vadd.f32 %v601_v1, %v313_v57  ;;  %v4658_v43 = vadd.f32 %v602_v60, %v314_v49  ;;  %1204 = vadd.xlane.f32.xlu0 %v1203_v27 }
  0xf4   :  { %8593 = vst [vmem:[#allocation241_spill] sm:$0xff] %v4640_v21  ;;  %8594 = vst [vmem:[#allocation242_spill] sm:$0xff] %v4645_v38  ;;  %v330_v0 = vld [vmem:[#allocation2 + $0x828] sm:$0xff]  ;;  %v331_v9 = vld [vmem:[#allocation2 + $0x830] sm:$0xff]  ;;  %v1607_v6 = vmul.f32 %v4616_v24, %v4616_v24  ;;  %v1223_v39 = vadd.f32 %v1222_v58, %v4624_v11  ;;  %v4672_v18 = vmul.f32 0.0013020834, %v974_v20  ;;  %v1608_v27 = vmul.f32 %v4629_v55, %v4629_v55  ;;  %v967_v20 = vpop.xlane.xlu0 %966 }
  0xf5   :  { %8595 = vst [vmem:[#allocation243_spill] sm:$0xff] %v4648_v63  ;;  %8596 = vst [vmem:[#allocation244_spill] sm:$0xff] %v4652_v12  ;;  %v332_v59 = vld [vmem:[#allocation2 + $0x838] sm:$0xff]  ;;  %v615_v41 = vld [vmem:[#allocation5 + $0x810] sm:$0xff]  ;;  %v1214_v3 = vadd.f32 %v1213_v48, %v4640_v21  ;;  %v4678_v58 = vmul.f32 %v4632_v34, %v4632_v34  ;;  %v4706_v21 = vmul.f32 0.0013020834, %v967_v20 }
  0xf6   :  { %8597 = vst [vmem:[#allocation245_spill] sm:$0xff] %v4656_v31  ;;  %8598 = vst [vmem:[#allocation246_spill] sm:$0xff] %v4658_v43  ;;  %v616_v54 = vld [vmem:[#allocation5 + $0x818] sm:$0xff]  ;;  %v617_v42 = vld [vmem:[#allocation5 + $0x820] sm:$0xff]  ;;  %v4666_v57 = vadd.f32 %v615_v41, %v327_v35  ;;  %v1224_v48 = vadd.f32 %v1223_v39, %v4626_v30  ;;  %v4692_v39 = vmul.f32 %v4645_v38, %v4645_v38 }
  0xf7   :  { %v618_v28 = vld [vmem:[#allocation5 + $0x828] sm:$0xff]  ;;  %v619_v37 = vld [vmem:[#allocation5 + $0x830] sm:$0xff]  ;;  %v620_v1 = vld [vmem:[#allocation5 + $0x838] sm:$0xff]  ;;  %v4668_v49 = vadd.f32 %v616_v54, %v328_v32  ;;  %v4670_v60 = vadd.f32 %v617_v42, %v329_v8  ;;  %v1215_v41 = vadd.f32 %v1214_v3, %v4652_v12 }
  0xf8   :  { %8599 = vst [vmem:[#allocation247_spill] sm:$0xff] %v4666_v57  ;;  %v321_v7 = vld [vmem:[#allocation2 + $0x7e0] sm:$0xff]  ;;  %v322_v10 = vld [vmem:[#allocation2 + $0x7e8] sm:$0xff]  ;;  %v4682_v35 = vadd.f32 %v618_v28, %v330_v0  ;;  %v323_v32 = vld [vmem:[#allocation2 + $0x7f0] sm:$0xff]  ;;  %v4686_v42 = vadd.f32 %v619_v37, %v331_v9  ;;  %v4688_v24 = vadd.f32 %v620_v1, %v332_v59  ;;  %v4696_v28 = vmul.f32 %v4648_v63, %v4648_v63 }
  0xf9   :  { %8600 = vst [vmem:[#allocation248_spill] sm:$0xff] %v4668_v49  ;;  %8601 = vst [vmem:[#allocation249_spill] sm:$0xff] %v4670_v60  ;;  %v1234_v8 = vadd.f32 %v4668_v49, %v4666_v57  ;;  %v324_v54 = vld [vmem:[#allocation2 + $0x7f8] sm:$0xff]  ;;  %v609_v55 = vld [vmem:[#allocation5 + $0x7e0] sm:$0xff]  ;;  %1225 = vadd.xlane.f32.xlu1 %v1224_v48  ;;  %v1216_v0 = vadd.f32 %v1215_v41, %v4656_v31  ;;  %v1894_v63 = vadd.f32 %v1607_v6, %v1606_v44 }
  0xfa   :  { %8602 = vst [vmem:[#allocation250_spill] sm:$0xff] %v4682_v35  ;;  %8603 = vst [vmem:[#allocation251_spill] sm:$0xff] %v4686_v42  ;;  %v610_v11 = vld [vmem:[#allocation5 + $0x7e8] sm:$0xff]  ;;  %v611_v34 = vld [vmem:[#allocation5 + $0x7f0] sm:$0xff]  ;;  %v4700_v1 = vadd.f32 %v609_v55, %v321_v7  ;;  %v4710_v48 = vsub.f32 %v3880_v22, %v4556_v46  ;;  %v4722_v22 = vsub.f32 %v3889_v36, %v4556_v46 }
  0xfb   :  { %8604 = vst [vmem:[#allocation252_spill] sm:$0xff] %v4688_v24  ;;  %v1235_v3 = vadd.f32 %v1234_v8, %v4670_v60  ;;  %v325_v37 = vld [vmem:[#allocation2 + $0x800] sm:$0xff]  ;;  %v612_v9 = vld [vmem:[#allocation5 + $0x7f8] sm:$0xff]  ;;  %v4702_v49 = vadd.f32 %v610_v11, %v322_v10  ;;  %v326_v57 = vld [vmem:[#allocation2 + $0x808] sm:$0xff]  ;;  %v4704_v30 = vadd.f32 %v611_v34, %v323_v32  ;;  %v1217_v41 = vadd.f32 %v1216_v0, %v4658_v43  ;;  %v988_v32 = vpop.xlane.xlu1 %987 }
  0xfc   :  { %v613_v59 = vld [vmem:[#allocation5 + $0x800] sm:$0xff]  ;;  %8605 = vst [vmem:[#allocation253_spill] sm:$0xff] %v4700_v1  ;;  %v339_v38 = vld [vmem:[#allocation2 + $0x870] sm:$0xff]  ;;  %v340_v12 = vld [vmem:[#allocation2 + $0x878] sm:$0xff]  ;;  %v4714_v7 = vadd.f32 %v612_v9, %v324_v54  ;;  %v1618_v0 = vmul.f32 %v4578_v5, %v4578_v5  ;;  %v1619_v54 = vmul.f32 %v4582_v51, %v4582_v51  ;;  %v4738_v51 = vmul.f32 0.0013020834, %v988_v32 }
  0xfd   :  { %8606 = vst [vmem:[#allocation254_spill] sm:$0xff] %v4702_v49  ;;  %8607 = vst [vmem:[#allocation255_spill] sm:$0xff] %v4704_v30  ;;  %v1236_v8 = vadd.f32 %v1235_v3, %v4682_v35  ;;  %v614_v55 = vld [vmem:[#allocation5 + $0x808] sm:$0xff]  ;;  %v1227_v10 = vadd.f32 %v4702_v49, %v4700_v1  ;;  %v341_v11 = vld [vmem:[#allocation2 + $0x880] sm:$0xff]  ;;  %v4718_v20 = vadd.f32 %v613_v59, %v325_v37  ;;  %1218 = vadd.xlane.f32.xlu0 %v1217_v41 }
  0xfe   :  { %8608 = vst [vmem:[#allocation256_spill] sm:$0xff] %v4710_v48  ;;  %8609 = vst [vmem:[#allocation257_spill] sm:$0xff] %v4714_v7  ;;  %v342_v34 = vld [vmem:[#allocation2 + $0x888] sm:$0xff]  ;;  %v627_v44 = vld [vmem:[#allocation5 + $0x870] sm:$0xff]  ;;  %v4734_v36 = vadd.f32 %v614_v55, %v326_v57  ;;  %v1895_v41 = vadd.f32 %v1894_v63, %v1608_v27  ;;  %v981_v55 = vpop.xlane.xlu0 %980  ;;  %v1620_v63 = vmul.f32 %v4596_v50, %v4596_v50 }
  0xff   :  { %v628_v6 = vld [vmem:[#allocation5 + $0x878] sm:$0xff]  ;;  %v629_v60 = vld [vmem:[#allocation5 + $0x880] sm:$0xff]  ;;  %8610 = vst [vmem:[#allocation258_spill] sm:$0xff] %v4722_v22  ;;  %v1237_v3 = vadd.f32 %v1236_v8, %v4686_v42  ;;  %v1228_v9 = vadd.f32 %v1227_v10, %v4704_v30  ;;  %v343_v37 = vld [vmem:[#allocation2 + $0x890] sm:$0xff]  ;;  %v4730_v49 = vadd.f32 %v627_v44, %v339_v38  ;;  %v1621_v27 = vmul.f32 %v4600_v26, %v4600_v26 }
 0x100   :  { %v630_v59 = vld [vmem:[#allocation5 + $0x888] sm:$0xff]  ;;  %v631_v35 = vld [vmem:[#allocation5 + $0x890] sm:$0xff]  ;;  %v4732_v1 = vadd.f32 %v628_v6, %v340_v12  ;;  %8613 = vst [vmem:[#allocation261_spill] sm:$0xff] %v4734_v36  ;;  %v344_v46 = vld [vmem:[#allocation2 + $0x898] sm:$0xff]  ;;  %v4736_v43 = vadd.f32 %v629_v60, %v341_v11  ;;  %v1908_v6 = vadd.f32 %v1619_v54, %v1618_v0  ;;  %v4762_v0 = vmul.f32 0.0013020834, %v981_v55 }
 0x101   :  { %8611 = vst [vmem:[#allocation259_spill] sm:$0xff] %v4730_v49  ;;  %v333_v5 = vld [vmem:[#allocation2 + $0x840] sm:$0xff]  ;;  %v334_v31 = vld [vmem:[#allocation2 + $0x848] sm:$0xff]  ;;  %v1238_v8 = vadd.f32 %v1237_v3, %v4688_v24  ;;  %v1229_v10 = vadd.f32 %v1228_v9, %v4714_v7  ;;  %v632_v42 = vld [vmem:[#allocation5 + $0x898] sm:$0xff]  ;;  %v4742_v30 = vadd.f32 %v630_v59, %v342_v34  ;;  %v4746_v60 = vadd.f32 %v631_v35, %v343_v37 }
 0x102   :  { %8612 = vst [vmem:[#allocation260_spill] sm:$0xff] %v4732_v1  ;;  %8614 = vst [vmem:[#allocation262_spill] sm:$0xff] %v4736_v43  ;;  %v1248_v38 = vadd.f32 %v4732_v1, %v4730_v49  ;;  %v335_v12 = vld [vmem:[#allocation2 + $0x850] sm:$0xff]  ;;  %v336_v57 = vld [vmem:[#allocation2 + $0x858] sm:$0xff]  ;;  %v4758_v49 = vadd.f32 %v632_v42, %v344_v46  ;;  %v1896_v54 = vadd.f32 %v1895_v41, %v4678_v58 }
 0x103   :  { %8615 = vst [vmem:[#allocation263_spill] sm:$0xff] %v4742_v30  ;;  %8616 = vst [vmem:[#allocation264_spill] sm:$0xff] %v4746_v60  ;;  %v621_v11 = vld [vmem:[#allocation5 + $0x840] sm:$0xff]  ;;  %v622_v44 = vld [vmem:[#allocation5 + $0x848] sm:$0xff]  ;;  %1239 = vadd.xlane.f32.xlu1 %v1238_v8  ;;  %v1230_v34 = vadd.f32 %v1229_v10, %v4718_v20  ;;  %v1622_v58 = vmul.f32 %v4710_v48, %v4710_v48  ;;  %v4777_v41 = vmul.f32 %v4722_v22, %v4722_v22 }
 0x104   :  { %v623_v32 = vld [vmem:[#allocation5 + $0x850] sm:$0xff]  ;;  %v1249_v3 = vadd.f32 %v1248_v38, %v4736_v43  ;;  %v337_v9 = vld [vmem:[#allocation2 + $0x860] sm:$0xff]  ;;  %v624_v59 = vld [vmem:[#allocation5 + $0x858] sm:$0xff]  ;;  %v4754_v35 = vadd.f32 %v621_v11, %v333_v5  ;;  %v4756_v37 = vadd.f32 %v622_v44, %v334_v31 }
 0x105   :  { %v625_v1 = vld [vmem:[#allocation5 + $0x860] sm:$0xff]  ;;  %v338_v24 = vld [vmem:[#allocation2 + $0x868] sm:$0xff]  ;;  %v4760_v50 = vadd.f32 %v623_v32, %v335_v12  ;;  %v351_v7 = vld [vmem:[#allocation2 + $0x8d0] sm:$0xff]  ;;  %v1231_v8 = vadd.f32 %v1230_v34, %v4734_v36  ;;  %v4767_v5 = vadd.f32 %v624_v59, %v336_v57  ;;  %v1002_v12 = vpop.xlane.xlu1 %1001  ;;  %v1909_v57 = vadd.f32 %v1908_v6, %v1620_v63 }
 0x106   :  { %8617 = vst [vmem:[#allocation265_spill] sm:$0xff] %v4754_v35  ;;  %8618 = vst [vmem:[#allocation266_spill] sm:$0xff] %v4756_v37  ;;  %v352_v26 = vld [vmem:[#allocation2 + $0x8d8] sm:$0xff]  ;;  %v1250_v10 = vadd.f32 %v1249_v3, %v4742_v30  ;;  %v626_v38 = vld [vmem:[#allocation5 + $0x868] sm:$0xff]  ;;  %v1241_v31 = vadd.f32 %v4756_v37, %v4754_v35  ;;  %v4771_v11 = vadd.f32 %v625_v1, %v337_v9  ;;  %v4789_v63 = vmul.f32 0.0013020834, %v1002_v12 }
 0x107   :  { %v353_v42 = vld [vmem:[#allocation2 + $0x8e0] sm:$0xff]  ;;  %v354_v46 = vld [vmem:[#allocation2 + $0x8e8] sm:$0xff]  ;;  %v639_v44 = vld [vmem:[#allocation5 + $0x8d0] sm:$0xff]  ;;  %1232 = vadd.xlane.f32.xlu0 %v1231_v8  ;;  %v4785_v37 = vadd.f32 %v626_v38, %v338_v24  ;;  %v1897_v6 = vadd.f32 %v1896_v54, %v4692_v39  ;;  %v4802_v39 = vsub.f32 %v3918_v14, %v4642_v62 }
 0x108   :  { %v640_v55 = vld [vmem:[#allocation5 + $0x8d8] sm:$0xff]  ;;  %v641_v32 = vld [vmem:[#allocation5 + $0x8e0] sm:$0xff]  ;;  %v1251_v34 = vadd.f32 %v1250_v10, %v4746_v60  ;;  %v1242_v3 = vadd.f32 %v1241_v31, %v4760_v50  ;;  %v355_v59 = vld [vmem:[#allocation2 + $0x8f0] sm:$0xff]  ;;  %v4781_v9 = vadd.f32 %v639_v44, %v351_v7  ;;  %v1910_v60 = vadd.f32 %v1909_v57, %v1621_v27 }
 0x109   :  { %v642_v30 = vld [vmem:[#allocation5 + $0x8e8] sm:$0xff]  ;;  %v643_v1 = vld [vmem:[#allocation5 + $0x8f0] sm:$0xff]  ;;  %v4783_v43 = vadd.f32 %v640_v55, %v352_v26  ;;  %v356_v48 = vld [vmem:[#allocation2 + $0x8f8] sm:$0xff]  ;;  %v4787_v35 = vadd.f32 %v641_v32, %v353_v42  ;;  %v995_v42 = vpop.xlane.xlu0 %994 }
 0x10a   :  { %v345_v22 = vld [vmem:[#allocation2 + $0x8a0] sm:$0xff]  ;;  %v346_v36 = vld [vmem:[#allocation2 + $0x8a8] sm:$0xff]  ;;  %v1252_v8 = vadd.f32 %v1251_v34, %v4758_v49  ;;  %v1243_v10 = vadd.f32 %v1242_v3, %v4767_v5  ;;  %v644_v31 = vld [vmem:[#allocation5 + $0x8f8] sm:$0xff]  ;;  %v4794_v7 = vadd.f32 %v642_v30, %v354_v46  ;;  %v4798_v44 = vadd.f32 %v643_v1, %v355_v59 }
 0x10b   :  { %8619 = vst [vmem:[#allocation267_spill] sm:$0xff] %v4783_v43  ;;  %8620 = vst [vmem:[#allocation268_spill] sm:$0xff] %v4787_v35  ;;  %v1262_v26 = vadd.f32 %v4783_v43, %v4781_v9  ;;  %v347_v24 = vld [vmem:[#allocation2 + $0x8b0] sm:$0xff]  ;;  %v348_v38 = vld [vmem:[#allocation2 + $0x8b8] sm:$0xff]  ;;  %v4806_v30 = vsub.f32 %v3920_v15, %v4642_v62  ;;  %v4814_v27 = vadd.f32 %v644_v31, %v356_v48  ;;  %v4818_v57 = vmul.f32 0.0013020834, %v995_v42 }
 0x10c   :  { %v633_v55 = vld [vmem:[#allocation5 + $0x8a0] sm:$0xff]  ;;  %v634_v12 = vld [vmem:[#allocation5 + $0x8a8] sm:$0xff]  ;;  %v635_v32 = vld [vmem:[#allocation5 + $0x8b0] sm:$0xff]  ;;  %1253 = vadd.xlane.f32.xlu1 %v1252_v8  ;;  %v1244_v54 = vadd.f32 %v1243_v10, %v4771_v11  ;;  %v4822_v15 = vsub.f32 %v3924_v19, %v4642_v62  ;;  %v4835_v19 = vsub.f32 %v3928_v25, %v4642_v62  ;;  %v1612_v42 = vmul.f32 %v4802_v39, %v4802_v39 }
 0x10d   :  { %v1263_v46 = vadd.f32 %v1262_v26, %v4787_v35  ;;  %v349_v34 = vld [vmem:[#allocation2 + $0x8c0] sm:$0xff]  ;;  %v636_v3 = vld [vmem:[#allocation5 + $0x8b8] sm:$0xff]  ;;  %v4810_v1 = vadd.f32 %v633_v55, %v345_v22  ;;  %v4812_v43 = vadd.f32 %v634_v12, %v346_v36  ;;  %v4816_v14 = vadd.f32 %v635_v32, %v347_v24  ;;  %v350_v26 = vld [vmem:[#allocation2 + $0x8c8] sm:$0xff]  ;;  %v1016_v36 = vpop.xlane.xlu1 %1015 }
 0x10e   :  { %v637_v59 = vld [vmem:[#allocation5 + $0x8c0] sm:$0xff]  ;;  %v1245_v8 = vadd.f32 %v1244_v54, %v4785_v37  ;;  %v638_v35 = vld [vmem:[#allocation5 + $0x8c8] sm:$0xff]  ;;  %v4826_v22 = vadd.f32 %v636_v3, %v348_v38  ;;  %v1898_v24 = vadd.f32 %v1897_v6, %v4696_v28  ;;  %v1911_v12 = vadd.f32 %v1910_v60, %v1622_v58 }
 0x10f   :  { %v1264_v10 = vadd.f32 %v1263_v46, %v4794_v7  ;;  %v1255_v48 = vadd.f32 %v4812_v43, %v4810_v1  ;;  %v4830_v31 = vadd.f32 %v637_v59, %v349_v34  ;;  %v1613_v32 = vmul.f32 %v4806_v30, %v4806_v30 }
 0x110   :  { %1246 = vadd.xlane.f32.xlu0 %v1245_v8  ;;  %v4843_v54 = vadd.f32 %v638_v35, %v350_v26  ;;  %v4845_v46 = vmul.f32 0.0013020834, %v1016_v36  ;;  %v4849_v25 = vsub.f32 %v3932_v33, %v4642_v62  ;;  %v4853_v28 = vsub.f32 %v3940_v47, %v4642_v62 }
 0x111   :  { %v1265_v55 = vadd.f32 %v1264_v10, %v4798_v44  ;;  %v1256_v38 = vadd.f32 %v1255_v48, %v4816_v14  ;;  %v1614_v60 = vmul.f32 %v4822_v15, %v4822_v15  ;;  %v1901_v58 = vadd.f32 %v1613_v32, %v1612_v42  ;;  %v1009_v10 = vpop.xlane.xlu0 %1008 }
 0x112   :  { %v4861_v35 = vsub.f32 %v3900_v52, %v4610_v45  ;;  %v4865_v33 = vsub.f32 %v3902_v53, %v4610_v45  ;;  %v4869_v47 = vsub.f32 %v3906_v56, %v4610_v45  ;;  %v4873_v62 = vsub.f32 %v3910_v61, %v4610_v45 }
 0x113   :  { %v1266_v6 = vadd.f32 %v1265_v55, %v4814_v27  ;;  %v1257_v34 = vadd.f32 %v1256_v38, %v4826_v22  ;;  %v1912_v59 = vadd.f32 %v1911_v12, %v4777_v41  ;;  %v1615_v52 = vmul.f32 %v4835_v19, %v4835_v19 }
 0x114   :  { %v1902_v8 = vadd.f32 %v1901_v58, %v1614_v60  ;;  %v1616_v53 = vmul.f32 %v4849_v25, %v4849_v25  ;;  %v1624_v56 = vmul.f32 %v4861_v35, %v4861_v35  ;;  %v1625_v61 = vmul.f32 %v4865_v33, %v4865_v33  ;;  %v1030_v58 = vpop.xlane.xlu1 %1029 }
 0x115   :  { %1267 = vadd.xlane.f32.xlu1 %v1266_v6  ;;  %v1258_v3 = vadd.f32 %v1257_v34, %v4830_v31  ;;  %v1626_v26 = vmul.f32 %v4869_v47, %v4869_v47  ;;  %v1617_v41 = vmul.f32 %v4853_v28, %v4853_v28  ;;  %v4892_v42 = vsub.f32 %v3914_v2, %v4610_v45 }
 0x116   :  { %v1903_v36 = vadd.f32 %v1902_v8, %v1615_v52  ;;  %v1627_v55 = vmul.f32 %v4873_v62, %v4873_v62  ;;  %v1915_v38 = vadd.f32 %v1625_v61, %v1624_v56  ;;  %v4898_v12 = vsub.f32 %v3954_v13, %v4706_v21 }
 0x117   :  { %v1259_v48 = vadd.f32 %v1258_v3, %v4843_v54  ;;  %v4902_v32 = vsub.f32 %v3956_v17, %v4706_v21  ;;  %v4904_v6 = vmul.f32 0.0013020834, %v1009_v10  ;;  %v4908_v2 = vsub.f32 %v3960_v23, %v4706_v21 }
 0x118   :  { %v1904_v34 = vadd.f32 %v1903_v36, %v1616_v53  ;;  %v4912_v60 = vsub.f32 %v3964_v29, %v4706_v21  ;;  %v4916_v13 = vsub.f32 %v3922_v16, %v4610_v45  ;;  %v1916_v3 = vadd.f32 %v1915_v38, %v1626_v26  ;;  %v8624_v45 = vld [vmem:[#allocation23_spill] sm:$0xff]  ;;  %v1023_v38 = vpop.xlane.xlu0 %1022 }
 0x119   :  { %1260 = vadd.xlane.f32.xlu0 %v1259_v48  ;;  %8621 = vst [vmem:[#allocation269_spill] sm:$0xff] %v4908_v2  ;;  %v1630_v17 = vmul.f32 %v4898_v12, %v4898_v12  ;;  %v1631_v52 = vmul.f32 %v4902_v32, %v4902_v32  ;;  %v1628_v23 = vmul.f32 %v4892_v42, %v4892_v42  ;;  %v4936_v26 = vmul.f32 0.0013020834, %v1030_v58  ;;  %v8626_v48 = vld [vmem:[#allocation15_spill] sm:$0xff]  ;;  %v8632_v58 = vld [vmem:[#allocation18_spill] sm:$0xff] }
 0x11a   :  { %8622 = vst [vmem:[#allocation270_spill] sm:$0xff] %v4912_v60  ;;  %v1905_v8 = vadd.f32 %v1904_v34, %v1617_v41  ;;  %v4926_v29 = vsub.f32 %v3968_v40, %v4706_v21  ;;  %v1632_v10 = vmul.f32 %v4908_v2, %v4908_v2  ;;  %v1917_v16 = vadd.f32 %v1916_v3, %v1627_v55  ;;  %v8628_v41 = vld [vmem:[#allocation16_spill] sm:$0xff]  ;;  %v8630_v55 = vld [vmem:[#allocation17_spill] sm:$0xff] }
 0x11b   :  { %v4932_v53 = vsub.f32 %v8624_v45, %v4706_v21  ;;  %v1633_v56 = vmul.f32 %v4912_v60, %v4912_v60  ;;  %v1922_v61 = vadd.f32 %v1631_v52, %v1630_v17  ;;  %v4940_v40 = vsub.f32 %v8626_v48, %v4672_v18 }
 0x11c   :  { %8623 = vst [vmem:[#allocation271_spill] sm:$0xff] %v4926_v29  ;;  %1906 = vadd.xlane.f32.xlu1 %v1905_v8  ;;  %v4944_v36 = vsub.f32 %v8628_v41, %v4672_v18  ;;  %v4948_v21 = vsub.f32 %v8630_v55, %v4672_v18  ;;  %v1629_v34 = vmul.f32 %v4916_v13, %v4916_v13  ;;  %v8634_v8 = vld [vmem:[#allocation19_spill] sm:$0xff] }
 0x11d   :  { %8625 = vst [vmem:[#allocation23_spill] sm:$0xff] %v4932_v53  ;;  %1899 = vadd.xlane.f32.xlu0 %v1898_v24  ;;  %8627 = vst [vmem:[#allocation15_spill] sm:$0xff] %v4940_v40  ;;  %v1918_v24 = vadd.f32 %v1917_v16, %v1628_v23  ;;  %v1923_v3 = vadd.f32 %v1922_v61, %v1632_v10  ;;  %v4954_v17 = vsub.f32 %v8632_v58, %v4672_v18  ;;  %v1044_v16 = vpop.xlane.xlu1 %1043  ;;  %v8636_v58 = vld [vmem:[#allocation20_spill] sm:$0xff] }
 0x11e   :  { %8629 = vst [vmem:[#allocation16_spill] sm:$0xff] %v4944_v36  ;;  %8631 = vst [vmem:[#allocation17_spill] sm:$0xff] %v4948_v21  ;;  %v1634_v52 = vmul.f32 %v4926_v29, %v4926_v29  ;;  %v4960_v45 = vsub.f32 %v8634_v8, %v4672_v18  ;;  %v1636_v48 = vmul.f32 %v4940_v40, %v4940_v40 }
 0x11f   :  { %8633 = vst [vmem:[#allocation18_spill] sm:$0xff] %v4954_v17  ;;  %v1637_v41 = vmul.f32 %v4944_v36, %v4944_v36  ;;  %v1919_v55 = vadd.f32 %v1918_v24, %v1629_v34  ;;  %v1635_v23 = vmul.f32 %v4932_v53, %v4932_v53  ;;  %v1924_v10 = vadd.f32 %v1923_v3, %v1633_v56  ;;  %v8638_v36 = vld [vmem:[#allocation27_spill] sm:$0xff]  ;;  %v8640_v56 = vld [vmem:[#allocation28_spill] sm:$0xff] }
 0x120   :  { %8635 = vst [vmem:[#allocation19_spill] sm:$0xff] %v4960_v45  ;;  %v1638_v61 = vmul.f32 %v4948_v21, %v4948_v21  ;;  %v4972_v8 = vsub.f32 %v8636_v58, %v4672_v18  ;;  %v1639_v40 = vmul.f32 %v4954_v17, %v4954_v17  ;;  %v4978_v34 = vsub.f32 %v8638_v36, %v4762_v0  ;;  %v8644_v18 = vld [vmem:[#allocation31_spill] sm:$0xff] }
 0x121   :  { %1913 = vadd.xlane.f32.xlu0 %v1912_v59  ;;  %v1929_v29 = vadd.f32 %v1637_v41, %v1636_v48  ;;  %1920 = vadd.xlane.f32.xlu1 %v1919_v55  ;;  %v1925_v24 = vadd.f32 %v1924_v10, %v1634_v52  ;;  %v4982_v3 = vsub.f32 %v8640_v56, %v4762_v0  ;;  %v8642_v59 = vld [vmem:[#allocation30_spill] sm:$0xff]  ;;  %v4992_v17 = vmul.f32 0.0013020834, %v1023_v38  ;;  %v1037_v55 = vpop.xlane.xlu0 %1036 }
 0x122   :  { %8637 = vst [vmem:[#allocation20_spill] sm:$0xff] %v4972_v8  ;;  %8639 = vst [vmem:[#allocation27_spill] sm:$0xff] %v4978_v34  ;;  %v4986_v21 = vsub.f32 %v8642_v59, %v4762_v0  ;;  %v4990_v58 = vsub.f32 %v8644_v18, %v4762_v0  ;;  %v4994_v48 = vmul.f32 0.0013020834, %v1044_v16  ;;  %v1640_v36 = vmul.f32 %v4960_v45, %v4960_v45  ;;  %v8646_v18 = vld [vmem:[#allocation32_spill] sm:$0xff]  ;;  %v8662_v45 = vld [vmem:[#allocation39_spill] sm:$0xff] }
 0x123   :  { %8641 = vst [vmem:[#allocation28_spill] sm:$0xff] %v4982_v3  ;;  %v1930_v52 = vadd.f32 %v1929_v29, %v1638_v61  ;;  %v1926_v41 = vadd.f32 %v1925_v24, %v1635_v23  ;;  %v1642_v10 = vmul.f32 %v4978_v34, %v4978_v34  ;;  %v1643_v56 = vmul.f32 %v4982_v3, %v4982_v3  ;;  %v8648_v61 = vld [vmem:[#allocation21_spill] sm:$0xff]  ;;  %v8650_v3 = vld [vmem:[#allocation22_spill] sm:$0xff]  ;;  %v8652_v34 = vld [vmem:[#allocation24_spill] sm:$0xff] }
 0x124   :  { %8643 = vst [vmem:[#allocation30_spill] sm:$0xff] %v4986_v21  ;;  %8645 = vst [vmem:[#allocation31_spill] sm:$0xff] %v4990_v58  ;;  %v1644_v59 = vmul.f32 %v4986_v21, %v4986_v21  ;;  %v1641_v38 = vmul.f32 %v4972_v8, %v4972_v8  ;;  %v5008_v53 = vsub.f32 %v8646_v18, %v4762_v0  ;;  %v8654_v8 = vld [vmem:[#allocation35_spill] sm:$0xff] }
 0x125   :  { %v1931_v16 = vadd.f32 %v1930_v52, %v1639_v40  ;;  %v1645_v29 = vmul.f32 %v4990_v58, %v4990_v58  ;;  %1927 = vadd.xlane.f32.xlu0 %v1926_v41  ;;  %v1936_v23 = vadd.f32 %v1643_v56, %v1642_v10  ;;  %v5014_v24 = vsub.f32 %v8648_v61, %v4738_v51  ;;  %v8656_v41 = vld [vmem:[#allocation25_spill] sm:$0xff]  ;;  %v8658_v61 = vld [vmem:[#allocation26_spill] sm:$0xff] }
 0x126   :  { %8647 = vst [vmem:[#allocation32_spill] sm:$0xff] %v5008_v53  ;;  %v5018_v21 = vsub.f32 %v8650_v3, %v4738_v51  ;;  %v5022_v40 = vsub.f32 %v8652_v34, %v4738_v51  ;;  %v5024_v52 = vmul.f32 0.0013020834, %v1037_v55  ;;  %v5028_v58 = vsub.f32 %v8654_v8, %v4762_v0  ;;  %v1058_v8 = vpop.xlane.xlu1 %1057 }
 0x127   :  { %8649 = vst [vmem:[#allocation21_spill] sm:$0xff] %v5014_v24  ;;  %v1932_v18 = vadd.f32 %v1931_v16, %v1640_v36  ;;  %v5032_v10 = vsub.f32 %v8656_v41, %v4738_v51  ;;  %v1937_v56 = vadd.f32 %v1936_v23, %v1644_v59  ;;  %v5036_v3 = vsub.f32 %v8658_v61, %v4738_v51  ;;  %v8660_v16 = vld [vmem:[#allocation29_spill] sm:$0xff] }
 0x128   :  { %8651 = vst [vmem:[#allocation22_spill] sm:$0xff] %v5018_v21  ;;  %8653 = vst [vmem:[#allocation24_spill] sm:$0xff] %v5022_v40  ;;  %v1648_v34 = vmul.f32 %v5014_v24, %v5014_v24  ;;  %v1649_v55 = vmul.f32 %v5018_v21, %v5018_v21  ;;  %v1646_v0 = vmul.f32 %v5008_v53, %v5008_v53 }
 0x129   :  { %8655 = vst [vmem:[#allocation35_spill] sm:$0xff] %v5028_v58  ;;  %8657 = vst [vmem:[#allocation25_spill] sm:$0xff] %v5032_v10  ;;  %v1933_v36 = vadd.f32 %v1932_v18, %v1641_v38  ;;  %v5046_v41 = vsub.f32 %v8660_v16, %v4738_v51  ;;  %v1650_v59 = vmul.f32 %v5022_v40, %v5022_v40  ;;  %v8664_v18 = vld [vmem:[#allocation40_spill] sm:$0xff]  ;;  %v8666_v16 = vld [vmem:[#allocation42_spill] sm:$0xff] }
 0x12a   :  { %8659 = vst [vmem:[#allocation26_spill] sm:$0xff] %v5036_v3  ;;  %v1938_v23 = vadd.f32 %v1937_v56, %v1645_v29  ;;  %v1651_v61 = vmul.f32 %v5032_v10, %v5032_v10  ;;  %v1943_v24 = vadd.f32 %v1649_v55, %v1648_v34  ;;  %v5054_v21 = vsub.f32 %v8662_v45, %v4818_v57  ;;  %v8668_v29 = vld [vmem:[#allocation43_spill] sm:$0xff]  ;;  %v1051_v10 = vpop.xlane.xlu0 %1050 }
 0x12b   :  { %8661 = vst [vmem:[#allocation29_spill] sm:$0xff] %v5046_v41  ;;  %1934 = vadd.xlane.f32.xlu1 %v1933_v36  ;;  %v1647_v38 = vmul.f32 %v5028_v58, %v5028_v58  ;;  %v5060_v51 = vsub.f32 %v8664_v18, %v4818_v57  ;;  %v5064_v40 = vsub.f32 %v8666_v16, %v4818_v57  ;;  %v5070_v55 = vmul.f32 0.0013020834, %v1058_v8 }
 0x12c   :  { %8663 = vst [vmem:[#allocation39_spill] sm:$0xff] %v5054_v21  ;;  %v5068_v56 = vsub.f32 %v8668_v29, %v4818_v57  ;;  %v1939_v34 = vadd.f32 %v1938_v23, %v1646_v0  ;;  %v1652_v45 = vmul.f32 %v5036_v3, %v5036_v3  ;;  %v1944_v36 = vadd.f32 %v1943_v24, %v1650_v59  ;;  %v8670_v23 = vld [vmem:[#allocation44_spill] sm:$0xff]  ;;  %v8672_v24 = vld [vmem:[#allocation47_spill] sm:$0xff]  ;;  %v8674_v3 = vld [vmem:[#allocation33_spill] sm:$0xff] }
 0x12d   :  { %8665 = vst [vmem:[#allocation40_spill] sm:$0xff] %v5060_v51  ;;  %8667 = vst [vmem:[#allocation42_spill] sm:$0xff] %v5064_v40  ;;  %v1653_v18 = vmul.f32 %v5046_v41, %v5046_v41  ;;  %v1654_v58 = vmul.f32 %v5054_v21, %v5054_v21  ;;  %v1655_v16 = vmul.f32 %v5060_v51, %v5060_v51 }
 0x12e   :  { %8669 = vst [vmem:[#allocation43_spill] sm:$0xff] %v5068_v56  ;;  %v1656_v29 = vmul.f32 %v5064_v40, %v5064_v40  ;;  %v1940_v0 = vadd.f32 %v1939_v34, %v1647_v38  ;;  %v1945_v8 = vadd.f32 %v1944_v36, %v1651_v61  ;;  %v5084_v53 = vsub.f32 %v8670_v23, %v4818_v57  ;;  %v8676_v40 = vld [vmem:[#allocation34_spill] sm:$0xff]  ;;  %v1072_v36 = vpop.xlane.xlu1 %1071 }
 0x12f   :  { %v5088_v59 = vsub.f32 %v8672_v24, %v4818_v57  ;;  %v1657_v41 = vmul.f32 %v5068_v56, %v5068_v56  ;;  %v1950_v21 = vadd.f32 %v1655_v16, %v1654_v58  ;;  %v5094_v51 = vsub.f32 %v8674_v3, %v4789_v63  ;;  %v8678_v57 = vld [vmem:[#allocation36_spill] sm:$0xff]  ;;  %v8680_v24 = vld [vmem:[#allocation37_spill] sm:$0xff]  ;;  %v8682_v3 = vld [vmem:[#allocation38_spill] sm:$0xff] }
 0x130   :  { %8671 = vst [vmem:[#allocation44_spill] sm:$0xff] %v5084_v53  ;;  %v5098_v38 = vsub.f32 %v8676_v40, %v4789_v63  ;;  %1941 = vadd.xlane.f32.xlu0 %v1940_v0  ;;  %v5100_v61 = vmul.f32 0.0013020834, %v1051_v10  ;;  %v1946_v34 = vadd.f32 %v1945_v8, %v1652_v45  ;;  %v5104_v23 = vsub.f32 %v8678_v57, %v4789_v63 }
 0x131   :  { %8673 = vst [vmem:[#allocation47_spill] sm:$0xff] %v5088_v59  ;;  %8675 = vst [vmem:[#allocation33_spill] sm:$0xff] %v5094_v51  ;;  %v5108_v58 = vsub.f32 %v8680_v24, %v4789_v63  ;;  %v1951_v16 = vadd.f32 %v1950_v21, %v1656_v29  ;;  %v5112_v56 = vsub.f32 %v8682_v3, %v4789_v63  ;;  %v5124_v57 = vmul.f32 0.0013020834, %v1072_v36 }
 0x132   :  { %8677 = vst [vmem:[#allocation34_spill] sm:$0xff] %v5098_v38  ;;  %8679 = vst [vmem:[#allocation36_spill] sm:$0xff] %v5104_v23  ;;  %v1660_v40 = vmul.f32 %v5094_v51, %v5094_v51  ;;  %v1661_v10 = vmul.f32 %v5098_v38, %v5098_v38  ;;  %v1947_v45 = vadd.f32 %v1946_v34, %v1653_v18  ;;  %v1065_v51 = vpop.xlane.xlu0 %1064  ;;  %v8684_v18 = vld [vmem:[#allocation51_spill] sm:$0xff]  ;;  %v8686_v38 = vld [vmem:[#allocation52_spill] sm:$0xff]  ;;  %v1086_v60 = vpop.xlane.xlu1 %1085 }
 0x133   :  { %8681 = vst [vmem:[#allocation37_spill] sm:$0xff] %v5108_v58  ;;  %8683 = vst [vmem:[#allocation38_spill] sm:$0xff] %v5112_v56  ;;  %v1658_v0 = vmul.f32 %v5084_v53, %v5084_v53  ;;  %v1659_v8 = vmul.f32 %v5088_v59, %v5088_v59  ;;  %v1662_v21 = vmul.f32 %v5104_v23, %v5104_v23  ;;  %v8688_v59 = vld [vmem:[#allocation54_spill] sm:$0xff] }
 0x134   :  { %v1952_v29 = vadd.f32 %v1951_v16, %v1657_v41  ;;  %v1663_v24 = vmul.f32 %v5108_v58, %v5108_v58  ;;  %v1957_v3 = vadd.f32 %v1661_v10, %v1660_v40  ;;  %1948 = vadd.xlane.f32.xlu1 %v1947_v45  ;;  %v5130_v34 = vsub.f32 %v8684_v18, %v4904_v6  ;;  %v8690_v41 = vld [vmem:[#allocation55_spill] sm:$0xff]  ;;  %v8692_v40 = vld [vmem:[#allocation41_spill] sm:$0xff] }
 0x135   :  { %v5134_v53 = vsub.f32 %v8686_v38, %v4904_v6  ;;  %v5138_v23 = vsub.f32 %v8688_v59, %v4904_v6  ;;  %v5142_v36 = vsub.f32 %v8690_v41, %v4904_v6  ;;  %v5146_v10 = vsub.f32 %v8692_v40, %v4789_v63  ;;  %v8694_v38 = vld [vmem:[#allocation56_spill] sm:$0xff] }
 0x136   :  { %8685 = vst [vmem:[#allocation51_spill] sm:$0xff] %v5130_v34  ;;  %v1953_v16 = vadd.f32 %v1952_v29, %v1658_v0  ;;  %v1664_v45 = vmul.f32 %v5112_v56, %v5112_v56  ;;  %v1958_v18 = vadd.f32 %v1957_v3, %v1662_v21  ;;  %v5152_v58 = vsub.f32 %v8694_v38, %v4904_v6  ;;  %v8696_v56 = vld [vmem:[#allocation59_spill] sm:$0xff] }
 0x137   :  { %8687 = vst [vmem:[#allocation52_spill] sm:$0xff] %v5134_v53  ;;  %8689 = vst [vmem:[#allocation54_spill] sm:$0xff] %v5138_v23  ;;  %v1666_v59 = vmul.f32 %v5130_v34, %v5130_v34  ;;  %v1667_v41 = vmul.f32 %v5134_v53, %v5134_v53  ;;  %v1668_v0 = vmul.f32 %v5138_v23, %v5138_v23  ;;  %v5160_v63 = vmul.f32 0.0013020834, %v1065_v51  ;;  %v8698_v34 = vld [vmem:[#allocation45_spill] sm:$0xff]  ;;  %v8700_v53 = vld [vmem:[#allocation46_spill] sm:$0xff] }
 0x138   :  { %8691 = vst [vmem:[#allocation55_spill] sm:$0xff] %v5142_v36  ;;  %8693 = vst [vmem:[#allocation41_spill] sm:$0xff] %v5146_v10  ;;  %v1954_v29 = vadd.f32 %v1953_v16, %v1659_v8  ;;  %v1959_v40 = vadd.f32 %v1958_v18, %v1663_v24  ;;  %v5164_v21 = vsub.f32 %v8696_v56, %v4904_v6  ;;  %v8702_v6 = vld [vmem:[#allocation48_spill] sm:$0xff]  ;;  %v8704_v24 = vld [vmem:[#allocation49_spill] sm:$0xff] }
 0x139   :  { %8695 = vst [vmem:[#allocation56_spill] sm:$0xff] %v5152_v58  ;;  %v1669_v3 = vmul.f32 %v5142_v36, %v5142_v36  ;;  %v1964_v38 = vadd.f32 %v1667_v41, %v1666_v59  ;;  %v5170_v2 = vsub.f32 %v8698_v34, %v4845_v46  ;;  %v5174_v23 = vsub.f32 %v8700_v53, %v4845_v46 }
 0x13a   :  { %8697 = vst [vmem:[#allocation59_spill] sm:$0xff] %v5164_v21  ;;  %1955 = vadd.xlane.f32.xlu0 %v1954_v29  ;;  %v1665_v51 = vmul.f32 %v5146_v10, %v5146_v10  ;;  %v1960_v8 = vadd.f32 %v1959_v40, %v1664_v45  ;;  %v5180_v56 = vsub.f32 %v8702_v6, %v4845_v46  ;;  %v5194_v29 = vmul.f32 0.0013020834, %v1086_v60  ;;  %v8710_v60 = vld [vmem:[#allocation64_spill] sm:$0xff] }
 0x13b   :  { %8699 = vst [vmem:[#allocation45_spill] sm:$0xff] %v5170_v2  ;;  %8701 = vst [vmem:[#allocation46_spill] sm:$0xff] %v5174_v23  ;;  %v5184_v16 = vsub.f32 %v8704_v24, %v4845_v46  ;;  %v1670_v34 = vmul.f32 %v5152_v58, %v5152_v58  ;;  %v1965_v18 = vadd.f32 %v1964_v38, %v1668_v0  ;;  %v8706_v24 = vld [vmem:[#allocation50_spill] sm:$0xff] }
 0x13c   :  { %8703 = vst [vmem:[#allocation48_spill] sm:$0xff] %v5180_v56  ;;  %v1672_v53 = vmul.f32 %v5170_v2, %v5170_v2  ;;  %v1673_v59 = vmul.f32 %v5174_v23, %v5174_v23  ;;  %v1961_v41 = vadd.f32 %v1960_v8, %v1665_v51  ;;  %v1671_v45 = vmul.f32 %v5164_v21, %v5164_v21  ;;  %v1079_v23 = vpop.xlane.xlu0 %1078  ;;  %v8708_v51 = vld [vmem:[#allocation63_spill] sm:$0xff] }
 0x13d   :  { %8705 = vst [vmem:[#allocation49_spill] sm:$0xff] %v5184_v16  ;;  %v1674_v40 = vmul.f32 %v5180_v56, %v5180_v56  ;;  %v1966_v6 = vadd.f32 %v1965_v18, %v1669_v3  ;;  %v5200_v58 = vsub.f32 %v8706_v24, %v4845_v46  ;;  %v1675_v0 = vmul.f32 %v5184_v16, %v5184_v16  ;;  %v8712_v3 = vld [vmem:[#allocation66_spill] sm:$0xff]  ;;  %v8714_v24 = vld [vmem:[#allocation67_spill] sm:$0xff] }
 0x13e   :  { %v1971_v38 = vadd.f32 %v1673_v59, %v1672_v53  ;;  %1962 = vadd.xlane.f32.xlu1 %v1961_v41  ;;  %v5206_v8 = vsub.f32 %v8708_v51, %v4992_v17  ;;  %v5210_v2 = vsub.f32 %v8710_v60, %v4992_v17  ;;  %v5214_v18 = vsub.f32 %v8712_v3, %v4992_v17  ;;  %v8716_v53 = vld [vmem:[#allocation53_spill] sm:$0xff]  ;;  %v8718_v51 = vld [vmem:[#allocation68_spill] sm:$0xff]  ;;  %v8720_v60 = vld [vmem:[#allocation71_spill] sm:$0xff] }
 0x13f   :  { %8707 = vst [vmem:[#allocation50_spill] sm:$0xff] %v5200_v58  ;;  %v5218_v56 = vsub.f32 %v8714_v24, %v4992_v17  ;;  %v1967_v16 = vadd.f32 %v1966_v6, %v1670_v34  ;;  %v5222_v59 = vsub.f32 %v8716_v53, %v4845_v46  ;;  %v5226_v21 = vsub.f32 %v8718_v51, %v4992_v17  ;;  %v1100_v51 = vpop.xlane.xlu1 %1099 }
 0x140   :  { %8709 = vst [vmem:[#allocation63_spill] sm:$0xff] %v5206_v8  ;;  %8711 = vst [vmem:[#allocation64_spill] sm:$0xff] %v5210_v2  ;;  %v1972_v41 = vadd.f32 %v1971_v38, %v1674_v40  ;;  %v5230_v36 = vsub.f32 %v8720_v60, %v4992_v17  ;;  %v1678_v3 = vmul.f32 %v5206_v8, %v5206_v8  ;;  %v5238_v6 = vmul.f32 0.0013020834, %v1079_v23  ;;  %v8722_v60 = vld [vmem:[#allocation57_spill] sm:$0xff] }
 0x141   :  { %8713 = vst [vmem:[#allocation66_spill] sm:$0xff] %v5214_v18  ;;  %8715 = vst [vmem:[#allocation67_spill] sm:$0xff] %v5218_v56  ;;  %v1679_v24 = vmul.f32 %v5210_v2, %v5210_v2  ;;  %v1680_v34 = vmul.f32 %v5214_v18, %v5214_v18  ;;  %v1968_v46 = vadd.f32 %v1967_v16, %v1671_v45  ;;  %v8724_v2 = vld [vmem:[#allocation58_spill] sm:$0xff]  ;;  %v8726_v45 = vld [vmem:[#allocation60_spill] sm:$0xff] }
 0x142   :  { %8717 = vst [vmem:[#allocation53_spill] sm:$0xff] %v5222_v59  ;;  %8719 = vst [vmem:[#allocation68_spill] sm:$0xff] %v5226_v21  ;;  %v1676_v40 = vmul.f32 %v5200_v58, %v5200_v58  ;;  %v1973_v38 = vadd.f32 %v1972_v41, %v1675_v0  ;;  %v1681_v17 = vmul.f32 %v5218_v56, %v5218_v56  ;;  %v8728_v41 = vld [vmem:[#allocation61_spill] sm:$0xff]  ;;  %v8730_v18 = vld [vmem:[#allocation62_spill] sm:$0xff] }
 0x143   :  { %8721 = vst [vmem:[#allocation71_spill] sm:$0xff] %v5230_v36  ;;  %v1978_v53 = vadd.f32 %v1679_v24, %v1678_v3  ;;  %v5246_v8 = vsub.f32 %v8722_v60, %v4936_v26  ;;  %v5250_v10 = vsub.f32 %v8724_v2, %v4936_v26  ;;  %1969 = vadd.xlane.f32.xlu0 %v1968_v46 }
 0x144   :  { %v1677_v23 = vmul.f32 %v5222_v59, %v5222_v59  ;;  %v1974_v16 = vadd.f32 %v1973_v38, %v1676_v40  ;;  %v5256_v0 = vsub.f32 %v8726_v45, %v4936_v26  ;;  %v5260_v3 = vsub.f32 %v8728_v41, %v4936_v26 }
 0x145   :  { %8723 = vst [vmem:[#allocation57_spill] sm:$0xff] %v5246_v8  ;;  %8725 = vst [vmem:[#allocation58_spill] sm:$0xff] %v5250_v10  ;;  %v1682_v24 = vmul.f32 %v5226_v21, %v5226_v21  ;;  %v1683_v2 = vmul.f32 %v5230_v36, %v5230_v36  ;;  %v1979_v60 = vadd.f32 %v1978_v53, %v1680_v34  ;;  %v5268_v40 = vmul.f32 0.0013020834, %v1100_v51  ;;  %v8732_v53 = vld [vmem:[#allocation75_spill] sm:$0xff]  ;;  %v1093_v51 = vpop.xlane.xlu0 %1092  ;;  %v8740_v36 = vld [vmem:[#allocation65_spill] sm:$0xff] }
 0x146   :  { %8727 = vst [vmem:[#allocation60_spill] sm:$0xff] %v5256_v0  ;;  %8729 = vst [vmem:[#allocation61_spill] sm:$0xff] %v5260_v3  ;;  %v1684_v46 = vmul.f32 %v5246_v8, %v5246_v8  ;;  %v1975_v56 = vadd.f32 %v1974_v16, %v1677_v23  ;;  %v1685_v38 = vmul.f32 %v5250_v10, %v5250_v10  ;;  %v8734_v16 = vld [vmem:[#allocation76_spill] sm:$0xff] }
 0x147   :  { %v1686_v45 = vmul.f32 %v5256_v0, %v5256_v0  ;;  %v1980_v41 = vadd.f32 %v1979_v60, %v1681_v17  ;;  %v5276_v21 = vsub.f32 %v8730_v18, %v4936_v26  ;;  %v1687_v34 = vmul.f32 %v5260_v3, %v5260_v3  ;;  %v8736_v17 = vld [vmem:[#allocation78_spill] sm:$0xff]  ;;  %v8738_v18 = vld [vmem:[#allocation79_spill] sm:$0xff] }
 0x148   :  { %v5282_v8 = vsub.f32 %v8732_v53, %v5024_v52  ;;  %1976 = vadd.xlane.f32.xlu1 %v1975_v56  ;;  %v1985_v23 = vadd.f32 %v1685_v38, %v1684_v46  ;;  %v5286_v10 = vsub.f32 %v8734_v16, %v5024_v52  ;;  %v5290_v60 = vsub.f32 %v8736_v17, %v5024_v52  ;;  %v8742_v56 = vld [vmem:[#allocation80_spill] sm:$0xff]  ;;  %v8744_v17 = vld [vmem:[#allocation83_spill] sm:$0xff] }
 0x149   :  { %8731 = vst [vmem:[#allocation62_spill] sm:$0xff] %v5276_v21  ;;  %v5294_v0 = vsub.f32 %v8738_v18, %v5024_v52  ;;  %v1981_v3 = vadd.f32 %v1980_v41, %v1682_v24  ;;  %v5298_v53 = vsub.f32 %v8740_v36, %v4936_v26  ;;  %v5302_v46 = vsub.f32 %v8742_v56, %v5024_v52 }
 0x14a   :  { %8733 = vst [vmem:[#allocation75_spill] sm:$0xff] %v5282_v8  ;;  %8735 = vst [vmem:[#allocation76_spill] sm:$0xff] %v5286_v10  ;;  %v1690_v38 = vmul.f32 %v5282_v8, %v5282_v8  ;;  %v1986_v16 = vadd.f32 %v1985_v23, %v1686_v45  ;;  %v5308_v59 = vsub.f32 %v8744_v17, %v5024_v52  ;;  %v5314_v36 = vmul.f32 0.0013020834, %v1093_v51  ;;  %v8746_v52 = vld [vmem:[#allocation69_spill] sm:$0xff]  ;;  %v8750_v51 = vld [vmem:[#allocation72_spill] sm:$0xff] }
 0x14b   :  { %8737 = vst [vmem:[#allocation78_spill] sm:$0xff] %v5290_v60  ;;  %8739 = vst [vmem:[#allocation79_spill] sm:$0xff] %v5294_v0  ;;  %v1691_v18 = vmul.f32 %v5286_v10, %v5286_v10  ;;  %v1692_v24 = vmul.f32 %v5290_v60, %v5290_v60  ;;  %v1982_v26 = vadd.f32 %v1981_v3, %v1683_v2  ;;  %v8748_v10 = vld [vmem:[#allocation70_spill] sm:$0xff] }
 0x14c   :  { %8741 = vst [vmem:[#allocation65_spill] sm:$0xff] %v5298_v53  ;;  %8743 = vst [vmem:[#allocation80_spill] sm:$0xff] %v5302_v46  ;;  %v1688_v41 = vmul.f32 %v5276_v21, %v5276_v21  ;;  %v1693_v56 = vmul.f32 %v5294_v0, %v5294_v0  ;;  %v1987_v45 = vadd.f32 %v1986_v16, %v1687_v34  ;;  %v8752_v34 = vld [vmem:[#allocation73_spill] sm:$0xff]  ;;  %v8754_v60 = vld [vmem:[#allocation74_spill] sm:$0xff] }
 0x14d   :  { %8745 = vst [vmem:[#allocation83_spill] sm:$0xff] %v5308_v59  ;;  %v1992_v23 = vadd.f32 %v1691_v18, %v1690_v38  ;;  %v5322_v17 = vsub.f32 %v8746_v52, %v4994_v48  ;;  %v5326_v8 = vsub.f32 %v8748_v10, %v4994_v48  ;;  %1983 = vadd.xlane.f32.xlu0 %v1982_v26  ;;  %v1114_v52 = vpop.xlane.xlu1 %1113 }
 0x14e   :  { %v1689_v3 = vmul.f32 %v5298_v53, %v5298_v53  ;;  %v1694_v2 = vmul.f32 %v5302_v46, %v5302_v46  ;;  %v5334_v0 = vsub.f32 %v8750_v51, %v4994_v48  ;;  %v5338_v38 = vsub.f32 %v8752_v34, %v4994_v48  ;;  %v8756_v51 = vld [vmem:[#allocation77_spill] sm:$0xff] }
 0x14f   :  { %8747 = vst [vmem:[#allocation69_spill] sm:$0xff] %v5322_v17  ;;  %8749 = vst [vmem:[#allocation70_spill] sm:$0xff] %v5326_v8  ;;  %v1988_v16 = vadd.f32 %v1987_v45, %v1688_v41  ;;  %v1695_v10 = vmul.f32 %v5308_v59, %v5308_v59  ;;  %v1993_v18 = vadd.f32 %v1992_v23, %v1692_v24 }
 0x150   :  { %8751 = vst [vmem:[#allocation72_spill] sm:$0xff] %v5334_v0  ;;  %8753 = vst [vmem:[#allocation73_spill] sm:$0xff] %v5338_v38  ;;  %v1696_v26 = vmul.f32 %v5322_v17, %v5322_v17  ;;  %v5346_v46 = vsub.f32 %v8754_v60, %v4994_v48  ;;  %v5350_v53 = vsub.f32 %v8756_v51, %v4994_v48  ;;  %v8758_v17 = vld [vmem:[#allocation87_spill] sm:$0xff]  ;;  %v1107_v60 = vpop.xlane.xlu0 %1106  ;;  %v8760_v48 = vld [vmem:[#allocation88_spill] sm:$0xff] }
 0x151   :  { %v1697_v34 = vmul.f32 %v5326_v8, %v5326_v8  ;;  %v1698_v41 = vmul.f32 %v5334_v0, %v5334_v0  ;;  %v1989_v45 = vadd.f32 %v1988_v16, %v1689_v3  ;;  %v1994_v24 = vadd.f32 %v1993_v18, %v1693_v56  ;;  %v8762_v8 = vld [vmem:[#allocation90_spill] sm:$0xff]  ;;  %v8764_v3 = vld [vmem:[#allocation91_spill] sm:$0xff] }
 0x152   :  { %8755 = vst [vmem:[#allocation74_spill] sm:$0xff] %v5346_v46  ;;  %8757 = vst [vmem:[#allocation77_spill] sm:$0xff] %v5350_v53  ;;  %v1699_v23 = vmul.f32 %v5338_v38, %v5338_v38  ;;  %v5360_v59 = vsub.f32 %v8758_v17, %v5100_v61  ;;  %v5364_v51 = vsub.f32 %v8760_v48, %v5100_v61  ;;  %v5374_v18 = vmul.f32 0.0013020834, %v1114_v52  ;;  %v8766_v17 = vld [vmem:[#allocation92_spill] sm:$0xff]  ;;  %v8768_v48 = vld [vmem:[#allocation95_spill] sm:$0xff] }
 0x153   :  { %v1999_v21 = vadd.f32 %v1697_v34, %v1696_v26  ;;  %v5368_v58 = vsub.f32 %v8762_v8, %v5100_v61  ;;  %v5372_v56 = vsub.f32 %v8764_v3, %v5100_v61  ;;  %1990 = vadd.xlane.f32.xlu1 %v1989_v45  ;;  %v1995_v16 = vadd.f32 %v1994_v24, %v1694_v2 }
 0x154   :  { %8759 = vst [vmem:[#allocation87_spill] sm:$0xff] %v5360_v59  ;;  %8761 = vst [vmem:[#allocation88_spill] sm:$0xff] %v5364_v51  ;;  %v5378_v38 = vsub.f32 %v8766_v17, %v5100_v61  ;;  %v1702_v26 = vmul.f32 %v5360_v59, %v5360_v59  ;;  %v5384_v8 = vsub.f32 %v8768_v48, %v5100_v61  ;;  %v5390_v45 = vmul.f32 0.0013020834, %v1107_v60  ;;  %v8770_v48 = vld [vmem:[#allocation81_spill] sm:$0xff]  ;;  %v8772_v60 = vld [vmem:[#allocation82_spill] sm:$0xff] }
 0x155   :  { %8763 = vst [vmem:[#allocation90_spill] sm:$0xff] %v5368_v58  ;;  %8765 = vst [vmem:[#allocation91_spill] sm:$0xff] %v5372_v56  ;;  %v2000_v34 = vadd.f32 %v1999_v21, %v1698_v41  ;;  %v1703_v3 = vmul.f32 %v5364_v51, %v5364_v51  ;;  %v1704_v2 = vmul.f32 %v5368_v58, %v5368_v58  ;;  %v8774_v58 = vld [vmem:[#allocation84_spill] sm:$0xff] }
 0x156   :  { %8767 = vst [vmem:[#allocation92_spill] sm:$0xff] %v5378_v38  ;;  %8769 = vst [vmem:[#allocation95_spill] sm:$0xff] %v5384_v8  ;;  %v1996_v52 = vadd.f32 %v1995_v16, %v1695_v10  ;;  %v1700_v24 = vmul.f32 %v5346_v46, %v5346_v46  ;;  %v1701_v17 = vmul.f32 %v5350_v53, %v5350_v53 }
 0x157   :  { %v2001_v21 = vadd.f32 %v2000_v34, %v1699_v23  ;;  %v1705_v61 = vmul.f32 %v5372_v56, %v5372_v56  ;;  %v2006_v41 = vadd.f32 %v1703_v3, %v1702_v26  ;;  %v5400_v51 = vsub.f32 %v8770_v48, %v5070_v55  ;;  %v8776_v23 = vld [vmem:[#allocation85_spill] sm:$0xff] }
 0x158   :  { %1997 = vadd.xlane.f32.xlu0 %v1996_v52  ;;  %v1706_v10 = vmul.f32 %v5378_v38, %v5378_v38  ;;  %v5406_v16 = vsub.f32 %v8772_v60, %v5070_v55  ;;  %v5410_v59 = vsub.f32 %v8774_v58, %v5070_v55  ;;  %v5414_v34 = vsub.f32 %v8776_v23, %v5070_v55  ;;  %v1128_v38 = vpop.xlane.xlu1 %1127  ;;  %v8778_v60 = vld [vmem:[#allocation86_spill] sm:$0xff]  ;;  %v8780_v58 = vld [vmem:[#allocation89_spill] sm:$0xff] }
 0x159   :  { %8771 = vst [vmem:[#allocation81_spill] sm:$0xff] %v5400_v51  ;;  %v2002_v26 = vadd.f32 %v2001_v21, %v1700_v24  ;;  %v1707_v3 = vmul.f32 %v5384_v8, %v5384_v8  ;;  %v2007_v52 = vadd.f32 %v2006_v41, %v1704_v2  ;;  %v1708_v48 = vmul.f32 %v5400_v51, %v5400_v51  ;;  %v8782_v51 = vld [vmem:[#allocation99_spill] sm:$0xff] }
 0x15a   :  { %8773 = vst [vmem:[#allocation82_spill] sm:$0xff] %v5406_v16  ;;  %8775 = vst [vmem:[#allocation84_spill] sm:$0xff] %v5410_v59  ;;  %v5422_v56 = vsub.f32 %v8778_v60, %v5070_v55  ;;  %v5426_v53 = vsub.f32 %v8780_v58, %v5070_v55  ;;  %v1709_v23 = vmul.f32 %v5406_v16, %v5406_v16  ;;  %v1121_v60 = vpop.xlane.xlu0 %1120  ;;  %v8784_v55 = vld [vmem:[#allocation100_spill] sm:$0xff]  ;;  %v8786_v16 = vld [vmem:[#allocation102_spill] sm:$0xff] }
 0x15b   :  { %8777 = vst [vmem:[#allocation85_spill] sm:$0xff] %v5414_v34  ;;  %v1710_v24 = vmul.f32 %v5410_v59, %v5410_v59  ;;  %v2003_v21 = vadd.f32 %v2002_v26, %v1701_v17  ;;  %v2008_v2 = vadd.f32 %v2007_v52, %v1705_v61  ;;  %v1711_v41 = vmul.f32 %v5414_v34, %v5414_v34  ;;  %v8788_v17 = vld [vmem:[#allocation103_spill] sm:$0xff] }
 0x15c   :  { %8779 = vst [vmem:[#allocation86_spill] sm:$0xff] %v5422_v56  ;;  %8781 = vst [vmem:[#allocation89_spill] sm:$0xff] %v5426_v53  ;;  %v5436_v8 = vsub.f32 %v8782_v51, %v5160_v63  ;;  %v2013_v46 = vadd.f32 %v1709_v23, %v1708_v48  ;;  %v5440_v58 = vsub.f32 %v8784_v55, %v5160_v63  ;;  %v5450_v52 = vmul.f32 0.0013020834, %v1128_v38  ;;  %v8790_v51 = vld [vmem:[#allocation104_spill] sm:$0xff]  ;;  %v8792_v55 = vld [vmem:[#allocation107_spill] sm:$0xff] }
 0x15d   :  { %v5444_v0 = vsub.f32 %v8786_v16, %v5160_v63  ;;  %v5448_v61 = vsub.f32 %v8788_v17, %v5160_v63  ;;  %2004 = vadd.xlane.f32.xlu1 %v2003_v21  ;;  %v2009_v26 = vadd.f32 %v2008_v2, %v1706_v10  ;;  %v5454_v34 = vsub.f32 %v8790_v51, %v5160_v63 }
 0x15e   :  { %8783 = vst [vmem:[#allocation99_spill] sm:$0xff] %v5436_v8  ;;  %8785 = vst [vmem:[#allocation100_spill] sm:$0xff] %v5440_v58  ;;  %v1714_v48 = vmul.f32 %v5436_v8, %v5436_v8  ;;  %v2014_v23 = vadd.f32 %v2013_v46, %v1710_v24  ;;  %v5460_v16 = vsub.f32 %v8792_v55, %v5160_v63  ;;  %v5466_v21 = vmul.f32 0.0013020834, %v1121_v60  ;;  %v8794_v55 = vld [vmem:[#allocation93_spill] sm:$0xff]  ;;  %v8796_v60 = vld [vmem:[#allocation94_spill] sm:$0xff] }
 0x15f   :  { %8787 = vst [vmem:[#allocation102_spill] sm:$0xff] %v5444_v0  ;;  %8789 = vst [vmem:[#allocation103_spill] sm:$0xff] %v5448_v61  ;;  %v1715_v17 = vmul.f32 %v5440_v58, %v5440_v58  ;;  %v1716_v10 = vmul.f32 %v5444_v0, %v5444_v0  ;;  %v2010_v38 = vadd.f32 %v2009_v26, %v1707_v3  ;;  %v8798_v0 = vld [vmem:[#allocation96_spill] sm:$0xff] }
 0x160   :  { %8791 = vst [vmem:[#allocation104_spill] sm:$0xff] %v5454_v34  ;;  %8793 = vst [vmem:[#allocation107_spill] sm:$0xff] %v5460_v16  ;;  %v1712_v2 = vmul.f32 %v5422_v56, %v5422_v56  ;;  %v1713_v51 = vmul.f32 %v5426_v53, %v5426_v53  ;;  %v2015_v46 = vadd.f32 %v2014_v23, %v1711_v41  ;;  %v8800_v41 = vld [vmem:[#allocation97_spill] sm:$0xff] }
 0x161   :  { %v1717_v63 = vmul.f32 %v5448_v61, %v5448_v61  ;;  %v2020_v24 = vadd.f32 %v1715_v17, %v1714_v48  ;;  %v5476_v58 = vsub.f32 %v8794_v55, %v5124_v57  ;;  %2011 = vadd.xlane.f32.xlu0 %v2010_v38  ;;  %v1718_v3 = vmul.f32 %v5454_v34, %v5454_v34  ;;  %v1142_v34 = vpop.xlane.xlu1 %1141 }
 0x162   :  { %v5482_v26 = vsub.f32 %v8796_v60, %v5124_v57  ;;  %v5486_v8 = vsub.f32 %v8798_v0, %v5124_v57  ;;  %v5490_v23 = vsub.f32 %v8800_v41, %v5124_v57  ;;  %v2016_v48 = vadd.f32 %v2015_v46, %v1712_v2  ;;  %v8802_v60 = vld [vmem:[#allocation98_spill] sm:$0xff]  ;;  %v8804_v0 = vld [vmem:[#allocation101_spill] sm:$0xff] }
 0x163   :  { %8795 = vst [vmem:[#allocation93_spill] sm:$0xff] %v5476_v58  ;;  %v1719_v17 = vmul.f32 %v5460_v16, %v5460_v16  ;;  %v2021_v38 = vadd.f32 %v2020_v24, %v1716_v10  ;;  %v1720_v55 = vmul.f32 %v5476_v58, %v5476_v58  ;;  %v5498_v61 = vsub.f32 %v8802_v60, %v5124_v57  ;;  %v8806_v58 = vld [vmem:[#allocation111_spill] sm:$0xff]  ;;  %v1135_v60 = vpop.xlane.xlu0 %1134 }
 0x164   :  { %8797 = vst [vmem:[#allocation94_spill] sm:$0xff] %v5482_v26  ;;  %8799 = vst [vmem:[#allocation96_spill] sm:$0xff] %v5486_v8  ;;  %v5502_v53 = vsub.f32 %v8804_v0, %v5124_v57  ;;  %v1721_v41 = vmul.f32 %v5482_v26, %v5482_v26  ;;  %v1722_v2 = vmul.f32 %v5486_v8, %v5486_v8  ;;  %v8808_v57 = vld [vmem:[#allocation112_spill] sm:$0xff]  ;;  %v8810_v26 = vld [vmem:[#allocation114_spill] sm:$0xff] }
 0x165   :  { %8801 = vst [vmem:[#allocation97_spill] sm:$0xff] %v5490_v23  ;;  %8803 = vst [vmem:[#allocation98_spill] sm:$0xff] %v5498_v61  ;;  %v2017_v46 = vadd.f32 %v2016_v48, %v1713_v51  ;;  %v2022_v10 = vadd.f32 %v2021_v38, %v1717_v63  ;;  %v1723_v24 = vmul.f32 %v5490_v23, %v5490_v23  ;;  %v8812_v51 = vld [vmem:[#allocation115_spill] sm:$0xff]  ;;  %v5526_v38 = vmul.f32 0.0013020834, %v1142_v34 }
 0x166   :  { %8805 = vst [vmem:[#allocation101_spill] sm:$0xff] %v5502_v53  ;;  %v5512_v16 = vsub.f32 %v8806_v58, %v5238_v6  ;;  %v2027_v56 = vadd.f32 %v1721_v41, %v1720_v55  ;;  %v5516_v0 = vsub.f32 %v8808_v57, %v5238_v6  ;;  %v5520_v59 = vsub.f32 %v8810_v26, %v5238_v6  ;;  %v8814_v58 = vld [vmem:[#allocation116_spill] sm:$0xff]  ;;  %v8816_v57 = vld [vmem:[#allocation119_spill] sm:$0xff] }
 0x167   :  { %v5524_v63 = vsub.f32 %v8812_v51, %v5238_v6  ;;  %2018 = vadd.xlane.f32.xlu1 %v2017_v46  ;;  %v2023_v48 = vadd.f32 %v2022_v10, %v1718_v3  ;;  %v5530_v23 = vsub.f32 %v8814_v58, %v5238_v6  ;;  %v5536_v26 = vsub.f32 %v8816_v57, %v5238_v6  ;;  %v8818_v57 = vld [vmem:[#allocation105_spill] sm:$0xff] }
 0x168   :  { %8807 = vst [vmem:[#allocation111_spill] sm:$0xff] %v5512_v16  ;;  %8809 = vst [vmem:[#allocation112_spill] sm:$0xff] %v5516_v0  ;;  %v1726_v55 = vmul.f32 %v5512_v16, %v5512_v16  ;;  %v2028_v41 = vadd.f32 %v2027_v56, %v1722_v2  ;;  %v1727_v51 = vmul.f32 %v5516_v0, %v5516_v0  ;;  %v5542_v46 = vmul.f32 0.0013020834, %v1135_v60  ;;  %v8820_v60 = vld [vmem:[#allocation106_spill] sm:$0xff] }
 0x169   :  { %8811 = vst [vmem:[#allocation114_spill] sm:$0xff] %v5520_v59  ;;  %8813 = vst [vmem:[#allocation115_spill] sm:$0xff] %v5524_v63  ;;  %v1728_v3 = vmul.f32 %v5520_v59, %v5520_v59  ;;  %v2024_v34 = vadd.f32 %v2023_v48, %v1719_v17  ;;  %v1724_v10 = vmul.f32 %v5498_v61, %v5498_v61  ;;  %v8822_v59 = vld [vmem:[#allocation108_spill] sm:$0xff] }
 0x16a   :  { %8815 = vst [vmem:[#allocation116_spill] sm:$0xff] %v5530_v23  ;;  %8817 = vst [vmem:[#allocation119_spill] sm:$0xff] %v5536_v26  ;;  %v1725_v58 = vmul.f32 %v5502_v53, %v5502_v53  ;;  %v2029_v56 = vadd.f32 %v2028_v41, %v1723_v24  ;;  %v1729_v6 = vmul.f32 %v5524_v63, %v5524_v63  ;;  %v8824_v24 = vld [vmem:[#allocation109_spill] sm:$0xff] }
 0x16b   :  { %v2034_v2 = vadd.f32 %v1727_v51, %v1726_v55  ;;  %v5552_v0 = vsub.f32 %v8818_v57, %v5194_v29  ;;  %2025 = vadd.xlane.f32.xlu0 %v2024_v34  ;;  %v1730_v17 = vmul.f32 %v5530_v23, %v5530_v23  ;;  %v5558_v48 = vsub.f32 %v8820_v60, %v5194_v29  ;;  %v1156_v23 = vpop.xlane.xlu1 %1155  ;;  %v8826_v60 = vld [vmem:[#allocation110_spill] sm:$0xff] }
 0x16c   :  { %v5562_v16 = vsub.f32 %v8822_v59, %v5194_v29  ;;  %v5566_v41 = vsub.f32 %v8824_v24, %v5194_v29  ;;  %v2030_v55 = vadd.f32 %v2029_v56, %v1724_v10  ;;  %v1731_v51 = vmul.f32 %v5536_v26, %v5536_v26  ;;  %v8828_v59 = vld [vmem:[#allocation113_spill] sm:$0xff] }
 0x16d   :  { %8819 = vst [vmem:[#allocation105_spill] sm:$0xff] %v5552_v0  ;;  %8821 = vst [vmem:[#allocation106_spill] sm:$0xff] %v5558_v48  ;;  %v2035_v34 = vadd.f32 %v2034_v2, %v1728_v3  ;;  %v1732_v57 = vmul.f32 %v5552_v0, %v5552_v0  ;;  %v5574_v63 = vsub.f32 %v8826_v60, %v5194_v29  ;;  %v8830_v0 = vld [vmem:[#allocation123_spill] sm:$0xff]  ;;  %v1149_v60 = vpop.xlane.xlu0 %1148 }
 0x16e   :  { %8823 = vst [vmem:[#allocation108_spill] sm:$0xff] %v5562_v16  ;;  %8825 = vst [vmem:[#allocation109_spill] sm:$0xff] %v5566_v41  ;;  %v5578_v53 = vsub.f32 %v8828_v59, %v5194_v29  ;;  %v1733_v24 = vmul.f32 %v5558_v48, %v5558_v48  ;;  %v1734_v10 = vmul.f32 %v5562_v16, %v5562_v16  ;;  %v8832_v29 = vld [vmem:[#allocation124_spill] sm:$0xff]  ;;  %v8834_v48 = vld [vmem:[#allocation126_spill] sm:$0xff] }
 0x16f   :  { %8827 = vst [vmem:[#allocation110_spill] sm:$0xff] %v5574_v63  ;;  %v2031_v56 = vadd.f32 %v2030_v55, %v1725_v58  ;;  %v2036_v3 = vadd.f32 %v2035_v34, %v1729_v6  ;;  %v1735_v2 = vmul.f32 %v5566_v41, %v5566_v41  ;;  %v5588_v26 = vsub.f32 %v8830_v0, %v5314_v36  ;;  %v8836_v58 = vld [vmem:[#allocation127_spill] sm:$0xff]  ;;  %v8838_v0 = vld [vmem:[#allocation128_spill] sm:$0xff] }
 0x170   :  { %8829 = vst [vmem:[#allocation113_spill] sm:$0xff] %v5578_v53  ;;  %v2041_v61 = vadd.f32 %v1733_v24, %v1732_v57  ;;  %v5592_v59 = vsub.f32 %v8832_v29, %v5314_v36  ;;  %v5596_v8 = vsub.f32 %v8834_v48, %v5314_v36  ;;  %v5600_v6 = vsub.f32 %v8836_v58, %v5314_v36  ;;  %v8840_v29 = vld [vmem:[#allocation131_spill] sm:$0xff] }
 0x171   :  { %8831 = vst [vmem:[#allocation123_spill] sm:$0xff] %v5588_v26  ;;  %2032 = vadd.xlane.f32.xlu1 %v2031_v56  ;;  %v2037_v55 = vadd.f32 %v2036_v3, %v1730_v17  ;;  %v5602_v34 = vmul.f32 0.0013020834, %v1156_v23  ;;  %v5606_v41 = vsub.f32 %v8838_v0, %v5314_v36  ;;  %v1738_v57 = vmul.f32 %v5588_v26, %v5588_v26 }
 0x172   :  { %8833 = vst [vmem:[#allocation124_spill] sm:$0xff] %v5592_v59  ;;  %8835 = vst [vmem:[#allocation126_spill] sm:$0xff] %v5596_v8  ;;  %v2042_v24 = vadd.f32 %v2041_v61, %v1734_v10  ;;  %v5612_v48 = vsub.f32 %v8840_v29, %v5314_v36  ;;  %v1739_v58 = vmul.f32 %v5592_v59, %v5592_v59  ;;  %v5618_v56 = vmul.f32 0.0013020834, %v1149_v60  ;;  %v8842_v29 = vld [vmem:[#allocation117_spill] sm:$0xff]  ;;  %v8844_v60 = vld [vmem:[#allocation118_spill] sm:$0xff] }
 0x173   :  { %8837 = vst [vmem:[#allocation127_spill] sm:$0xff] %v5600_v6  ;;  %8839 = vst [vmem:[#allocation128_spill] sm:$0xff] %v5606_v41  ;;  %v1740_v17 = vmul.f32 %v5596_v8, %v5596_v8  ;;  %v2038_v23 = vadd.f32 %v2037_v55, %v1731_v51  ;;  %v1736_v3 = vmul.f32 %v5574_v63, %v5574_v63  ;;  %v8846_v8 = vld [vmem:[#allocation120_spill] sm:$0xff] }
 0x174   :  { %8841 = vst [vmem:[#allocation131_spill] sm:$0xff] %v5612_v48  ;;  %v1737_v0 = vmul.f32 %v5578_v53, %v5578_v53  ;;  %v2043_v61 = vadd.f32 %v2042_v24, %v1735_v2  ;;  %v1741_v36 = vmul.f32 %v5600_v6, %v5600_v6  ;;  %v2048_v10 = vadd.f32 %v1739_v58, %v1738_v57  ;;  %v8848_v2 = vld [vmem:[#allocation121_spill] sm:$0xff] }
 0x175   :  { %v5628_v59 = vsub.f32 %v8842_v29, %v5268_v40  ;;  %2039 = vadd.xlane.f32.xlu0 %v2038_v23  ;;  %v1742_v51 = vmul.f32 %v5606_v41, %v5606_v41  ;;  %v5634_v55 = vsub.f32 %v8844_v60, %v5268_v40  ;;  %v5638_v26 = vsub.f32 %v8846_v8, %v5268_v40  ;;  %v1170_v41 = vpop.xlane.xlu1 %1169  ;;  %v8850_v60 = vld [vmem:[#allocation122_spill] sm:$0xff]  ;;  %v8852_v8 = vld [vmem:[#allocation125_spill] sm:$0xff] }
 0x176   :  { %v5642_v24 = vsub.f32 %v8848_v2, %v5268_v40  ;;  %v2044_v57 = vadd.f32 %v2043_v61, %v1736_v3  ;;  %v1743_v58 = vmul.f32 %v5612_v48, %v5612_v48  ;;  %v2049_v23 = vadd.f32 %v2048_v10, %v1740_v17 }
 0x177   :  { %8843 = vst [vmem:[#allocation117_spill] sm:$0xff] %v5628_v59  ;;  %8845 = vst [vmem:[#allocation118_spill] sm:$0xff] %v5634_v55  ;;  %v1744_v29 = vmul.f32 %v5628_v59, %v5628_v59  ;;  %v5650_v6 = vsub.f32 %v8850_v60, %v5268_v40  ;;  %v5654_v53 = vsub.f32 %v8852_v8, %v5268_v40  ;;  %v8854_v59 = vld [vmem:[#allocation135_spill] sm:$0xff]  ;;  %v1163_v60 = vpop.xlane.xlu0 %1162  ;;  %v8856_v40 = vld [vmem:[#allocation136_spill] sm:$0xff] }
 0x178   :  { %8847 = vst [vmem:[#allocation120_spill] sm:$0xff] %v5638_v26  ;;  %8849 = vst [vmem:[#allocation121_spill] sm:$0xff] %v5642_v24  ;;  %v1745_v2 = vmul.f32 %v5634_v55, %v5634_v55  ;;  %v1746_v3 = vmul.f32 %v5638_v26, %v5638_v26  ;;  %v2045_v61 = vadd.f32 %v2044_v57, %v1737_v0  ;;  %v8858_v55 = vld [vmem:[#allocation138_spill] sm:$0xff]  ;;  %v8860_v0 = vld [vmem:[#allocation139_spill] sm:$0xff] }
 0x179   :  { %8851 = vst [vmem:[#allocation122_spill] sm:$0xff] %v5650_v6  ;;  %8853 = vst [vmem:[#allocation125_spill] sm:$0xff] %v5654_v53  ;;  %v2050_v17 = vadd.f32 %v2049_v23, %v1741_v36  ;;  %v1747_v10 = vmul.f32 %v5642_v24, %v5642_v24  ;;  %v5664_v48 = vsub.f32 %v8854_v59, %v5390_v45  ;;  %v5678_v23 = vmul.f32 0.0013020834, %v1170_v41  ;;  %v8862_v59 = vld [vmem:[#allocation140_spill] sm:$0xff] }
 0x17a   :  { %v2055_v63 = vadd.f32 %v1745_v2, %v1744_v29  ;;  %v5668_v8 = vsub.f32 %v8856_v40, %v5390_v45  ;;  %v5672_v16 = vsub.f32 %v8858_v55, %v5390_v45  ;;  %v5676_v36 = vsub.f32 %v8860_v0, %v5390_v45  ;;  %2046 = vadd.xlane.f32.xlu1 %v2045_v61  ;;  %v8864_v40 = vld [vmem:[#allocation143_spill] sm:$0xff] }
 0x17b   :  { %8855 = vst [vmem:[#allocation135_spill] sm:$0xff] %v5664_v48  ;;  %v2051_v57 = vadd.f32 %v2050_v17, %v1742_v51  ;;  %v5682_v24 = vsub.f32 %v8862_v59, %v5390_v45  ;;  %v1750_v29 = vmul.f32 %v5664_v48, %v5664_v48  ;;  %v5688_v55 = vsub.f32 %v8864_v40, %v5390_v45  ;;  %v8866_v40 = vld [vmem:[#allocation129_spill] sm:$0xff] }
 0x17c   :  { %8857 = vst [vmem:[#allocation136_spill] sm:$0xff] %v5668_v8  ;;  %8859 = vst [vmem:[#allocation138_spill] sm:$0xff] %v5672_v16  ;;  %v2056_v2 = vadd.f32 %v2055_v63, %v1746_v3  ;;  %v1751_v0 = vmul.f32 %v5668_v8, %v5668_v8  ;;  %v1752_v51 = vmul.f32 %v5672_v16, %v5672_v16  ;;  %v5694_v61 = vmul.f32 0.0013020834, %v1163_v60  ;;  %v8868_v60 = vld [vmem:[#allocation130_spill] sm:$0xff]  ;;  %v8870_v16 = vld [vmem:[#allocation132_spill] sm:$0xff] }
 0x17d   :  { %8861 = vst [vmem:[#allocation139_spill] sm:$0xff] %v5676_v36  ;;  %8863 = vst [vmem:[#allocation140_spill] sm:$0xff] %v5682_v24  ;;  %v2052_v41 = vadd.f32 %v2051_v57, %v1743_v58  ;;  %v1748_v17 = vmul.f32 %v5650_v6, %v5650_v6  ;;  %v1749_v59 = vmul.f32 %v5654_v53, %v5654_v53 }
 0x17e   :  { %8865 = vst [vmem:[#allocation143_spill] sm:$0xff] %v5688_v55  ;;  %v2057_v63 = vadd.f32 %v2056_v2, %v1747_v10  ;;  %v1753_v45 = vmul.f32 %v5676_v36, %v5676_v36  ;;  %v2062_v3 = vadd.f32 %v1751_v0, %v1750_v29  ;;  %v5704_v8 = vsub.f32 %v8866_v40, %v5374_v18  ;;  %v8872_v10 = vld [vmem:[#allocation133_spill] sm:$0xff] }
 0x17f   :  { %2053 = vadd.xlane.f32.xlu0 %v2052_v41  ;;  %v1754_v58 = vmul.f32 %v5682_v24, %v5682_v24  ;;  %v5710_v57 = vsub.f32 %v8868_v60, %v5374_v18  ;;  %v5714_v48 = vsub.f32 %v8870_v16, %v5374_v18  ;;  %v5718_v2 = vsub.f32 %v8872_v10, %v5374_v18  ;;  %v1184_v24 = vpop.xlane.xlu1 %1183  ;;  %v8874_v60 = vld [vmem:[#allocation134_spill] sm:$0xff]  ;;  %v8876_v16 = vld [vmem:[#allocation137_spill] sm:$0xff] }
 0x180   :  { %8867 = vst [vmem:[#allocation129_spill] sm:$0xff] %v5704_v8  ;;  %v2058_v29 = vadd.f32 %v2057_v63, %v1748_v17  ;;  %v1755_v0 = vmul.f32 %v5688_v55, %v5688_v55  ;;  %v2063_v41 = vadd.f32 %v2062_v3, %v1752_v51  ;;  %v1756_v40 = vmul.f32 %v5704_v8, %v5704_v8  ;;  %v8878_v8 = vld [vmem:[#allocation147_spill] sm:$0xff] }
 0x181   :  { %8869 = vst [vmem:[#allocation130_spill] sm:$0xff] %v5710_v57  ;;  %8871 = vst [vmem:[#allocation132_spill] sm:$0xff] %v5714_v48  ;;  %v5726_v36 = vsub.f32 %v8874_v60, %v5374_v18  ;;  %v5730_v53 = vsub.f32 %v8876_v16, %v5374_v18  ;;  %v1757_v10 = vmul.f32 %v5710_v57, %v5710_v57  ;;  %v1177_v60 = vpop.xlane.xlu0 %1176  ;;  %v8880_v18 = vld [vmem:[#allocation148_spill] sm:$0xff]  ;;  %v8882_v57 = vld [vmem:[#allocation150_spill] sm:$0xff] }
 0x182   :  { %8873 = vst [vmem:[#allocation133_spill] sm:$0xff] %v5718_v2  ;;  %v1758_v17 = vmul.f32 %v5714_v48, %v5714_v48  ;;  %v2059_v63 = vadd.f32 %v2058_v29, %v1749_v59  ;;  %v2064_v51 = vadd.f32 %v2063_v41, %v1753_v45  ;;  %v1759_v3 = vmul.f32 %v5718_v2, %v5718_v2  ;;  %v8884_v59 = vld [vmem:[#allocation151_spill] sm:$0xff] }
 0x183   :  { %8875 = vst [vmem:[#allocation134_spill] sm:$0xff] %v5726_v36  ;;  %8877 = vst [vmem:[#allocation137_spill] sm:$0xff] %v5730_v53  ;;  %v5740_v55 = vsub.f32 %v8878_v8, %v5466_v21  ;;  %v2069_v6 = vadd.f32 %v1757_v10, %v1756_v40  ;;  %v5744_v16 = vsub.f32 %v8880_v18, %v5466_v21  ;;  %v5754_v41 = vmul.f32 0.0013020834, %v1184_v24  ;;  %v8886_v8 = vld [vmem:[#allocation152_spill] sm:$0xff]  ;;  %v8888_v18 = vld [vmem:[#allocation155_spill] sm:$0xff] }
 0x184   :  { %v5748_v26 = vsub.f32 %v8882_v57, %v5466_v21  ;;  %v5752_v45 = vsub.f32 %v8884_v59, %v5466_v21  ;;  %2060 = vadd.xlane.f32.xlu1 %v2059_v63  ;;  %v2065_v29 = vadd.f32 %v2064_v51, %v1754_v58  ;;  %v5758_v2 = vsub.f32 %v8886_v8, %v5466_v21 }
 0x185   :  { %8879 = vst [vmem:[#allocation147_spill] sm:$0xff] %v5740_v55  ;;  %8881 = vst [vmem:[#allocation148_spill] sm:$0xff] %v5744_v16  ;;  %v1762_v40 = vmul.f32 %v5740_v55, %v5740_v55  ;;  %v2070_v10 = vadd.f32 %v2069_v6, %v1758_v17  ;;  %v5764_v57 = vsub.f32 %v8888_v18, %v5466_v21  ;;  %v5770_v63 = vmul.f32 0.0013020834, %v1177_v60  ;;  %v8890_v18 = vld [vmem:[#allocation141_spill] sm:$0xff]  ;;  %v8892_v60 = vld [vmem:[#allocation142_spill] sm:$0xff] }
 0x186   :  { %8883 = vst [vmem:[#allocation150_spill] sm:$0xff] %v5748_v26  ;;  %8885 = vst [vmem:[#allocation151_spill] sm:$0xff] %v5752_v45  ;;  %v1763_v59 = vmul.f32 %v5744_v16, %v5744_v16  ;;  %v1764_v58 = vmul.f32 %v5748_v26, %v5748_v26  ;;  %v2066_v24 = vadd.f32 %v2065_v29, %v1755_v0  ;;  %v8894_v26 = vld [vmem:[#allocation144_spill] sm:$0xff] }
 0x187   :  { %8887 = vst [vmem:[#allocation152_spill] sm:$0xff] %v5758_v2  ;;  %8889 = vst [vmem:[#allocation155_spill] sm:$0xff] %v5764_v57  ;;  %v1760_v51 = vmul.f32 %v5726_v36, %v5726_v36  ;;  %v1761_v8 = vmul.f32 %v5730_v53, %v5730_v53  ;;  %v2071_v6 = vadd.f32 %v2070_v10, %v1759_v3  ;;  %v8896_v3 = vld [vmem:[#allocation145_spill] sm:$0xff] }
 0x188   :  { %v1765_v21 = vmul.f32 %v5752_v45, %v5752_v45  ;;  %v2076_v17 = vadd.f32 %v1763_v59, %v1762_v40  ;;  %v5780_v16 = vsub.f32 %v8890_v18, %v5450_v52  ;;  %2067 = vadd.xlane.f32.xlu0 %v2066_v24  ;;  %v1766_v0 = vmul.f32 %v5758_v2, %v5758_v2  ;;  %v1198_v2 = vpop.xlane.xlu1 %1197 }
 0x189   :  { %v5786_v29 = vsub.f32 %v8892_v60, %v5450_v52  ;;  %v5790_v55 = vsub.f32 %v8894_v26, %v5450_v52  ;;  %v5794_v10 = vsub.f32 %v8896_v3, %v5450_v52  ;;  %v2072_v40 = vadd.f32 %v2071_v6, %v1760_v51  ;;  %v8898_v60 = vld [vmem:[#allocation146_spill] sm:$0xff]  ;;  %v8900_v26 = vld [vmem:[#allocation149_spill] sm:$0xff] }
 0x18a   :  { %8891 = vst [vmem:[#allocation141_spill] sm:$0xff] %v5780_v16  ;;  %v1767_v59 = vmul.f32 %v5764_v57, %v5764_v57  ;;  %v2077_v24 = vadd.f32 %v2076_v17, %v1764_v58  ;;  %v1768_v18 = vmul.f32 %v5780_v16, %v5780_v16  ;;  %v5802_v45 = vsub.f32 %v8898_v60, %v5450_v52  ;;  %v8902_v16 = vld [vmem:[#allocation159_spill] sm:$0xff]  ;;  %v1191_v60 = vpop.xlane.xlu0 %1190 }
 0x18b   :  { %8893 = vst [vmem:[#allocation142_spill] sm:$0xff] %v5786_v29  ;;  %8895 = vst [vmem:[#allocation144_spill] sm:$0xff] %v5790_v55  ;;  %v5806_v53 = vsub.f32 %v8900_v26, %v5450_v52  ;;  %v1769_v3 = vmul.f32 %v5786_v29, %v5786_v29  ;;  %v1770_v51 = vmul.f32 %v5790_v55, %v5790_v55  ;;  %v8904_v52 = vld [vmem:[#allocation160_spill] sm:$0xff]  ;;  %v8906_v29 = vld [vmem:[#allocation162_spill] sm:$0xff] }
 0x18c   :  { %8897 = vst [vmem:[#allocation145_spill] sm:$0xff] %v5794_v10  ;;  %8899 = vst [vmem:[#allocation146_spill] sm:$0xff] %v5802_v45  ;;  %v2073_v6 = vadd.f32 %v2072_v40, %v1761_v8  ;;  %v2078_v58 = vadd.f32 %v2077_v24, %v1765_v21  ;;  %v1771_v17 = vmul.f32 %v5794_v10, %v5794_v10  ;;  %v8908_v8 = vld [vmem:[#allocation163_spill] sm:$0xff]  ;;  %v5830_v24 = vmul.f32 0.0013020834, %v1198_v2 }
 0x18d   :  { %8901 = vst [vmem:[#allocation149_spill] sm:$0xff] %v5806_v53  ;;  %v5816_v57 = vsub.f32 %v8902_v16, %v5542_v46  ;;  %v2083_v36 = vadd.f32 %v1769_v3, %v1768_v18  ;;  %v5820_v26 = vsub.f32 %v8904_v52, %v5542_v46  ;;  %v5824_v48 = vsub.f32 %v8906_v29, %v5542_v46  ;;  %v8910_v16 = vld [vmem:[#allocation164_spill] sm:$0xff]  ;;  %v8912_v52 = vld [vmem:[#allocation167_spill] sm:$0xff] }
 0x18e   :  { %v5828_v21 = vsub.f32 %v8908_v8, %v5542_v46  ;;  %2074 = vadd.xlane.f32.xlu1 %v2073_v6  ;;  %v2079_v40 = vadd.f32 %v2078_v58, %v1766_v0  ;;  %v5834_v10 = vsub.f32 %v8910_v16, %v5542_v46  ;;  %v5840_v29 = vsub.f32 %v8912_v52, %v5542_v46  ;;  %v8914_v52 = vld [vmem:[#allocation153_spill] sm:$0xff] }
 0x18f   :  { %8903 = vst [vmem:[#allocation159_spill] sm:$0xff] %v5816_v57  ;;  %8905 = vst [vmem:[#allocation160_spill] sm:$0xff] %v5820_v26  ;;  %v1774_v18 = vmul.f32 %v5816_v57, %v5816_v57  ;;  %v2084_v3 = vadd.f32 %v2083_v36, %v1770_v51  ;;  %v1775_v8 = vmul.f32 %v5820_v26, %v5820_v26  ;;  %v5846_v6 = vmul.f32 0.0013020834, %v1191_v60  ;;  %v8916_v60 = vld [vmem:[#allocation154_spill] sm:$0xff] }
 0x190   :  { %8907 = vst [vmem:[#allocation162_spill] sm:$0xff] %v5824_v48  ;;  %8909 = vst [vmem:[#allocation163_spill] sm:$0xff] %v5828_v21  ;;  %v1776_v0 = vmul.f32 %v5824_v48, %v5824_v48  ;;  %v2080_v2 = vadd.f32 %v2079_v40, %v1767_v59  ;;  %v1772_v58 = vmul.f32 %v5802_v45, %v5802_v45  ;;  %v8918_v48 = vld [vmem:[#allocation156_spill] sm:$0xff] }
 0x191   :  { %8911 = vst [vmem:[#allocation164_spill] sm:$0xff] %v5834_v10  ;;  %8913 = vst [vmem:[#allocation167_spill] sm:$0xff] %v5840_v29  ;;  %v1773_v16 = vmul.f32 %v5806_v53, %v5806_v53  ;;  %v2085_v36 = vadd.f32 %v2084_v3, %v1771_v17  ;;  %v1777_v46 = vmul.f32 %v5828_v21, %v5828_v21  ;;  %v8920_v17 = vld [vmem:[#allocation157_spill] sm:$0xff] }
 0x192   :  { %v2090_v51 = vadd.f32 %v1775_v8, %v1774_v18  ;;  %v5856_v26 = vsub.f32 %v8914_v52, %v5526_v38  ;;  %2081 = vadd.xlane.f32.xlu0 %v2080_v2  ;;  %v1778_v59 = vmul.f32 %v5834_v10, %v5834_v10  ;;  %v5862_v40 = vsub.f32 %v8916_v60, %v5526_v38  ;;  %v1212_v10 = vpop.xlane.xlu1 %1211  ;;  %v8922_v60 = vld [vmem:[#allocation158_spill] sm:$0xff] }
 0x193   :  { %v5866_v57 = vsub.f32 %v8918_v48, %v5526_v38  ;;  %v5870_v3 = vsub.f32 %v8920_v17, %v5526_v38  ;;  %v2086_v18 = vadd.f32 %v2085_v36, %v1772_v58  ;;  %v1779_v8 = vmul.f32 %v5840_v29, %v5840_v29  ;;  %v8924_v48 = vld [vmem:[#allocation161_spill] sm:$0xff] }
 0x194   :  { %8915 = vst [vmem:[#allocation153_spill] sm:$0xff] %v5856_v26  ;;  %8917 = vst [vmem:[#allocation154_spill] sm:$0xff] %v5862_v40  ;;  %v2091_v2 = vadd.f32 %v2090_v51, %v1776_v0  ;;  %v1780_v52 = vmul.f32 %v5856_v26, %v5856_v26  ;;  %v5878_v21 = vsub.f32 %v8922_v60, %v5526_v38  ;;  %v8926_v26 = vld [vmem:[#allocation171_spill] sm:$0xff]  ;;  %v1205_v60 = vpop.xlane.xlu0 %1204 }
 0x195   :  { %8919 = vst [vmem:[#allocation156_spill] sm:$0xff] %v5866_v57  ;;  %8921 = vst [vmem:[#allocation157_spill] sm:$0xff] %v5870_v3  ;;  %v5882_v53 = vsub.f32 %v8924_v48, %v5526_v38  ;;  %v1781_v17 = vmul.f32 %v5862_v40, %v5862_v40  ;;  %v1782_v58 = vmul.f32 %v5866_v57, %v5866_v57  ;;  %v8928_v38 = vld [vmem:[#allocation172_spill] sm:$0xff]  ;;  %v8930_v40 = vld [vmem:[#allocation174_spill] sm:$0xff] }
 0x196   :  { %8923 = vst [vmem:[#allocation158_spill] sm:$0xff] %v5878_v21  ;;  %v2087_v36 = vadd.f32 %v2086_v18, %v1773_v16  ;;  %v2092_v0 = vadd.f32 %v2091_v2, %v1777_v46  ;;  %v1783_v51 = vmul.f32 %v5870_v3, %v5870_v3  ;;  %v5892_v29 = vsub.f32 %v8926_v26, %v5618_v56  ;;  %v8932_v16 = vld [vmem:[#allocation175_spill] sm:$0xff]  ;;  %v8934_v26 = vld [vmem:[#allocation176_spill] sm:$0xff] }
 0x197   :  { %8925 = vst [vmem:[#allocation161_spill] sm:$0xff] %v5882_v53  ;;  %v2097_v45 = vadd.f32 %v1781_v17, %v1780_v52  ;;  %v5896_v48 = vsub.f32 %v8928_v38, %v5618_v56  ;;  %v5900_v55 = vsub.f32 %v8930_v40, %v5618_v56  ;;  %v5904_v46 = vsub.f32 %v8932_v16, %v5618_v56  ;;  %v8936_v38 = vld [vmem:[#allocation179_spill] sm:$0xff] }
 0x198   :  { %8927 = vst [vmem:[#allocation171_spill] sm:$0xff] %v5892_v29  ;;  %2088 = vadd.xlane.f32.xlu1 %v2087_v36  ;;  %v2093_v18 = vadd.f32 %v2092_v0, %v1778_v59  ;;  %v5906_v2 = vmul.f32 0.0013020834, %v1212_v10  ;;  %v5910_v3 = vsub.f32 %v8934_v26, %v5618_v56  ;;  %v1786_v52 = vmul.f32 %v5892_v29, %v5892_v29 }
 0x199   :  { %8929 = vst [vmem:[#allocation172_spill] sm:$0xff] %v5896_v48  ;;  %8931 = vst [vmem:[#allocation174_spill] sm:$0xff] %v5900_v55  ;;  %v2098_v17 = vadd.f32 %v2097_v45, %v1782_v58  ;;  %v5916_v40 = vsub.f32 %v8936_v38, %v5618_v56  ;;  %v1787_v16 = vmul.f32 %v5896_v48, %v5896_v48  ;;  %v5922_v36 = vmul.f32 0.0013020834, %v1205_v60  ;;  %v8938_v38 = vld [vmem:[#allocation165_spill] sm:$0xff]  ;;  %v8940_v60 = vld [vmem:[#allocation166_spill] sm:$0xff] }
 0x19a   :  { %8933 = vst [vmem:[#allocation175_spill] sm:$0xff] %v5904_v46  ;;  %8935 = vst [vmem:[#allocation176_spill] sm:$0xff] %v5910_v3  ;;  %v1788_v59 = vmul.f32 %v5900_v55, %v5900_v55  ;;  %v2094_v10 = vadd.f32 %v2093_v18, %v1779_v8  ;;  %v1784_v0 = vmul.f32 %v5878_v21, %v5878_v21  ;;  %v8942_v55 = vld [vmem:[#allocation168_spill] sm:$0xff] }
 0x19b   :  { %8937 = vst [vmem:[#allocation179_spill] sm:$0xff] %v5916_v40  ;;  %v1785_v26 = vmul.f32 %v5882_v53, %v5882_v53  ;;  %v2099_v45 = vadd.f32 %v2098_v17, %v1783_v51  ;;  %v1789_v56 = vmul.f32 %v5904_v46, %v5904_v46  ;;  %v2104_v58 = vadd.f32 %v1787_v16, %v1786_v52  ;;  %v8944_v51 = vld [vmem:[#allocation169_spill] sm:$0xff] }
 0x19c   :  { %v5932_v48 = vsub.f32 %v8938_v38, %v5602_v34  ;;  %2095 = vadd.xlane.f32.xlu0 %v2094_v10  ;;  %v1790_v8 = vmul.f32 %v5910_v3, %v5910_v3  ;;  %v5938_v18 = vsub.f32 %v8940_v60, %v5602_v34  ;;  %v5942_v29 = vsub.f32 %v8942_v55, %v5602_v34  ;;  %v1226_v3 = vpop.xlane.xlu1 %1225  ;;  %v8946_v60 = vld [vmem:[#allocation170_spill] sm:$0xff]  ;;  %v8948_v55 = vld [vmem:[#allocation173_spill] sm:$0xff] }
 0x19d   :  { %v5946_v17 = vsub.f32 %v8944_v51, %v5602_v34  ;;  %v2100_v52 = vadd.f32 %v2099_v45, %v1784_v0  ;;  %v1791_v16 = vmul.f32 %v5916_v40, %v5916_v40  ;;  %v2105_v10 = vadd.f32 %v2104_v58, %v1788_v59 }
 0x19e   :  { %8939 = vst [vmem:[#allocation165_spill] sm:$0xff] %v5932_v48  ;;  %8941 = vst [vmem:[#allocation166_spill] sm:$0xff] %v5938_v18  ;;  %v1792_v38 = vmul.f32 %v5932_v48, %v5932_v48  ;;  %v5954_v46 = vsub.f32 %v8946_v60, %v5602_v34  ;;  %v5958_v53 = vsub.f32 %v8948_v55, %v5602_v34  ;;  %v8950_v48 = vld [vmem:[#allocation183_spill] sm:$0xff]  ;;  %v1219_v60 = vpop.xlane.xlu0 %1218  ;;  %v8952_v34 = vld [vmem:[#allocation184_spill] sm:$0xff] }
 0x19f   :  { %8943 = vst [vmem:[#allocation168_spill] sm:$0xff] %v5942_v29  ;;  %8945 = vst [vmem:[#allocation169_spill] sm:$0xff] %v5946_v17  ;;  %v1793_v51 = vmul.f32 %v5938_v18, %v5938_v18  ;;  %v1794_v0 = vmul.f32 %v5942_v29, %v5942_v29  ;;  %v2101_v45 = vadd.f32 %v2100_v52, %v1785_v26  ;;  %v8954_v18 = vld [vmem:[#allocation186_spill] sm:$0xff]  ;;  %v8956_v26 = vld [vmem:[#allocation187_spill] sm:$0xff] }
 0x1a0   :  { %8947 = vst [vmem:[#allocation170_spill] sm:$0xff] %v5954_v46  ;;  %8949 = vst [vmem:[#allocation173_spill] sm:$0xff] %v5958_v53  ;;  %v2106_v59 = vadd.f32 %v2105_v10, %v1789_v56  ;;  %v1795_v58 = vmul.f32 %v5946_v17, %v5946_v17  ;;  %v5968_v40 = vsub.f32 %v8950_v48, %v5694_v61  ;;  %v5982_v10 = vmul.f32 0.0013020834, %v1226_v3  ;;  %v8958_v48 = vld [vmem:[#allocation188_spill] sm:$0xff] }
 0x1a1   :  { %v2111_v21 = vadd.f32 %v1793_v51, %v1792_v38  ;;  %v5972_v55 = vsub.f32 %v8952_v34, %v5694_v61  ;;  %v5976_v57 = vsub.f32 %v8954_v18, %v5694_v61  ;;  %v5980_v56 = vsub.f32 %v8956_v26, %v5694_v61  ;;  %2102 = vadd.xlane.f32.xlu1 %v2101_v45  ;;  %v8960_v34 = vld [vmem:[#allocation191_spill] sm:$0xff] }
 0x1a2   :  { %8951 = vst [vmem:[#allocation183_spill] sm:$0xff] %v5968_v40  ;;  %v2107_v52 = vadd.f32 %v2106_v59, %v1790_v8  ;;  %v5986_v17 = vsub.f32 %v8958_v48, %v5694_v61  ;;  %v1798_v38 = vmul.f32 %v5968_v40, %v5968_v40  ;;  %v5992_v18 = vsub.f32 %v8960_v34, %v5694_v61  ;;  %v8962_v34 = vld [vmem:[#allocation177_spill] sm:$0xff] }
 0x1a3   :  { %8953 = vst [vmem:[#allocation184_spill] sm:$0xff] %v5972_v55  ;;  %8955 = vst [vmem:[#allocation186_spill] sm:$0xff] %v5976_v57  ;;  %v2112_v51 = vadd.f32 %v2111_v21, %v1794_v0  ;;  %v1799_v26 = vmul.f32 %v5972_v55, %v5972_v55  ;;  %v1800_v8 = vmul.f32 %v5976_v57, %v5976_v57  ;;  %v5998_v45 = vmul.f32 0.0013020834, %v1219_v60  ;;  %v8964_v60 = vld [vmem:[#allocation178_spill] sm:$0xff]  ;;  %v8966_v57 = vld [vmem:[#allocation180_spill] sm:$0xff] }
 0x1a4   :  { %8957 = vst [vmem:[#allocation187_spill] sm:$0xff] %v5980_v56  ;;  %8959 = vst [vmem:[#allocation188_spill] sm:$0xff] %v5986_v17  ;;  %v2108_v3 = vadd.f32 %v2107_v52, %v1791_v16  ;;  %v1796_v59 = vmul.f32 %v5954_v46, %v5954_v46  ;;  %v1797_v48 = vmul.f32 %v5958_v53, %v5958_v53 }
 0x1a5   :  { %8961 = vst [vmem:[#allocation191_spill] sm:$0xff] %v5992_v18  ;;  %v2113_v21 = vadd.f32 %v2112_v51, %v1795_v58  ;;  %v1801_v61 = vmul.f32 %v5980_v56, %v5980_v56  ;;  %v2118_v0 = vadd.f32 %v1799_v26, %v1798_v38  ;;  %v6008_v55 = vsub.f32 %v8962_v34, %v5678_v23  ;;  %v8968_v58 = vld [vmem:[#allocation181_spill] sm:$0xff] }
 0x1a6   :  { %2109 = vadd.xlane.f32.xlu0 %v2108_v3  ;;  %v1802_v16 = vmul.f32 %v5986_v17, %v5986_v17  ;;  %v6014_v52 = vsub.f32 %v8964_v60, %v5678_v23  ;;  %v6018_v40 = vsub.f32 %v8966_v57, %v5678_v23  ;;  %v6022_v51 = vsub.f32 %v8968_v58, %v5678_v23  ;;  %v1240_v17 = vpop.xlane.xlu1 %1239  ;;  %v8970_v60 = vld [vmem:[#allocation182_spill] sm:$0xff]  ;;  %v8972_v57 = vld [vmem:[#allocation185_spill] sm:$0xff] }
 0x1a7   :  { %8963 = vst [vmem:[#allocation177_spill] sm:$0xff] %v6008_v55  ;;  %v2114_v38 = vadd.f32 %v2113_v21, %v1796_v59  ;;  %v1803_v26 = vmul.f32 %v5992_v18, %v5992_v18  ;;  %v2119_v3 = vadd.f32 %v2118_v0, %v1800_v8  ;;  %v1804_v34 = vmul.f32 %v6008_v55, %v6008_v55  ;;  %v8974_v55 = vld [vmem:[#allocation195_spill] sm:$0xff] }
 0x1a8   :  { %8965 = vst [vmem:[#allocation178_spill] sm:$0xff] %v6014_v52  ;;  %8967 = vst [vmem:[#allocation180_spill] sm:$0xff] %v6018_v40  ;;  %v6030_v56 = vsub.f32 %v8970_v60, %v5678_v23  ;;  %v6034_v53 = vsub.f32 %v8972_v57, %v5678_v23  ;;  %v1805_v58 = vmul.f32 %v6014_v52, %v6014_v52  ;;  %v1233_v60 = vpop.xlane.xlu0 %1232  ;;  %v8976_v23 = vld [vmem:[#allocation196_spill] sm:$0xff]  ;;  %v8978_v52 = vld [vmem:[#allocation198_spill] sm:$0xff] }
 0x1a9   :  { %8969 = vst [vmem:[#allocation181_spill] sm:$0xff] %v6022_v51  ;;  %v1806_v59 = vmul.f32 %v6018_v40, %v6018_v40  ;;  %v2115_v21 = vadd.f32 %v2114_v38, %v1797_v48  ;;  %v2120_v8 = vadd.f32 %v2119_v3, %v1801_v61  ;;  %v1807_v0 = vmul.f32 %v6022_v51, %v6022_v51  ;;  %v8980_v48 = vld [vmem:[#allocation199_spill] sm:$0xff] }
 0x1aa   :  { %8971 = vst [vmem:[#allocation182_spill] sm:$0xff] %v6030_v56  ;;  %8973 = vst [vmem:[#allocation185_spill] sm:$0xff] %v6034_v53  ;;  %v6044_v18 = vsub.f32 %v8974_v55, %v5770_v63  ;;  %v2125_v46 = vadd.f32 %v1805_v58, %v1804_v34  ;;  %v6048_v57 = vsub.f32 %v8976_v23, %v5770_v63  ;;  %v6058_v3 = vmul.f32 0.0013020834, %v1240_v17  ;;  %v8982_v55 = vld [vmem:[#allocation200_spill] sm:$0xff]  ;;  %v8984_v23 = vld [vmem:[#allocation203_spill] sm:$0xff] }
 0x1ab   :  { %v6052_v29 = vsub.f32 %v8978_v52, %v5770_v63  ;;  %v6056_v61 = vsub.f32 %v8980_v48, %v5770_v63  ;;  %2116 = vadd.xlane.f32.xlu1 %v2115_v21  ;;  %v2121_v38 = vadd.f32 %v2120_v8, %v1802_v16  ;;  %v6062_v51 = vsub.f32 %v8982_v55, %v5770_v63 }
 0x1ac   :  { %8975 = vst [vmem:[#allocation195_spill] sm:$0xff] %v6044_v18  ;;  %8977 = vst [vmem:[#allocation196_spill] sm:$0xff] %v6048_v57  ;;  %v1810_v34 = vmul.f32 %v6044_v18, %v6044_v18  ;;  %v2126_v58 = vadd.f32 %v2125_v46, %v1806_v59  ;;  %v6068_v52 = vsub.f32 %v8984_v23, %v5770_v63  ;;  %v6074_v21 = vmul.f32 0.0013020834, %v1233_v60  ;;  %v8986_v23 = vld [vmem:[#allocation189_spill] sm:$0xff]  ;;  %v8988_v60 = vld [vmem:[#allocation190_spill] sm:$0xff] }
 0x1ad   :  { %8979 = vst [vmem:[#allocation198_spill] sm:$0xff] %v6052_v29  ;;  %8981 = vst [vmem:[#allocation199_spill] sm:$0xff] %v6056_v61  ;;  %v1811_v48 = vmul.f32 %v6048_v57, %v6048_v57  ;;  %v1812_v16 = vmul.f32 %v6052_v29, %v6052_v29  ;;  %v2122_v17 = vadd.f32 %v2121_v38, %v1803_v26  ;;  %v8990_v29 = vld [vmem:[#allocation192_spill] sm:$0xff] }
 0x1ae   :  { %8983 = vst [vmem:[#allocation200_spill] sm:$0xff] %v6062_v51  ;;  %8985 = vst [vmem:[#allocation203_spill] sm:$0xff] %v6068_v52  ;;  %v1808_v8 = vmul.f32 %v6030_v56, %v6030_v56  ;;  %v1809_v55 = vmul.f32 %v6034_v53, %v6034_v53  ;;  %v2127_v46 = vadd.f32 %v2126_v58, %v1807_v0  ;;  %v8992_v0 = vld [vmem:[#allocation193_spill] sm:$0xff] }
 0x1af   :  { %v1813_v63 = vmul.f32 %v6056_v61, %v6056_v61  ;;  %v2132_v59 = vadd.f32 %v1811_v48, %v1810_v34  ;;  %v6084_v57 = vsub.f32 %v8986_v23, %v5754_v41  ;;  %2123 = vadd.xlane.f32.xlu0 %v2122_v17  ;;  %v1814_v26 = vmul.f32 %v6062_v51, %v6062_v51  ;;  %v1254_v51 = vpop.xlane.xlu1 %1253 }
 0x1b0   :  { %v6090_v38 = vsub.f32 %v8988_v60, %v5754_v41  ;;  %v6094_v18 = vsub.f32 %v8990_v29, %v5754_v41  ;;  %v6098_v58 = vsub.f32 %v8992_v0, %v5754_v41  ;;  %v2128_v34 = vadd.f32 %v2127_v46, %v1808_v8  ;;  %v8994_v60 = vld [vmem:[#allocation194_spill] sm:$0xff]  ;;  %v8996_v29 = vld [vmem:[#allocation197_spill] sm:$0xff] }
 0x1b1   :  { %8987 = vst [vmem:[#allocation189_spill] sm:$0xff] %v6084_v57  ;;  %v1815_v48 = vmul.f32 %v6068_v52, %v6068_v52  ;;  %v2133_v17 = vadd.f32 %v2132_v59, %v1812_v16  ;;  %v1816_v23 = vmul.f32 %v6084_v57, %v6084_v57  ;;  %v6106_v61 = vsub.f32 %v8994_v60, %v5754_v41  ;;  %v8998_v57 = vld [vmem:[#allocation207_spill] sm:$0xff]  ;;  %v1247_v60 = vpop.xlane.xlu0 %1246 }
 0x1b2   :  { %8989 = vst [vmem:[#allocation190_spill] sm:$0xff] %v6090_v38  ;;  %8991 = vst [vmem:[#allocation192_spill] sm:$0xff] %v6094_v18  ;;  %v6110_v53 = vsub.f32 %v8996_v29, %v5754_v41  ;;  %v1817_v0 = vmul.f32 %v6090_v38, %v6090_v38  ;;  %v1818_v8 = vmul.f32 %v6094_v18, %v6094_v18  ;;  %v9000_v41 = vld [vmem:[#allocation208_spill] sm:$0xff]  ;;  %v9002_v38 = vld [vmem:[#allocation210_spill] sm:$0xff] }
 0x1b3   :  { %8993 = vst [vmem:[#allocation193_spill] sm:$0xff] %v6098_v58  ;;  %8995 = vst [vmem:[#allocation194_spill] sm:$0xff] %v6106_v61  ;;  %v2129_v46 = vadd.f32 %v2128_v34, %v1809_v55  ;;  %v2134_v16 = vadd.f32 %v2133_v17, %v1813_v63  ;;  %v1819_v59 = vmul.f32 %v6098_v58, %v6098_v58  ;;  %v9004_v55 = vld [vmem:[#allocation211_spill] sm:$0xff]  ;;  %v6134_v17 = vmul.f32 0.0013020834, %v1254_v51  ;;  %v9023_v18 = vld [vmem:[#allocation222_spill] sm:$0xff] }
 0x1b4   :  { %8997 = vst [vmem:[#allocation197_spill] sm:$0xff] %v6110_v53  ;;  %v6120_v52 = vsub.f32 %v8998_v57, %v5846_v6  ;;  %v2139_v56 = vadd.f32 %v1817_v0, %v1816_v23  ;;  %v6124_v29 = vsub.f32 %v9000_v41, %v5846_v6  ;;  %v6128_v40 = vsub.f32 %v9002_v38, %v5846_v6  ;;  %v9006_v57 = vld [vmem:[#allocation212_spill] sm:$0xff]  ;;  %v9008_v41 = vld [vmem:[#allocation215_spill] sm:$0xff] }
 0x1b5   :  { %v6132_v63 = vsub.f32 %v9004_v55, %v5846_v6  ;;  %2130 = vadd.xlane.f32.xlu1 %v2129_v46  ;;  %v2135_v34 = vadd.f32 %v2134_v16, %v1814_v26  ;;  %v6138_v58 = vsub.f32 %v9006_v57, %v5846_v6  ;;  %v6144_v38 = vsub.f32 %v9008_v41, %v5846_v6  ;;  %v1268_v41 = vpop.xlane.xlu1 %1267 }
 0x1b6   :  { %8999 = vst [vmem:[#allocation207_spill] sm:$0xff] %v6120_v52  ;;  %9001 = vst [vmem:[#allocation208_spill] sm:$0xff] %v6124_v29  ;;  %v1822_v23 = vmul.f32 %v6120_v52, %v6120_v52  ;;  %v2140_v0 = vadd.f32 %v2139_v56, %v1818_v8  ;;  %v1823_v55 = vmul.f32 %v6124_v29, %v6124_v29  ;;  %v6150_v46 = vmul.f32 0.0013020834, %v1247_v60  ;;  %v9010_v29 = vld [vmem:[#allocation201_spill] sm:$0xff]  ;;  %v9012_v60 = vld [vmem:[#allocation202_spill] sm:$0xff] }
 0x1b7   :  { %9003 = vst [vmem:[#allocation210_spill] sm:$0xff] %v6128_v40  ;;  %9005 = vst [vmem:[#allocation211_spill] sm:$0xff] %v6132_v63  ;;  %v1824_v26 = vmul.f32 %v6128_v40, %v6128_v40  ;;  %v2136_v51 = vadd.f32 %v2135_v34, %v1815_v48  ;;  %v1820_v16 = vmul.f32 %v6106_v61, %v6106_v61  ;;  %v9014_v40 = vld [vmem:[#allocation204_spill] sm:$0xff] }
 0x1b8   :  { %9007 = vst [vmem:[#allocation212_spill] sm:$0xff] %v6138_v58  ;;  %9009 = vst [vmem:[#allocation215_spill] sm:$0xff] %v6144_v38  ;;  %v1821_v57 = vmul.f32 %v6110_v53, %v6110_v53  ;;  %v2141_v56 = vadd.f32 %v2140_v0, %v1819_v59  ;;  %v1825_v6 = vmul.f32 %v6132_v63, %v6132_v63  ;;  %v9016_v0 = vld [vmem:[#allocation205_spill] sm:$0xff]  ;;  %v6180_v63 = vmul.f32 0.0013020834, %v1268_v41  ;;  %v9017_v53 = vld [vmem:[#allocation206_spill] sm:$0xff] }
 0x1b9   :  { %v2146_v8 = vadd.f32 %v1823_v55, %v1822_v23  ;;  %v6160_v52 = vsub.f32 %v9010_v29, %v5830_v24  ;;  %2137 = vadd.xlane.f32.xlu0 %v2136_v51  ;;  %v1826_v48 = vmul.f32 %v6138_v58, %v6138_v58  ;;  %v6166_v34 = vsub.f32 %v9012_v60, %v5830_v24  ;;  %v1261_v60 = vpop.xlane.xlu0 %1260 }
 0x1ba   :  { %v6170_v59 = vsub.f32 %v9014_v40, %v5830_v24  ;;  %v6174_v23 = vsub.f32 %v9016_v0, %v5830_v24  ;;  %v2142_v55 = vadd.f32 %v2141_v56, %v1820_v16  ;;  %v1827_v29 = vmul.f32 %v6144_v38, %v6144_v38  ;;  %v9021_v38 = vld [vmem:[#allocation221_spill] sm:$0xff] }
 0x1bb   :  { %9011 = vst [vmem:[#allocation201_spill] sm:$0xff] %v6160_v52  ;;  %9013 = vst [vmem:[#allocation202_spill] sm:$0xff] %v6166_v34  ;;  %v2147_v51 = vadd.f32 %v2146_v8, %v1824_v26  ;;  %v1828_v58 = vmul.f32 %v6160_v52, %v6160_v52  ;;  %v6184_v61 = vsub.f32 %v9017_v53, %v5830_v24  ;;  %v9019_v8 = vld [vmem:[#allocation220_spill] sm:$0xff] }
 0x1bc   :  { %9015 = vst [vmem:[#allocation204_spill] sm:$0xff] %v6170_v59  ;;  %v1829_v40 = vmul.f32 %v6166_v34, %v6166_v34  ;;  %v1830_v16 = vmul.f32 %v6170_v59, %v6170_v59  ;;  %v2143_v56 = vadd.f32 %v2142_v55, %v1821_v57  ;;  %v1831_v26 = vmul.f32 %v6174_v23, %v6174_v23  ;;  %v9025_v59 = vld [vmem:[#allocation225_spill] sm:$0xff] }
 0x1bd   :  { %9018 = vst [vmem:[#allocation205_spill] sm:$0xff] %v6184_v61  ;;  %v2148_v0 = vadd.f32 %v2147_v51, %v1825_v6  ;;  %v6194_v41 = vsub.f32 %v9019_v8, %v5922_v36  ;;  %v6198_v53 = vsub.f32 %v9021_v38, %v5922_v36  ;;  %v6202_v34 = vsub.f32 %v9023_v18, %v5922_v36  ;;  %v9027_v51 = vld [vmem:[#allocation209_spill] sm:$0xff] }
 0x1be   :  { %v2153_v52 = vadd.f32 %v1829_v40, %v1828_v58  ;;  %v6206_v57 = vsub.f32 %v9025_v59, %v5922_v36  ;;  %2144 = vadd.xlane.f32.xlu1 %v2143_v56  ;;  %v6208_v55 = vmul.f32 0.0013020834, %v1261_v60  ;;  %v6212_v8 = vsub.f32 %v9027_v51, %v5830_v24  ;;  %v9030_v56 = vld [vmem:[#allocation213_spill] sm:$0xff] }
 0x1bf   :  { %9020 = vst [vmem:[#allocation206_spill] sm:$0xff] %v6194_v41  ;;  %9022 = vst [vmem:[#allocation220_spill] sm:$0xff] %v6198_v53  ;;  %v2149_v6 = vadd.f32 %v2148_v0, %v1826_v48  ;;  %v1834_v58 = vmul.f32 %v6194_v41, %v6194_v41  ;;  %v1832_v38 = vmul.f32 %v6184_v61, %v6184_v61  ;;  %v9050_v61 = vld [vmem:[#allocation244_spill] sm:$0xff] }
 0x1c0   :  { %9024 = vst [vmem:[#allocation221_spill] sm:$0xff] %v6202_v34  ;;  %9026 = vst [vmem:[#allocation222_spill] sm:$0xff] %v6206_v57  ;;  %v2154_v18 = vadd.f32 %v2153_v52, %v1830_v16  ;;  %v1835_v40 = vmul.f32 %v6198_v53, %v6198_v53  ;;  %v1836_v59 = vmul.f32 %v6202_v34, %v6202_v34  ;;  %v9032_v16 = vld [vmem:[#allocation214_spill] sm:$0xff]  ;;  %v9034_v34 = vld [vmem:[#allocation216_spill] sm:$0xff] }
 0x1c1   :  { %9028 = vst [vmem:[#allocation225_spill] sm:$0xff] %v6212_v8  ;;  %v2150_v48 = vadd.f32 %v2149_v6, %v1827_v29  ;;  %v6224_v60 = vsub.f32 %v4590_v4, %v5922_v36  ;;  %v1837_v24 = vmul.f32 %v6206_v57, %v6206_v57  ;;  %v6230_v0 = vsub.f32 %v9030_v56, %v5906_v2  ;;  %v9036_v6 = vld [vmem:[#allocation226_spill] sm:$0xff]  ;;  %v9038_v56 = vld [vmem:[#allocation217_spill] sm:$0xff] }
 0x1c2   :  { %v2155_v51 = vadd.f32 %v2154_v18, %v1831_v26  ;;  %v2160_v52 = vadd.f32 %v1835_v40, %v1834_v58  ;;  %v6234_v53 = vsub.f32 %v9032_v16, %v5906_v2  ;;  %v6238_v29 = vsub.f32 %v9034_v34, %v5906_v2 }
 0x1c3   :  { %9029 = vst [vmem:[#allocation209_spill] sm:$0xff] %v6224_v60  ;;  %9031 = vst [vmem:[#allocation213_spill] sm:$0xff] %v6230_v0  ;;  %2151 = vadd.xlane.f32.xlu0 %v2150_v48  ;;  %v1833_v4 = vmul.f32 %v6212_v8, %v6212_v8  ;;  %v6244_v57 = vsub.f32 %v9036_v6, %v5922_v36  ;;  %v6248_v26 = vsub.f32 %v9038_v56, %v5906_v2  ;;  %v9040_v36 = vld [vmem:[#allocation218_spill] sm:$0xff] }
 0x1c4   :  { %9033 = vst [vmem:[#allocation214_spill] sm:$0xff] %v6234_v53  ;;  %9035 = vst [vmem:[#allocation216_spill] sm:$0xff] %v6238_v29  ;;  %v1840_v58 = vmul.f32 %v6230_v0, %v6230_v0  ;;  %v2156_v18 = vadd.f32 %v2155_v51, %v1832_v38  ;;  %v2161_v40 = vadd.f32 %v2160_v52, %v1836_v59  ;;  %v9042_v0 = vld [vmem:[#allocation239_spill] sm:$0xff]  ;;  %v6268_v59 = vpop.xlane.xlu0 %1899 }
 0x1c5   :  { %9037 = vst [vmem:[#allocation226_spill] sm:$0xff] %v6244_v57  ;;  %9039 = vst [vmem:[#allocation217_spill] sm:$0xff] %v6248_v26  ;;  %v1841_v34 = vmul.f32 %v6234_v53, %v6234_v53  ;;  %v1842_v48 = vmul.f32 %v6238_v29, %v6238_v29  ;;  %v1838_v16 = vmul.f32 %v6224_v60, %v6224_v60  ;;  %v9044_v29 = vld [vmem:[#allocation240_spill] sm:$0xff]  ;;  %v9046_v60 = vld [vmem:[#allocation219_spill] sm:$0xff] }
 0x1c6   :  { %v6260_v6 = vsub.f32 %v9040_v36, %v5906_v2  ;;  %v1843_v56 = vmul.f32 %v6248_v26, %v6248_v26  ;;  %v6266_v38 = vsub.f32 %v9042_v0, %v5998_v45  ;;  %v2157_v51 = vadd.f32 %v2156_v18, %v1833_v4  ;;  %v9048_v26 = vld [vmem:[#allocation241_spill] sm:$0xff] }
 0x1c7   :  { %v2162_v52 = vadd.f32 %v2161_v40, %v1837_v24  ;;  %v2167_v53 = vadd.f32 %v1841_v34, %v1840_v58  ;;  %v6272_v41 = vsub.f32 %v9044_v29, %v5998_v45  ;;  %v1839_v36 = vmul.f32 %v6244_v57, %v6244_v57  ;;  %v6288_v24 = vpop.xlane.xlu1 %1906 }
 0x1c8   :  { %9041 = vst [vmem:[#allocation218_spill] sm:$0xff] %v6260_v6  ;;  %9043 = vst [vmem:[#allocation239_spill] sm:$0xff] %v6266_v38  ;;  %v6278_v8 = vsub.f32 %v9046_v60, %v5906_v2  ;;  %v6282_v0 = vsub.f32 %v9048_v26, %v5998_v45  ;;  %v6286_v4 = vsub.f32 %v9050_v61, %v5998_v45  ;;  %2158 = vadd.xlane.f32.xlu1 %v2157_v51  ;;  %v9052_v26 = vld [vmem:[#allocation245_spill] sm:$0xff] }
 0x1c9   :  { %9045 = vst [vmem:[#allocation240_spill] sm:$0xff] %v6272_v41  ;;  %v2163_v29 = vadd.f32 %v2162_v52, %v1838_v16  ;;  %v2168_v58 = vadd.f32 %v2167_v53, %v1842_v48  ;;  %v1846_v18 = vmul.f32 %v6266_v38, %v6266_v38  ;;  %v1847_v2 = vmul.f32 %v6272_v41, %v6272_v41  ;;  %v9054_v51 = vld [vmem:[#allocation229_spill] sm:$0xff]  ;;  %v9056_v38 = vld [vmem:[#allocation230_spill] sm:$0xff] }
 0x1ca   :  { %9047 = vst [vmem:[#allocation219_spill] sm:$0xff] %v6278_v8  ;;  %9049 = vst [vmem:[#allocation241_spill] sm:$0xff] %v6282_v0  ;;  %v1844_v60 = vmul.f32 %v6260_v6, %v6260_v6  ;;  %v6298_v40 = vsub.f32 %v9052_v26, %v5998_v45  ;;  %v1848_v61 = vmul.f32 %v6282_v0, %v6282_v0  ;;  %v9058_v6 = vld [vmem:[#allocation231_spill] sm:$0xff] }
 0x1cb   :  { %9051 = vst [vmem:[#allocation244_spill] sm:$0xff] %v6286_v4  ;;  %v1849_v34 = vmul.f32 %v6286_v4, %v6286_v4  ;;  %v2164_v53 = vadd.f32 %v2163_v29, %v1839_v36  ;;  %v2169_v48 = vadd.f32 %v2168_v58, %v1843_v56  ;;  %v2174_v16 = vadd.f32 %v1847_v2, %v1846_v18  ;;  %v9060_v4 = vld [vmem:[#allocation234_spill] sm:$0xff]  ;;  %v6322_v56 = vpop.xlane.xlu0 %1913 }
 0x1cc   :  { %9053 = vst [vmem:[#allocation245_spill] sm:$0xff] %v6298_v40  ;;  %v6306_v52 = vsub.f32 %v9054_v51, %v5982_v10  ;;  %v1845_v41 = vmul.f32 %v6278_v8, %v6278_v8  ;;  %v6312_v26 = vsub.f32 %v9056_v38, %v5982_v10  ;;  %v6316_v0 = vsub.f32 %v9058_v6, %v5982_v10  ;;  %v9062_v58 = vld [vmem:[#allocation246_spill] sm:$0xff]  ;;  %v9064_v51 = vld [vmem:[#allocation235_spill] sm:$0xff] }
 0x1cd   :  { %v6320_v36 = vsub.f32 %v9060_v4, %v5982_v10  ;;  %2165 = vadd.xlane.f32.xlu0 %v2164_v53  ;;  %v2170_v29 = vadd.f32 %v2169_v48, %v1844_v60  ;;  %v6326_v18 = vsub.f32 %v9062_v58, %v5998_v45  ;;  %v2175_v2 = vadd.f32 %v2174_v16, %v1848_v61  ;;  %v6340_v53 = vpop.xlane.xlu1 %1920  ;;  %v9066_v16 = vld [vmem:[#allocation253_spill] sm:$0xff] }
 0x1ce   :  { %9055 = vst [vmem:[#allocation229_spill] sm:$0xff] %v6306_v52  ;;  %9057 = vst [vmem:[#allocation230_spill] sm:$0xff] %v6312_v26  ;;  %v1852_v38 = vmul.f32 %v6306_v52, %v6306_v52  ;;  %v1850_v6 = vmul.f32 %v6298_v40, %v6298_v40  ;;  %v6334_v8 = vsub.f32 %v9064_v51, %v5982_v10  ;;  %v9068_v51 = vld [vmem:[#allocation254_spill] sm:$0xff] }
 0x1cf   :  { %9059 = vst [vmem:[#allocation231_spill] sm:$0xff] %v6316_v0  ;;  %9061 = vst [vmem:[#allocation234_spill] sm:$0xff] %v6320_v36  ;;  %v1853_v4 = vmul.f32 %v6312_v26, %v6312_v26  ;;  %v1854_v60 = vmul.f32 %v6316_v0, %v6316_v0  ;;  %v2171_v45 = vadd.f32 %v2170_v29, %v1845_v41  ;;  %v9070_v26 = vld [vmem:[#allocation255_spill] sm:$0xff]  ;;  %v9072_v0 = vld [vmem:[#allocation257_spill] sm:$0xff] }
 0x1d0   :  { %9063 = vst [vmem:[#allocation246_spill] sm:$0xff] %v6326_v18  ;;  %9065 = vst [vmem:[#allocation235_spill] sm:$0xff] %v6334_v8  ;;  %v2176_v61 = vadd.f32 %v2175_v2, %v1849_v34  ;;  %v1855_v48 = vmul.f32 %v6320_v36, %v6320_v36  ;;  %v6346_v58 = vsub.f32 %v9066_v16, %v6074_v21  ;;  %v9074_v2 = vld [vmem:[#allocation236_spill] sm:$0xff] }
 0x1d1   :  { %v2181_v52 = vadd.f32 %v1853_v4, %v1852_v38  ;;  %v6350_v40 = vsub.f32 %v9068_v51, %v6074_v21  ;;  %v6354_v57 = vsub.f32 %v9070_v26, %v6074_v21  ;;  %v6358_v41 = vsub.f32 %v9072_v0, %v6074_v21  ;;  %2172 = vadd.xlane.f32.xlu1 %v2171_v45  ;;  %v6374_v51 = vpop.xlane.xlu0 %1927 }
 0x1d2   :  { %9067 = vst [vmem:[#allocation253_spill] sm:$0xff] %v6346_v58  ;;  %v1851_v34 = vmul.f32 %v6326_v18, %v6326_v18  ;;  %v2177_v29 = vadd.f32 %v2176_v61, %v1850_v6  ;;  %v6364_v38 = vsub.f32 %v9074_v2, %v5982_v10  ;;  %v1858_v4 = vmul.f32 %v6346_v58, %v6346_v58  ;;  %v9077_v2 = vld [vmem:[#allocation247_spill] sm:$0xff] }
 0x1d3   :  { %9069 = vst [vmem:[#allocation254_spill] sm:$0xff] %v6350_v40  ;;  %9071 = vst [vmem:[#allocation255_spill] sm:$0xff] %v6354_v57  ;;  %v1856_v26 = vmul.f32 %v6334_v8, %v6334_v8  ;;  %v2182_v16 = vadd.f32 %v2181_v52, %v1854_v60  ;;  %v1859_v0 = vmul.f32 %v6350_v40, %v6350_v40  ;;  %v9079_v40 = vld [vmem:[#allocation248_spill] sm:$0xff] }
 0x1d4   :  { %9073 = vst [vmem:[#allocation257_spill] sm:$0xff] %v6358_v41  ;;  %9075 = vst [vmem:[#allocation236_spill] sm:$0xff] %v6364_v38  ;;  %v1860_v45 = vmul.f32 %v6354_v57, %v6354_v57  ;;  %v2178_v6 = vadd.f32 %v2177_v29, %v1851_v34  ;;  %v6378_v10 = vsub.f32 %v4718_v20, %v6074_v21  ;;  %v9081_v57 = vld [vmem:[#allocation249_spill] sm:$0xff]  ;;  %v6394_v29 = vpop.xlane.xlu1 %1934 }
 0x1d5   :  { %v1861_v61 = vmul.f32 %v6358_v41, %v6358_v41  ;;  %v6384_v58 = vsub.f32 %v9077_v2, %v6058_v3  ;;  %v2183_v52 = vadd.f32 %v2182_v16, %v1855_v48  ;;  %v2188_v60 = vadd.f32 %v1859_v0, %v1858_v4  ;;  %v9083_v41 = vld [vmem:[#allocation261_spill] sm:$0xff]  ;;  %v9084_v48 = vld [vmem:[#allocation250_spill] sm:$0xff]  ;;  %v6428_v36 = vpop.xlane.xlu0 %1941 }
 0x1d6   :  { %9076 = vst [vmem:[#allocation272_spill] sm:$0xff] %v6378_v10  ;;  %v6388_v8 = vsub.f32 %v9079_v40, %v6058_v3  ;;  %v6392_v34 = vsub.f32 %v9081_v57, %v6058_v3  ;;  %2179 = vadd.xlane.f32.xlu0 %v2178_v6  ;;  %v1857_v20 = vmul.f32 %v6364_v38, %v6364_v38 }
 0x1d7   :  { %9078 = vst [vmem:[#allocation247_spill] sm:$0xff] %v6384_v58  ;;  %v6400_v2 = vsub.f32 %v9083_v41, %v6074_v21  ;;  %v6404_v4 = vsub.f32 %v9084_v48, %v6058_v3  ;;  %v1864_v40 = vmul.f32 %v6384_v58, %v6384_v58  ;;  %v2184_v16 = vadd.f32 %v2183_v52, %v1856_v26  ;;  %v9085_v21 = vld [vmem:[#allocation251_spill] sm:$0xff]  ;;  %v9086_v58 = vld [vmem:[#allocation265_spill] sm:$0xff] }
 0x1d8   :  { %9080 = vst [vmem:[#allocation248_spill] sm:$0xff] %v6388_v8  ;;  %9082 = vst [vmem:[#allocation249_spill] sm:$0xff] %v6392_v34  ;;  %v2189_v57 = vadd.f32 %v2188_v60, %v1860_v45  ;;  %v1865_v0 = vmul.f32 %v6388_v8, %v6388_v8  ;;  %v1866_v6 = vmul.f32 %v6392_v34, %v6392_v34  ;;  %v9088_v8 = vld [vmem:[#allocation266_spill] sm:$0xff] }
 0x1d9   :  { %v1862_v38 = vmul.f32 %v6378_v10, %v6378_v10  ;;  %v6416_v41 = vsub.f32 %v9085_v21, %v6058_v3  ;;  %v1867_v48 = vmul.f32 %v6404_v4, %v6404_v4  ;;  %v6422_v26 = vsub.f32 %v9086_v58, %v6150_v46  ;;  %v9090_v10 = vld [vmem:[#allocation252_spill] sm:$0xff] }
 0x1da   :  { %v2185_v45 = vadd.f32 %v2184_v16, %v1857_v20  ;;  %v2190_v52 = vadd.f32 %v2189_v57, %v1861_v61  ;;  %v2195_v60 = vadd.f32 %v1865_v0, %v1864_v40  ;;  %v6426_v34 = vsub.f32 %v9088_v8, %v6150_v46  ;;  %v6448_v57 = vpop.xlane.xlu1 %1948 }
 0x1db   :  { %9087 = vst [vmem:[#allocation261_spill] sm:$0xff] %v6422_v26  ;;  %v1863_v21 = vmul.f32 %v6400_v2, %v6400_v2  ;;  %v6434_v18 = vsub.f32 %v9090_v10, %v6058_v3  ;;  %v6438_v58 = vsub.f32 %v4760_v50, %v6150_v46  ;;  %v6442_v61 = vsub.f32 %v4767_v5, %v6150_v46 }
 0x1dc   :  { %9089 = vst [vmem:[#allocation250_spill] sm:$0xff] %v6426_v34  ;;  %2186 = vadd.xlane.f32.xlu1 %v2185_v45  ;;  %v2191_v8 = vadd.f32 %v2190_v52, %v1862_v38  ;;  %v2196_v20 = vadd.f32 %v2195_v60, %v1866_v6  ;;  %v1870_v40 = vmul.f32 %v6422_v26, %v6422_v26  ;;  %v9093_v45 = vld [vmem:[#allocation259_spill] sm:$0xff]  ;;  %v9096_v26 = vld [vmem:[#allocation262_spill] sm:$0xff] }
 0x1dd   :  { %9091 = vst [vmem:[#allocation251_spill] sm:$0xff] %v6438_v58  ;;  %9092 = vst [vmem:[#allocation265_spill] sm:$0xff] %v6442_v61  ;;  %v1871_v16 = vmul.f32 %v6426_v34, %v6426_v34  ;;  %v1868_v3 = vmul.f32 %v6416_v41, %v6416_v41  ;;  %v6454_v50 = vsub.f32 %v4771_v11, %v6150_v46  ;;  %v9094_v34 = vld [vmem:[#allocation260_spill] sm:$0xff] }
 0x1de   :  { %v1872_v5 = vmul.f32 %v6438_v58, %v6438_v58  ;;  %v1873_v38 = vmul.f32 %v6442_v61, %v6442_v61  ;;  %v2192_v10 = vadd.f32 %v2191_v8, %v1863_v21  ;;  %v2197_v0 = vadd.f32 %v2196_v20, %v1867_v48  ;;  %v9097_v61 = vld [vmem:[#allocation263_spill] sm:$0xff] }
 0x1df   :  { %v2202_v6 = vadd.f32 %v1871_v16, %v1870_v40  ;;  %v6462_v52 = vsub.f32 %v9093_v45, %v6134_v17  ;;  %v1869_v60 = vmul.f32 %v6434_v18, %v6434_v18  ;;  %v6468_v11 = vsub.f32 %v9094_v34, %v6134_v17  ;;  %v6484_v34 = vpop.xlane.xlu0 %1955  ;;  %v9099_v16 = vld [vmem:[#allocation264_spill] sm:$0xff] }
 0x1e0   :  { %v6472_v58 = vsub.f32 %v9096_v26, %v6134_v17  ;;  %v6476_v21 = vsub.f32 %v9097_v61, %v6134_v17  ;;  %2193 = vadd.xlane.f32.xlu0 %v2192_v10  ;;  %v2198_v48 = vadd.f32 %v2197_v0, %v1868_v3  ;;  %v6480_v8 = vsub.f32 %v4785_v37, %v6150_v46  ;;  %v6502_v0 = vpop.xlane.xlu1 %1962 }
 0x1e1   :  { %9095 = vst [vmem:[#allocation266_spill] sm:$0xff] %v6468_v11  ;;  %v2203_v20 = vadd.f32 %v2202_v6, %v1872_v5  ;;  %v1876_v40 = vmul.f32 %v6462_v52, %v6462_v52  ;;  %v1874_v26 = vmul.f32 %v6454_v50, %v6454_v50  ;;  %v6490_v45 = vsub.f32 %v9099_v16, %v6134_v17 }
 0x1e2   :  { %9098 = vst [vmem:[#allocation252_spill] sm:$0xff] %v6476_v21  ;;  %v1877_v61 = vmul.f32 %v6468_v11, %v6468_v11  ;;  %v1878_v37 = vmul.f32 %v6472_v58, %v6472_v58  ;;  %v2199_v46 = vadd.f32 %v2198_v48, %v1869_v60  ;;  %v1879_v5 = vmul.f32 %v6476_v21, %v6476_v21 }
 0x1e3   :  { %9100 = vst [vmem:[#allocation259_spill] sm:$0xff] %v6490_v45  ;;  %v2204_v3 = vadd.f32 %v2203_v20, %v1873_v38  ;;  %v6500_v10 = vsub.f32 %v4810_v1, %v6208_v55  ;;  %v6506_v16 = vsub.f32 %v4812_v43, %v6208_v55  ;;  %v6510_v11 = vsub.f32 %v4816_v14, %v6208_v55 }
 0x1e4   :  { %v2209_v6 = vadd.f32 %v1877_v61, %v1876_v40  ;;  %v6514_v38 = vsub.f32 %v4826_v22, %v6208_v55  ;;  %2200 = vadd.xlane.f32.xlu1 %v2199_v46  ;;  %v1875_v1 = vmul.f32 %v6480_v8, %v6480_v8  ;;  %v6520_v48 = vsub.f32 %v4758_v49, %v6134_v17  ;;  %v6540_v46 = vpop.xlane.xlu0 %1969 }
 0x1e5   :  { %9101 = vst [vmem:[#allocation260_spill] sm:$0xff] %v6500_v10  ;;  %9102 = vst [vmem:[#allocation262_spill] sm:$0xff] %v6506_v16  ;;  %v2205_v60 = vadd.f32 %v2204_v3, %v1874_v26  ;;  %v1882_v43 = vmul.f32 %v6500_v10, %v6500_v10  ;;  %v1880_v14 = vmul.f32 %v6490_v45, %v6490_v45 }
 0x1e6   :  { %9103 = vst [vmem:[#allocation263_spill] sm:$0xff] %v6510_v11  ;;  %9104 = vst [vmem:[#allocation264_spill] sm:$0xff] %v6514_v38  ;;  %v2210_v20 = vadd.f32 %v2209_v6, %v1878_v37  ;;  %v1883_v22 = vmul.f32 %v6506_v16, %v6506_v16  ;;  %v1884_v40 = vmul.f32 %v6510_v11, %v6510_v11  ;;  %v9108_v6 = vld [vmem:[#allocation267_spill] sm:$0xff] }
 0x1e7   :  { %9105 = vst [vmem:[#allocation273_spill] sm:$0xff] %v6520_v48  ;;  %v2206_v61 = vadd.f32 %v2205_v60, %v1875_v1  ;;  %v6532_v26 = vsub.f32 %v4830_v31, %v6208_v55  ;;  %v1885_v49 = vmul.f32 %v6514_v38, %v6514_v38  ;;  %v6538_v17 = vsub.f32 %v4781_v9, %v6180_v63  ;;  %v9110_v1 = vld [vmem:[#allocation268_spill] sm:$0xff] }
 0x1e8   :  { %v2211_v37 = vadd.f32 %v2210_v20, %v1879_v5  ;;  %v2216_v3 = vadd.f32 %v1883_v22, %v1882_v43  ;;  %v6544_v16 = vsub.f32 %v9108_v6, %v6180_v63  ;;  %v6548_v60 = vsub.f32 %v9110_v1, %v6180_v63  ;;  %v6562_v20 = vpop.xlane.xlu1 %1976 }
 0x1e9   :  { %9106 = vst [vmem:[#allocation274_spill] sm:$0xff] %v6532_v26  ;;  %9107 = vst [vmem:[#allocation275_spill] sm:$0xff] %v6538_v17  ;;  %2207 = vadd.xlane.f32.xlu0 %v2206_v61  ;;  %v1881_v31 = vmul.f32 %v6520_v48, %v6520_v48  ;;  %v6554_v9 = vsub.f32 %v4843_v54, %v6208_v55  ;;  %v6558_v5 = vsub.f32 %v4794_v7, %v6180_v63  ;;  %v9129_v48 = vld [vmem:[#allocation258_spill] sm:$0xff] }
 0x1ea   :  { %9109 = vst [vmem:[#allocation267_spill] sm:$0xff] %v6544_v16  ;;  %9111 = vst [vmem:[#allocation268_spill] sm:$0xff] %v6548_v60  ;;  %v1888_v43 = vmul.f32 %v6538_v17, %v6538_v17  ;;  %v2212_v22 = vadd.f32 %v2211_v37, %v1880_v14  ;;  %v2217_v6 = vadd.f32 %v2216_v3, %v1884_v40  ;;  %v2665_v17 = vlaneseq }
 0x1eb   :  { %9112 = vst [vmem:[#allocation276_spill] sm:$0xff] %v6554_v9  ;;  %9113 = vst [vmem:[#allocation277_spill] sm:$0xff] %v6558_v5  ;;  %v1889_v61 = vmul.f32 %v6544_v16, %v6544_v16  ;;  %v1890_v1 = vmul.f32 %v6548_v60, %v6548_v60  ;;  %v1886_v54 = vmul.f32 %v6532_v26, %v6532_v26  ;;  %v2230_v37 = vmul.f32 0.0013020834, %v6268_v59  ;;  %v1984_v16 = vpop.xlane.xlu0 %1983 }
 0x1ec   :  { %v6572_v7 = vsub.f32 %v4798_v44, %v6180_v63  ;;  %v1891_v55 = vmul.f32 %v6558_v5, %v6558_v5  ;;  %v2213_v38 = vadd.f32 %v2212_v22, %v1881_v31  ;;  %v2218_v14 = vadd.f32 %v2217_v6, %v1885_v49  ;;  %v2662_v6 = vld [vmem:[#allocation7] sm:$0x3f] }
 0x1ed   :  { %v2223_v40 = vadd.f32 %v1889_v61, %v1888_v43  ;;  %v6577_v3 = vshrl.u32 %v2665_v17, 7  ;;  %v1887_v60 = vmul.f32 %v6554_v9, %v6554_v9  ;;  %v6583_v44 = vsub.f32 %v4814_v27, %v6180_v63  ;;  %v1991_v43 = vpop.xlane.xlu1 %1990 }
 0x1ee   :  { %9114 = vst [vmem:[#allocation278_spill] sm:$0xff] %v6572_v7  ;;  %2214 = vadd.xlane.f32.xlu1 %v2213_v38  ;;  %v2219_v26 = vadd.f32 %v2218_v14, %v1886_v54  ;;  %v1892_v31 = vmul.f32 %v6572_v7, %v6572_v7  ;;  %v2231_v17 = vmul.f32 0.0013020834, %v6288_v24  ;;  %v2278_v54 = vadd.f32 1e-12, %v2230_v37 }
 0x1ef   :  { %9115 = vst [vmem:[#allocation279_spill] sm:$0xff] %v6583_v44  ;;  %v2224_v11 = vadd.f32 %v2223_v40, %v1890_v1  ;;  %v2667_v49 = vsub.s32 0, %v6577_v3  ;;  %v2675_v61 = vsub.s32 2, %v6577_v3  ;;  %v2679_v27 = vsub.s32 3, %v6577_v3 }
 0x1f0   :  { %v2220_v38 = vadd.f32 %v2219_v26, %v1887_v60  ;;  %v2232_v63 = vmul.f32 0.0013020834, %v6322_v56  ;;  %v2233_v1 = vmul.f32 0.0013020834, %v6340_v53  ;;  %v1893_v14 = vmul.f32 %v6583_v44, %v6583_v44 }
 0x1f1   :  { %v2225_v22 = vadd.f32 %v2224_v11, %v1891_v55  ;;  %v6596_v59 = vrot.slane %v2662_v6, %v2667_v49  ;;  %v9116_v24 = vsub.s32 1, %v6577_v3  ;;  %v2683_v26 = vsub.s32 4, %v6577_v3  ;;  %v1998_v55 = vpop.xlane.xlu0 %1997  ;;  %v2005_v7 = vpop.xlane.xlu1 %2004 }
 0x1f2   :  { %2221 = vadd.xlane.f32.xlu0 %v2220_v38  ;;  %v2687_v60 = vsub.s32 5, %v6577_v3  ;;  %v6604_v56 = vrot.slane %v2662_v6, %v2675_v61  ;;  %3616 = vrsqrt.f32 %v2278_v54  ;;  %v2279_v53 = vadd.f32 1e-12, %v2231_v17 }
 0x1f3   :  { %v2226_v40 = vadd.f32 %v2225_v22, %v1892_v31  ;;  %v6600_v11 = vrot.slane %v2662_v6, %v9116_v24  ;;  %v6606_v38 = vrot.slane %v2662_v6, %v2679_v27  ;;  %v2280_v44 = vadd.f32 1e-12, %v2232_v63 }
 0x1f4   :  { %v2281_v31 = vadd.f32 1e-12, %v2233_v1  ;;  %v2234_v22 = vmul.f32 0.0013020834, %v6374_v51  ;;  %3618 = vrsqrt.f32 %v2279_v53  ;;  %v2235_v24 = vmul.f32 0.0013020834, %v6394_v29 }
 0x1f5   :  { %v2227_v37 = vadd.f32 %v2226_v40, %v1893_v14  ;;  %v2236_v5 = vmul.f32 0.0013020834, %v6428_v36  ;;  %v2237_v9 = vmul.f32 0.0013020834, %v6448_v57  ;;  %3620 = vrsqrt.f32 %v2280_v44  ;;  %v2663_v51 = vld [vmem:[#allocation8] sm:$0x3f]  ;;  %v2012_v36 = vpop.xlane.xlu0 %2011 }
 0x1f6   :  { %v2282_v14 = vadd.f32 1e-12, %v2234_v22  ;;  %v2238_v54 = vmul.f32 0.0013020834, %v6484_v34  ;;  %v2239_v17 = vmul.f32 0.0013020834, %v6502_v0  ;;  %3622 = vrsqrt.f32 %v2281_v31 }
 0x1f7   :  { %2228 = vadd.xlane.f32.xlu1 %v2227_v37  ;;  %v2283_v63 = vadd.f32 1e-12, %v2235_v24  ;;  %v2284_v1 = vadd.f32 1e-12, %v2236_v5  ;;  %v2285_v40 = vadd.f32 1e-12, %v2237_v9  ;;  %v6614_v10 = vrot.slane %v2662_v6, %v2683_v26  ;;  %v2019_v5 = vpop.xlane.xlu1 %2018 }
 0x1f8   :  { %3624 = vrsqrt.f32 %v2282_v14  ;;  %v2286_v37 = vadd.f32 1e-12, %v2238_v54  ;;  %v2240_v29 = vmul.f32 0.0013020834, %v6540_v46  ;;  %v2287_v57 = vadd.f32 1e-12, %v2239_v17 }
 0x1f9   :  { %3626 = vrsqrt.f32 %v2283_v63  ;;  %v2241_v44 = vmul.f32 0.0013020834, %v6562_v20  ;;  %v2242_v53 = vmul.f32 0.0013020834, %v1984_v16  ;;  %v6618_v34 = vrot.slane %v2662_v6, %v2687_v60 }
 0x1fa   :  { %3628 = vrsqrt.f32 %v2284_v1  ;;  %v2288_v0 = vadd.f32 1e-12, %v2240_v29  ;;  %v2243_v31 = vmul.f32 0.0013020834, %v1991_v43  ;;  %v6620_v9 = vrot.slane %v2663_v51, %v2667_v49  ;;  %v2026_v1 = vpop.xlane.xlu0 %2025 }
 0x1fb   :  { %3630 = vrsqrt.f32 %v2285_v40  ;;  %v2289_v22 = vadd.f32 1e-12, %v2241_v44  ;;  %v2244_v24 = vmul.f32 0.0013020834, %v1998_v55  ;;  %v2290_v14 = vadd.f32 1e-12, %v2242_v53 }
 0x1fc   :  { %3632 = vrsqrt.f32 %v2286_v37  ;;  %v2245_v46 = vmul.f32 0.0013020834, %v2005_v7  ;;  %v2246_v54 = vmul.f32 0.0013020834, %v2012_v36  ;;  %v9117_v17 = vsub.s32 1, %v6577_v3  ;;  %v9119_v36 = vld [vmem:[#allocation233_spill] sm:$0xff] }
 0x1fd   :  { %v6626_v16 = vrot.slane %v2663_v51, %v2675_v61  ;;  %3634 = vrsqrt.f32 %v2287_v57  ;;  %v2247_v20 = vmul.f32 0.0013020834, %v2019_v5  ;;  %v6628_v6 = vrot.slane %v2663_v51, %v2679_v27  ;;  %v9118_v27 = vld [vmem:[#allocation232_spill] sm:$0xff]  ;;  %v9120_v44 = vld [vmem:[#allocation237_spill] sm:$0xff] }
 0x1fe   :  { %v6624_v63 = vrot.slane %v2663_v51, %v9117_v17  ;;  %v6630_v43 = vrot.slane %v2663_v51, %v2683_v26  ;;  %3636 = vrsqrt.f32 %v2288_v0  ;;  %v2291_v49 = vadd.f32 1e-12, %v2243_v31  ;;  %v9122_v31 = vld [vmem:[#allocation242_spill] sm:$0xff] }
 0x1ff   :  { %v6632_v55 = vrot.slane %v2663_v51, %v2687_v60  ;;  %3638 = vrsqrt.f32 %v2289_v22  ;;  %v6634_v7 = vadd.f32 1e-12, %v2244_v24  ;;  %v2248_v40 = vmul.f32 0.0013020834, %v2026_v1  ;;  %v3617_v3 = vpop.eup %3616  ;;  %v9121_v60 = vld [vmem:[#allocation238_spill] sm:$0xff]  ;;  %v9123_v22 = vld [vmem:[#allocation243_spill] sm:$0xff] }
 0x200   :  { %3640 = vrsqrt.f32 %v2290_v14  ;;  %v6636_v37 = vadd.f32 1e-12, %v2245_v46  ;;  %v6638_v61 = vadd.f32 1e-12, %v2246_v54  ;;  %v6640_v29 = vadd.f32 1e-12, %v2247_v20 }
 0x201   :  { %v2374_v26 = vmul.f32 %v3617_v3, %v9118_v27  ;;  %v2375_v57 = vmul.f32 %v3617_v3, %v9119_v36  ;;  %v2376_v53 = vmul.f32 %v3617_v3, %v9120_v44  ;;  %v2377_v51 = vmul.f32 %v3617_v3, %v9121_v60  ;;  %v3619_v0 = vpop.eup %3618 }
 0x202   :  { %v2378_v5 = vmul.f32 %v3617_v3, %v9122_v31  ;;  %v2379_v24 = vmul.f32 %v3617_v3, %v9123_v22  ;;  %3642 = vrsqrt.f32 %v2291_v49  ;;  %v6648_v14 = vadd.f32 1e-12, %v2248_v40  ;;  %v3621_v46 = vpop.eup %3620 }
 0x203   :  { %v2695_v54 = vmul.f32 %v6596_v59, %v2374_v26  ;;  %v2696_v17 = vmul.f32 %v6600_v11, %v2375_v57  ;;  %v2697_v20 = vmul.f32 %v6604_v56, %v2376_v53  ;;  %v2698_v1 = vmul.f32 %v6606_v38, %v2377_v51  ;;  %v6654_v27 = vpop.eup %3622 }
 0x204   :  { %v2699_v36 = vmul.f32 %v6614_v10, %v2378_v5  ;;  %v2700_v44 = vmul.f32 %v6618_v34, %v2379_v24  ;;  %v2380_v3 = vmul.f32 %v3619_v0, %v4802_v39  ;;  %v2381_v49 = vmul.f32 %v3619_v0, %v4806_v30 }
 0x205   :  { %v6660_v40 = vpop.eup %3624  ;;  %v3014_v26 = vadd.f32 %v6620_v9, %v2695_v54  ;;  %v3015_v57 = vadd.f32 %v6624_v63, %v2696_v17  ;;  %v3016_v53 = vadd.f32 %v6626_v16, %v2697_v20  ;;  %v3017_v60 = vadd.f32 %v6628_v6, %v2698_v1 }
 0x206   :  { %v6666_v51 = vpop.eup %3626  ;;  %v3018_v31 = vadd.f32 %v6630_v43, %v2699_v36  ;;  %v3019_v5 = vadd.f32 %v6632_v55, %v2700_v44  ;;  %v2382_v39 = vmul.f32 %v3619_v0, %v4822_v15  ;;  %v2383_v30 = vmul.f32 %v3619_v0, %v4835_v19  ;;  %v9124_v36 = vld [vmem:[#allocation223_spill] sm:$0xff] }
 0x207   :  { %v6672_v22 = vpop.eup %3628  ;;  %3302 = vst [vmem:[#allocation10] sm:$0xff] %v3014_v26  ;;  %3303 = vst [vmem:[#allocation10 + $0x8] sm:$0xff] %v3015_v57  ;;  %v2384_v24 = vmul.f32 %v3619_v0, %v4849_v25  ;;  %v2385_v54 = vmul.f32 %v3619_v0, %v4853_v28  ;;  %v2701_v17 = vmul.f32 %v6596_v59, %v2380_v3  ;;  %v9125_v26 = vld [vmem:[#allocation224_spill] sm:$0xff]  ;;  %3644 = vrsqrt.f32 %v6634_v7 }
 0x208   :  { %3304 = vst [vmem:[#allocation10 + $0x10] sm:$0xff] %v3016_v53  ;;  %3305 = vst [vmem:[#allocation10 + $0x18] sm:$0xff] %v3017_v60  ;;  %v2702_v20 = vmul.f32 %v6600_v11, %v2381_v49  ;;  %v6678_v1 = vpop.eup %3630  ;;  %v2703_v15 = vmul.f32 %v6604_v56, %v2382_v39  ;;  %v2704_v19 = vmul.f32 %v6606_v38, %v2383_v30  ;;  %v9127_v30 = vld [vmem:[#allocation228_spill] sm:$0xff]  ;;  %3646 = vrsqrt.f32 %v6636_v37 }
 0x209   :  { %3306 = vst [vmem:[#allocation10 + $0x20] sm:$0xff] %v3018_v31  ;;  %3307 = vst [vmem:[#allocation10 + $0x28] sm:$0xff] %v3019_v5  ;;  %v2386_v44 = vmul.f32 %v3621_v46, %v9124_v36  ;;  %v2387_v57 = vmul.f32 %v3621_v46, %v9125_v26  ;;  %v6684_v53 = vpop.eup %3632  ;;  %v2705_v25 = vmul.f32 %v6614_v10, %v2384_v24  ;;  %v9126_v5 = vld [vmem:[#allocation227_spill] sm:$0xff]  ;;  %3648 = vrsqrt.f32 %v6638_v61 }
 0x20a   :  { %v2706_v28 = vmul.f32 %v6618_v34, %v2385_v54  ;;  %v3020_v0 = vadd.f32 %v6620_v9, %v2701_v17  ;;  %v3021_v3 = vadd.f32 %v6624_v63, %v2702_v20  ;;  %v6690_v49 = vpop.eup %3634  ;;  %v3022_v60 = vadd.f32 %v6626_v16, %v2703_v15  ;;  %v9128_v17 = vld [vmem:[#allocation256_spill] sm:$0xff] }
 0x20b   :  { %v3023_v31 = vadd.f32 %v6628_v6, %v2704_v19  ;;  %v2388_v39 = vmul.f32 %v3621_v46, %v9126_v5  ;;  %v2389_v36 = vmul.f32 %v3621_v46, %v9127_v30  ;;  %v6696_v26 = vpop.eup %3636  ;;  %v3024_v24 = vadd.f32 %v6630_v43, %v2705_v25 }
 0x20c   :  { %v3025_v54 = vadd.f32 %v6632_v55, %v2706_v28  ;;  %3308 = vst [vmem:[#allocation10 + $0x30] sm:$0xff] %v3020_v0  ;;  %3309 = vst [vmem:[#allocation10 + $0x38] sm:$0xff] %v3021_v3  ;;  %v2390_v20 = vmul.f32 %v3621_v46, %v9128_v17  ;;  %v2391_v45 = vmul.f32 %v3621_v46, %v9129_v48  ;;  %v6702_v21 = vpop.eup %3638  ;;  %3650 = vrsqrt.f32 %v6640_v29 }
 0x20d   :  { %3310 = vst [vmem:[#allocation10 + $0x40] sm:$0xff] %v3022_v60  ;;  %3311 = vst [vmem:[#allocation10 + $0x48] sm:$0xff] %v3023_v31  ;;  %v2707_v15 = vmul.f32 %v6596_v59, %v2386_v44  ;;  %v2708_v19 = vmul.f32 %v6600_v11, %v2387_v57  ;;  %v2709_v5 = vmul.f32 %v6604_v56, %v2388_v39  ;;  %v6708_v30 = vpop.eup %3640  ;;  %3652 = vrsqrt.f32 %v6648_v14 }
 0x20e   :  { %v2710_v25 = vmul.f32 %v6606_v38, %v2389_v36  ;;  %3312 = vst [vmem:[#allocation10 + $0x50] sm:$0xff] %v3024_v24  ;;  %3313 = vst [vmem:[#allocation10 + $0x58] sm:$0xff] %v3025_v54  ;;  %v2711_v28 = vmul.f32 %v6614_v10, %v2390_v20  ;;  %v2712_v48 = vmul.f32 %v6618_v34, %v2391_v45 }
 0x20f   :  { %v2392_v46 = vmul.f32 %v6654_v27, %v4861_v35  ;;  %v2393_v44 = vmul.f32 %v6654_v27, %v4865_v33  ;;  %v3026_v57 = vadd.f32 %v6620_v9, %v2707_v15  ;;  %v3027_v0 = vadd.f32 %v6624_v63, %v2708_v19  ;;  %v6720_v31 = vpop.eup %3642 }
 0x210   :  { %v3028_v3 = vadd.f32 %v6626_v16, %v2709_v5  ;;  %v3029_v60 = vadd.f32 %v6628_v6, %v2710_v25  ;;  %v3030_v39 = vadd.f32 %v6630_v43, %v2711_v28  ;;  %v3031_v45 = vadd.f32 %v6632_v55, %v2712_v48  ;;  %v9130_v28 = vld [vmem:[#allocation269_spill] sm:$0xff] }
 0x211   :  { %v2394_v35 = vmul.f32 %v6654_v27, %v4869_v47  ;;  %v2395_v33 = vmul.f32 %v6654_v27, %v4873_v62  ;;  %3314 = vst [vmem:[#allocation10 + $0x60] sm:$0xff] %v3026_v57  ;;  %3315 = vst [vmem:[#allocation10 + $0x68] sm:$0xff] %v3027_v0  ;;  %v2396_v36 = vmul.f32 %v6654_v27, %v4892_v42  ;;  %v9132_v57 = vld [vmem:[#allocation271_spill] sm:$0xff] }
 0x212   :  { %3316 = vst [vmem:[#allocation10 + $0x70] sm:$0xff] %v3028_v3  ;;  %3317 = vst [vmem:[#allocation10 + $0x78] sm:$0xff] %v3029_v60  ;;  %v2397_v24 = vmul.f32 %v6654_v27, %v4916_v13  ;;  %v2713_v54 = vmul.f32 %v6596_v59, %v2392_v46  ;;  %v2714_v17 = vmul.f32 %v6600_v11, %v2393_v44  ;;  %v9131_v46 = vld [vmem:[#allocation270_spill] sm:$0xff]  ;;  %v9133_v3 = vld [vmem:[#allocation23_spill] sm:$0xff] }
 0x213   :  { %3318 = vst [vmem:[#allocation10 + $0x80] sm:$0xff] %v3030_v39  ;;  %3319 = vst [vmem:[#allocation10 + $0x88] sm:$0xff] %v3031_v45  ;;  %v2715_v47 = vmul.f32 %v6604_v56, %v2394_v35  ;;  %v2716_v62 = vmul.f32 %v6606_v38, %v2395_v33  ;;  %v2398_v20 = vmul.f32 %v6660_v40, %v4898_v12 }
 0x214   :  { %v2399_v15 = vmul.f32 %v6660_v40, %v4902_v32  ;;  %v2717_v42 = vmul.f32 %v6614_v10, %v2396_v36  ;;  %v2718_v13 = vmul.f32 %v6618_v34, %v2397_v24  ;;  %v3032_v27 = vadd.f32 %v6620_v9, %v2713_v54  ;;  %v9134_v54 = vld [vmem:[#allocation15_spill] sm:$0xff] }
 0x215   :  { %v3033_v19 = vadd.f32 %v6624_v63, %v2714_v17  ;;  %v3034_v5 = vadd.f32 %v6626_v16, %v2715_v47  ;;  %v3035_v25 = vadd.f32 %v6628_v6, %v2716_v62  ;;  %v2400_v48 = vmul.f32 %v6660_v40, %v9130_v28 }
 0x216   :  { %v2401_v12 = vmul.f32 %v6660_v40, %v9131_v46  ;;  %v3036_v32 = vadd.f32 %v6630_v43, %v2717_v42  ;;  %v3037_v44 = vadd.f32 %v6632_v55, %v2718_v13  ;;  %3320 = vst [vmem:[#allocation10 + $0x90] sm:$0xff] %v3032_v27  ;;  %v2402_v0 = vmul.f32 %v6660_v40, %v9132_v57 }
 0x217   :  { %3321 = vst [vmem:[#allocation10 + $0x98] sm:$0xff] %v3033_v19  ;;  %v2403_v60 = vmul.f32 %v6660_v40, %v9133_v3  ;;  %3322 = vst [vmem:[#allocation10 + $0xa0] sm:$0xff] %v3034_v5  ;;  %v2719_v39 = vmul.f32 %v6596_v59, %v2398_v20  ;;  %v2720_v45 = vmul.f32 %v6600_v11, %v2399_v15  ;;  %v9135_v40 = vld [vmem:[#allocation16_spill] sm:$0xff]  ;;  %v9136_v19 = vld [vmem:[#allocation17_spill] sm:$0xff] }
 0x218   :  { %3323 = vst [vmem:[#allocation10 + $0xa8] sm:$0xff] %v3035_v25  ;;  %v2721_v35 = vmul.f32 %v6604_v56, %v2400_v48  ;;  %v2722_v33 = vmul.f32 %v6606_v38, %v2401_v12  ;;  %3324 = vst [vmem:[#allocation10 + $0xb0] sm:$0xff] %v3036_v32  ;;  %v2723_v36 = vmul.f32 %v6614_v10, %v2402_v0  ;;  %v9137_v25 = vld [vmem:[#allocation18_spill] sm:$0xff]  ;;  %v9138_v48 = vld [vmem:[#allocation19_spill] sm:$0xff] }
 0x219   :  { %3325 = vst [vmem:[#allocation10 + $0xb8] sm:$0xff] %v3037_v44  ;;  %v2724_v24 = vmul.f32 %v6618_v34, %v2403_v60  ;;  %v2404_v17 = vmul.f32 %v6666_v51, %v9134_v54  ;;  %v2405_v47 = vmul.f32 %v6666_v51, %v9135_v40  ;;  %v3038_v62 = vadd.f32 %v6620_v9, %v2719_v39  ;;  %v9139_v12 = vld [vmem:[#allocation20_spill] sm:$0xff]  ;;  %v9140_v60 = vld [vmem:[#allocation27_spill] sm:$0xff]  ;;  %v9142_v40 = vld [vmem:[#allocation30_spill] sm:$0xff] }
 0x21a   :  { %v3039_v20 = vadd.f32 %v6624_v63, %v2720_v45  ;;  %v3040_v15 = vadd.f32 %v6626_v16, %v2721_v35  ;;  %v3041_v42 = vadd.f32 %v6628_v6, %v2722_v33  ;;  %v3042_v13 = vadd.f32 %v6630_v43, %v2723_v36  ;;  %v9141_v45 = vld [vmem:[#allocation28_spill] sm:$0xff] }
 0x21b   :  { %v3043_v27 = vadd.f32 %v6632_v55, %v2724_v24  ;;  %v2406_v5 = vmul.f32 %v6666_v51, %v9136_v19  ;;  %v2407_v28 = vmul.f32 %v6666_v51, %v9137_v25  ;;  %3326 = vst [vmem:[#allocation10 + $0xc0] sm:$0xff] %v3038_v62  ;;  %v2408_v46 = vmul.f32 %v6666_v51, %v9138_v48  ;;  %v9143_v62 = vld [vmem:[#allocation31_spill] sm:$0xff]  ;;  %v6804_v25 = vpop.xlane.xlu1 %2032 }
 0x21c   :  { %3327 = vst [vmem:[#allocation10 + $0xc8] sm:$0xff] %v3039_v20  ;;  %3328 = vst [vmem:[#allocation10 + $0xd0] sm:$0xff] %v3040_v15  ;;  %v2409_v32 = vmul.f32 %v6666_v51, %v9139_v12  ;;  %v2725_v44 = vmul.f32 %v6596_v59, %v2404_v17  ;;  %v2726_v57 = vmul.f32 %v6600_v11, %v2405_v47  ;;  %v9145_v19 = vld [vmem:[#allocation35_spill] sm:$0xff] }
 0x21d   :  { %3329 = vst [vmem:[#allocation10 + $0xd8] sm:$0xff] %v3041_v42  ;;  %3330 = vst [vmem:[#allocation10 + $0xe0] sm:$0xff] %v3042_v13  ;;  %v2727_v0 = vmul.f32 %v6604_v56, %v2406_v5  ;;  %v2728_v3 = vmul.f32 %v6606_v38, %v2407_v28  ;;  %v2410_v39 = vmul.f32 %v6672_v22, %v9140_v60  ;;  %v9144_v13 = vld [vmem:[#allocation32_spill] sm:$0xff] }
 0x21e   :  { %3331 = vst [vmem:[#allocation10 + $0xe8] sm:$0xff] %v3043_v27  ;;  %v2411_v35 = vmul.f32 %v6672_v22, %v9141_v45  ;;  %v2729_v33 = vmul.f32 %v6614_v10, %v2408_v46  ;;  %v2730_v51 = vmul.f32 %v6618_v34, %v2409_v32  ;;  %v3044_v36 = vadd.f32 %v6620_v9, %v2725_v44  ;;  %v6810_v32 = vpop.xlane.xlu0 %2039 }
 0x21f   :  { %v3045_v24 = vadd.f32 %v6624_v63, %v2726_v57  ;;  %v3046_v54 = vadd.f32 %v6626_v16, %v2727_v0  ;;  %v3047_v17 = vadd.f32 %v6628_v6, %v2728_v3  ;;  %v2412_v47 = vmul.f32 %v6672_v22, %v9142_v40  ;;  %v9146_v57 = vld [vmem:[#allocation21_spill] sm:$0xff]  ;;  %v9147_v3 = vld [vmem:[#allocation22_spill] sm:$0xff] }
 0x220   :  { %v2413_v20 = vmul.f32 %v6672_v22, %v9143_v62  ;;  %v3048_v15 = vadd.f32 %v6630_v43, %v2729_v33  ;;  %v3049_v42 = vadd.f32 %v6632_v55, %v2730_v51  ;;  %3332 = vst [vmem:[#allocation10 + $0xf0] sm:$0xff] %v3044_v36  ;;  %v2414_v27 = vmul.f32 %v6672_v22, %v9144_v13 }
 0x221   :  { %3333 = vst [vmem:[#allocation10 + $0xf8] sm:$0xff] %v3045_v24  ;;  %v2415_v5 = vmul.f32 %v6672_v22, %v9145_v19  ;;  %3334 = vst [vmem:[#allocation10 + $0x100] sm:$0xff] %v3046_v54  ;;  %v2731_v28 = vmul.f32 %v6596_v59, %v2410_v39  ;;  %v2732_v48 = vmul.f32 %v6600_v11, %v2411_v35  ;;  %v9148_v24 = vld [vmem:[#allocation24_spill] sm:$0xff] }
 0x222   :  { %3335 = vst [vmem:[#allocation10 + $0x108] sm:$0xff] %v3047_v17  ;;  %v2733_v46 = vmul.f32 %v6604_v56, %v2412_v47  ;;  %v2734_v12 = vmul.f32 %v6606_v38, %v2413_v20  ;;  %3336 = vst [vmem:[#allocation10 + $0x110] sm:$0xff] %v3048_v15  ;;  %v2735_v44 = vmul.f32 %v6614_v10, %v2414_v27  ;;  %v9149_v17 = vld [vmem:[#allocation25_spill] sm:$0xff]  ;;  %v9150_v47 = vld [vmem:[#allocation26_spill] sm:$0xff] }
 0x223   :  { %3337 = vst [vmem:[#allocation10 + $0x118] sm:$0xff] %v3049_v42  ;;  %v2736_v22 = vmul.f32 %v6618_v34, %v2415_v5  ;;  %v2416_v0 = vmul.f32 %v6678_v1, %v9146_v57  ;;  %v2417_v60 = vmul.f32 %v6678_v1, %v9147_v3  ;;  %v3050_v39 = vadd.f32 %v6620_v9, %v2731_v28  ;;  %v9151_v20 = vld [vmem:[#allocation29_spill] sm:$0xff]  ;;  %v9152_v5 = vld [vmem:[#allocation39_spill] sm:$0xff] }
 0x224   :  { %v3051_v45 = vadd.f32 %v6624_v63, %v2732_v48  ;;  %v3052_v35 = vadd.f32 %v6626_v16, %v2733_v46  ;;  %v3053_v33 = vadd.f32 %v6628_v6, %v2734_v12  ;;  %v3054_v51 = vadd.f32 %v6630_v43, %v2735_v44  ;;  %v9153_v48 = vld [vmem:[#allocation40_spill] sm:$0xff]  ;;  %v6840_v12 = vpop.xlane.xlu1 %2046 }
 0x225   :  { %v3055_v36 = vadd.f32 %v6632_v55, %v2736_v22  ;;  %v2418_v54 = vmul.f32 %v6678_v1, %v9148_v24  ;;  %v2419_v40 = vmul.f32 %v6678_v1, %v9149_v17  ;;  %3338 = vst [vmem:[#allocation10 + $0x120] sm:$0xff] %v3050_v39  ;;  %v2420_v62 = vmul.f32 %v6678_v1, %v9150_v47  ;;  %v9154_v39 = vld [vmem:[#allocation42_spill] sm:$0xff]  ;;  %v9156_v24 = vld [vmem:[#allocation44_spill] sm:$0xff]  ;;  %v9157_v17 = vld [vmem:[#allocation47_spill] sm:$0xff] }
 0x226   :  { %3339 = vst [vmem:[#allocation10 + $0x128] sm:$0xff] %v3051_v45  ;;  %3340 = vst [vmem:[#allocation10 + $0x130] sm:$0xff] %v3052_v35  ;;  %v2421_v15 = vmul.f32 %v6678_v1, %v9151_v20  ;;  %v2737_v42 = vmul.f32 %v6596_v59, %v2416_v0  ;;  %v2738_v13 = vmul.f32 %v6600_v11, %v2417_v60  ;;  %v6846_v0 = vpop.xlane.xlu0 %2053  ;;  %v9155_v35 = vld [vmem:[#allocation43_spill] sm:$0xff] }
 0x227   :  { %3341 = vst [vmem:[#allocation10 + $0x138] sm:$0xff] %v3053_v33  ;;  %3342 = vst [vmem:[#allocation10 + $0x140] sm:$0xff] %v3054_v51  ;;  %v2739_v27 = vmul.f32 %v6604_v56, %v2418_v54  ;;  %v2740_v19 = vmul.f32 %v6606_v38, %v2419_v40  ;;  %v2422_v28 = vmul.f32 %v6684_v53, %v9152_v5  ;;  %v2252_v37 = vmul.f32 0.0013020834, %v6846_v0 }
 0x228   :  { %3343 = vst [vmem:[#allocation10 + $0x148] sm:$0xff] %v3055_v36  ;;  %v2423_v46 = vmul.f32 %v6684_v53, %v9153_v48  ;;  %v2741_v1 = vmul.f32 %v6614_v10, %v2420_v62  ;;  %v2742_v44 = vmul.f32 %v6618_v34, %v2421_v15  ;;  %v3056_v22 = vadd.f32 %v6620_v9, %v2737_v42 }
 0x229   :  { %v3057_v57 = vadd.f32 %v6624_v63, %v2738_v13  ;;  %v3058_v3 = vadd.f32 %v6626_v16, %v2739_v27  ;;  %v3059_v60 = vadd.f32 %v6628_v6, %v2740_v19  ;;  %v2424_v45 = vmul.f32 %v6684_v53, %v9154_v39  ;;  %v9158_v27 = vld [vmem:[#allocation33_spill] sm:$0xff] }
 0x22a   :  { %v2425_v33 = vmul.f32 %v6684_v53, %v9155_v35  ;;  %v3060_v51 = vadd.f32 %v6630_v43, %v2741_v1  ;;  %v3061_v36 = vadd.f32 %v6632_v55, %v2742_v44  ;;  %3344 = vst [vmem:[#allocation10 + $0x150] sm:$0xff] %v3056_v22  ;;  %v2426_v54 = vmul.f32 %v6684_v53, %v9156_v24  ;;  %v6874_v44 = vpop.xlane.xlu1 %2060  ;;  %v9161_v39 = vld [vmem:[#allocation37_spill] sm:$0xff]  ;;  %v6882_v35 = vpop.xlane.xlu0 %2067 }
 0x22b   :  { %3345 = vst [vmem:[#allocation10 + $0x158] sm:$0xff] %v3057_v57  ;;  %v2427_v40 = vmul.f32 %v6684_v53, %v9157_v17  ;;  %3346 = vst [vmem:[#allocation10 + $0x160] sm:$0xff] %v3058_v3  ;;  %v2743_v47 = vmul.f32 %v6596_v59, %v2422_v28  ;;  %v2744_v62 = vmul.f32 %v6600_v11, %v2423_v46  ;;  %v9159_v53 = vld [vmem:[#allocation34_spill] sm:$0xff]  ;;  %v9160_v3 = vld [vmem:[#allocation36_spill] sm:$0xff]  ;;  %v2254_v61 = vmul.f32 0.0013020834, %v6882_v35 }
 0x22c   :  { %3347 = vst [vmem:[#allocation10 + $0x168] sm:$0xff] %v3059_v60  ;;  %v2745_v20 = vmul.f32 %v6604_v56, %v2424_v45  ;;  %v2746_v15 = vmul.f32 %v6606_v38, %v2425_v33  ;;  %3348 = vst [vmem:[#allocation10 + $0x170] sm:$0xff] %v3060_v51  ;;  %v2747_v42 = vmul.f32 %v6614_v10, %v2426_v54  ;;  %v9162_v33 = vld [vmem:[#allocation38_spill] sm:$0xff] }
 0x22d   :  { %3349 = vst [vmem:[#allocation10 + $0x178] sm:$0xff] %v3061_v36  ;;  %v2748_v13 = vmul.f32 %v6618_v34, %v2427_v40  ;;  %v2428_v19 = vmul.f32 %v6690_v49, %v9158_v27  ;;  %v2429_v5 = vmul.f32 %v6690_v49, %v9159_v53  ;;  %v3062_v28 = vadd.f32 %v6620_v9, %v2743_v47  ;;  %v9163_v36 = vld [vmem:[#allocation41_spill] sm:$0xff] }
 0x22e   :  { %v3063_v48 = vadd.f32 %v6624_v63, %v2744_v62  ;;  %v3064_v46 = vadd.f32 %v6626_v16, %v2745_v20  ;;  %v3065_v1 = vadd.f32 %v6628_v6, %v2746_v15  ;;  %v3066_v22 = vadd.f32 %v6630_v43, %v2747_v42  ;;  %v9164_v62 = vld [vmem:[#allocation51_spill] sm:$0xff]  ;;  %v9165_v15 = vld [vmem:[#allocation52_spill] sm:$0xff] }
 0x22f   :  { %v3067_v57 = vadd.f32 %v6632_v55, %v2748_v13  ;;  %v2430_v60 = vmul.f32 %v6690_v49, %v9160_v3  ;;  %v2431_v45 = vmul.f32 %v6690_v49, %v9161_v39  ;;  %3350 = vst [vmem:[#allocation10 + $0x180] sm:$0xff] %v3062_v28  ;;  %v2432_v51 = vmul.f32 %v6690_v49, %v9162_v33  ;;  %v9166_v28 = vld [vmem:[#allocation54_spill] sm:$0xff]  ;;  %v9168_v3 = vld [vmem:[#allocation56_spill] sm:$0xff]  ;;  %v9169_v39 = vld [vmem:[#allocation59_spill] sm:$0xff]  ;;  %v6912_v33 = vpop.xlane.xlu1 %2074 }
 0x230   :  { %3351 = vst [vmem:[#allocation10 + $0x188] sm:$0xff] %v3063_v48  ;;  %3352 = vst [vmem:[#allocation10 + $0x190] sm:$0xff] %v3064_v46  ;;  %v2433_v24 = vmul.f32 %v6690_v49, %v9163_v36  ;;  %v2749_v54 = vmul.f32 %v6596_v59, %v2428_v19  ;;  %v2750_v17 = vmul.f32 %v6600_v11, %v2429_v5  ;;  %v9167_v46 = vld [vmem:[#allocation55_spill] sm:$0xff] }
 0x231   :  { %3353 = vst [vmem:[#allocation10 + $0x198] sm:$0xff] %v3065_v1  ;;  %3354 = vst [vmem:[#allocation10 + $0x1a0] sm:$0xff] %v3066_v22  ;;  %v2751_v40 = vmul.f32 %v6604_v56, %v2430_v60  ;;  %v2752_v47 = vmul.f32 %v6606_v38, %v2431_v45  ;;  %v2434_v20 = vmul.f32 %v6696_v26, %v9164_v62 }
 0x232   :  { %3355 = vst [vmem:[#allocation10 + $0x1a8] sm:$0xff] %v3067_v57  ;;  %v2435_v42 = vmul.f32 %v6696_v26, %v9165_v15  ;;  %v2753_v13 = vmul.f32 %v6614_v10, %v2432_v51  ;;  %v2754_v49 = vmul.f32 %v6618_v34, %v2433_v24  ;;  %v3068_v27 = vadd.f32 %v6620_v9, %v2749_v54  ;;  %v9171_v15 = vld [vmem:[#allocation46_spill] sm:$0xff] }
 0x233   :  { %v3069_v19 = vadd.f32 %v6624_v63, %v2750_v17  ;;  %v3070_v53 = vadd.f32 %v6626_v16, %v2751_v40  ;;  %v3071_v5 = vadd.f32 %v6628_v6, %v2752_v47  ;;  %v2436_v48 = vmul.f32 %v6696_v26, %v9166_v28  ;;  %v6918_v17 = vpop.xlane.xlu0 %2081  ;;  %v9170_v47 = vld [vmem:[#allocation45_spill] sm:$0xff] }
 0x234   :  { %v2437_v1 = vmul.f32 %v6696_v26, %v9167_v46  ;;  %v3072_v22 = vadd.f32 %v6630_v43, %v2753_v13  ;;  %v3073_v57 = vadd.f32 %v6632_v55, %v2754_v49  ;;  %3356 = vst [vmem:[#allocation10 + $0x1b0] sm:$0xff] %v3068_v27  ;;  %v2438_v60 = vmul.f32 %v6696_v26, %v9168_v3 }
 0x235   :  { %3357 = vst [vmem:[#allocation10 + $0x1b8] sm:$0xff] %v3069_v19  ;;  %v2439_v45 = vmul.f32 %v6696_v26, %v9169_v39  ;;  %3358 = vst [vmem:[#allocation10 + $0x1c0] sm:$0xff] %v3070_v53  ;;  %v2755_v51 = vmul.f32 %v6596_v59, %v2434_v20  ;;  %v2756_v36 = vmul.f32 %v6600_v11, %v2435_v42  ;;  %v2256_v0 = vmul.f32 0.0013020834, %v6918_v17 }
 0x236   :  { %3359 = vst [vmem:[#allocation10 + $0x1c8] sm:$0xff] %v3071_v5  ;;  %v2757_v24 = vmul.f32 %v6604_v56, %v2436_v48  ;;  %v2758_v54 = vmul.f32 %v6606_v38, %v2437_v1  ;;  %3360 = vst [vmem:[#allocation10 + $0x1d0] sm:$0xff] %v3072_v22  ;;  %v2759_v40 = vmul.f32 %v6614_v10, %v2438_v60  ;;  %v9172_v5 = vld [vmem:[#allocation48_spill] sm:$0xff]  ;;  %v9173_v48 = vld [vmem:[#allocation49_spill] sm:$0xff] }
 0x237   :  { %3361 = vst [vmem:[#allocation10 + $0x1d8] sm:$0xff] %v3073_v57  ;;  %v2760_v26 = vmul.f32 %v6618_v34, %v2439_v45  ;;  %v2440_v62 = vmul.f32 %v6702_v21, %v9170_v47  ;;  %v2441_v20 = vmul.f32 %v6702_v21, %v9171_v15  ;;  %v3074_v42 = vadd.f32 %v6620_v9, %v2755_v51  ;;  %v9174_v1 = vld [vmem:[#allocation50_spill] sm:$0xff]  ;;  %v9175_v57 = vld [vmem:[#allocation53_spill] sm:$0xff] }
 0x238   :  { %v3075_v13 = vadd.f32 %v6624_v63, %v2756_v36  ;;  %v3076_v49 = vadd.f32 %v6626_v16, %v2757_v24  ;;  %v3077_v27 = vadd.f32 %v6628_v6, %v2758_v54  ;;  %v3078_v19 = vadd.f32 %v6630_v43, %v2759_v40  ;;  %v9176_v36 = vld [vmem:[#allocation63_spill] sm:$0xff]  ;;  %v9177_v54 = vld [vmem:[#allocation64_spill] sm:$0xff] }
 0x239   :  { %v3079_v53 = vadd.f32 %v6632_v55, %v2760_v26  ;;  %v2442_v28 = vmul.f32 %v6702_v21, %v9172_v5  ;;  %v2443_v46 = vmul.f32 %v6702_v21, %v9173_v48  ;;  %3362 = vst [vmem:[#allocation10 + $0x1e0] sm:$0xff] %v3074_v42  ;;  %v2444_v22 = vmul.f32 %v6702_v21, %v9174_v1  ;;  %v6948_v26 = vpop.xlane.xlu1 %2088  ;;  %v9180_v48 = vld [vmem:[#allocation68_spill] sm:$0xff]  ;;  %v9181_v1 = vld [vmem:[#allocation71_spill] sm:$0xff] }
 0x23a   :  { %3363 = vst [vmem:[#allocation10 + $0x1e8] sm:$0xff] %v3075_v13  ;;  %3364 = vst [vmem:[#allocation10 + $0x1f0] sm:$0xff] %v3076_v49  ;;  %v2445_v3 = vmul.f32 %v6702_v21, %v9175_v57  ;;  %v2761_v60 = vmul.f32 %v6596_v59, %v2440_v62  ;;  %v2762_v39 = vmul.f32 %v6600_v11, %v2441_v20  ;;  %v6954_v20 = vpop.xlane.xlu0 %2095  ;;  %v9178_v49 = vld [vmem:[#allocation66_spill] sm:$0xff] }
 0x23b   :  { %3365 = vst [vmem:[#allocation10 + $0x1f8] sm:$0xff] %v3077_v27  ;;  %3366 = vst [vmem:[#allocation10 + $0x200] sm:$0xff] %v3078_v19  ;;  %v2763_v45 = vmul.f32 %v6604_v56, %v2442_v28  ;;  %v2764_v51 = vmul.f32 %v6606_v38, %v2443_v46  ;;  %v2446_v24 = vmul.f32 %v6708_v30, %v9176_v36  ;;  %v9179_v19 = vld [vmem:[#allocation67_spill] sm:$0xff]  ;;  %v9182_v36 = vld [vmem:[#allocation57_spill] sm:$0xff] }
 0x23c   :  { %3367 = vst [vmem:[#allocation10 + $0x208] sm:$0xff] %v3079_v53  ;;  %v2447_v40 = vmul.f32 %v6708_v30, %v9177_v54  ;;  %v2765_v21 = vmul.f32 %v6614_v10, %v2444_v22  ;;  %v2766_v47 = vmul.f32 %v6618_v34, %v2445_v3  ;;  %v3080_v62 = vadd.f32 %v6620_v9, %v2761_v60 }
 0x23d   :  { %v3081_v15 = vadd.f32 %v6624_v63, %v2762_v39  ;;  %v3082_v42 = vadd.f32 %v6626_v16, %v2763_v45  ;;  %v3083_v13 = vadd.f32 %v6628_v6, %v2764_v51  ;;  %v2448_v27 = vmul.f32 %v6708_v30, %v9178_v49  ;;  %v9184_v49 = vld [vmem:[#allocation60_spill] sm:$0xff] }
 0x23e   :  { %v2449_v53 = vmul.f32 %v6708_v30, %v9179_v19  ;;  %v3084_v5 = vadd.f32 %v6630_v43, %v2765_v21  ;;  %v3085_v28 = vadd.f32 %v6632_v55, %v2766_v47  ;;  %3368 = vst [vmem:[#allocation10 + $0x210] sm:$0xff] %v3080_v62  ;;  %v2450_v46 = vmul.f32 %v6708_v30, %v9180_v48  ;;  %v9185_v19 = vld [vmem:[#allocation61_spill] sm:$0xff] }
 0x23f   :  { %3369 = vst [vmem:[#allocation10 + $0x218] sm:$0xff] %v3081_v15  ;;  %v2451_v22 = vmul.f32 %v6708_v30, %v9181_v1  ;;  %3370 = vst [vmem:[#allocation10 + $0x220] sm:$0xff] %v3082_v42  ;;  %v2767_v57 = vmul.f32 %v6596_v59, %v2446_v24  ;;  %v2768_v3 = vmul.f32 %v6600_v11, %v2447_v40  ;;  %v9183_v30 = vld [vmem:[#allocation58_spill] sm:$0xff]  ;;  %v2103_v15 = vpop.xlane.xlu1 %2102 }
 0x240   :  { %3371 = vst [vmem:[#allocation10 + $0x228] sm:$0xff] %v3083_v13  ;;  %v2769_v60 = vmul.f32 %v6604_v56, %v2448_v27  ;;  %v2770_v39 = vmul.f32 %v6606_v38, %v2449_v53  ;;  %3372 = vst [vmem:[#allocation10 + $0x230] sm:$0xff] %v3084_v5  ;;  %v2771_v45 = vmul.f32 %v6614_v10, %v2450_v46  ;;  %v2110_v5 = vpop.xlane.xlu0 %2109  ;;  %v9187_v46 = vld [vmem:[#allocation65_spill] sm:$0xff]  ;;  %v2259_v14 = vmul.f32 0.0013020834, %v2103_v15 }
 0x241   :  { %3373 = vst [vmem:[#allocation10 + $0x238] sm:$0xff] %v3085_v28  ;;  %v2772_v51 = vmul.f32 %v6618_v34, %v2451_v22  ;;  %v2452_v54 = vmul.f32 %v6720_v31, %v9182_v36  ;;  %v2453_v21 = vmul.f32 %v6720_v31, %v9183_v30  ;;  %v3086_v24 = vadd.f32 %v6620_v9, %v2767_v57  ;;  %v9186_v28 = vld [vmem:[#allocation62_spill] sm:$0xff] }
 0x242   :  { %v3087_v40 = vadd.f32 %v6624_v63, %v2768_v3  ;;  %v3088_v47 = vadd.f32 %v6626_v16, %v2769_v60  ;;  %v3089_v62 = vadd.f32 %v6628_v6, %v2770_v39  ;;  %v3090_v42 = vadd.f32 %v6630_v43, %v2771_v45 }
 0x243   :  { %v3091_v13 = vadd.f32 %v6632_v55, %v2772_v51  ;;  %v2454_v27 = vmul.f32 %v6720_v31, %v9184_v49  ;;  %v2455_v53 = vmul.f32 %v6720_v31, %v9185_v19  ;;  %3374 = vst [vmem:[#allocation10 + $0x240] sm:$0xff] %v3086_v24  ;;  %v2456_v48 = vmul.f32 %v6720_v31, %v9186_v28 }
 0x244   :  { %3375 = vst [vmem:[#allocation10 + $0x248] sm:$0xff] %v3087_v40  ;;  %3376 = vst [vmem:[#allocation10 + $0x250] sm:$0xff] %v3088_v47  ;;  %v2457_v1 = vmul.f32 %v6720_v31, %v9187_v46  ;;  %v2773_v22 = vmul.f32 %v6596_v59, %v2452_v54  ;;  %v2774_v57 = vmul.f32 %v6600_v11, %v2453_v21  ;;  %v2249_v39 = vmul.f32 0.0013020834, %v6804_v25  ;;  %v2117_v40 = vpop.xlane.xlu1 %2116 }
 0x245   :  { %3377 = vst [vmem:[#allocation10 + $0x258] sm:$0xff] %v3089_v62  ;;  %3378 = vst [vmem:[#allocation10 + $0x260] sm:$0xff] %v3090_v42  ;;  %v2775_v3 = vmul.f32 %v6604_v56, %v2454_v27  ;;  %v2776_v60 = vmul.f32 %v6606_v38, %v2455_v53  ;;  %v2777_v45 = vmul.f32 %v6614_v10, %v2456_v48  ;;  %v2250_v25 = vmul.f32 0.0013020834, %v6810_v32  ;;  %v2124_v42 = vpop.xlane.xlu0 %2123 }
 0x246   :  { %3379 = vst [vmem:[#allocation10 + $0x268] sm:$0xff] %v3091_v13  ;;  %v2778_v51 = vmul.f32 %v6618_v34, %v2457_v1  ;;  %v3092_v31 = vadd.f32 %v6620_v9, %v2773_v22  ;;  %v3093_v36 = vadd.f32 %v6624_v63, %v2774_v57  ;;  %v2297_v21 = vadd.f32 1e-12, %v2249_v39  ;;  %v9188_v39 = vld [vmem:[#allocation75_spill] sm:$0xff] }
 0x247   :  { %v3094_v54 = vadd.f32 %v6626_v16, %v2775_v3  ;;  %v3095_v30 = vadd.f32 %v6628_v6, %v2776_v60  ;;  %v3096_v24 = vadd.f32 %v6630_v43, %v2777_v45  ;;  %v2251_v47 = vmul.f32 0.0013020834, %v6840_v12 }
 0x248   :  { %v3097_v7 = vadd.f32 %v6632_v55, %v2778_v51  ;;  %3380 = vst [vmem:[#allocation10 + $0x270] sm:$0xff] %v3092_v31  ;;  %3381 = vst [vmem:[#allocation10 + $0x278] sm:$0xff] %v3093_v36  ;;  %v2253_v62 = vmul.f32 0.0013020834, %v6874_v44  ;;  %v2298_v13 = vadd.f32 1e-12, %v2250_v25  ;;  %3654 = vrsqrt.f32 %v2297_v21 }
 0x249   :  { %3382 = vst [vmem:[#allocation10 + $0x280] sm:$0xff] %v3094_v54  ;;  %3383 = vst [vmem:[#allocation10 + $0x288] sm:$0xff] %v3095_v30  ;;  %v2255_v32 = vmul.f32 0.0013020834, %v6912_v33  ;;  %v2299_v49 = vadd.f32 1e-12, %v2251_v47  ;;  %v2131_v33 = vpop.xlane.xlu1 %2130  ;;  %v2138_v46 = vpop.xlane.xlu0 %2137 }
 0x24a   :  { %3384 = vst [vmem:[#allocation10 + $0x290] sm:$0xff] %v3096_v24  ;;  %3385 = vst [vmem:[#allocation10 + $0x298] sm:$0xff] %v3097_v7  ;;  %v2300_v27 = vadd.f32 1e-12, %v2252_v37  ;;  %v2301_v29 = vadd.f32 1e-12, %v2253_v62  ;;  %3656 = vrsqrt.f32 %v2298_v13 }
 0x24b   :  { %v2302_v12 = vadd.f32 1e-12, %v2254_v61  ;;  %v2303_v19 = vadd.f32 1e-12, %v2255_v32  ;;  %3658 = vrsqrt.f32 %v2299_v49  ;;  %v2257_v44 = vmul.f32 0.0013020834, %v6948_v26 }
 0x24c   :  { %v2258_v53 = vmul.f32 0.0013020834, %v6954_v20  ;;  %3660 = vrsqrt.f32 %v2300_v27  ;;  %v2304_v28 = vadd.f32 1e-12, %v2256_v0  ;;  %v2260_v35 = vmul.f32 0.0013020834, %v2110_v5  ;;  %v3645_v20 = vpop.eup %3644 }
 0x24d   :  { %v2261_v48 = vmul.f32 0.0013020834, %v2117_v40  ;;  %3662 = vrsqrt.f32 %v2301_v29  ;;  %v2305_v1 = vadd.f32 1e-12, %v2257_v44  ;;  %v2262_v57 = vmul.f32 0.0013020834, %v2124_v42  ;;  %v3647_v24 = vpop.eup %3646 }
 0x24e   :  { %3664 = vrsqrt.f32 %v2302_v12  ;;  %v7019_v22 = vadd.f32 1e-12, %v2258_v53  ;;  %v7021_v17 = vadd.f32 1e-12, %v2259_v14  ;;  %v7023_v3 = vadd.f32 1e-12, %v2260_v35  ;;  %v3649_v62 = vpop.eup %3648 }
 0x24f   :  { %3666 = vrsqrt.f32 %v2303_v19  ;;  %v2263_v26 = vmul.f32 0.0013020834, %v2131_v33  ;;  %v7025_v15 = vadd.f32 1e-12, %v2261_v48  ;;  %v7027_v5 = vadd.f32 1e-12, %v2262_v57  ;;  %v7043_v49 = vpop.eup %3650 }
 0x250   :  { %3668 = vrsqrt.f32 %v2304_v28  ;;  %v7029_v60 = vmul.f32 0.0013020834, %v2138_v46  ;;  %v2458_v45 = vmul.f32 %v3645_v20, %v9188_v39  ;;  %v9189_v51 = vld [vmem:[#allocation76_spill] sm:$0xff]  ;;  %v9190_v36 = vld [vmem:[#allocation78_spill] sm:$0xff]  ;;  %v9191_v30 = vld [vmem:[#allocation79_spill] sm:$0xff]  ;;  %v7049_v53 = vpop.eup %3652 }
 0x251   :  { %v2459_v31 = vmul.f32 %v3645_v20, %v9189_v51  ;;  %v2460_v54 = vmul.f32 %v3645_v20, %v9190_v36  ;;  %v2461_v21 = vmul.f32 %v3645_v20, %v9191_v30  ;;  %v9192_v7 = vld [vmem:[#allocation80_spill] sm:$0xff]  ;;  %v9193_v40 = vld [vmem:[#allocation83_spill] sm:$0xff]  ;;  %3670 = vrsqrt.f32 %v2305_v1  ;;  %v9194_v12 = vld [vmem:[#allocation69_spill] sm:$0xff] }
 0x252   :  { %v2462_v25 = vmul.f32 %v3645_v20, %v9192_v7  ;;  %v2463_v47 = vmul.f32 %v3645_v20, %v9193_v40  ;;  %v7037_v37 = vadd.f32 1e-12, %v2263_v26  ;;  %v2779_v42 = vmul.f32 %v6596_v59, %v2458_v45  ;;  %v9195_v0 = vld [vmem:[#allocation70_spill] sm:$0xff]  ;;  %v9196_v57 = vld [vmem:[#allocation72_spill] sm:$0xff]  ;;  %v9197_v20 = vld [vmem:[#allocation73_spill] sm:$0xff] }
 0x253   :  { %v2780_v13 = vmul.f32 %v6600_v11, %v2459_v31  ;;  %v2781_v61 = vmul.f32 %v6604_v56, %v2460_v54  ;;  %v2782_v32 = vmul.f32 %v6606_v38, %v2461_v21  ;;  %v2464_v19 = vmul.f32 %v3647_v24, %v9194_v12  ;;  %v9198_v51 = vld [vmem:[#allocation74_spill] sm:$0xff]  ;;  %v9199_v36 = vld [vmem:[#allocation77_spill] sm:$0xff] }
 0x254   :  { %v2783_v27 = vmul.f32 %v6614_v10, %v2462_v25  ;;  %v2784_v29 = vmul.f32 %v6618_v34, %v2463_v47  ;;  %v2465_v44 = vmul.f32 %v3647_v24, %v9195_v0  ;;  %v3098_v14 = vadd.f32 %v6620_v9, %v2779_v42  ;;  %v9200_v47 = vld [vmem:[#allocation87_spill] sm:$0xff] }
 0x255   :  { %v3099_v28 = vadd.f32 %v6624_v63, %v2780_v13  ;;  %v3100_v35 = vadd.f32 %v6626_v16, %v2781_v61  ;;  %v3101_v48 = vadd.f32 %v6628_v6, %v2782_v32  ;;  %v7055_v33 = vpop.eup %3654  ;;  %v2466_v26 = vmul.f32 %v3647_v24, %v9196_v57  ;;  %v9201_v13 = vld [vmem:[#allocation88_spill] sm:$0xff] }
 0x256   :  { %v3102_v46 = vadd.f32 %v6630_v43, %v2783_v27  ;;  %v3103_v1 = vadd.f32 %v6632_v55, %v2784_v29  ;;  %v2467_v39 = vmul.f32 %v3647_v24, %v9197_v20  ;;  %3386 = vst [vmem:[#allocation10 + $0x2a0] sm:$0xff] %v3098_v14  ;;  %v2468_v31 = vmul.f32 %v3647_v24, %v9198_v51  ;;  %v9202_v14 = vld [vmem:[#allocation90_spill] sm:$0xff] }
 0x257   :  { %v7061_v45 = vpop.eup %3656  ;;  %3387 = vst [vmem:[#allocation10 + $0x2a8] sm:$0xff] %v3099_v28  ;;  %3388 = vst [vmem:[#allocation10 + $0x2b0] sm:$0xff] %v3100_v35  ;;  %v2469_v54 = vmul.f32 %v3647_v24, %v9199_v36  ;;  %v2785_v30 = vmul.f32 %v6596_v59, %v2464_v19  ;;  %v2786_v21 = vmul.f32 %v6600_v11, %v2465_v44  ;;  %v9203_v35 = vld [vmem:[#allocation91_spill] sm:$0xff]  ;;  %3672 = vrsqrt.f32 %v7019_v22 }
 0x258   :  { %3389 = vst [vmem:[#allocation10 + $0x2b8] sm:$0xff] %v3101_v48  ;;  %v7067_v7 = vpop.eup %3658  ;;  %3390 = vst [vmem:[#allocation10 + $0x2c0] sm:$0xff] %v3102_v46  ;;  %v2787_v25 = vmul.f32 %v6604_v56, %v2466_v26  ;;  %v2788_v40 = vmul.f32 %v6606_v38, %v2467_v39  ;;  %v2470_v42 = vmul.f32 %v3649_v62, %v9200_v47  ;;  %v9204_v26 = vld [vmem:[#allocation92_spill] sm:$0xff]  ;;  %v9205_v39 = vld [vmem:[#allocation95_spill] sm:$0xff]  ;;  %3674 = vrsqrt.f32 %v7021_v17 }
 0x259   :  { %3391 = vst [vmem:[#allocation10 + $0x2c8] sm:$0xff] %v3103_v1  ;;  %v2471_v61 = vmul.f32 %v3649_v62, %v9201_v13  ;;  %v7073_v32 = vpop.eup %3660  ;;  %v2789_v24 = vmul.f32 %v6614_v10, %v2468_v31  ;;  %v2790_v27 = vmul.f32 %v6618_v34, %v2469_v54  ;;  %v3104_v29 = vadd.f32 %v6620_v9, %v2785_v30  ;;  %v9206_v47 = vld [vmem:[#allocation81_spill] sm:$0xff] }
 0x25a   :  { %v3105_v12 = vadd.f32 %v6624_v63, %v2786_v21  ;;  %v7079_v19 = vpop.eup %3662  ;;  %v3106_v0 = vadd.f32 %v6626_v16, %v2787_v25  ;;  %v3107_v44 = vadd.f32 %v6628_v6, %v2788_v40  ;;  %v2472_v28 = vmul.f32 %v3649_v62, %v9202_v14 }
 0x25b   :  { %v2473_v48 = vmul.f32 %v3649_v62, %v9203_v35  ;;  %v7085_v46 = vpop.eup %3664  ;;  %v3108_v1 = vadd.f32 %v6630_v43, %v2789_v24  ;;  %v3109_v57 = vadd.f32 %v6632_v55, %v2790_v27  ;;  %3392 = vst [vmem:[#allocation10 + $0x2d0] sm:$0xff] %v3104_v29  ;;  %v2474_v20 = vmul.f32 %v3649_v62, %v9204_v26  ;;  %v9207_v24 = vld [vmem:[#allocation82_spill] sm:$0xff] }
 0x25c   :  { %3393 = vst [vmem:[#allocation10 + $0x2d8] sm:$0xff] %v3105_v12  ;;  %v2475_v51 = vmul.f32 %v3649_v62, %v9205_v39  ;;  %v7091_v31 = vpop.eup %3666  ;;  %3394 = vst [vmem:[#allocation10 + $0x2e0] sm:$0xff] %v3106_v0  ;;  %v2791_v36 = vmul.f32 %v6596_v59, %v2470_v42  ;;  %v2792_v54 = vmul.f32 %v6600_v11, %v2471_v61  ;;  %3676 = vrsqrt.f32 %v7023_v3 }
 0x25d   :  { %3395 = vst [vmem:[#allocation10 + $0x2e8] sm:$0xff] %v3107_v44  ;;  %v2793_v30 = vmul.f32 %v6604_v56, %v2472_v28  ;;  %v2794_v21 = vmul.f32 %v6606_v38, %v2473_v48  ;;  %v7097_v25 = vpop.eup %3668  ;;  %3396 = vst [vmem:[#allocation10 + $0x2f0] sm:$0xff] %v3108_v1  ;;  %v2795_v40 = vmul.f32 %v6614_v10, %v2474_v20  ;;  %v9208_v28 = vld [vmem:[#allocation84_spill] sm:$0xff]  ;;  %v9209_v48 = vld [vmem:[#allocation85_spill] sm:$0xff]  ;;  %3678 = vrsqrt.f32 %v7025_v15 }
 0x25e   :  { %3397 = vst [vmem:[#allocation10 + $0x2f8] sm:$0xff] %v3109_v57  ;;  %v2796_v62 = vmul.f32 %v6618_v34, %v2475_v51  ;;  %v2476_v13 = vmul.f32 %v7043_v49, %v9206_v47  ;;  %v2477_v42 = vmul.f32 %v7043_v49, %v9207_v24  ;;  %v3110_v61 = vadd.f32 %v6620_v9, %v2791_v36  ;;  %v7109_v0 = vpop.eup %3670  ;;  %v9210_v57 = vld [vmem:[#allocation86_spill] sm:$0xff]  ;;  %v9211_v20 = vld [vmem:[#allocation89_spill] sm:$0xff] }
 0x25f   :  { %v3111_v27 = vadd.f32 %v6624_v63, %v2792_v54  ;;  %v3112_v29 = vadd.f32 %v6626_v16, %v2793_v30  ;;  %v3113_v12 = vadd.f32 %v6628_v6, %v2794_v21  ;;  %v3114_v44 = vadd.f32 %v6630_v43, %v2795_v40  ;;  %v9212_v21 = vld [vmem:[#allocation99_spill] sm:$0xff] }
 0x260   :  { %v3115_v14 = vadd.f32 %v6632_v55, %v2796_v62  ;;  %v2478_v35 = vmul.f32 %v7043_v49, %v9208_v28  ;;  %v2479_v1 = vmul.f32 %v7043_v49, %v9209_v48  ;;  %3398 = vst [vmem:[#allocation10 + $0x300] sm:$0xff] %v3110_v61  ;;  %v2480_v26 = vmul.f32 %v7043_v49, %v9210_v57  ;;  %v9213_v62 = vld [vmem:[#allocation100_spill] sm:$0xff]  ;;  %v9217_v57 = vld [vmem:[#allocation107_spill] sm:$0xff] }
 0x261   :  { %3399 = vst [vmem:[#allocation10 + $0x308] sm:$0xff] %v3111_v27  ;;  %3400 = vst [vmem:[#allocation10 + $0x310] sm:$0xff] %v3112_v29  ;;  %v2481_v39 = vmul.f32 %v7043_v49, %v9211_v20  ;;  %v2797_v51 = vmul.f32 %v6596_v59, %v2476_v13  ;;  %v2798_v36 = vmul.f32 %v6600_v11, %v2477_v42  ;;  %v9214_v29 = vld [vmem:[#allocation102_spill] sm:$0xff]  ;;  %v9216_v48 = vld [vmem:[#allocation104_spill] sm:$0xff]  ;;  %3680 = vrsqrt.f32 %v7027_v5 }
 0x262   :  { %3401 = vst [vmem:[#allocation10 + $0x318] sm:$0xff] %v3113_v12  ;;  %3402 = vst [vmem:[#allocation10 + $0x320] sm:$0xff] %v3114_v44  ;;  %v2799_v54 = vmul.f32 %v6604_v56, %v2478_v35  ;;  %v2800_v30 = vmul.f32 %v6606_v38, %v2479_v1  ;;  %v2482_v40 = vmul.f32 %v7049_v53, %v9212_v21  ;;  %v9215_v44 = vld [vmem:[#allocation103_spill] sm:$0xff]  ;;  %v9218_v21 = vld [vmem:[#allocation93_spill] sm:$0xff]  ;;  %3682 = vrsqrt.f32 %v7037_v37 }
 0x263   :  { %3403 = vst [vmem:[#allocation10 + $0x328] sm:$0xff] %v3115_v14  ;;  %v2483_v47 = vmul.f32 %v7049_v53, %v9213_v62  ;;  %v2801_v24 = vmul.f32 %v6614_v10, %v2480_v26  ;;  %v2802_v49 = vmul.f32 %v6618_v34, %v2481_v39  ;;  %v3116_v13 = vadd.f32 %v6620_v9, %v2797_v51 }
 0x264   :  { %v3117_v42 = vadd.f32 %v6624_v63, %v2798_v36  ;;  %v3118_v61 = vadd.f32 %v6626_v16, %v2799_v54  ;;  %v3119_v27 = vadd.f32 %v6628_v6, %v2800_v30  ;;  %v2484_v12 = vmul.f32 %v7049_v53, %v9214_v29 }
 0x265   :  { %v2485_v14 = vmul.f32 %v7049_v53, %v9215_v44  ;;  %v3120_v28 = vadd.f32 %v6630_v43, %v2801_v24  ;;  %v3121_v35 = vadd.f32 %v6632_v55, %v2802_v49  ;;  %3404 = vst [vmem:[#allocation10 + $0x330] sm:$0xff] %v3116_v13  ;;  %v2486_v1 = vmul.f32 %v7049_v53, %v9216_v48 }
 0x266   :  { %3405 = vst [vmem:[#allocation10 + $0x338] sm:$0xff] %v3117_v42  ;;  %v2487_v26 = vmul.f32 %v7049_v53, %v9217_v57  ;;  %3406 = vst [vmem:[#allocation10 + $0x340] sm:$0xff] %v3118_v61  ;;  %v2803_v20 = vmul.f32 %v6596_v59, %v2482_v40  ;;  %v2804_v39 = vmul.f32 %v6600_v11, %v2483_v47  ;;  %v9219_v53 = vld [vmem:[#allocation94_spill] sm:$0xff] }
 0x267   :  { %3407 = vst [vmem:[#allocation10 + $0x348] sm:$0xff] %v3119_v27  ;;  %v2805_v51 = vmul.f32 %v6604_v56, %v2484_v12  ;;  %v2806_v36 = vmul.f32 %v6606_v38, %v2485_v14  ;;  %3408 = vst [vmem:[#allocation10 + $0x350] sm:$0xff] %v3120_v28  ;;  %v2807_v54 = vmul.f32 %v6614_v10, %v2486_v1  ;;  %v9220_v27 = vld [vmem:[#allocation96_spill] sm:$0xff]  ;;  %v9221_v12 = vld [vmem:[#allocation97_spill] sm:$0xff] }
 0x268   :  { %3409 = vst [vmem:[#allocation10 + $0x358] sm:$0xff] %v3121_v35  ;;  %v2808_v30 = vmul.f32 %v6618_v34, %v2487_v26  ;;  %v2488_v62 = vmul.f32 %v7055_v33, %v9218_v21  ;;  %v2489_v24 = vmul.f32 %v7055_v33, %v9219_v53  ;;  %v3122_v40 = vadd.f32 %v6620_v9, %v2803_v20  ;;  %v9222_v14 = vld [vmem:[#allocation98_spill] sm:$0xff]  ;;  %v9223_v35 = vld [vmem:[#allocation101_spill] sm:$0xff] }
 0x269   :  { %v3123_v47 = vadd.f32 %v6624_v63, %v2804_v39  ;;  %v3124_v49 = vadd.f32 %v6626_v16, %v2805_v51  ;;  %v3125_v13 = vadd.f32 %v6628_v6, %v2806_v36  ;;  %v3126_v42 = vadd.f32 %v6630_v43, %v2807_v54  ;;  %v9224_v39 = vld [vmem:[#allocation111_spill] sm:$0xff]  ;;  %v9225_v36 = vld [vmem:[#allocation112_spill] sm:$0xff] }
 0x26a   :  { %v3127_v61 = vadd.f32 %v6632_v55, %v2808_v30  ;;  %v2490_v29 = vmul.f32 %v7055_v33, %v9220_v27  ;;  %v2491_v44 = vmul.f32 %v7055_v33, %v9221_v12  ;;  %3410 = vst [vmem:[#allocation10 + $0x360] sm:$0xff] %v3122_v40  ;;  %v2492_v28 = vmul.f32 %v7055_v33, %v9222_v14  ;;  %v9226_v40 = vld [vmem:[#allocation114_spill] sm:$0xff]  ;;  %v9228_v27 = vld [vmem:[#allocation116_spill] sm:$0xff]  ;;  %v9229_v12 = vld [vmem:[#allocation119_spill] sm:$0xff] }
 0x26b   :  { %3411 = vst [vmem:[#allocation10 + $0x368] sm:$0xff] %v3123_v47  ;;  %3412 = vst [vmem:[#allocation10 + $0x370] sm:$0xff] %v3124_v49  ;;  %v2493_v48 = vmul.f32 %v7055_v33, %v9223_v35  ;;  %v2809_v1 = vmul.f32 %v6596_v59, %v2488_v62  ;;  %v2810_v57 = vmul.f32 %v6600_v11, %v2489_v24  ;;  %v9227_v49 = vld [vmem:[#allocation115_spill] sm:$0xff] }
 0x26c   :  { %3413 = vst [vmem:[#allocation10 + $0x378] sm:$0xff] %v3125_v13  ;;  %3414 = vst [vmem:[#allocation10 + $0x380] sm:$0xff] %v3126_v42  ;;  %v2811_v26 = vmul.f32 %v6604_v56, %v2490_v29  ;;  %v2812_v20 = vmul.f32 %v6606_v38, %v2491_v44  ;;  %v2494_v51 = vmul.f32 %v7061_v45, %v9224_v39 }
 0x26d   :  { %3415 = vst [vmem:[#allocation10 + $0x388] sm:$0xff] %v3127_v61  ;;  %v2495_v54 = vmul.f32 %v7061_v45, %v9225_v36  ;;  %v2813_v30 = vmul.f32 %v6614_v10, %v2492_v28  ;;  %v2814_v33 = vmul.f32 %v6618_v34, %v2493_v48  ;;  %v3128_v21 = vadd.f32 %v6620_v9, %v2809_v1 }
 0x26e   :  { %v3129_v62 = vadd.f32 %v6624_v63, %v2810_v57  ;;  %v3130_v53 = vadd.f32 %v6626_v16, %v2811_v26  ;;  %v3131_v24 = vadd.f32 %v6628_v6, %v2812_v20  ;;  %v2496_v47 = vmul.f32 %v7061_v45, %v9226_v40  ;;  %v9230_v26 = vld [vmem:[#allocation105_spill] sm:$0xff] }
 0x26f   :  { %v2497_v13 = vmul.f32 %v7061_v45, %v9227_v49  ;;  %v3132_v42 = vadd.f32 %v6630_v43, %v2813_v30  ;;  %v3133_v61 = vadd.f32 %v6632_v55, %v2814_v33  ;;  %3416 = vst [vmem:[#allocation10 + $0x390] sm:$0xff] %v3128_v21  ;;  %v2498_v29 = vmul.f32 %v7061_v45, %v9228_v27 }
 0x270   :  { %3417 = vst [vmem:[#allocation10 + $0x398] sm:$0xff] %v3129_v62  ;;  %v2499_v44 = vmul.f32 %v7061_v45, %v9229_v12  ;;  %3418 = vst [vmem:[#allocation10 + $0x3a0] sm:$0xff] %v3130_v53  ;;  %v2815_v14 = vmul.f32 %v6596_v59, %v2494_v51  ;;  %v2816_v28 = vmul.f32 %v6600_v11, %v2495_v54  ;;  %v9231_v45 = vld [vmem:[#allocation106_spill] sm:$0xff]  ;;  %v9232_v62 = vld [vmem:[#allocation108_spill] sm:$0xff] }
 0x271   :  { %3419 = vst [vmem:[#allocation10 + $0x3a8] sm:$0xff] %v3131_v24  ;;  %v2817_v35 = vmul.f32 %v6604_v56, %v2496_v47  ;;  %v2818_v48 = vmul.f32 %v6606_v38, %v2497_v13  ;;  %3420 = vst [vmem:[#allocation10 + $0x3b0] sm:$0xff] %v3132_v42  ;;  %v2819_v1 = vmul.f32 %v6614_v10, %v2498_v29  ;;  %v9233_v24 = vld [vmem:[#allocation109_spill] sm:$0xff]  ;;  %v9234_v47 = vld [vmem:[#allocation110_spill] sm:$0xff] }
 0x272   :  { %3421 = vst [vmem:[#allocation10 + $0x3b8] sm:$0xff] %v3133_v61  ;;  %v2820_v57 = vmul.f32 %v6618_v34, %v2499_v44  ;;  %v2500_v20 = vmul.f32 %v7067_v7, %v9230_v26  ;;  %v2501_v39 = vmul.f32 %v7067_v7, %v9231_v45  ;;  %v3134_v51 = vadd.f32 %v6620_v9, %v2815_v14  ;;  %v9235_v13 = vld [vmem:[#allocation113_spill] sm:$0xff]  ;;  %v9236_v44 = vld [vmem:[#allocation123_spill] sm:$0xff]  ;;  %v9238_v45 = vld [vmem:[#allocation126_spill] sm:$0xff] }
 0x273   :  { %v3135_v36 = vadd.f32 %v6624_v63, %v2816_v28  ;;  %v3136_v54 = vadd.f32 %v6626_v16, %v2817_v35  ;;  %v3137_v30 = vadd.f32 %v6628_v6, %v2818_v48  ;;  %v3138_v33 = vadd.f32 %v6630_v43, %v2819_v1  ;;  %v9237_v28 = vld [vmem:[#allocation124_spill] sm:$0xff] }
 0x274   :  { %v3139_v21 = vadd.f32 %v6632_v55, %v2820_v57  ;;  %v2502_v53 = vmul.f32 %v7067_v7, %v9232_v62  ;;  %v2503_v40 = vmul.f32 %v7067_v7, %v9233_v24  ;;  %3422 = vst [vmem:[#allocation10 + $0x3c0] sm:$0xff] %v3134_v51  ;;  %v2504_v49 = vmul.f32 %v7067_v7, %v9234_v47  ;;  %v9239_v51 = vld [vmem:[#allocation127_spill] sm:$0xff] }
 0x275   :  { %3423 = vst [vmem:[#allocation10 + $0x3c8] sm:$0xff] %v3135_v36  ;;  %3424 = vst [vmem:[#allocation10 + $0x3d0] sm:$0xff] %v3136_v54  ;;  %v2505_v42 = vmul.f32 %v7067_v7, %v9235_v13  ;;  %v2821_v61 = vmul.f32 %v6596_v59, %v2500_v20  ;;  %v2822_v27 = vmul.f32 %v6600_v11, %v2501_v39  ;;  %v9241_v62 = vld [vmem:[#allocation131_spill] sm:$0xff] }
 0x276   :  { %3425 = vst [vmem:[#allocation10 + $0x3d8] sm:$0xff] %v3137_v30  ;;  %3426 = vst [vmem:[#allocation10 + $0x3e0] sm:$0xff] %v3138_v33  ;;  %v2823_v29 = vmul.f32 %v6604_v56, %v2502_v53  ;;  %v2824_v12 = vmul.f32 %v6606_v38, %v2503_v40  ;;  %v2506_v14 = vmul.f32 %v7073_v32, %v9236_v44  ;;  %v9240_v33 = vld [vmem:[#allocation128_spill] sm:$0xff] }
 0x277   :  { %3427 = vst [vmem:[#allocation10 + $0x3e8] sm:$0xff] %v3139_v21  ;;  %v2507_v35 = vmul.f32 %v7073_v32, %v9237_v28  ;;  %v2825_v48 = vmul.f32 %v6614_v10, %v2504_v49  ;;  %v2826_v7 = vmul.f32 %v6618_v34, %v2505_v42  ;;  %v3140_v1 = vadd.f32 %v6620_v9, %v2821_v61  ;;  %v9242_v61 = vld [vmem:[#allocation117_spill] sm:$0xff] }
 0x278   :  { %v3141_v57 = vadd.f32 %v6624_v63, %v2822_v27  ;;  %v3142_v26 = vadd.f32 %v6626_v16, %v2823_v29  ;;  %v3143_v20 = vadd.f32 %v6628_v6, %v2824_v12  ;;  %v2508_v39 = vmul.f32 %v7073_v32, %v9238_v45 }
 0x279   :  { %v2509_v36 = vmul.f32 %v7073_v32, %v9239_v51  ;;  %v3144_v54 = vadd.f32 %v6630_v43, %v2825_v48  ;;  %v3145_v30 = vadd.f32 %v6632_v55, %v2826_v7  ;;  %3428 = vst [vmem:[#allocation10 + $0x3f0] sm:$0xff] %v3140_v1  ;;  %v2510_v21 = vmul.f32 %v7073_v32, %v9240_v33  ;;  %v9244_v7 = vld [vmem:[#allocation120_spill] sm:$0xff] }
 0x27a   :  { %3429 = vst [vmem:[#allocation10 + $0x3f8] sm:$0xff] %v3141_v57  ;;  %v2511_v53 = vmul.f32 %v7073_v32, %v9241_v62  ;;  %3430 = vst [vmem:[#allocation10 + $0x400] sm:$0xff] %v3142_v26  ;;  %v2827_v24 = vmul.f32 %v6596_v59, %v2506_v14  ;;  %v2828_v40 = vmul.f32 %v6600_v11, %v2507_v35  ;;  %v9243_v32 = vld [vmem:[#allocation118_spill] sm:$0xff]  ;;  %v9245_v57 = vld [vmem:[#allocation121_spill] sm:$0xff] }
 0x27b   :  { %3431 = vst [vmem:[#allocation10 + $0x408] sm:$0xff] %v3143_v20  ;;  %v2829_v47 = vmul.f32 %v6604_v56, %v2508_v39  ;;  %v2830_v49 = vmul.f32 %v6606_v38, %v2509_v36  ;;  %3432 = vst [vmem:[#allocation10 + $0x410] sm:$0xff] %v3144_v54  ;;  %v2831_v13 = vmul.f32 %v6614_v10, %v2510_v21  ;;  %v9246_v20 = vld [vmem:[#allocation122_spill] sm:$0xff]  ;;  %v9247_v39 = vld [vmem:[#allocation125_spill] sm:$0xff] }
 0x27c   :  { %3433 = vst [vmem:[#allocation10 + $0x418] sm:$0xff] %v3145_v30  ;;  %v2832_v42 = vmul.f32 %v6618_v34, %v2511_v53  ;;  %v2512_v27 = vmul.f32 %v7079_v19, %v9242_v61  ;;  %v2513_v29 = vmul.f32 %v7079_v19, %v9243_v32  ;;  %v3146_v12 = vadd.f32 %v6620_v9, %v2827_v24  ;;  %v9248_v21 = vld [vmem:[#allocation135_spill] sm:$0xff]  ;;  %v9249_v53 = vld [vmem:[#allocation136_spill] sm:$0xff]  ;;  %v9250_v61 = vld [vmem:[#allocation138_spill] sm:$0xff] }
 0x27d   :  { %v3147_v44 = vadd.f32 %v6624_v63, %v2828_v40  ;;  %v3148_v14 = vadd.f32 %v6626_v16, %v2829_v47  ;;  %v3149_v28 = vadd.f32 %v6628_v6, %v2830_v49  ;;  %v3150_v35 = vadd.f32 %v6630_v43, %v2831_v13  ;;  %v9251_v32 = vld [vmem:[#allocation139_spill] sm:$0xff] }
 0x27e   :  { %v3151_v48 = vadd.f32 %v6632_v55, %v2832_v42  ;;  %v2514_v1 = vmul.f32 %v7079_v19, %v9244_v7  ;;  %v2515_v26 = vmul.f32 %v7079_v19, %v9245_v57  ;;  %3434 = vst [vmem:[#allocation10 + $0x420] sm:$0xff] %v3146_v12  ;;  %v2516_v45 = vmul.f32 %v7079_v19, %v9246_v20  ;;  %v7283_v12 = vpop.xlane.xlu1 %2144 }
 0x27f   :  { %3435 = vst [vmem:[#allocation10 + $0x428] sm:$0xff] %v3147_v44  ;;  %3436 = vst [vmem:[#allocation10 + $0x430] sm:$0xff] %v3148_v14  ;;  %v2517_v51 = vmul.f32 %v7079_v19, %v9247_v39  ;;  %v2833_v36 = vmul.f32 %v6596_v59, %v2512_v27  ;;  %v2834_v54 = vmul.f32 %v6600_v11, %v2513_v29 }
 0x280   :  { %3437 = vst [vmem:[#allocation10 + $0x438] sm:$0xff] %v3149_v28  ;;  %3438 = vst [vmem:[#allocation10 + $0x440] sm:$0xff] %v3150_v35  ;;  %v2835_v30 = vmul.f32 %v6604_v56, %v2514_v1  ;;  %v2836_v33 = vmul.f32 %v6606_v38, %v2515_v26  ;;  %v2518_v62 = vmul.f32 %v7085_v46, %v9248_v21  ;;  %v9252_v28 = vld [vmem:[#allocation140_spill] sm:$0xff] }
 0x281   :  { %3439 = vst [vmem:[#allocation10 + $0x448] sm:$0xff] %v3151_v48  ;;  %v2519_v24 = vmul.f32 %v7085_v46, %v9249_v53  ;;  %v2837_v40 = vmul.f32 %v6614_v10, %v2516_v45  ;;  %v2838_v19 = vmul.f32 %v6618_v34, %v2517_v51  ;;  %v3152_v47 = vadd.f32 %v6620_v9, %v2833_v36  ;;  %v9253_v48 = vld [vmem:[#allocation143_spill] sm:$0xff]  ;;  %v7295_v45 = vpop.xlane.xlu0 %2151  ;;  %v9254_v36 = vld [vmem:[#allocation129_spill] sm:$0xff] }
 0x282   :  { %v3153_v49 = vadd.f32 %v6624_v63, %v2834_v54  ;;  %v3154_v13 = vadd.f32 %v6626_v16, %v2835_v30  ;;  %v3155_v42 = vadd.f32 %v6628_v6, %v2836_v33  ;;  %v2520_v27 = vmul.f32 %v7085_v46, %v9250_v61  ;;  %v9255_v54 = vld [vmem:[#allocation130_spill] sm:$0xff] }
 0x283   :  { %v2521_v29 = vmul.f32 %v7085_v46, %v9251_v32  ;;  %v3156_v44 = vadd.f32 %v6630_v43, %v2837_v40  ;;  %v3157_v14 = vadd.f32 %v6632_v55, %v2838_v19  ;;  %3440 = vst [vmem:[#allocation10 + $0x450] sm:$0xff] %v3152_v47  ;;  %v2522_v35 = vmul.f32 %v7085_v46, %v9252_v28  ;;  %v9256_v19 = vld [vmem:[#allocation132_spill] sm:$0xff] }
 0x284   :  { %3441 = vst [vmem:[#allocation10 + $0x458] sm:$0xff] %v3153_v49  ;;  %v2523_v7 = vmul.f32 %v7085_v46, %v9253_v48  ;;  %3442 = vst [vmem:[#allocation10 + $0x460] sm:$0xff] %v3154_v13  ;;  %v2839_v1 = vmul.f32 %v6596_v59, %v2518_v62  ;;  %v2840_v57 = vmul.f32 %v6600_v11, %v2519_v24  ;;  %v9257_v49 = vld [vmem:[#allocation133_spill] sm:$0xff]  ;;  %v9260_v48 = vld [vmem:[#allocation147_spill] sm:$0xff] }
 0x285   :  { %3443 = vst [vmem:[#allocation10 + $0x468] sm:$0xff] %v3155_v42  ;;  %v2841_v26 = vmul.f32 %v6604_v56, %v2520_v27  ;;  %v2842_v20 = vmul.f32 %v6606_v38, %v2521_v29  ;;  %3444 = vst [vmem:[#allocation10 + $0x470] sm:$0xff] %v3156_v44  ;;  %v2843_v39 = vmul.f32 %v6614_v10, %v2522_v35  ;;  %v9258_v42 = vld [vmem:[#allocation134_spill] sm:$0xff]  ;;  %v9259_v27 = vld [vmem:[#allocation137_spill] sm:$0xff] }
 0x286   :  { %3445 = vst [vmem:[#allocation10 + $0x478] sm:$0xff] %v3157_v14  ;;  %v2844_v51 = vmul.f32 %v6618_v34, %v2523_v7  ;;  %v2524_v46 = vmul.f32 %v7091_v31, %v9254_v36  ;;  %v2525_v30 = vmul.f32 %v7091_v31, %v9255_v54  ;;  %v3158_v33 = vadd.f32 %v6620_v9, %v2839_v1  ;;  %v7319_v14 = vpop.xlane.xlu1 %2158  ;;  %v9261_v1 = vld [vmem:[#allocation148_spill] sm:$0xff]  ;;  %v9262_v54 = vld [vmem:[#allocation150_spill] sm:$0xff] }
 0x287   :  { %v3159_v21 = vadd.f32 %v6624_v63, %v2840_v57  ;;  %v3160_v62 = vadd.f32 %v6626_v16, %v2841_v26  ;;  %v3161_v53 = vadd.f32 %v6628_v6, %v2842_v20  ;;  %v3162_v24 = vadd.f32 %v6630_v43, %v2843_v39 }
 0x288   :  { %v3163_v40 = vadd.f32 %v6632_v55, %v2844_v51  ;;  %v2526_v47 = vmul.f32 %v7091_v31, %v9256_v19  ;;  %v2527_v13 = vmul.f32 %v7091_v31, %v9257_v49  ;;  %3446 = vst [vmem:[#allocation10 + $0x480] sm:$0xff] %v3158_v33  ;;  %v2528_v61 = vmul.f32 %v7091_v31, %v9258_v42  ;;  %v7331_v51 = vpop.xlane.xlu0 %2165  ;;  %v9263_v33 = vld [vmem:[#allocation151_spill] sm:$0xff] }
 0x289   :  { %3447 = vst [vmem:[#allocation10 + $0x488] sm:$0xff] %v3159_v21  ;;  %3448 = vst [vmem:[#allocation10 + $0x490] sm:$0xff] %v3160_v62  ;;  %v2529_v32 = vmul.f32 %v7091_v31, %v9259_v27  ;;  %v2845_v29 = vmul.f32 %v6596_v59, %v2524_v46  ;;  %v2846_v44 = vmul.f32 %v6600_v11, %v2525_v30  ;;  %v9265_v19 = vld [vmem:[#allocation155_spill] sm:$0xff]  ;;  %v2267_v17 = vmul.f32 0.0013020834, %v7319_v14 }
 0x28a   :  { %3449 = vst [vmem:[#allocation10 + $0x498] sm:$0xff] %v3161_v53  ;;  %3450 = vst [vmem:[#allocation10 + $0x4a0] sm:$0xff] %v3162_v24  ;;  %v2847_v28 = vmul.f32 %v6604_v56, %v2526_v47  ;;  %v2848_v35 = vmul.f32 %v6606_v38, %v2527_v13  ;;  %v2530_v7 = vmul.f32 %v7097_v25, %v9260_v48  ;;  %v9264_v24 = vld [vmem:[#allocation152_spill] sm:$0xff] }
 0x28b   :  { %3451 = vst [vmem:[#allocation10 + $0x4a8] sm:$0xff] %v3163_v40  ;;  %v2531_v57 = vmul.f32 %v7097_v25, %v9261_v1  ;;  %v2849_v31 = vmul.f32 %v6614_v10, %v2528_v61  ;;  %v2850_v26 = vmul.f32 %v6618_v34, %v2529_v32  ;;  %v3164_v20 = vadd.f32 %v6620_v9, %v2845_v29  ;;  %v9266_v29 = vld [vmem:[#allocation141_spill] sm:$0xff] }
 0x28c   :  { %v3165_v39 = vadd.f32 %v6624_v63, %v2846_v44  ;;  %v3166_v36 = vadd.f32 %v6626_v16, %v2847_v28  ;;  %v3167_v46 = vadd.f32 %v6628_v6, %v2848_v35  ;;  %v2532_v30 = vmul.f32 %v7097_v25, %v9262_v54  ;;  %v2173_v35 = vpop.xlane.xlu1 %2172  ;;  %v2180_v54 = vpop.xlane.xlu0 %2179 }
 0x28d   :  { %v2533_v21 = vmul.f32 %v7097_v25, %v9263_v33  ;;  %v3168_v62 = vadd.f32 %v6630_v43, %v2849_v31  ;;  %v3169_v53 = vadd.f32 %v6632_v55, %v2850_v26  ;;  %3452 = vst [vmem:[#allocation10 + $0x4b0] sm:$0xff] %v3164_v20  ;;  %v2534_v40 = vmul.f32 %v7097_v25, %v9264_v24  ;;  %v9268_v20 = vld [vmem:[#allocation144_spill] sm:$0xff] }
 0x28e   :  { %3453 = vst [vmem:[#allocation10 + $0x4b8] sm:$0xff] %v3165_v39  ;;  %v2535_v47 = vmul.f32 %v7097_v25, %v9265_v19  ;;  %3454 = vst [vmem:[#allocation10 + $0x4c0] sm:$0xff] %v3166_v36  ;;  %v2851_v49 = vmul.f32 %v6596_v59, %v2530_v7  ;;  %v2852_v13 = vmul.f32 %v6600_v11, %v2531_v57  ;;  %v9267_v25 = vld [vmem:[#allocation142_spill] sm:$0xff]  ;;  %v9269_v36 = vld [vmem:[#allocation145_spill] sm:$0xff]  ;;  %v2315_v3 = vadd.f32 1e-12, %v2267_v17 }
 0x28f   :  { %3455 = vst [vmem:[#allocation10 + $0x4c8] sm:$0xff] %v3167_v46  ;;  %v2853_v42 = vmul.f32 %v6604_v56, %v2532_v30  ;;  %v2854_v61 = vmul.f32 %v6606_v38, %v2533_v21  ;;  %3456 = vst [vmem:[#allocation10 + $0x4d0] sm:$0xff] %v3168_v62  ;;  %v2855_v27 = vmul.f32 %v6614_v10, %v2534_v40  ;;  %v9270_v30 = vld [vmem:[#allocation146_spill] sm:$0xff]  ;;  %v9271_v21 = vld [vmem:[#allocation149_spill] sm:$0xff] }
 0x290   :  { %3457 = vst [vmem:[#allocation10 + $0x4d8] sm:$0xff] %v3169_v53  ;;  %v2856_v32 = vmul.f32 %v6618_v34, %v2535_v47  ;;  %v2536_v44 = vmul.f32 %v7109_v0, %v9266_v29  ;;  %v2537_v28 = vmul.f32 %v7109_v0, %v9267_v25  ;;  %v3170_v48 = vadd.f32 %v6620_v9, %v2851_v49  ;;  %v2187_v29 = vpop.xlane.xlu1 %2186  ;;  %v9279_v17 = vld [vmem:[#allocation154_spill] sm:$0xff] }
 0x291   :  { %v3171_v7 = vadd.f32 %v6624_v63, %v2852_v13  ;;  %v3172_v1 = vadd.f32 %v6626_v16, %v2853_v42  ;;  %v3173_v57 = vadd.f32 %v6628_v6, %v2854_v61  ;;  %v3174_v31 = vadd.f32 %v6630_v43, %v2855_v27 }
 0x292   :  { %v3175_v26 = vadd.f32 %v6632_v55, %v2856_v32  ;;  %v2538_v39 = vmul.f32 %v7109_v0, %v9268_v20  ;;  %v2539_v46 = vmul.f32 %v7109_v0, %v9269_v36  ;;  %3458 = vst [vmem:[#allocation10 + $0x4e0] sm:$0xff] %v3170_v48  ;;  %v2540_v33 = vmul.f32 %v7109_v0, %v9270_v30  ;;  %v9272_v36 = vld [vmem:[#allocation159_spill] sm:$0xff] }
 0x293   :  { %3459 = vst [vmem:[#allocation10 + $0x4e8] sm:$0xff] %v3171_v7  ;;  %3460 = vst [vmem:[#allocation10 + $0x4f0] sm:$0xff] %v3172_v1  ;;  %v2541_v62 = vmul.f32 %v7109_v0, %v9271_v21  ;;  %v2857_v53 = vmul.f32 %v6596_v59, %v2536_v44  ;;  %v2858_v24 = vmul.f32 %v6600_v11, %v2537_v28  ;;  %v2312_v47 = vadd.f32 1e-12, %v7029_v60  ;;  %v2194_v28 = vpop.xlane.xlu0 %2193 }
 0x294   :  { %3461 = vst [vmem:[#allocation10 + $0x4f8] sm:$0xff] %v3173_v57  ;;  %3462 = vst [vmem:[#allocation10 + $0x500] sm:$0xff] %v3174_v31  ;;  %v2859_v40 = vmul.f32 %v6604_v56, %v2538_v39  ;;  %v2860_v19 = vmul.f32 %v6606_v38, %v2539_v46  ;;  %v2861_v49 = vmul.f32 %v6614_v10, %v2540_v33  ;;  %v2265_v32 = vmul.f32 0.0013020834, %v7283_v12  ;;  %v2201_v31 = vpop.xlane.xlu1 %2200  ;;  %v9274_v33 = vld [vmem:[#allocation162_spill] sm:$0xff] }
 0x295   :  { %3463 = vst [vmem:[#allocation10 + $0x508] sm:$0xff] %v3175_v26  ;;  %v2862_v13 = vmul.f32 %v6618_v34, %v2541_v62  ;;  %v3176_v0 = vadd.f32 %v6620_v9, %v2857_v53  ;;  %v3177_v42 = vadd.f32 %v6624_v63, %v2858_v24  ;;  %v2266_v44 = vmul.f32 0.0013020834, %v7295_v45  ;;  %v9275_v62 = vld [vmem:[#allocation163_spill] sm:$0xff] }
 0x296   :  { %v3178_v61 = vadd.f32 %v6626_v16, %v2859_v40  ;;  %v3179_v27 = vadd.f32 %v6628_v6, %v2860_v19  ;;  %v3180_v22 = vadd.f32 %v6630_v43, %v2861_v49  ;;  %v2313_v25 = vadd.f32 1e-12, %v2265_v32  ;;  %v9276_v40 = vld [vmem:[#allocation164_spill] sm:$0xff] }
 0x297   :  { %v3181_v60 = vadd.f32 %v6632_v55, %v2862_v13  ;;  %3464 = vst [vmem:[#allocation10 + $0x510] sm:$0xff] %v3176_v0  ;;  %3465 = vst [vmem:[#allocation10 + $0x518] sm:$0xff] %v3177_v42  ;;  %v2268_v12 = vmul.f32 0.0013020834, %v7331_v51  ;;  %v2314_v48 = vadd.f32 1e-12, %v2266_v44  ;;  %3684 = vrsqrt.f32 %v2312_v47  ;;  %v2208_v26 = vpop.xlane.xlu0 %2207 }
 0x298   :  { %3466 = vst [vmem:[#allocation10 + $0x520] sm:$0xff] %v3178_v61  ;;  %3467 = vst [vmem:[#allocation10 + $0x528] sm:$0xff] %v3179_v27  ;;  %v2269_v7 = vmul.f32 0.0013020834, %v2173_v35  ;;  %v2270_v1 = vmul.f32 0.0013020834, %v2180_v54  ;;  %3686 = vrsqrt.f32 %v2313_v25  ;;  %v3673_v35 = vpop.eup %3672 }
 0x299   :  { %3468 = vst [vmem:[#allocation10 + $0x530] sm:$0xff] %v3180_v22  ;;  %3469 = vst [vmem:[#allocation10 + $0x538] sm:$0xff] %v3181_v60  ;;  %v2316_v45 = vadd.f32 1e-12, %v2268_v12  ;;  %v2271_v57 = vmul.f32 0.0013020834, %v2187_v29  ;;  %3688 = vrsqrt.f32 %v2314_v48  ;;  %v2542_v46 = vmul.f32 %v3673_v35, %v9272_v36  ;;  %v3675_v24 = vpop.eup %3674 }
 0x29a   :  { %v2317_v15 = vadd.f32 1e-12, %v2269_v7  ;;  %v2318_v14 = vadd.f32 1e-12, %v2270_v1  ;;  %v2272_v51 = vmul.f32 0.0013020834, %v2194_v28  ;;  %3690 = vrsqrt.f32 %v2315_v3  ;;  %v3677_v0 = vpop.eup %3676 }
 0x29b   :  { %3692 = vrsqrt.f32 %v2316_v45  ;;  %v2319_v20 = vadd.f32 1e-12, %v2271_v57  ;;  %v2273_v5 = vmul.f32 0.0013020834, %v2201_v31  ;;  %v7394_v37 = vmul.f32 0.0013020834, %v2208_v26  ;;  %v7408_v29 = vpop.eup %3678 }
 0x29c   :  { %3694 = vrsqrt.f32 %v2317_v15  ;;  %v7392_v39 = vadd.f32 1e-12, %v2272_v51  ;;  %v9273_v54 = vld [vmem:[#allocation160_spill] sm:$0xff]  ;;  %v2544_v21 = vmul.f32 %v3673_v35, %v9274_v33  ;;  %v2545_v53 = vmul.f32 %v3673_v35, %v9275_v62  ;;  %v9277_v47 = vld [vmem:[#allocation167_spill] sm:$0xff]  ;;  %v9278_v44 = vld [vmem:[#allocation153_spill] sm:$0xff]  ;;  %v7414_v28 = vpop.eup %3680 }
 0x29d   :  { %3696 = vrsqrt.f32 %v2318_v14  ;;  %v2543_v30 = vmul.f32 %v3673_v35, %v9273_v54  ;;  %v2546_v19 = vmul.f32 %v3673_v35, %v9276_v40  ;;  %v2547_v49 = vmul.f32 %v3673_v35, %v9277_v47  ;;  %v7420_v45 = vpop.eup %3682  ;;  %v9280_v31 = vld [vmem:[#allocation156_spill] sm:$0xff]  ;;  %v9281_v51 = vld [vmem:[#allocation157_spill] sm:$0xff] }
 0x29e   :  { %3698 = vrsqrt.f32 %v2319_v20  ;;  %v7402_v13 = vadd.f32 1e-12, %v2273_v5  ;;  %v2863_v42 = vmul.f32 %v6596_v59, %v2542_v46  ;;  %v2865_v27 = vmul.f32 %v6604_v56, %v2544_v21  ;;  %v9282_v5 = vld [vmem:[#allocation158_spill] sm:$0xff]  ;;  %v9283_v36 = vld [vmem:[#allocation161_spill] sm:$0xff] }
 0x29f   :  { %v2864_v61 = vmul.f32 %v6600_v11, %v2543_v30  ;;  %v2866_v32 = vmul.f32 %v6606_v38, %v2545_v53  ;;  %v2867_v22 = vmul.f32 %v6614_v10, %v2546_v19  ;;  %v2868_v60 = vmul.f32 %v6618_v34, %v2547_v49  ;;  %v9284_v53 = vld [vmem:[#allocation171_spill] sm:$0xff]  ;;  %v9285_v19 = vld [vmem:[#allocation172_spill] sm:$0xff] }
 0x2a0   :  { %v2548_v25 = vmul.f32 %v3675_v24, %v9278_v44  ;;  %v2549_v12 = vmul.f32 %v3675_v24, %v9279_v17  ;;  %v3182_v48 = vadd.f32 %v6620_v9, %v2863_v42  ;;  %v3184_v1 = vadd.f32 %v6626_v16, %v2865_v27  ;;  %v9286_v44 = vld [vmem:[#allocation174_spill] sm:$0xff]  ;;  %v9287_v17 = vld [vmem:[#allocation175_spill] sm:$0xff] }
 0x2a1   :  { %v3183_v7 = vadd.f32 %v6624_v63, %v2864_v61  ;;  %v3185_v3 = vadd.f32 %v6628_v6, %v2866_v32  ;;  %v3186_v57 = vadd.f32 %v6630_v43, %v2867_v22  ;;  %v3187_v15 = vadd.f32 %v6632_v55, %v2868_v60 }
 0x2a2   :  { %v2550_v14 = vmul.f32 %v3675_v24, %v9280_v31  ;;  %v2551_v26 = vmul.f32 %v3675_v24, %v9281_v51  ;;  %3470 = vst [vmem:[#allocation10 + $0x540] sm:$0xff] %v3182_v48  ;;  %3472 = vst [vmem:[#allocation10 + $0x550] sm:$0xff] %v3184_v1  ;;  %v2552_v35 = vmul.f32 %v3675_v24, %v9282_v5  ;;  %3700 = vrsqrt.f32 %v7392_v39 }
 0x2a3   :  { %3471 = vst [vmem:[#allocation10 + $0x548] sm:$0xff] %v3183_v7  ;;  %3473 = vst [vmem:[#allocation10 + $0x558] sm:$0xff] %v3185_v3  ;;  %v2553_v46 = vmul.f32 %v3675_v24, %v9283_v36  ;;  %v2869_v54 = vmul.f32 %v6596_v59, %v2548_v25  ;;  %v2870_v30 = vmul.f32 %v6600_v11, %v2549_v12  ;;  %v9288_v3 = vld [vmem:[#allocation176_spill] sm:$0xff]  ;;  %3702 = vrsqrt.f32 %v7402_v13 }
 0x2a4   :  { %v7426_v20 = vpop.eup %3684  ;;  %3474 = vst [vmem:[#allocation10 + $0x560] sm:$0xff] %v3186_v57  ;;  %3475 = vst [vmem:[#allocation10 + $0x568] sm:$0xff] %v3187_v15  ;;  %v2871_v21 = vmul.f32 %v6604_v56, %v2550_v14  ;;  %v2872_v62 = vmul.f32 %v6606_v38, %v2551_v26  ;;  %v2554_v40 = vmul.f32 %v3677_v0, %v9284_v53  ;;  %v9289_v15 = vld [vmem:[#allocation179_spill] sm:$0xff] }
 0x2a5   :  { %v7432_v33 = vpop.eup %3686  ;;  %v2555_v47 = vmul.f32 %v3677_v0, %v9285_v19  ;;  %v2873_v24 = vmul.f32 %v6614_v10, %v2552_v35  ;;  %v2874_v42 = vmul.f32 %v6618_v34, %v2553_v46  ;;  %v3188_v61 = vadd.f32 %v6620_v9, %v2869_v54  ;;  %v9290_v54 = vld [vmem:[#allocation165_spill] sm:$0xff] }
 0x2a6   :  { %v7438_v49 = vpop.eup %3688  ;;  %v3189_v27 = vadd.f32 %v6624_v63, %v2870_v30  ;;  %v3190_v22 = vadd.f32 %v6626_v16, %v2871_v21  ;;  %v3191_v60 = vadd.f32 %v6628_v6, %v2872_v62  ;;  %v2556_v25 = vmul.f32 %v3677_v0, %v9286_v44  ;;  %v9291_v21 = vld [vmem:[#allocation166_spill] sm:$0xff] }
 0x2a7   :  { %v7444_v32 = vpop.eup %3690  ;;  %v2557_v12 = vmul.f32 %v3677_v0, %v9287_v17  ;;  %v3192_v7 = vadd.f32 %v6630_v43, %v2873_v24  ;;  %v3193_v1 = vadd.f32 %v6632_v55, %v2874_v42  ;;  %3476 = vst [vmem:[#allocation10 + $0x570] sm:$0xff] %v3188_v61  ;;  %v2558_v57 = vmul.f32 %v3677_v0, %v9288_v3 }
 0x2a8   :  { %v7450_v48 = vpop.eup %3692  ;;  %3477 = vst [vmem:[#allocation10 + $0x578] sm:$0xff] %v3189_v27  ;;  %v2559_v31 = vmul.f32 %v3677_v0, %v9289_v15  ;;  %3478 = vst [vmem:[#allocation10 + $0x580] sm:$0xff] %v3190_v22  ;;  %v2875_v51 = vmul.f32 %v6596_v59, %v2554_v40  ;;  %v2876_v26 = vmul.f32 %v6600_v11, %v2555_v47  ;;  %v9292_v27 = vld [vmem:[#allocation168_spill] sm:$0xff] }
 0x2a9   :  { %v7456_v14 = vpop.eup %3694  ;;  %3479 = vst [vmem:[#allocation10 + $0x588] sm:$0xff] %v3191_v60  ;;  %v2877_v5 = vmul.f32 %v6604_v56, %v2556_v25  ;;  %v2878_v35 = vmul.f32 %v6606_v38, %v2557_v12  ;;  %3480 = vst [vmem:[#allocation10 + $0x590] sm:$0xff] %v3192_v7  ;;  %v2879_v46 = vmul.f32 %v6614_v10, %v2558_v57  ;;  %v9293_v60 = vld [vmem:[#allocation169_spill] sm:$0xff]  ;;  %v9294_v25 = vld [vmem:[#allocation170_spill] sm:$0xff] }
 0x2aa   :  { %v7462_v36 = vpop.eup %3696  ;;  %3481 = vst [vmem:[#allocation10 + $0x598] sm:$0xff] %v3193_v1  ;;  %v2880_v0 = vmul.f32 %v6618_v34, %v2559_v31  ;;  %v2560_v30 = vmul.f32 %v7408_v29, %v9290_v54  ;;  %v2561_v62 = vmul.f32 %v7408_v29, %v9291_v21  ;;  %v3194_v53 = vadd.f32 %v6620_v9, %v2875_v51  ;;  %v9295_v12 = vld [vmem:[#allocation173_spill] sm:$0xff]  ;;  %v9296_v31 = vld [vmem:[#allocation183_spill] sm:$0xff]  ;;  %v9298_v21 = vld [vmem:[#allocation186_spill] sm:$0xff] }
 0x2ab   :  { %v3195_v40 = vadd.f32 %v6624_v63, %v2876_v26  ;;  %v3196_v19 = vadd.f32 %v6626_v16, %v2877_v5  ;;  %v3197_v47 = vadd.f32 %v6628_v6, %v2878_v35  ;;  %v7474_v24 = vpop.eup %3698  ;;  %v3198_v42 = vadd.f32 %v6630_v43, %v2879_v46  ;;  %v9297_v26 = vld [vmem:[#allocation184_spill] sm:$0xff] }
 0x2ac   :  { %v3199_v61 = vadd.f32 %v6632_v55, %v2880_v0  ;;  %v2562_v22 = vmul.f32 %v7408_v29, %v9292_v27  ;;  %v2563_v44 = vmul.f32 %v7408_v29, %v9293_v60  ;;  %3482 = vst [vmem:[#allocation10 + $0x5a0] sm:$0xff] %v3194_v53  ;;  %v2564_v17 = vmul.f32 %v7408_v29, %v9294_v25  ;;  %v9299_v53 = vld [vmem:[#allocation187_spill] sm:$0xff] }
 0x2ad   :  { %3483 = vst [vmem:[#allocation10 + $0x5a8] sm:$0xff] %v3195_v40  ;;  %3484 = vst [vmem:[#allocation10 + $0x5b0] sm:$0xff] %v3196_v19  ;;  %v2565_v7 = vmul.f32 %v7408_v29, %v9295_v12  ;;  %v2881_v1 = vmul.f32 %v6596_v59, %v2560_v30  ;;  %v2882_v3 = vmul.f32 %v6600_v11, %v2561_v62  ;;  %v9301_v27 = vld [vmem:[#allocation191_spill] sm:$0xff] }
 0x2ae   :  { %3485 = vst [vmem:[#allocation10 + $0x5b8] sm:$0xff] %v3197_v47  ;;  %3486 = vst [vmem:[#allocation10 + $0x5c0] sm:$0xff] %v3198_v42  ;;  %v2883_v57 = vmul.f32 %v6604_v56, %v2562_v22  ;;  %v2884_v15 = vmul.f32 %v6606_v38, %v2563_v44  ;;  %v2566_v51 = vmul.f32 %v7414_v28, %v9296_v31  ;;  %v9300_v42 = vld [vmem:[#allocation188_spill] sm:$0xff] }
 0x2af   :  { %3487 = vst [vmem:[#allocation10 + $0x5c8] sm:$0xff] %v3199_v61  ;;  %v2567_v5 = vmul.f32 %v7414_v28, %v9297_v26  ;;  %v2885_v35 = vmul.f32 %v6614_v10, %v2564_v17  ;;  %v2886_v29 = vmul.f32 %v6618_v34, %v2565_v7  ;;  %v3200_v46 = vadd.f32 %v6620_v9, %v2881_v1  ;;  %v9302_v1 = vld [vmem:[#allocation177_spill] sm:$0xff] }
 0x2b0   :  { %v3201_v0 = vadd.f32 %v6624_v63, %v2882_v3  ;;  %v3202_v54 = vadd.f32 %v6626_v16, %v2883_v57  ;;  %v3203_v30 = vadd.f32 %v6628_v6, %v2884_v15  ;;  %v2568_v62 = vmul.f32 %v7414_v28, %v9298_v21 }
 0x2b1   :  { %v2569_v40 = vmul.f32 %v7414_v28, %v9299_v53  ;;  %v3204_v19 = vadd.f32 %v6630_v43, %v2885_v35  ;;  %v3205_v47 = vadd.f32 %v6632_v55, %v2886_v29  ;;  %3488 = vst [vmem:[#allocation10 + $0x5d0] sm:$0xff] %v3200_v46  ;;  %v2570_v61 = vmul.f32 %v7414_v28, %v9300_v42  ;;  %v9304_v29 = vld [vmem:[#allocation180_spill] sm:$0xff] }
 0x2b2   :  { %3489 = vst [vmem:[#allocation10 + $0x5d8] sm:$0xff] %v3201_v0  ;;  %v2571_v22 = vmul.f32 %v7414_v28, %v9301_v27  ;;  %3490 = vst [vmem:[#allocation10 + $0x5e0] sm:$0xff] %v3202_v54  ;;  %v2887_v60 = vmul.f32 %v6596_v59, %v2566_v51  ;;  %v2888_v44 = vmul.f32 %v6600_v11, %v2567_v5  ;;  %v9303_v28 = vld [vmem:[#allocation178_spill] sm:$0xff]  ;;  %v9305_v0 = vld [vmem:[#allocation181_spill] sm:$0xff] }
 0x2b3   :  { %3491 = vst [vmem:[#allocation10 + $0x5e8] sm:$0xff] %v3203_v30  ;;  %v2889_v25 = vmul.f32 %v6604_v56, %v2568_v62  ;;  %v2890_v17 = vmul.f32 %v6606_v38, %v2569_v40  ;;  %3492 = vst [vmem:[#allocation10 + $0x5f0] sm:$0xff] %v3204_v19  ;;  %v2891_v12 = vmul.f32 %v6614_v10, %v2570_v61  ;;  %v9306_v30 = vld [vmem:[#allocation182_spill] sm:$0xff]  ;;  %v9307_v62 = vld [vmem:[#allocation185_spill] sm:$0xff] }
 0x2b4   :  { %3493 = vst [vmem:[#allocation10 + $0x5f8] sm:$0xff] %v3205_v47  ;;  %v2892_v7 = vmul.f32 %v6618_v34, %v2571_v22  ;;  %v2572_v3 = vmul.f32 %v7420_v45, %v9302_v1  ;;  %v2573_v57 = vmul.f32 %v7420_v45, %v9303_v28  ;;  %v3206_v15 = vadd.f32 %v6620_v9, %v2887_v60  ;;  %v9308_v61 = vld [vmem:[#allocation195_spill] sm:$0xff]  ;;  %v9309_v22 = vld [vmem:[#allocation196_spill] sm:$0xff]  ;;  %v9310_v1 = vld [vmem:[#allocation198_spill] sm:$0xff] }
 0x2b5   :  { %v3207_v31 = vadd.f32 %v6624_v63, %v2888_v44  ;;  %v3208_v51 = vadd.f32 %v6626_v16, %v2889_v25  ;;  %v3209_v26 = vadd.f32 %v6628_v6, %v2890_v17  ;;  %v3210_v5 = vadd.f32 %v6630_v43, %v2891_v12  ;;  %v9311_v28 = vld [vmem:[#allocation199_spill] sm:$0xff] }
 0x2b6   :  { %v3211_v35 = vadd.f32 %v6632_v55, %v2892_v7  ;;  %v2574_v46 = vmul.f32 %v7420_v45, %v9304_v29  ;;  %v2575_v54 = vmul.f32 %v7420_v45, %v9305_v0  ;;  %3494 = vst [vmem:[#allocation10 + $0x600] sm:$0xff] %v3206_v15  ;;  %v2576_v21 = vmul.f32 %v7420_v45, %v9306_v30 }
 0x2b7   :  { %3495 = vst [vmem:[#allocation10 + $0x608] sm:$0xff] %v3207_v31  ;;  %3496 = vst [vmem:[#allocation10 + $0x610] sm:$0xff] %v3208_v51  ;;  %v2577_v53 = vmul.f32 %v7420_v45, %v9307_v62  ;;  %v2893_v40 = vmul.f32 %v6596_v59, %v2572_v3  ;;  %v2894_v19 = vmul.f32 %v6600_v11, %v2573_v57  ;;  %v9312_v51 = vld [vmem:[#allocation200_spill] sm:$0xff]  ;;  %v9314_v62 = vld [vmem:[#allocation189_spill] sm:$0xff] }
 0x2b8   :  { %3497 = vst [vmem:[#allocation10 + $0x618] sm:$0xff] %v3209_v26  ;;  %3498 = vst [vmem:[#allocation10 + $0x620] sm:$0xff] %v3210_v5  ;;  %v2895_v47 = vmul.f32 %v6604_v56, %v2574_v46  ;;  %v2896_v42 = vmul.f32 %v6606_v38, %v2575_v54  ;;  %v2578_v27 = vmul.f32 %v7426_v20, %v9308_v61  ;;  %v9313_v5 = vld [vmem:[#allocation203_spill] sm:$0xff] }
 0x2b9   :  { %3499 = vst [vmem:[#allocation10 + $0x628] sm:$0xff] %v3211_v35  ;;  %v2579_v60 = vmul.f32 %v7426_v20, %v9309_v22  ;;  %v2897_v44 = vmul.f32 %v6614_v10, %v2576_v21  ;;  %v2898_v45 = vmul.f32 %v6618_v34, %v2577_v53  ;;  %v3212_v25 = vadd.f32 %v6620_v9, %v2893_v40 }
 0x2ba   :  { %v3213_v17 = vadd.f32 %v6624_v63, %v2894_v19  ;;  %v3214_v12 = vadd.f32 %v6626_v16, %v2895_v47  ;;  %v3215_v7 = vadd.f32 %v6628_v6, %v2896_v42  ;;  %v2580_v3 = vmul.f32 %v7426_v20, %v9310_v1 }
 0x2bb   :  { %v2581_v57 = vmul.f32 %v7426_v20, %v9311_v28  ;;  %v3216_v15 = vadd.f32 %v6630_v43, %v2897_v44  ;;  %v3217_v31 = vadd.f32 %v6632_v55, %v2898_v45  ;;  %3500 = vst [vmem:[#allocation10 + $0x630] sm:$0xff] %v3212_v25  ;;  %v2582_v26 = vmul.f32 %v7426_v20, %v9312_v51  ;;  %v9317_v45 = vld [vmem:[#allocation193_spill] sm:$0xff] }
 0x2bc   :  { %3501 = vst [vmem:[#allocation10 + $0x638] sm:$0xff] %v3213_v17  ;;  %v2583_v35 = vmul.f32 %v7426_v20, %v9313_v5  ;;  %3502 = vst [vmem:[#allocation10 + $0x640] sm:$0xff] %v3214_v12  ;;  %v2899_v29 = vmul.f32 %v6596_v59, %v2578_v27  ;;  %v2900_v46 = vmul.f32 %v6600_v11, %v2579_v60  ;;  %v9315_v20 = vld [vmem:[#allocation190_spill] sm:$0xff]  ;;  %v9316_v60 = vld [vmem:[#allocation192_spill] sm:$0xff] }
 0x2bd   :  { %3503 = vst [vmem:[#allocation10 + $0x648] sm:$0xff] %v3215_v7  ;;  %v2901_v0 = vmul.f32 %v6604_v56, %v2580_v3  ;;  %v2902_v54 = vmul.f32 %v6606_v38, %v2581_v57  ;;  %3504 = vst [vmem:[#allocation10 + $0x650] sm:$0xff] %v3216_v15  ;;  %v2903_v30 = vmul.f32 %v6614_v10, %v2582_v26  ;;  %v9318_v17 = vld [vmem:[#allocation194_spill] sm:$0xff]  ;;  %v9319_v7 = vld [vmem:[#allocation197_spill] sm:$0xff] }
 0x2be   :  { %3505 = vst [vmem:[#allocation10 + $0x658] sm:$0xff] %v3217_v31  ;;  %v2904_v21 = vmul.f32 %v6618_v34, %v2583_v35  ;;  %v2584_v53 = vmul.f32 %v7432_v33, %v9314_v62  ;;  %v2585_v40 = vmul.f32 %v7432_v33, %v9315_v20  ;;  %v3218_v19 = vadd.f32 %v6620_v9, %v2899_v29  ;;  %v9320_v31 = vld [vmem:[#allocation207_spill] sm:$0xff]  ;;  %v9321_v26 = vld [vmem:[#allocation208_spill] sm:$0xff] }
 0x2bf   :  { %v3219_v47 = vadd.f32 %v6624_v63, %v2900_v46  ;;  %v3220_v42 = vadd.f32 %v6626_v16, %v2901_v0  ;;  %v3221_v61 = vadd.f32 %v6628_v6, %v2902_v54  ;;  %v3222_v27 = vadd.f32 %v6630_v43, %v2903_v30  ;;  %v9322_v30 = vld [vmem:[#allocation210_spill] sm:$0xff]  ;;  %v9323_v62 = vld [vmem:[#allocation211_spill] sm:$0xff] }
 0x2c0   :  { %v3223_v22 = vadd.f32 %v6632_v55, %v2904_v21  ;;  %v2586_v44 = vmul.f32 %v7432_v33, %v9316_v60  ;;  %v2587_v25 = vmul.f32 %v7432_v33, %v9317_v45  ;;  %3506 = vst [vmem:[#allocation10 + $0x660] sm:$0xff] %v3218_v19  ;;  %v2588_v12 = vmul.f32 %v7432_v33, %v9318_v17  ;;  %v9324_v19 = vld [vmem:[#allocation212_spill] sm:$0xff]  ;;  %v9326_v17 = vld [vmem:[#allocation201_spill] sm:$0xff] }
 0x2c1   :  { %3507 = vst [vmem:[#allocation10 + $0x668] sm:$0xff] %v3219_v47  ;;  %3508 = vst [vmem:[#allocation10 + $0x670] sm:$0xff] %v3220_v42  ;;  %v2589_v1 = vmul.f32 %v7432_v33, %v9319_v7  ;;  %v2905_v3 = vmul.f32 %v6596_v59, %v2584_v53  ;;  %v2906_v28 = vmul.f32 %v6600_v11, %v2585_v40  ;;  %v9325_v42 = vld [vmem:[#allocation215_spill] sm:$0xff] }
 0x2c2   :  { %3509 = vst [vmem:[#allocation10 + $0x678] sm:$0xff] %v3221_v61  ;;  %3510 = vst [vmem:[#allocation10 + $0x680] sm:$0xff] %v3222_v27  ;;  %v2907_v57 = vmul.f32 %v6604_v56, %v2586_v44  ;;  %v2908_v15 = vmul.f32 %v6606_v38, %v2587_v25  ;;  %v2590_v51 = vmul.f32 %v7438_v49, %v9320_v31 }
 0x2c3   :  { %3511 = vst [vmem:[#allocation10 + $0x688] sm:$0xff] %v3223_v22  ;;  %v2591_v5 = vmul.f32 %v7438_v49, %v9321_v26  ;;  %v2909_v35 = vmul.f32 %v6614_v10, %v2588_v12  ;;  %v2910_v33 = vmul.f32 %v6618_v34, %v2589_v1  ;;  %v3224_v29 = vadd.f32 %v6620_v9, %v2905_v3 }
 0x2c4   :  { %v3225_v46 = vadd.f32 %v6624_v63, %v2906_v28  ;;  %v3226_v0 = vadd.f32 %v6626_v16, %v2907_v57  ;;  %v3227_v54 = vadd.f32 %v6628_v6, %v2908_v15  ;;  %v2592_v21 = vmul.f32 %v7438_v49, %v9322_v30 }
 0x2c5   :  { %v2593_v53 = vmul.f32 %v7438_v49, %v9323_v62  ;;  %v3228_v20 = vadd.f32 %v6630_v43, %v2909_v35  ;;  %v3229_v40 = vadd.f32 %v6632_v55, %v2910_v33  ;;  %3512 = vst [vmem:[#allocation10 + $0x690] sm:$0xff] %v3224_v29  ;;  %v2594_v47 = vmul.f32 %v7438_v49, %v9324_v19  ;;  %v9329_v35 = vld [vmem:[#allocation205_spill] sm:$0xff] }
 0x2c6   :  { %3513 = vst [vmem:[#allocation10 + $0x698] sm:$0xff] %v3225_v46  ;;  %v2595_v61 = vmul.f32 %v7438_v49, %v9325_v42  ;;  %3514 = vst [vmem:[#allocation10 + $0x6a0] sm:$0xff] %v3226_v0  ;;  %v2911_v27 = vmul.f32 %v6596_v59, %v2590_v51  ;;  %v2912_v22 = vmul.f32 %v6600_v11, %v2591_v5  ;;  %v9327_v49 = vld [vmem:[#allocation202_spill] sm:$0xff]  ;;  %v9328_v51 = vld [vmem:[#allocation204_spill] sm:$0xff] }
 0x2c7   :  { %3515 = vst [vmem:[#allocation10 + $0x6a8] sm:$0xff] %v3227_v54  ;;  %v2913_v60 = vmul.f32 %v6604_v56, %v2592_v21  ;;  %v2914_v44 = vmul.f32 %v6606_v38, %v2593_v53  ;;  %3516 = vst [vmem:[#allocation10 + $0x6b0] sm:$0xff] %v3228_v20  ;;  %v2915_v45 = vmul.f32 %v6614_v10, %v2594_v47  ;;  %v9330_v29 = vld [vmem:[#allocation225_spill] sm:$0xff]  ;;  %v9331_v21 = vld [vmem:[#allocation206_spill] sm:$0xff] }
 0x2c8   :  { %3517 = vst [vmem:[#allocation10 + $0x6b8] sm:$0xff] %v3229_v40  ;;  %v2916_v25 = vmul.f32 %v6618_v34, %v2595_v61  ;;  %v2596_v12 = vmul.f32 %v7444_v32, %v9326_v17  ;;  %v2597_v7 = vmul.f32 %v7444_v32, %v9327_v49  ;;  %v3230_v1 = vadd.f32 %v6620_v9, %v2911_v27  ;;  %v9332_v53 = vld [vmem:[#allocation220_spill] sm:$0xff]  ;;  %v9333_v27 = vld [vmem:[#allocation221_spill] sm:$0xff]  ;;  %v9336_v49 = vld [vmem:[#allocation226_spill] sm:$0xff] }
 0x2c9   :  { %v3231_v3 = vadd.f32 %v6624_v63, %v2912_v22  ;;  %v3232_v28 = vadd.f32 %v6626_v16, %v2913_v60  ;;  %v3233_v57 = vadd.f32 %v6628_v6, %v2914_v44  ;;  %v3234_v15 = vadd.f32 %v6630_v43, %v2915_v45  ;;  %v9334_v60 = vld [vmem:[#allocation222_spill] sm:$0xff]  ;;  %v9335_v17 = vld [vmem:[#allocation209_spill] sm:$0xff] }
 0x2ca   :  { %v3235_v31 = vadd.f32 %v6632_v55, %v2916_v25  ;;  %v2598_v26 = vmul.f32 %v7444_v32, %v9328_v51  ;;  %v2599_v5 = vmul.f32 %v7444_v32, %v6174_v23  ;;  %3518 = vst [vmem:[#allocation10 + $0x6c0] sm:$0xff] %v3230_v1  ;;  %v2600_v33 = vmul.f32 %v7444_v32, %v9329_v35  ;;  %v9337_v51 = vld [vmem:[#allocation213_spill] sm:$0xff] }
 0x2cb   :  { %3519 = vst [vmem:[#allocation10 + $0x6c8] sm:$0xff] %v3231_v3  ;;  %3520 = vst [vmem:[#allocation10 + $0x6d0] sm:$0xff] %v3232_v28  ;;  %v2601_v46 = vmul.f32 %v7444_v32, %v9330_v29  ;;  %v2917_v0 = vmul.f32 %v6596_v59, %v2596_v12  ;;  %v2918_v54 = vmul.f32 %v6600_v11, %v2597_v7 }
 0x2cc   :  { %3521 = vst [vmem:[#allocation10 + $0x6d8] sm:$0xff] %v3233_v57  ;;  %3522 = vst [vmem:[#allocation10 + $0x6e0] sm:$0xff] %v3234_v15  ;;  %v2919_v30 = vmul.f32 %v6604_v56, %v2598_v26  ;;  %v2920_v23 = vmul.f32 %v6606_v38, %v2599_v5  ;;  %v2602_v62 = vmul.f32 %v7450_v48, %v9331_v21  ;;  %v9340_v21 = vld [vmem:[#allocation217_spill] sm:$0xff] }
 0x2cd   :  { %3523 = vst [vmem:[#allocation10 + $0x6e8] sm:$0xff] %v3235_v31  ;;  %v2603_v20 = vmul.f32 %v7450_v48, %v9332_v53  ;;  %v2921_v40 = vmul.f32 %v6614_v10, %v2600_v33  ;;  %v2922_v32 = vmul.f32 %v6618_v34, %v2601_v46  ;;  %v3236_v19 = vadd.f32 %v6620_v9, %v2917_v0  ;;  %v9341_v53 = vld [vmem:[#allocation218_spill] sm:$0xff] }
 0x2ce   :  { %v3237_v47 = vadd.f32 %v6624_v63, %v2918_v54  ;;  %v3238_v42 = vadd.f32 %v6626_v16, %v2919_v30  ;;  %v3239_v61 = vadd.f32 %v6628_v6, %v2920_v23  ;;  %v2604_v22 = vmul.f32 %v7450_v48, %v9333_v27  ;;  %v9339_v30 = vld [vmem:[#allocation216_spill] sm:$0xff]  ;;  %v9343_v27 = vld [vmem:[#allocation239_spill] sm:$0xff] }
 0x2cf   :  { %v2605_v44 = vmul.f32 %v7450_v48, %v9334_v60  ;;  %v3240_v45 = vadd.f32 %v6630_v43, %v2921_v40  ;;  %v3241_v25 = vadd.f32 %v6632_v55, %v2922_v32  ;;  %3524 = vst [vmem:[#allocation10 + $0x6f0] sm:$0xff] %v3236_v19  ;;  %v2606_v12 = vmul.f32 %v7450_v48, %v9335_v17  ;;  %v9342_v40 = vld [vmem:[#allocation219_spill] sm:$0xff]  ;;  %v9344_v60 = vld [vmem:[#allocation240_spill] sm:$0xff] }
 0x2d0   :  { %3525 = vst [vmem:[#allocation10 + $0x6f8] sm:$0xff] %v3237_v47  ;;  %v2607_v7 = vmul.f32 %v7450_v48, %v9336_v49  ;;  %3526 = vst [vmem:[#allocation10 + $0x700] sm:$0xff] %v3238_v42  ;;  %v2923_v1 = vmul.f32 %v6596_v59, %v2602_v62  ;;  %v2924_v3 = vmul.f32 %v6600_v11, %v2603_v20  ;;  %v9338_v48 = vld [vmem:[#allocation214_spill] sm:$0xff] }
 0x2d1   :  { %3527 = vst [vmem:[#allocation10 + $0x708] sm:$0xff] %v3239_v61  ;;  %v2925_v28 = vmul.f32 %v6604_v56, %v2604_v22  ;;  %v2926_v57 = vmul.f32 %v6606_v38, %v2605_v44  ;;  %3528 = vst [vmem:[#allocation10 + $0x710] sm:$0xff] %v3240_v45  ;;  %v2927_v15 = vmul.f32 %v6614_v10, %v2606_v12 }
 0x2d2   :  { %3529 = vst [vmem:[#allocation10 + $0x718] sm:$0xff] %v3241_v25  ;;  %v2928_v31 = vmul.f32 %v6618_v34, %v2607_v7  ;;  %v2608_v26 = vmul.f32 %v7456_v14, %v9337_v51  ;;  %v2609_v5 = vmul.f32 %v7456_v14, %v9338_v48  ;;  %v3242_v35 = vadd.f32 %v6620_v9, %v2923_v1  ;;  %v9345_v7 = vld [vmem:[#allocation241_spill] sm:$0xff] }
 0x2d3   :  { %v3243_v33 = vadd.f32 %v6624_v63, %v2924_v3  ;;  %v3244_v29 = vadd.f32 %v6626_v16, %v2925_v28  ;;  %v3245_v46 = vadd.f32 %v6628_v6, %v2926_v57  ;;  %v3246_v0 = vadd.f32 %v6630_v43, %v2927_v15  ;;  %v9346_v3 = vld [vmem:[#allocation244_spill] sm:$0xff] }
 0x2d4   :  { %v3247_v54 = vadd.f32 %v6632_v55, %v2928_v31  ;;  %v2610_v23 = vmul.f32 %v7456_v14, %v9339_v30  ;;  %v2611_v62 = vmul.f32 %v7456_v14, %v9340_v21  ;;  %3530 = vst [vmem:[#allocation10 + $0x720] sm:$0xff] %v3242_v35  ;;  %v2612_v20 = vmul.f32 %v7456_v14, %v9341_v53  ;;  %v9347_v31 = vld [vmem:[#allocation245_spill] sm:$0xff] }
 0x2d5   :  { %3531 = vst [vmem:[#allocation10 + $0x728] sm:$0xff] %v3243_v33  ;;  %3532 = vst [vmem:[#allocation10 + $0x730] sm:$0xff] %v3244_v29  ;;  %v2613_v32 = vmul.f32 %v7456_v14, %v9342_v40  ;;  %v2929_v19 = vmul.f32 %v6596_v59, %v2608_v26  ;;  %v2930_v47 = vmul.f32 %v6600_v11, %v2609_v5  ;;  %v9348_v26 = vld [vmem:[#allocation246_spill] sm:$0xff] }
 0x2d6   :  { %3533 = vst [vmem:[#allocation10 + $0x738] sm:$0xff] %v3245_v46  ;;  %3534 = vst [vmem:[#allocation10 + $0x740] sm:$0xff] %v3246_v0  ;;  %v2931_v42 = vmul.f32 %v6604_v56, %v2610_v23  ;;  %v2932_v61 = vmul.f32 %v6606_v38, %v2611_v62  ;;  %v2614_v22 = vmul.f32 %v7462_v36, %v9343_v27  ;;  %v2215_v27 = vpop.xlane.xlu1 %2214 }
 0x2d7   :  { %3535 = vst [vmem:[#allocation10 + $0x748] sm:$0xff] %v3247_v54  ;;  %v2615_v44 = vmul.f32 %v7462_v36, %v9344_v60  ;;  %v2933_v45 = vmul.f32 %v6614_v10, %v2612_v20  ;;  %v2934_v14 = vmul.f32 %v6618_v34, %v2613_v32  ;;  %v3248_v25 = vadd.f32 %v6620_v9, %v2929_v19  ;;  %v9349_v54 = vld [vmem:[#allocation229_spill] sm:$0xff]  ;;  %v9351_v19 = vld [vmem:[#allocation231_spill] sm:$0xff] }
 0x2d8   :  { %v3249_v17 = vadd.f32 %v6624_v63, %v2930_v47  ;;  %v3250_v12 = vadd.f32 %v6626_v16, %v2931_v42  ;;  %v3251_v49 = vadd.f32 %v6628_v6, %v2932_v61  ;;  %v2616_v1 = vmul.f32 %v7462_v36, %v9345_v7  ;;  %v9352_v42 = vld [vmem:[#allocation234_spill] sm:$0xff] }
 0x2d9   :  { %v2617_v28 = vmul.f32 %v7462_v36, %v9346_v3  ;;  %v3252_v57 = vadd.f32 %v6630_v43, %v2933_v45  ;;  %v3253_v15 = vadd.f32 %v6632_v55, %v2934_v14  ;;  %3536 = vst [vmem:[#allocation10 + $0x750] sm:$0xff] %v3248_v25  ;;  %v2618_v51 = vmul.f32 %v7462_v36, %v9347_v31  ;;  %v2222_v31 = vpop.xlane.xlu0 %2221 }
 0x2da   :  { %3537 = vst [vmem:[#allocation10 + $0x758] sm:$0xff] %v3249_v17  ;;  %v2619_v48 = vmul.f32 %v7462_v36, %v9348_v26  ;;  %3538 = vst [vmem:[#allocation10 + $0x760] sm:$0xff] %v3250_v12  ;;  %v2935_v5 = vmul.f32 %v6596_v59, %v2614_v22  ;;  %v2936_v35 = vmul.f32 %v6600_v11, %v2615_v44  ;;  %v9350_v36 = vld [vmem:[#allocation230_spill] sm:$0xff]  ;;  %v9353_v22 = vld [vmem:[#allocation235_spill] sm:$0xff]  ;;  %v2276_v26 = vmul.f32 0.0013020834, %v2222_v31 }
 0x2db   :  { %3539 = vst [vmem:[#allocation10 + $0x768] sm:$0xff] %v3251_v49  ;;  %v2937_v33 = vmul.f32 %v6604_v56, %v2616_v1  ;;  %v2938_v29 = vmul.f32 %v6606_v38, %v2617_v28  ;;  %3540 = vst [vmem:[#allocation10 + $0x770] sm:$0xff] %v3252_v57  ;;  %v2939_v46 = vmul.f32 %v6614_v10, %v2618_v51  ;;  %v9354_v44 = vld [vmem:[#allocation236_spill] sm:$0xff]  ;;  %v2322_v49 = vadd.f32 1e-12, %v7394_v37  ;;  %v2229_v51 = vpop.xlane.xlu1 %2228 }
 0x2dc   :  { %3541 = vst [vmem:[#allocation10 + $0x778] sm:$0xff] %v3253_v15  ;;  %v2940_v0 = vmul.f32 %v6618_v34, %v2619_v48  ;;  %v2620_v30 = vmul.f32 %v7474_v24, %v9349_v54  ;;  %v2621_v23 = vmul.f32 %v7474_v24, %v9350_v36  ;;  %v3254_v21 = vadd.f32 %v6620_v9, %v2935_v5 }
 0x2dd   :  { %v3255_v62 = vadd.f32 %v6624_v63, %v2936_v35  ;;  %v3256_v53 = vadd.f32 %v6626_v16, %v2937_v33  ;;  %v3257_v20 = vadd.f32 %v6628_v6, %v2938_v29  ;;  %v3258_v40 = vadd.f32 %v6630_v43, %v2939_v46  ;;  %v3701_v33 = vpop.eup %3700  ;;  %v9355_v29 = vld [vmem:[#allocation253_spill] sm:$0xff] }
 0x2de   :  { %v3259_v32 = vadd.f32 %v6632_v55, %v2940_v0  ;;  %v2622_v47 = vmul.f32 %v7474_v24, %v9351_v19  ;;  %v2623_v61 = vmul.f32 %v7474_v24, %v9352_v42  ;;  %3542 = vst [vmem:[#allocation10 + $0x780] sm:$0xff] %v3254_v21  ;;  %v2624_v60 = vmul.f32 %v7474_v24, %v9353_v22  ;;  %v9356_v0 = vld [vmem:[#allocation254_spill] sm:$0xff]  ;;  %v9360_v22 = vld [vmem:[#allocation247_spill] sm:$0xff] }
 0x2df   :  { %3543 = vst [vmem:[#allocation10 + $0x788] sm:$0xff] %v3255_v62  ;;  %3544 = vst [vmem:[#allocation10 + $0x790] sm:$0xff] %v3256_v53  ;;  %v2625_v45 = vmul.f32 %v7474_v24, %v9354_v44  ;;  %v2941_v14 = vmul.f32 %v6596_v59, %v2620_v30  ;;  %v2942_v25 = vmul.f32 %v6600_v11, %v2621_v23  ;;  %v2275_v15 = vmul.f32 0.0013020834, %v2215_v27  ;;  %v9357_v30 = vld [vmem:[#allocation255_spill] sm:$0xff]  ;;  %v9358_v23 = vld [vmem:[#allocation257_spill] sm:$0xff]  ;;  %v3703_v62 = vpop.eup %3702 }
 0x2e0   :  { %3545 = vst [vmem:[#allocation10 + $0x798] sm:$0xff] %v3257_v20  ;;  %3546 = vst [vmem:[#allocation10 + $0x7a0] sm:$0xff] %v3258_v40  ;;  %v2943_v17 = vmul.f32 %v6604_v56, %v2622_v47  ;;  %v2944_v12 = vmul.f32 %v6606_v38, %v2623_v61  ;;  %v2945_v7 = vmul.f32 %v6614_v10, %v2624_v60  ;;  %3704 = vrsqrt.f32 %v2322_v49  ;;  %v9359_v53 = vld [vmem:[#allocation272_spill] sm:$0xff] }
 0x2e1   :  { %3547 = vst [vmem:[#allocation10 + $0x7a8] sm:$0xff] %v3259_v32  ;;  %v2946_v1 = vmul.f32 %v6618_v34, %v2625_v45  ;;  %v3260_v24 = vadd.f32 %v6620_v9, %v2941_v14  ;;  %v3261_v3 = vadd.f32 %v6624_v63, %v2942_v25  ;;  %v2323_v48 = vadd.f32 1e-12, %v2275_v15  ;;  %v9361_v44 = vld [vmem:[#allocation248_spill] sm:$0xff] }
 0x2e2   :  { %v3262_v28 = vadd.f32 %v6626_v16, %v2943_v17  ;;  %v3263_v57 = vadd.f32 %v6628_v6, %v2944_v12  ;;  %v3264_v39 = vadd.f32 %v6630_v43, %v2945_v7  ;;  %v2277_v5 = vmul.f32 0.0013020834, %v2229_v51  ;;  %v9363_v51 = vld [vmem:[#allocation261_spill] sm:$0xff] }
 0x2e3   :  { %v3265_v37 = vadd.f32 %v6632_v55, %v2946_v1  ;;  %3548 = vst [vmem:[#allocation10 + $0x7b0] sm:$0xff] %v3260_v24  ;;  %3549 = vst [vmem:[#allocation10 + $0x7b8] sm:$0xff] %v3261_v3  ;;  %v2324_v35 = vadd.f32 1e-12, %v2276_v26  ;;  %3706 = vrsqrt.f32 %v2323_v48  ;;  %v2626_v46 = vmul.f32 %v3701_v33, %v9355_v29  ;;  %v9362_v1 = vld [vmem:[#allocation249_spill] sm:$0xff]  ;;  %v9364_v26 = vld [vmem:[#allocation250_spill] sm:$0xff] }
 0x2e4   :  { %3550 = vst [vmem:[#allocation10 + $0x7c0] sm:$0xff] %v3262_v28  ;;  %3551 = vst [vmem:[#allocation10 + $0x7c8] sm:$0xff] %v3263_v57  ;;  %v2325_v13 = vadd.f32 1e-12, %v2277_v5  ;;  %v2627_v54 = vmul.f32 %v3701_v33, %v9356_v0  ;;  %v2628_v36 = vmul.f32 %v3701_v33, %v9357_v30  ;;  %v2629_v21 = vmul.f32 %v3701_v33, %v9358_v23 }
 0x2e5   :  { %3552 = vst [vmem:[#allocation10 + $0x7d0] sm:$0xff] %v3264_v39  ;;  %3553 = vst [vmem:[#allocation10 + $0x7d8] sm:$0xff] %v3265_v37  ;;  %3708 = vrsqrt.f32 %v2324_v35  ;;  %v2630_v20 = vmul.f32 %v3701_v33, %v9359_v53  ;;  %v2631_v40 = vmul.f32 %v3701_v33, %v6400_v2  ;;  %v2947_v32 = vmul.f32 %v6596_v59, %v2626_v46  ;;  %v9365_v46 = vld [vmem:[#allocation251_spill] sm:$0xff] }
 0x2e6   :  { %3710 = vrsqrt.f32 %v2325_v13  ;;  %v2948_v19 = vmul.f32 %v6600_v11, %v2627_v54  ;;  %v2949_v47 = vmul.f32 %v6604_v56, %v2628_v36  ;;  %v2950_v42 = vmul.f32 %v6606_v38, %v2629_v21  ;;  %v9366_v54 = vld [vmem:[#allocation265_spill] sm:$0xff] }
 0x2e7   :  { %v2951_v61 = vmul.f32 %v6614_v10, %v2630_v20  ;;  %v2952_v27 = vmul.f32 %v6618_v34, %v2631_v40  ;;  %v2632_v60 = vmul.f32 %v3703_v62, %v9360_v22  ;;  %v2633_v45 = vmul.f32 %v3703_v62, %v9361_v44 }
 0x2e8   :  { %v3266_v2 = vadd.f32 %v6620_v9, %v2947_v32  ;;  %v3267_v25 = vadd.f32 %v6624_v63, %v2948_v19  ;;  %v3268_v17 = vadd.f32 %v6626_v16, %v2949_v47  ;;  %v3269_v12 = vadd.f32 %v6628_v6, %v2950_v42 }
 0x2e9   :  { %v3270_v49 = vadd.f32 %v6630_v43, %v2951_v61  ;;  %v3271_v7 = vadd.f32 %v6632_v55, %v2952_v27  ;;  %v2634_v24 = vmul.f32 %v3703_v62, %v9362_v1  ;;  %v2635_v3 = vmul.f32 %v3703_v62, %v6404_v4 }
 0x2ea   :  { %3554 = vst [vmem:[#allocation10 + $0x7e0] sm:$0xff] %v3266_v2  ;;  %3555 = vst [vmem:[#allocation10 + $0x7e8] sm:$0xff] %v3267_v25  ;;  %v2636_v28 = vmul.f32 %v3703_v62, %v6416_v41  ;;  %v2637_v57 = vmul.f32 %v3703_v62, %v6434_v18  ;;  %v2953_v15 = vmul.f32 %v6596_v59, %v2632_v60 }
 0x2eb   :  { %3556 = vst [vmem:[#allocation10 + $0x7f0] sm:$0xff] %v3268_v17  ;;  %3557 = vst [vmem:[#allocation10 + $0x7f8] sm:$0xff] %v3269_v12  ;;  %v2954_v31 = vmul.f32 %v6600_v11, %v2633_v45  ;;  %v2955_v39 = vmul.f32 %v6604_v56, %v2634_v24  ;;  %v2956_v37 = vmul.f32 %v6606_v38, %v2635_v3  ;;  %v9368_v17 = vld [vmem:[#allocation252_spill] sm:$0xff] }
 0x2ec   :  { %3558 = vst [vmem:[#allocation10 + $0x800] sm:$0xff] %v3270_v49  ;;  %3559 = vst [vmem:[#allocation10 + $0x808] sm:$0xff] %v3271_v7  ;;  %v2957_v5 = vmul.f32 %v6614_v10, %v2636_v28  ;;  %v2958_v41 = vmul.f32 %v6618_v34, %v2637_v57  ;;  %v3272_v18 = vadd.f32 %v6620_v9, %v2953_v15  ;;  %v9370_v7 = vld [vmem:[#allocation273_spill] sm:$0xff]  ;;  %v9371_v57 = vld [vmem:[#allocation260_spill] sm:$0xff] }
 0x2ed   :  { %v3705_v14 = vpop.eup %3704  ;;  %v3273_v35 = vadd.f32 %v6624_v63, %v2954_v31  ;;  %v3274_v33 = vadd.f32 %v6626_v16, %v2955_v39  ;;  %v3275_v29 = vadd.f32 %v6628_v6, %v2956_v37  ;;  %v9372_v31 = vld [vmem:[#allocation262_spill] sm:$0xff] }
 0x2ee   :  { %v2638_v4 = vmul.f32 %v3705_v14, %v9363_v51  ;;  %v2639_v48 = vmul.f32 %v3705_v14, %v9364_v26  ;;  %v2640_v0 = vmul.f32 %v3705_v14, %v9365_v46  ;;  %v2641_v30 = vmul.f32 %v3705_v14, %v9366_v54  ;;  %3560 = vst [vmem:[#allocation10 + $0x810] sm:$0xff] %v3272_v18  ;;  %v9375_v46 = vld [vmem:[#allocation274_spill] sm:$0xff]  ;;  %v9376_v54 = vld [vmem:[#allocation276_spill] sm:$0xff] }
 0x2ef   :  { %v3276_v36 = vadd.f32 %v6630_v43, %v2957_v5  ;;  %v3277_v23 = vadd.f32 %v6632_v55, %v2958_v41  ;;  %3561 = vst [vmem:[#allocation10 + $0x818] sm:$0xff] %v3273_v35  ;;  %v2642_v21 = vmul.f32 %v3705_v14, %v6454_v50  ;;  %v2643_v62 = vmul.f32 %v3705_v14, %v6480_v8  ;;  %v9367_v8 = vld [vmem:[#allocation266_spill] sm:$0xff]  ;;  %v9373_v41 = vld [vmem:[#allocation263_spill] sm:$0xff]  ;;  %v9374_v35 = vld [vmem:[#allocation264_spill] sm:$0xff] }
 0x2f0   :  { %v3707_v13 = vpop.eup %3706  ;;  %3562 = vst [vmem:[#allocation10 + $0x820] sm:$0xff] %v3274_v33  ;;  %3563 = vst [vmem:[#allocation10 + $0x828] sm:$0xff] %v3275_v29  ;;  %v2959_v53 = vmul.f32 %v6596_v59, %v2638_v4  ;;  %v2960_v20 = vmul.f32 %v6600_v11, %v2639_v48  ;;  %v2961_v40 = vmul.f32 %v6604_v56, %v2640_v0 }
 0x2f1   :  { %v2962_v32 = vmul.f32 %v6606_v38, %v2641_v30  ;;  %3564 = vst [vmem:[#allocation10 + $0x830] sm:$0xff] %v3276_v36  ;;  %3565 = vst [vmem:[#allocation10 + $0x838] sm:$0xff] %v3277_v23  ;;  %v2963_v47 = vmul.f32 %v6614_v10, %v2642_v21  ;;  %v2964_v42 = vmul.f32 %v6618_v34, %v2643_v62 }
 0x2f2   :  { %v3709_v19 = vpop.eup %3708  ;;  %v2644_v50 = vmul.f32 %v3707_v13, %v6462_v52  ;;  %v2645_v61 = vmul.f32 %v3707_v13, %v9367_v8  ;;  %v3278_v27 = vadd.f32 %v6620_v9, %v2959_v53  ;;  %v3279_v22 = vadd.f32 %v6624_v63, %v2960_v20  ;;  %v9369_v52 = vld [vmem:[#allocation259_spill] sm:$0xff] }
 0x2f3   :  { %v3280_v60 = vadd.f32 %v6626_v16, %v2961_v40  ;;  %v3281_v44 = vadd.f32 %v6628_v6, %v2962_v32  ;;  %v3711_v45 = vpop.eup %3710  ;;  %v3282_v14 = vadd.f32 %v6630_v43, %v2963_v47  ;;  %v3283_v2 = vadd.f32 %v6632_v55, %v2964_v42  ;;  %v9377_v40 = vld [vmem:[#allocation275_spill] sm:$0xff] }
 0x2f4   :  { %v2646_v25 = vmul.f32 %v3707_v13, %v6472_v58  ;;  %v2647_v12 = vmul.f32 %v3707_v13, %v9368_v17  ;;  %3566 = vst [vmem:[#allocation10 + $0x840] sm:$0xff] %v3278_v27  ;;  %3567 = vst [vmem:[#allocation10 + $0x848] sm:$0xff] %v3279_v22  ;;  %v2648_v49 = vmul.f32 %v3707_v13, %v9369_v52  ;;  %v9378_v47 = vld [vmem:[#allocation267_spill] sm:$0xff] }
 0x2f5   :  { %3568 = vst [vmem:[#allocation10 + $0x850] sm:$0xff] %v3280_v60  ;;  %3569 = vst [vmem:[#allocation10 + $0x858] sm:$0xff] %v3281_v44  ;;  %v2649_v1 = vmul.f32 %v3707_v13, %v9370_v7  ;;  %v2965_v24 = vmul.f32 %v6596_v59, %v2644_v50  ;;  %v2966_v3 = vmul.f32 %v6600_v11, %v2645_v61  ;;  %v9379_v60 = vld [vmem:[#allocation268_spill] sm:$0xff] }
 0x2f6   :  { %3570 = vst [vmem:[#allocation10 + $0x860] sm:$0xff] %v3282_v14  ;;  %3571 = vst [vmem:[#allocation10 + $0x868] sm:$0xff] %v3283_v2  ;;  %v2967_v28 = vmul.f32 %v6604_v56, %v2646_v25  ;;  %v2968_v58 = vmul.f32 %v6606_v38, %v2647_v12  ;;  %v2650_v15 = vmul.f32 %v3709_v19, %v9371_v57  ;;  %v9380_v14 = vld [vmem:[#allocation277_spill] sm:$0xff]  ;;  %v9381_v25 = vld [vmem:[#allocation278_spill] sm:$0xff] }
 0x2f7   :  { %v2651_v39 = vmul.f32 %v3709_v19, %v9372_v31  ;;  %v2969_v37 = vmul.f32 %v6614_v10, %v2648_v49  ;;  %v2970_v51 = vmul.f32 %v6618_v34, %v2649_v1  ;;  %v3284_v4 = vadd.f32 %v6620_v9, %v2965_v24  ;;  %v9382_v12 = vld [vmem:[#allocation279_spill] sm:$0xff] }
 0x2f8   :  { %v3285_v26 = vadd.f32 %v6624_v63, %v2966_v3  ;;  %v3286_v48 = vadd.f32 %v6626_v16, %v2967_v28  ;;  %v3287_v5 = vadd.f32 %v6628_v6, %v2968_v58  ;;  %v2652_v18 = vmul.f32 %v3709_v19, %v9373_v41 }
 0x2f9   :  { %v2653_v13 = vmul.f32 %v3709_v19, %v9374_v35  ;;  %v3288_v33 = vadd.f32 %v6630_v43, %v2969_v37  ;;  %v3289_v29 = vadd.f32 %v6632_v55, %v2970_v51  ;;  %3572 = vst [vmem:[#allocation10 + $0x870] sm:$0xff] %v3284_v4  ;;  %v2654_v0 = vmul.f32 %v3709_v19, %v9375_v46 }
 0x2fa   :  { %3573 = vst [vmem:[#allocation10 + $0x878] sm:$0xff] %v3285_v26  ;;  %v2655_v30 = vmul.f32 %v3709_v19, %v9376_v54  ;;  %3574 = vst [vmem:[#allocation10 + $0x880] sm:$0xff] %v3286_v48  ;;  %v2971_v36 = vmul.f32 %v6596_v59, %v2650_v15  ;;  %v2972_v23 = vmul.f32 %v6600_v11, %v2651_v39 }
 0x2fb   :  { %3575 = vst [vmem:[#allocation10 + $0x888] sm:$0xff] %v3287_v5  ;;  %v2973_v21 = vmul.f32 %v6604_v56, %v2652_v18  ;;  %v2974_v62 = vmul.f32 %v6606_v38, %v2653_v13  ;;  %3576 = vst [vmem:[#allocation10 + $0x890] sm:$0xff] %v3288_v33  ;;  %v2975_v53 = vmul.f32 %v6614_v10, %v2654_v0 }
 0x2fc   :  { %3577 = vst [vmem:[#allocation10 + $0x898] sm:$0xff] %v3289_v29  ;;  %v2976_v20 = vmul.f32 %v6618_v34, %v2655_v30  ;;  %v2656_v32 = vmul.f32 %v3711_v45, %v9377_v40  ;;  %v2657_v19 = vmul.f32 %v3711_v45, %v9378_v47  ;;  %v3290_v42 = vadd.f32 %v6620_v9, %v2971_v36 }
 0x2fd   :  { %v3291_v50 = vadd.f32 %v6624_v63, %v2972_v23  ;;  %v3292_v8 = vadd.f32 %v6626_v16, %v2973_v21  ;;  %v3293_v61 = vadd.f32 %v6628_v6, %v2974_v62  ;;  %v3294_v27 = vadd.f32 %v6630_v43, %v2975_v53 }
 0x2fe   :  { %v3295_v22 = vadd.f32 %v6632_v55, %v2976_v20  ;;  %v2658_v44 = vmul.f32 %v3711_v45, %v9379_v60  ;;  %v2659_v2 = vmul.f32 %v3711_v45, %v9380_v14  ;;  %3578 = vst [vmem:[#allocation10 + $0x8a0] sm:$0xff] %v3290_v42  ;;  %v2660_v17 = vmul.f32 %v3711_v45, %v9381_v25 }
 0x2ff   :  { %3579 = vst [vmem:[#allocation10 + $0x8a8] sm:$0xff] %v3291_v50  ;;  %3580 = vst [vmem:[#allocation10 + $0x8b0] sm:$0xff] %v3292_v8  ;;  %v2661_v52 = vmul.f32 %v3711_v45, %v9382_v12  ;;  %v2977_v49 = vmul.f32 %v6596_v59, %v2656_v32  ;;  %v2978_v7 = vmul.f32 %v6600_v11, %v2657_v19 }
 0x300   :  { %3581 = vst [vmem:[#allocation10 + $0x8b8] sm:$0xff] %v3293_v61  ;;  %3582 = vst [vmem:[#allocation10 + $0x8c0] sm:$0xff] %v3294_v27  ;;  %v2979_v1 = vmul.f32 %v6604_v56, %v2658_v44  ;;  %v2980_v24 = vmul.f32 %v6606_v38, %v2659_v2  ;;  %v2981_v3 = vmul.f32 %v6614_v10, %v2660_v17 }
 0x301   :  { %3583 = vst [vmem:[#allocation10 + $0x8c8] sm:$0xff] %v3295_v22  ;;  %v2982_v28 = vmul.f32 %v6618_v34, %v2661_v52  ;;  %v3296_v58 = vadd.f32 %v6620_v9, %v2977_v49  ;;  %v3297_v45 = vadd.f32 %v6624_v63, %v2978_v7 }
 0x302   :  { %v3298_v59 = vadd.f32 %v6626_v16, %v2979_v1  ;;  %v3299_v11 = vadd.f32 %v6628_v6, %v2980_v24  ;;  %v3300_v57 = vadd.f32 %v6630_v43, %v2981_v3 }
 0x303   :  { %v3301_v56 = vadd.f32 %v6632_v55, %v2982_v28  ;;  %3584 = vst [vmem:[#allocation10 + $0x8d0] sm:$0xff] %v3296_v58  ;;  %3585 = vst [vmem:[#allocation10 + $0x8d8] sm:$0xff] %v3297_v45 }
 0x304   :  { %3586 = vst [vmem:[#allocation10 + $0x8e0] sm:$0xff] %v3298_v59  ;;  %3587 = vst [vmem:[#allocation10 + $0x8e8] sm:$0xff] %v3299_v11 }
 0x305   :  { %3588 = vst [vmem:[#allocation10 + $0x8f0] sm:$0xff] %v3300_v57  ;;  %3589 = vst [vmem:[#allocation10 + $0x8f8] sm:$0xff] %v3301_v56 }
 0x306   :  { %3803 = shalt.err (!%p3800_p10)
}
 0x307   :  { %3601 = dma.vmem_to_hbm [thread:$0]  %s3596_s3, 36864, %s7859_s4, [#allocation4], %s3822_s20, %s3822_s20, %s3823_s21  }
 0x308   :  { %3818 = dma.done.wait [#allocation4], 36864  }
 0x309   :  { %3819 = vsyncadd [#allocation4], 4294930432 }
 0x30a   :  { %3605 = vsyncpa [#allocation3], 1 }
 0x30b   :  { %3606 = vsyncpa [#allocation6], 1 }
 0x30c   :  { %3607 = vsyncpa [#allocation9], 1 }
 0x30d   :  { %3608 = vsyncpa [#allocation4], 1 }

</bundles_post_ra>
